<compile_context>
chip_gen: v5e
topology: v5e:2x2
jax: 0.10.0
libtpu: 0.0.40
codegen_flags: <defaults>
</compile_context>

<pallas_src>
import functools
import math

import jax
import jax.numpy as jnp
import numpy as np
from jax import lax
from jax.experimental import pallas as pl
from jax.experimental.pallas import tpu as pltpu

# Small synthetic sensor size (W, H) for the self-contained test; the real
# module uses (256, 160).  The kernels are written for the production size too
# (the fc weight is int8 and streamed through a K-grid, never VMEM-resident).
SENSOR_SIZE = (64, 32)
INPUT_CHANNELS = 6
FEATURE_DIM = 512
RELATIVE_GOAL_DIM = 3
ACTION_DIM = 2
HIDDEN1 = 256
HIDDEN2 = 128

_VMEM_LIMIT = 40 * 1024 * 1024  # comfortably under v7x's 64 MiB physical VMEM


# ----------------------------- Conv (fused im2col) ---------------------------

def _conv_relu_kernel(x_ref, w_ref, b_ref, o_ref, acc_ref, *, KH, KWg, stride, Ho, Wo):
    """Fused im2col + matmul + bias + ReLU for one image.

    x_ref  : (1, Hq, s, Wq, s*Cin) bf16  phase-decomposed, zero-padded input
    w_ref  : (KH, KW//s, s*Cin, Cout) bf16  phase-grouped weights (resident)
    b_ref  : (1, Cout) f32
    o_ref  : (1, Ho*Wo, Cout) bf16
    acc_ref: (Ho*Wo, Cout) f32 VMEM scratch accumulator
    """
    s = stride
    first = True
    for kh in range(KH):
        ph, th = divmod(kh, s)
        for pw in range(KWg):
            # Full-lane contiguous tap: all s col-phases x Cin channels at once.
            tap = x_ref[0, pl.ds(ph, Ho), th, pl.ds(pw, Wo), :]       # (Ho, Wo, s*Cin)
            lhs = tap.reshape(Ho * Wo, tap.shape[-1])
            contrib = jnp.dot(lhs, w_ref[kh, pw], preferred_element_type=jnp.float32)
            if first:
                acc_ref[...] = contrib
                first = False
            else:
                acc_ref[...] += contrib
    o_ref[0] = jnp.maximum(acc_ref[...] + b_ref[...], 0.0).astype(o_ref.dtype)


def conv2d_relu(x_nhwc, w_grouped, b, *, stride, padding):
    """Conv2d + ReLU with im2col fused into the Pallas kernel (per-image grid).

    x_nhwc    : (B, H, W, Cin) bf16
    w_grouped : (KH, KW//s, s*Cin, Cout) bf16 (phase-grouped at init)
    """
    B, H, W, Cin = x_nhwc.shape
    KH, KWg, sCin, Cout = w_grouped.shape
    s = stride
    KW = KWg * s
    assert sCin == s * Cin
    Ho = (H + 2 * padding - KH) // s + 1
    Wo = (W + 2 * padding - KW) // s + 1

    # Phase-decomposed padded extents (multiples of the stride).
    Hq = Ho + (KH - 1) // s
    Wq = Wo + (KW - 1) // s
    Hp, Wp = s * Hq, s * Wq
    xp = jnp.pad(
        x_nhwc,
        ((0, 0),
         (padding, max(0, Hp - H - padding)),
         (padding, max(0, Wp - W - padding)),
         (0, 0)),
    )[:, :Hp, :Wp, :]
    # (B,Hp,Wp,C) -> (B,Hq,s,Wq,s*C): xr[b,p,t,q,r*C+c] == xp[b,s*p+t,s*q+r,c]
    xr = xp.reshape(B, Hq, s, Wq, sCin)

    kernel = functools.partial(_conv_relu_kernel, KH=KH, KWg=KWg, stride=s,
                               Ho=Ho, Wo=Wo)
    out = pl.pallas_call(
        kernel,
        out_shape=jax.ShapeDtypeStruct((B, Ho * Wo, Cout), jnp.bfloat16),
        grid=(B,),
        in_specs=[
            pl.BlockSpec((1, Hq, s, Wq, sCin), lambda bi: (bi, 0, 0, 0, 0)),
            pl.BlockSpec((KH, KWg, sCin, Cout), lambda bi: (0, 0, 0, 0)),
            pl.BlockSpec((1, Cout), lambda bi: (0, 0)),
        ],
        out_specs=pl.BlockSpec((1, Ho * Wo, Cout), lambda bi: (bi, 0, 0)),
        scratch_shapes=[pltpu.VMEM((Ho * Wo, Cout), jnp.float32)],
        compiler_params=pltpu.CompilerParams(
            dimension_semantics=("parallel",),
            vmem_limit_bytes=_VMEM_LIMIT,
        ),
    )(xr, w_grouped, b.reshape(1, Cout))
    return out.reshape(B, Ho, Wo, Cout)


# ------------------------- Fused policy head kernel --------------------------

def _policy_head_kernel(x_ref, fcw_ref, fcs_ref, fcb_ref, g_ref,
                        w1f_ref, w1g_ref, b1_ref,
                        w2_ref, b2_ref, w3_ref, b3_ref, ls_ref,
                        mean_ref, std_ref, acc_ref):
    """fc (int8 weight, K-streamed) -> ReLU -> p1(split feat/goal) -> p2 -> p3 -> std."""
    k = pl.program_id(1)

    @pl.when(k == 0)
    def _():
        acc_ref[...] = jnp.zeros_like(acc_ref)

    # Stream the big fc weight (int8 -> bf16 on the fly; acc stays f32).
    acc_ref[...] += jnp.dot(x_ref[...], fcw_ref[...].astype(jnp.bfloat16),
                            preferred_element_type=jnp.float32)

    @pl.when(k == pl.num_programs(1) - 1)
    def _():
        # Per-column dequant scale applied once, in the epilogue.
        feat = jnp.maximum(acc_ref[...] * fcs_ref[...] + fcb_ref[...], 0.0)   # (tm, 512)
        h = jnp.dot(feat.astype(jnp.bfloat16), w1f_ref[...],
                    preferred_element_type=jnp.float32)
        h = h + jnp.dot(g_ref[...], w1g_ref[...],
                        preferred_element_type=jnp.float32)                   # split-K p1
        h = jnp.maximum(h + b1_ref[...], 0.0)                                 # (tm, 256)
        h = jnp.maximum(
            jnp.dot(h.astype(jnp.bfloat16), w2_ref[...],
                    preferred_element_type=jnp.float32) + b2_ref[...], 0.0)   # (tm, 128)
        mean = jnp.dot(h.astype(jnp.bfloat16), w3_ref[...],
                       preferred_element_type=jnp.float32) + b3_ref[...]      # (tm, A)
        mean_ref[...] = mean
        std_ref[...] = jnp.exp(jnp.clip(ls_ref[...], -20.0, 2.0))


def _pick_k_tile(K):
    for t in (8192, 4096, 2048, 1024, 512, 256, 128):
        if K % t == 0 and K > t:
            return t
    return K


def policy_head(x_flat, goal, params):
    """x_flat: (B, Kfc) bf16 (NHWC flatten);  goal: (B, 3) f32."""
    B, Kfc = x_flat.shape
    Bp = ((B + 15) // 16) * 16                 # pad M to bf16 sublane-tile multiple
    tm = Bp if Bp <= 256 else 256              # M tile (bounds VMEM at large batch)
    Bp = ((Bp + tm - 1) // tm) * tm
    if Bp != B:
        x_flat = jnp.pad(x_flat, ((0, Bp - B), (0, 0)))
        goal = jnp.pad(goal, ((0, Bp - B), (0, 0)))
    tk = _pick_k_tile(Kfc)
    grid = (Bp // tm, Kfc // tk)

    mean_p, std = pl.pallas_call(
        _policy_head_kernel,
        out_shape=(
            jax.ShapeDtypeStruct((Bp, ACTION_DIM), jnp.float32),
            jax.ShapeDtypeStruct((1, ACTION_DIM), jnp.float32),
        ),
        grid=grid,
        in_specs=[
            pl.BlockSpec((tm, tk), lambda i, k: (i, k)),                       # conv features (bf16)
            pl.BlockSpec((tk, FEATURE_DIM), lambda i, k: (k, 0)),              # fc_w (int8, streamed)
            pl.BlockSpec((1, FEATURE_DIM), lambda i, k: (0, 0)),               # fc per-col scale
            pl.BlockSpec((1, FEATURE_DIM), lambda i, k: (0, 0)),               # fc_b
            pl.BlockSpec((tm, RELATIVE_GOAL_DIM), lambda i, k: (i, 0)),        # relative goal
            pl.BlockSpec((FEATURE_DIM, HIDDEN1), lambda i, k: (0, 0)),         # p1_w[:512] (bf16)
            pl.BlockSpec((RELATIVE_GOAL_DIM, HIDDEN1), lambda i, k: (0, 0)),   # p1_w[512:] (f32)
            pl.BlockSpec((1, HIDDEN1), lambda i, k: (0, 0)),                   # p1_b
            pl.BlockSpec((HIDDEN1, HIDDEN2), lambda i, k: (0, 0)),             # p2_w (bf16)
            pl.BlockSpec((1, HIDDEN2), lambda i, k: (0, 0)),                   # p2_b
            pl.BlockSpec((HIDDEN2, ACTION_DIM), lambda i, k: (0, 0)),          # p3_w (bf16)
            pl.BlockSpec((1, ACTION_DIM), lambda i, k: (0, 0)),                # p3_b
            pl.BlockSpec((1, ACTION_DIM), lambda i, k: (0, 0)),                # log_std
        ],
        out_specs=(
            pl.BlockSpec((tm, ACTION_DIM), lambda i, k: (i, 0)),
            pl.BlockSpec((1, ACTION_DIM), lambda i, k: (0, 0)),
        ),
        scratch_shapes=[pltpu.VMEM((tm, FEATURE_DIM), jnp.float32)],
        compiler_params=pltpu.CompilerParams(
            dimension_semantics=("parallel", "arbitrary"),
            vmem_limit_bytes=_VMEM_LIMIT,
        ),
    )(
        x_flat,
        params["fc_wq"], params["fc_scale"], params["fc_b"].reshape(1, FEATURE_DIM),
        goal,
        params["p1_wf"], params["p1_wg"], params["p1_b"].reshape(1, HIDDEN1),
        params["p2_w"], params["p2_b"].reshape(1, HIDDEN2),
        params["p3_w"], params["p3_b"].reshape(1, ACTION_DIM),
        params["log_std"].reshape(1, ACTION_DIM),
    )
    return mean_p[:B], std.reshape(ACTION_DIM)


# ----------------------------- Parameter init --------------------------------

def _init_linear(key, fan_in, fan_out):
    k1, k2 = jax.random.split(key)
    bound = 1.0 / math.sqrt(fan_in)
    w = jax.random.uniform(k1, (fan_in, fan_out), jnp.float32, -bound, bound)
    b = jax.random.uniform(k2, (fan_out,), jnp.float32, -bound, bound)
    return w, b


def _init_conv(key, kh, kw, cin, cout):
    k1, k2 = jax.random.split(key)
    fan_in = kh * kw * cin
    bound = 1.0 / math.sqrt(fan_in)
    w = jax.random.uniform(k1, (kh, kw, cin, cout), jnp.float32, -bound, bound)
    b = jax.random.uniform(k2, (cout,), jnp.float32, -bound, bound)
    return w, b


def _group_conv_weight(w_hwio, stride):
    """(KH, KW, Cin, Cout) -> (KH, KW//s, s*Cin, Cout); wg[kh,pw,tw*Cin+c] = w[kh,s*pw+tw,c]."""
    KH, KW, Cin, Cout = w_hwio.shape
    assert KW % stride == 0
    return (w_hwio.reshape(KH, KW // stride, stride, Cin, Cout)
                  .reshape(KH, KW // stride, stride * Cin, Cout))


def _conv_output_hw():
    W0, H0 = SENSOR_SIZE
    h1 = (H0 + 4 - 8) // 4 + 1
    w1 = (W0 + 4 - 8) // 4 + 1
    h2 = (h1 + 2 - 4) // 2 + 1
    w2 = (w1 + 2 - 4) // 2 + 1
    h3 = (h2 + 2 - 3) // 1 + 1
    w3 = (w2 + 2 - 3) // 1 + 1
    return h3, w3


def init_ppo_policy_params(key):
    keys = jax.random.split(key, 7)
    params = {}

    conv_defs = [("conv1", 8, INPUT_CHANNELS, 32, 4),
                 ("conv2", 4, 32, 64, 2),
                 ("conv3", 3, 64, 64, 1)]
    for i, (name, k, cin, cout, stride) in enumerate(conv_defs):
        w, b = _init_conv(keys[i], k, k, cin, cout)
        params[f"{name}_w"] = w                                          # f32 HWIO (reference)
        params[f"{name}_b"] = b
        params[f"{name}_wg"] = _group_conv_weight(w, stride).astype(jnp.bfloat16)

    h3, w3 = _conv_output_hw()
    c3 = 64
    conv_output_size = c3 * h3 * w3

    fc_w, fc_b = _init_linear(keys[3], conv_output_size, FEATURE_DIM)
    params["fc_w_ref"] = fc_w                                            # torch NCHW-flatten rows (reference)
    params["fc_b"] = fc_b
    # Fold torch's NCHW x.view(B,-1) flatten into the weight (row permutation
    # (c,h,w)->(h,w,c) once at init), then weight-only int8 quantization with
    # per-output-column scales (dequant happens in the kernel epilogue).
    fc_w_nhwc = (fc_w.reshape(c3, h3, w3, FEATURE_DIM)
                     .transpose(1, 2, 0, 3)
                     .reshape(conv_output_size, FEATURE_DIM))
    scale = jnp.maximum(jnp.max(jnp.abs(fc_w_nhwc), axis=0, keepdims=True), 1e-8) / 127.0
    params["fc_wq"] = jnp.clip(jnp.round(fc_w_nhwc / scale), -127, 127).astype(jnp.int8)
    params["fc_scale"] = scale.astype(jnp.float32)

    combined_dim = FEATURE_DIM + RELATIVE_GOAL_DIM
    p1_w, p1_b = _init_linear(keys[4], combined_dim, HIDDEN1)
    params["p1_w_ref"] = p1_w
    params["p1_wf"] = p1_w[:FEATURE_DIM].astype(jnp.bfloat16)            # feature part
    params["p1_wg"] = p1_w[FEATURE_DIM:]                                 # goal part (f32)
    params["p1_b"] = p1_b
    p2_w, p2_b = _init_linear(keys[5], HIDDEN1, HIDDEN2)
    params["p2_w_ref"] = p2_w
    params["p2_w"] = p2_w.astype(jnp.bfloat16)
    params["p2_b"] = p2_b
    p3_w, p3_b = _init_linear(keys[6], HIDDEN2, ACTION_DIM)
    params["p3_w_ref"] = p3_w
    params["p3_w"] = p3_w.astype(jnp.bfloat16)
    params["p3_b"] = p3_b
    params["log_std"] = jnp.zeros((ACTION_DIM,), jnp.float32)
    return params


# --------------------------------- Forward -----------------------------------

def ppo_policy_forward(params, images_nchw, relative_goal):
    """Matches PPOPolicy.forward: returns (mean: (B, action_dim), std: (action_dim,))."""
    x = jnp.transpose(images_nchw, (0, 2, 3, 1)).astype(jnp.bfloat16)    # NCHW -> NHWC once, bf16
    x = conv2d_relu(x, params["conv1_wg"], params["conv1_b"], stride=4, padding=2)
    x = conv2d_relu(x, params["conv2_wg"], params["conv2_b"], stride=2, padding=1)
    x = conv2d_relu(x, params["conv3_wg"], params["conv3_b"], stride=1, padding=1)
    B = x.shape[0]
    x_flat = x.reshape(B, -1)   # bf16 NHWC flatten; fc_w rows were permuted to match
    mean, std = policy_head(x_flat, relative_goal.astype(jnp.float32), params)
    return mean, std

# TODO(synk): get_mixture_action_and_log_prob (Normal sampling / log-prob path)
# is not part of forward() and is left unimplemented.


# ---------------------------- Pure-JAX reference ------------------------------

def reference_forward(params, images_nchw, relative_goal):
    """f32 reference mirroring the PyTorch module (torch NCHW flatten order)."""
    x = images_nchw.astype(jnp.float32)
    for i, (s, p) in enumerate(((4, 2), (2, 1), (1, 1)), start=1):
        w = params[f"conv{i}_w"]
        b = params[f"conv{i}_b"]
        x = lax.conv_general_dilated(
            x, w, window_strides=(s, s), padding=((p, p), (p, p)),
            dimension_numbers=("NCHW", "HWIO", "NCHW"))
        x = jnp.maximum(x + b.reshape(1, -1, 1, 1), 0.0)
    B = x.shape[0]
    xf = x.reshape(B, -1)                                   # torch NCHW flatten
    feat = jnp.maximum(xf @ params["fc_w_ref"] + params["fc_b"], 0.0)
    comb = jnp.concatenate([feat, relative_goal.astype(jnp.float32)], axis=1)
    h = jnp.maximum(comb @ params["p1_w_ref"] + params["p1_b"], 0.0)
    h = jnp.maximum(h @ params["p2_w_ref"] + params["p2_b"], 0.0)
    mean = h @ params["p3_w_ref"] + params["p3_b"]
    std = jnp.exp(jnp.clip(params["log_std"], -20.0, 2.0))
    return mean, std


if __name__ == "__main__":
    key = jax.random.PRNGKey(0)
    k_params, k_img, k_goal = jax.random.split(key, 3)

    params = init_ppo_policy_params(k_params)

    W0, H0 = SENSOR_SIZE
    batch = 2
    images = jax.random.normal(k_img, (batch, INPUT_CHANNELS, H0, W0), jnp.float32)
    relative_goal = jax.random.normal(k_goal, (batch, RELATIVE_GOAL_DIM), jnp.float32)

    fwd = jax.jit(ppo_policy_forward)
    mean, std = fwd(params, images, relative_goal)
    jax.block_until_ready((mean, std))

    assert mean.shape == (batch, ACTION_DIM)
    assert std.shape == (ACTION_DIM,)

    # Kernel runs bf16 convs/matmuls + int8 fc weights (f32 accumulation); the
    # f32 reference therefore only matches to ~1e-2-level tolerances.
    mean_ref, std_ref = reference_forward(params, images, relative_goal)
    np.testing.assert_allclose(np.asarray(mean), np.asarray(mean_ref), rtol=5e-2, atol=5e-2)
    np.testing.assert_allclose(np.asarray(std), np.asarray(std_ref), rtol=1e-5, atol=1e-5)

    print("KERNEL_OK")
</pallas_src>

<mosaic_0001>
module attributes {stable_mosaic.version = 11 : i64} {
  func.func @_conv_relu_kernel(%arg0: i32, %arg1: memref<1x9x4x17x24xbf16, #tpu.memory_space<vmem>>, %arg2: memref<8x2x24x32xbf16, #tpu.memory_space<vmem>>, %arg3: memref<1x32xf32, #tpu.memory_space<vmem>>, %arg4: memref<1x128x32xbf16, #tpu.memory_space<vmem>>, %arg5: memref<128x32xf32, #tpu.memory_space<vmem>>) attributes {dimension_semantics = [#tpu.dimension_semantics<parallel>], iteration_bounds = array<i64: 2>, scalar_prefetch = 0 : i64, scratch_operands = 1 : i64, tpu.core_type = #tpu.core_type<tc>, window_params = [{transform_indices = @transform_0, window_bounds = array<i64: 1, 9, 4, 17, 24>}, {pipeline_mode = #tpu.pipeline_mode<synchronous>, transform_indices = @transform_1, window_bounds = array<i64: 8, 2, 24, 32>}, {pipeline_mode = #tpu.pipeline_mode<synchronous>, transform_indices = @transform_2, window_bounds = array<i64: 1, 32>}, {transform_indices = @transform_3, window_bounds = array<i64: 1, 128, 32>}]} {
    %c0 = arith.constant 0 : index
    %c0_0 = arith.constant 0 : index
    %c0_1 = arith.constant 0 : index
    %c0_2 = arith.constant 0 : index
    %c0_3 = arith.constant 0 : index
    %0 = vector.load %arg1[%c0, %c0_0, %c0_1, %c0_2, %c0_3] : memref<1x9x4x17x24xbf16, #tpu.memory_space<vmem>>, vector<1x8x1x16x24xbf16>
    %1 = vector.shape_cast %0 : vector<1x8x1x16x24xbf16> to vector<8x16x24xbf16>
    %2 = vector.shape_cast %1 : vector<8x16x24xbf16> to vector<128x24xbf16>
    %c0_4 = arith.constant 0 : index
    %c0_5 = arith.constant 0 : index
    %c0_6 = arith.constant 0 : index
    %c0_7 = arith.constant 0 : index
    %3 = vector.load %arg2[%c0_4, %c0_5, %c0_6, %c0_7] : memref<8x2x24x32xbf16, #tpu.memory_space<vmem>>, vector<1x1x24x32xbf16>
    %4 = vector.shape_cast %3 : vector<1x1x24x32xbf16> to vector<24x32xbf16>
    %cst = arith.constant dense<0.000000e+00> : vector<128x32xf32>
    %5 = tpu.matmul %2, %4, %cst {dimension_numbers = #tpu.dot_dimension_numbers<[1], [0], [0], [1], [0, 0, 1, 1], [], []>} : vector<128x24xbf16>, vector<24x32xbf16>, vector<128x32xf32> -> vector<128x32xf32>
    %c0_8 = arith.constant 0 : index
    %c0_9 = arith.constant 0 : index
    %6 = vector.load %arg5[%c0_8, %c0_9] : memref<128x32xf32, #tpu.memory_space<vmem>>, vector<128x32xf32>
    tpu.vector_store %arg5[%c0_8, %c0_9], %5 {strides = array<i32>} : memref<128x32xf32, #tpu.memory_space<vmem>>, vector<128x32xf32>,
    %c0_10 = arith.constant 0 : index
    %c0_11 = arith.constant 0 : index
    %c0_12 = arith.constant 0 : index
    %c1 = arith.constant 1 : index
    %c0_13 = arith.constant 0 : index
    %7 = vector.load %arg1[%c0_10, %c0_11, %c0_12, %c1, %c0_13] : memref<1x9x4x17x24xbf16, #tpu.memory_space<vmem>>, vector<1x8x1x16x24xbf16>
    %8 = vector.shape_cast %7 : vector<1x8x1x16x24xbf16> to vector<8x16x24xbf16>
    %9 = vector.shape_cast %8 : vector<8x16x24xbf16> to vector<128x24xbf16>
    %c0_14 = arith.constant 0 : index
    %c1_15 = arith.constant 1 : index
    %c0_16 = arith.constant 0 : index
    %c0_17 = arith.constant 0 : index
    %10 = vector.load %arg2[%c0_14, %c1_15, %c0_16, %c0_17] : memref<8x2x24x32xbf16, #tpu.memory_space<vmem>>, vector<1x1x24x32xbf16>
    %11 = vector.shape_cast %10 : vector<1x1x24x32xbf16> to vector<24x32xbf16>
    %cst_18 = arith.constant dense<0.000000e+00> : vector<128x32xf32>
    %12 = tpu.matmul %9, %11, %cst_18 {dimension_numbers = #tpu.dot_dimension_numbers<[1], [0], [0], [1], [0, 0, 1, 1], [], []>} : vector<128x24xbf16>, vector<24x32xbf16>, vector<128x32xf32> -> vector<128x32xf32>
    %c0_19 = arith.constant 0 : index
    %c0_20 = arith.constant 0 : index
    %13 = vector.load %arg5[%c0_19, %c0_20] : memref<128x32xf32, #tpu.memory_space<vmem>>, vector<128x32xf32>
    %14 = arith.addf %13, %12 : vector<128x32xf32>
    %c0_21 = arith.constant 0 : index
    %c0_22 = arith.constant 0 : index
    %15 = vector.load %arg5[%c0_21, %c0_22] : memref<128x32xf32, #tpu.memory_space<vmem>>, vector<128x32xf32>
    tpu.vector_store %arg5[%c0_21, %c0_22], %14 {strides = array<i32>} : memref<128x32xf32, #tpu.memory_space<vmem>>, vector<128x32xf32>,
    %c0_23 = arith.constant 0 : index
    %c0_24 = arith.constant 0 : index
    %c1_25 = arith.constant 1 : index
    %c0_26 = arith.constant 0 : index
    %c0_27 = arith.constant 0 : index
    %16 = vector.load %arg1[%c0_23, %c0_24, %c1_25, %c0_26, %c0_27] : memref<1x9x4x17x24xbf16, #tpu.memory_space<vmem>>, vector<1x8x1x16x24xbf16>
    %17 = vector.shape_cast %16 : vector<1x8x1x16x24xbf16> to vector<8x16x24xbf16>
    %18 = vector.shape_cast %17 : vector<8x16x24xbf16> to vector<128x24xbf16>
    %c1_28 = arith.constant 1 : index
    %c0_29 = arith.constant 0 : index
    %c0_30 = arith.constant 0 : index
    %c0_31 = arith.constant 0 : index
    %19 = vector.load %arg2[%c1_28, %c0_29, %c0_30, %c0_31] : memref<8x2x24x32xbf16, #tpu.memory_space<vmem>>, vector<1x1x24x32xbf16>
    %20 = vector.shape_cast %19 : vector<1x1x24x32xbf16> to vector<24x32xbf16>
    %cst_32 = arith.constant dense<0.000000e+00> : vector<128x32xf32>
    %21 = tpu.matmul %18, %20, %cst_32 {dimension_numbers = #tpu.dot_dimension_numbers<[1], [0], [0], [1], [0, 0, 1, 1], [], []>} : vector<128x24xbf16>, vector<24x32xbf16>, vector<128x32xf32> -> vector<128x32xf32>
    %c0_33 = arith.constant 0 : index
    %c0_34 = arith.constant 0 : index
    %22 = vector.load %arg5[%c0_33, %c0_34] : memref<128x32xf32, #tpu.memory_space<vmem>>, vector<128x32xf32>
    %23 = arith.addf %22, %21 : vector<128x32xf32>
    %c0_35 = arith.constant 0 : index
    %c0_36 = arith.constant 0 : index
    %24 = vector.load %arg5[%c0_35, %c0_36] : memref<128x32xf32, #tpu.memory_space<vmem>>, vector<128x32xf32>
    tpu.vector_store %arg5[%c0_35, %c0_36], %23 {strides = array<i32>} : memref<128x32xf32, #tpu.memory_space<vmem>>, vector<128x32xf32>,
    %c0_37 = arith.constant 0 : index
    %c0_38 = arith.constant 0 : index
    %c1_39 = arith.constant 1 : index
    %c1_40 = arith.constant 1 : index
    %c0_41 = arith.constant 0 : index
    %25 = vector.load %arg1[%c0_37, %c0_38, %c1_39, %c1_40, %c0_41] : memref<1x9x4x17x24xbf16, #tpu.memory_space<vmem>>, vector<1x8x1x16x24xbf16>
    %26 = vector.shape_cast %25 : vector<1x8x1x16x24xbf16> to vector<8x16x24xbf16>
    %27 = vector.shape_cast %26 : vector<8x16x24xbf16> to vector<128x24xbf16>
    %c1_42 = arith.constant 1 : index
    %c1_43 = arith.constant 1 : index
    %c0_44 = arith.constant 0 : index
    %c0_45 = arith.constant 0 : index
    %28 = vector.load %arg2[%c1_42, %c1_43, %c0_44, %c0_45] : memref<8x2x24x32xbf16, #tpu.memory_space<vmem>>, vector<1x1x24x32xbf16>
    %29 = vector.shape_cast %28 : vector<1x1x24x32xbf16> to vector<24x32xbf16>
    %cst_46 = arith.constant dense<0.000000e+00> : vector<128x32xf32>
    %30 = tpu.matmul %27, %29, %cst_46 {dimension_numbers = #tpu.dot_dimension_numbers<[1], [0], [0], [1], [0, 0, 1, 1], [], []>} : vector<128x24xbf16>, vector<24x32xbf16>, vector<128x32xf32> -> vector<128x32xf32>
    %c0_47 = arith.constant 0 : index
    %c0_48 = arith.constant 0 : index
    %31 = vector.load %arg5[%c0_47, %c0_48] : memref<128x32xf32, #tpu.memory_space<vmem>>, vector<128x32xf32>
    %32 = arith.addf %31, %30 : vector<128x32xf32>
    %c0_49 = arith.constant 0 : index
    %c0_50 = arith.constant 0 : index
    %33 = vector.load %arg5[%c0_49, %c0_50] : memref<128x32xf32, #tpu.memory_space<vmem>>, vector<128x32xf32>
    tpu.vector_store %arg5[%c0_49, %c0_50], %32 {strides = array<i32>} : memref<128x32xf32, #tpu.memory_space<vmem>>, vector<128x32xf32>,
    %c0_51 = arith.constant 0 : index
    %c0_52 = arith.constant 0 : index
    %c2 = arith.constant 2 : index
    %c0_53 = arith.constant 0 : index
    %c0_54 = arith.constant 0 : index
    %34 = vector.load %arg1[%c0_51, %c0_52, %c2, %c0_53, %c0_54] : memref<1x9x4x17x24xbf16, #tpu.memory_space<vmem>>, vector<1x8x1x16x24xbf16>
    %35 = vector.shape_cast %34 : vector<1x8x1x16x24xbf16> to vector<8x16x24xbf16>
    %36 = vector.shape_cast %35 : vector<8x16x24xbf16> to vector<128x24xbf16>
    %c2_55 = arith.constant 2 : index
    %c0_56 = arith.constant 0 : index
    %c0_57 = arith.constant 0 : index
    %c0_58 = arith.constant 0 : index
    %37 = vector.load %arg2[%c2_55, %c0_56, %c0_57, %c0_58] : memref<8x2x24x32xbf16, #tpu.memory_space<vmem>>, vector<1x1x24x32xbf16>
    %38 = vector.shape_cast %37 : vector<1x1x24x32xbf16> to vector<24x32xbf16>
    %cst_59 = arith.constant dense<0.000000e+00> : vector<128x32xf32>
    %39 = tpu.matmul %36, %38, %cst_59 {dimension_numbers = #tpu.dot_dimension_numbers<[1], [0], [0], [1], [0, 0, 1, 1], [], []>} : vector<128x24xbf16>, vector<24x32xbf16>, vector<128x32xf32> -> vector<128x32xf32>
    %c0_60 = arith.constant 0 : index
    %c0_61 = arith.constant 0 : index
    %40 = vector.load %arg5[%c0_60, %c0_61] : memref<128x32xf32, #tpu.memory_space<vmem>>, vector<128x32xf32>
    %41 = arith.addf %40, %39 : vector<128x32xf32>
    %c0_62 = arith.constant 0 : index
    %c0_63 = arith.constant 0 : index
    %42 = vector.load %arg5[%c0_62, %c0_63] : memref<128x32xf32, #tpu.memory_space<vmem>>, vector<128x32xf32>
    tpu.vector_store %arg5[%c0_62, %c0_63], %41 {strides = array<i32>} : memref<128x32xf32, #tpu.memory_space<vmem>>, vector<128x32xf32>,
    %c0_64 = arith.constant 0 : index
    %c0_65 = arith.constant 0 : index
    %c2_66 = arith.constant 2 : index
    %c1_67 = arith.constant 1 : index
    %c0_68 = arith.constant 0 : index
    %43 = vector.load %arg1[%c0_64, %c0_65, %c2_66, %c1_67, %c0_68] : memref<1x9x4x17x24xbf16, #tpu.memory_space<vmem>>, vector<1x8x1x16x24xbf16>
    %44 = vector.shape_cast %43 : vector<1x8x1x16x24xbf16> to vector<8x16x24xbf16>
    %45 = vector.shape_cast %44 : vector<8x16x24xbf16> to vector<128x24xbf16>
    %c2_69 = arith.constant 2 : index
    %c1_70 = arith.constant 1 : index
    %c0_71 = arith.constant 0 : index
    %c0_72 = arith.constant 0 : index
    %46 = vector.load %arg2[%c2_69, %c1_70, %c0_71, %c0_72] : memref<8x2x24x32xbf16, #tpu.memory_space<vmem>>, vector<1x1x24x32xbf16>
    %47 = vector.shape_cast %46 : vector<1x1x24x32xbf16> to vector<24x32xbf16>
    %cst_73 = arith.constant dense<0.000000e+00> : vector<128x32xf32>
    %48 = tpu.matmul %45, %47, %cst_73 {dimension_numbers = #tpu.dot_dimension_numbers<[1], [0], [0], [1], [0, 0, 1, 1], [], []>} : vector<128x24xbf16>, vector<24x32xbf16>, vector<128x32xf32> -> vector<128x32xf32>
    %c0_74 = arith.constant 0 : index
    %c0_75 = arith.constant 0 : index
    %49 = vector.load %arg5[%c0_74, %c0_75] : memref<128x32xf32, #tpu.memory_space<vmem>>, vector<128x32xf32>
    %50 = arith.addf %49, %48 : vector<128x32xf32>
    %c0_76 = arith.constant 0 : index
    %c0_77 = arith.constant 0 : index
    %51 = vector.load %arg5[%c0_76, %c0_77] : memref<128x32xf32, #tpu.memory_space<vmem>>, vector<128x32xf32>
    tpu.vector_store %arg5[%c0_76, %c0_77], %50 {strides = array<i32>} : memref<128x32xf32, #tpu.memory_space<vmem>>, vector<128x32xf32>,
    %c0_78 = arith.constant 0 : index
    %c0_79 = arith.constant 0 : index
    %c3 = arith.constant 3 : index
    %c0_80 = arith.constant 0 : index
    %c0_81 = arith.constant 0 : index
    %52 = vector.load %arg1[%c0_78, %c0_79, %c3, %c0_80, %c0_81] : memref<1x9x4x17x24xbf16, #tpu.memory_space<vmem>>, vector<1x8x1x16x24xbf16>
    %53 = vector.shape_cast %52 : vector<1x8x1x16x24xbf16> to vector<8x16x24xbf16>
    %54 = vector.shape_cast %53 : vector<8x16x24xbf16> to vector<128x24xbf16>
    %c3_82 = arith.constant 3 : index
    %c0_83 = arith.constant 0 : index
    %c0_84 = arith.constant 0 : index
    %c0_85 = arith.constant 0 : index
    %55 = vector.load %arg2[%c3_82, %c0_83, %c0_84, %c0_85] : memref<8x2x24x32xbf16, #tpu.memory_space<vmem>>, vector<1x1x24x32xbf16>
    %56 = vector.shape_cast %55 : vector<1x1x24x32xbf16> to vector<24x32xbf16>
    %cst_86 = arith.constant dense<0.000000e+00> : vector<128x32xf32>
    %57 = tpu.matmul %54, %56, %cst_86 {dimension_numbers = #tpu.dot_dimension_numbers<[1], [0], [0], [1], [0, 0, 1, 1], [], []>} : vector<128x24xbf16>, vector<24x32xbf16>, vector<128x32xf32> -> vector<128x32xf32>
    %c0_87 = arith.constant 0 : index
    %c0_88 = arith.constant 0 : index
    %58 = vector.load %arg5[%c0_87, %c0_88] : memref<128x32xf32, #tpu.memory_space<vmem>>, vector<128x32xf32>
    %59 = arith.addf %58, %57 : vector<128x32xf32>
    %c0_89 = arith.constant 0 : index
    %c0_90 = arith.constant 0 : index
    %60 = vector.load %arg5[%c0_89, %c0_90] : memref<128x32xf32, #tpu.memory_space<vmem>>, vector<128x32xf32>
    tpu.vector_store %arg5[%c0_89, %c0_90], %59 {strides = array<i32>} : memref<128x32xf32, #tpu.memory_space<vmem>>, vector<128x32xf32>,
    %c0_91 = arith.constant 0 : index
    %c0_92 = arith.constant 0 : index
    %c3_93 = arith.constant 3 : index
    %c1_94 = arith.constant 1 : index
    %c0_95 = arith.constant 0 : index
    %61 = vector.load %arg1[%c0_91, %c0_92, %c3_93, %c1_94, %c0_95] : memref<1x9x4x17x24xbf16, #tpu.memory_space<vmem>>, vector<1x8x1x16x24xbf16>
    %62 = vector.shape_cast %61 : vector<1x8x1x16x24xbf16> to vector<8x16x24xbf16>
    %63 = vector.shape_cast %62 : vector<8x16x24xbf16> to vector<128x24xbf16>
    %c3_96 = arith.constant 3 : index
    %c1_97 = arith.constant 1 : index
    %c0_98 = arith.constant 0 : index
    %c0_99 = arith.constant 0 : index
    %64 = vector.load %arg2[%c3_96, %c1_97, %c0_98, %c0_99] : memref<8x2x24x32xbf16, #tpu.memory_space<vmem>>, vector<1x1x24x32xbf16>
    %65 = vector.shape_cast %64 : vector<1x1x24x32xbf16> to vector<24x32xbf16>
    %cst_100 = arith.constant dense<0.000000e+00> : vector<128x32xf32>
    %66 = tpu.matmul %63, %65, %cst_100 {dimension_numbers = #tpu.dot_dimension_numbers<[1], [0], [0], [1], [0, 0, 1, 1], [], []>} : vector<128x24xbf16>, vector<24x32xbf16>, vector<128x32xf32> -> vector<128x32xf32>
    %c0_101 = arith.constant 0 : index
    %c0_102 = arith.constant 0 : index
    %67 = vector.load %arg5[%c0_101, %c0_102] : memref<128x32xf32, #tpu.memory_space<vmem>>, vector<128x32xf32>
    %68 = arith.addf %67, %66 : vector<128x32xf32>
    %c0_103 = arith.constant 0 : index
    %c0_104 = arith.constant 0 : index
    %69 = vector.load %arg5[%c0_103, %c0_104] : memref<128x32xf32, #tpu.memory_space<vmem>>, vector<128x32xf32>
    tpu.vector_store %arg5[%c0_103, %c0_104], %68 {strides = array<i32>} : memref<128x32xf32, #tpu.memory_space<vmem>>, vector<128x32xf32>,
    %c0_105 = arith.constant 0 : index
    %c1_106 = arith.constant 1 : index
    %c0_107 = arith.constant 0 : index
    %c0_108 = arith.constant 0 : index
    %c0_109 = arith.constant 0 : index
    %70 = vector.load %arg1[%c0_105, %c1_106, %c0_107, %c0_108, %c0_109] : memref<1x9x4x17x24xbf16, #tpu.memory_space<vmem>>, vector<1x8x1x16x24xbf16>
    %71 = vector.shape_cast %70 : vector<1x8x1x16x24xbf16> to vector<8x16x24xbf16>
    %72 = vector.shape_cast %71 : vector<8x16x24xbf16> to vector<128x24xbf16>
    %c4 = arith.constant 4 : index
    %c0_110 = arith.constant 0 : index
    %c0_111 = arith.constant 0 : index
    %c0_112 = arith.constant 0 : index
    %73 = vector.load %arg2[%c4, %c0_110, %c0_111, %c0_112] : memref<8x2x24x32xbf16, #tpu.memory_space<vmem>>, vector<1x1x24x32xbf16>
    %74 = vector.shape_cast %73 : vector<1x1x24x32xbf16> to vector<24x32xbf16>
    %cst_113 = arith.constant dense<0.000000e+00> : vector<128x32xf32>
    %75 = tpu.matmul %72, %74, %cst_113 {dimension_numbers = #tpu.dot_dimension_numbers<[1], [0], [0], [1], [0, 0, 1, 1], [], []>} : vector<128x24xbf16>, vector<24x32xbf16>, vector<128x32xf32> -> vector<128x32xf32>
    %c0_114 = arith.constant 0 : index
    %c0_115 = arith.constant 0 : index
    %76 = vector.load %arg5[%c0_114, %c0_115] : memref<128x32xf32, #tpu.memory_space<vmem>>, vector<128x32xf32>
    %77 = arith.addf %76, %75 : vector<128x32xf32>
    %c0_116 = arith.constant 0 : index
    %c0_117 = arith.constant 0 : index
    %78 = vector.load %arg5[%c0_116, %c0_117] : memref<128x32xf32, #tpu.memory_space<vmem>>, vector<128x32xf32>
    tpu.vector_store %arg5[%c0_116, %c0_117], %77 {strides = array<i32>} : memref<128x32xf32, #tpu.memory_space<vmem>>, vector<128x32xf32>,
    %c0_118 = arith.constant 0 : index
    %c1_119 = arith.constant 1 : index
    %c0_120 = arith.constant 0 : index
    %c1_121 = arith.constant 1 : index
    %c0_122 = arith.constant 0 : index
    %79 = vector.load %arg1[%c0_118, %c1_119, %c0_120, %c1_121, %c0_122] : memref<1x9x4x17x24xbf16, #tpu.memory_space<vmem>>, vector<1x8x1x16x24xbf16>
    %80 = vector.shape_cast %79 : vector<1x8x1x16x24xbf16> to vector<8x16x24xbf16>
    %81 = vector.shape_cast %80 : vector<8x16x24xbf16> to vector<128x24xbf16>
    %c4_123 = arith.constant 4 : index
    %c1_124 = arith.constant 1 : index
    %c0_125 = arith.constant 0 : index
    %c0_126 = arith.constant 0 : index
    %82 = vector.load %arg2[%c4_123, %c1_124, %c0_125, %c0_126] : memref<8x2x24x32xbf16, #tpu.memory_space<vmem>>, vector<1x1x24x32xbf16>
    %83 = vector.shape_cast %82 : vector<1x1x24x32xbf16> to vector<24x32xbf16>
    %cst_127 = arith.constant dense<0.000000e+00> : vector<128x32xf32>
    %84 = tpu.matmul %81, %83, %cst_127 {dimension_numbers = #tpu.dot_dimension_numbers<[1], [0], [0], [1], [0, 0, 1, 1], [], []>} : vector<128x24xbf16>, vector<24x32xbf16>, vector<128x32xf32> -> vector<128x32xf32>
    %c0_128 = arith.constant 0 : index
    %c0_129 = arith.constant 0 : index
    %85 = vector.load %arg5[%c0_128, %c0_129] : memref<128x32xf32, #tpu.memory_space<vmem>>, vector<128x32xf32>
    %86 = arith.addf %85, %84 : vector<128x32xf32>
    %c0_130 = arith.constant 0 : index
    %c0_131 = arith.constant 0 : index
    %87 = vector.load %arg5[%c0_130, %c0_131] : memref<128x32xf32, #tpu.memory_space<vmem>>, vector<128x32xf32>
    tpu.vector_store %arg5[%c0_130, %c0_131], %86 {strides = array<i32>} : memref<128x32xf32, #tpu.memory_space<vmem>>, vector<128x32xf32>,
    %c0_132 = arith.constant 0 : index
    %c1_133 = arith.constant 1 : index
    %c1_134 = arith.constant 1 : index
    %c0_135 = arith.constant 0 : index
    %c0_136 = arith.constant 0 : index
    %88 = vector.load %arg1[%c0_132, %c1_133, %c1_134, %c0_135, %c0_136] : memref<1x9x4x17x24xbf16, #tpu.memory_space<vmem>>, vector<1x8x1x16x24xbf16>
    %89 = vector.shape_cast %88 : vector<1x8x1x16x24xbf16> to vector<8x16x24xbf16>
    %90 = vector.shape_cast %89 : vector<8x16x24xbf16> to vector<128x24xbf16>
    %c5 = arith.constant 5 : index
    %c0_137 = arith.constant 0 : index
    %c0_138 = arith.constant 0 : index
    %c0_139 = arith.constant 0 : index
    %91 = vector.load %arg2[%c5, %c0_137, %c0_138, %c0_139] : memref<8x2x24x32xbf16, #tpu.memory_space<vmem>>, vector<1x1x24x32xbf16>
    %92 = vector.shape_cast %91 : vector<1x1x24x32xbf16> to vector<24x32xbf16>
    %cst_140 = arith.constant dense<0.000000e+00> : vector<128x32xf32>
    %93 = tpu.matmul %90, %92, %cst_140 {dimension_numbers = #tpu.dot_dimension_numbers<[1], [0], [0], [1], [0, 0, 1, 1], [], []>} : vector<128x24xbf16>, vector<24x32xbf16>, vector<128x32xf32> -> vector<128x32xf32>
    %c0_141 = arith.constant 0 : index
    %c0_142 = arith.constant 0 : index
    %94 = vector.load %arg5[%c0_141, %c0_142] : memref<128x32xf32, #tpu.memory_space<vmem>>, vector<128x32xf32>
    %95 = arith.addf %94, %93 : vector<128x32xf32>
    %c0_143 = arith.constant 0 : index
    %c0_144 = arith.constant 0 : index
    %96 = vector.load %arg5[%c0_143, %c0_144] : memref<128x32xf32, #tpu.memory_space<vmem>>, vector<128x32xf32>
    tpu.vector_store %arg5[%c0_143, %c0_144], %95 {strides = array<i32>} : memref<128x32xf32, #tpu.memory_space<vmem>>, vector<128x32xf32>,
    %c0_145 = arith.constant 0 : index
    %c1_146 = arith.constant 1 : index
    %c1_147 = arith.constant 1 : index
    %c1_148 = arith.constant 1 : index
    %c0_149 = arith.constant 0 : index
    %97 = vector.load %arg1[%c0_145, %c1_146, %c1_147, %c1_148, %c0_149] : memref<1x9x4x17x24xbf16, #tpu.memory_space<vmem>>, vector<1x8x1x16x24xbf16>
    %98 = vector.shape_cast %97 : vector<1x8x1x16x24xbf16> to vector<8x16x24xbf16>
    %99 = vector.shape_cast %98 : vector<8x16x24xbf16> to vector<128x24xbf16>
    %c5_150 = arith.constant 5 : index
    %c1_151 = arith.constant 1 : index
    %c0_152 = arith.constant 0 : index
    %c0_153 = arith.constant 0 : index
    %100 = vector.load %arg2[%c5_150, %c1_151, %c0_152, %c0_153] : memref<8x2x24x32xbf16, #tpu.memory_space<vmem>>, vector<1x1x24x32xbf16>
    %101 = vector.shape_cast %100 : vector<1x1x24x32xbf16> to vector<24x32xbf16>
    %cst_154 = arith.constant dense<0.000000e+00> : vector<128x32xf32>
    %102 = tpu.matmul %99, %101, %cst_154 {dimension_numbers = #tpu.dot_dimension_numbers<[1], [0], [0], [1], [0, 0, 1, 1], [], []>} : vector<128x24xbf16>, vector<24x32xbf16>, vector<128x32xf32> -> vector<128x32xf32>
    %c0_155 = arith.constant 0 : index
    %c0_156 = arith.constant 0 : index
    %103 = vector.load %arg5[%c0_155, %c0_156] : memref<128x32xf32, #tpu.memory_space<vmem>>, vector<128x32xf32>
    %104 = arith.addf %103, %102 : vector<128x32xf32>
    %c0_157 = arith.constant 0 : index
    %c0_158 = arith.constant 0 : index
    %105 = vector.load %arg5[%c0_157, %c0_158] : memref<128x32xf32, #tpu.memory_space<vmem>>, vector<128x32xf32>
    tpu.vector_store %arg5[%c0_157, %c0_158], %104 {strides = array<i32>} : memref<128x32xf32, #tpu.memory_space<vmem>>, vector<128x32xf32>,
    %c0_159 = arith.constant 0 : index
    %c1_160 = arith.constant 1 : index
    %c2_161 = arith.constant 2 : index
    %c0_162 = arith.constant 0 : index
    %c0_163 = arith.constant 0 : index
    %106 = vector.load %arg1[%c0_159, %c1_160, %c2_161, %c0_162, %c0_163] : memref<1x9x4x17x24xbf16, #tpu.memory_space<vmem>>, vector<1x8x1x16x24xbf16>
    %107 = vector.shape_cast %106 : vector<1x8x1x16x24xbf16> to vector<8x16x24xbf16>
    %108 = vector.shape_cast %107 : vector<8x16x24xbf16> to vector<128x24xbf16>
    %c6 = arith.constant 6 : index
    %c0_164 = arith.constant 0 : index
    %c0_165 = arith.constant 0 : index
    %c0_166 = arith.constant 0 : index
    %109 = vector.load %arg2[%c6, %c0_164, %c0_165, %c0_166] : memref<8x2x24x32xbf16, #tpu.memory_space<vmem>>, vector<1x1x24x32xbf16>
    %110 = vector.shape_cast %109 : vector<1x1x24x32xbf16> to vector<24x32xbf16>
    %cst_167 = arith.constant dense<0.000000e+00> : vector<128x32xf32>
    %111 = tpu.matmul %108, %110, %cst_167 {dimension_numbers = #tpu.dot_dimension_numbers<[1], [0], [0], [1], [0, 0, 1, 1], [], []>} : vector<128x24xbf16>, vector<24x32xbf16>, vector<128x32xf32> -> vector<128x32xf32>
    %c0_168 = arith.constant 0 : index
    %c0_169 = arith.constant 0 : index
    %112 = vector.load %arg5[%c0_168, %c0_169] : memref<128x32xf32, #tpu.memory_space<vmem>>, vector<128x32xf32>
    %113 = arith.addf %112, %111 : vector<128x32xf32>
    %c0_170 = arith.constant 0 : index
    %c0_171 = arith.constant 0 : index
    %114 = vector.load %arg5[%c0_170, %c0_171] : memref<128x32xf32, #tpu.memory_space<vmem>>, vector<128x32xf32>
    tpu.vector_store %arg5[%c0_170, %c0_171], %113 {strides = array<i32>} : memref<128x32xf32, #tpu.memory_space<vmem>>, vector<128x32xf32>,
    %c0_172 = arith.constant 0 : index
    %c1_173 = arith.constant 1 : index
    %c2_174 = arith.constant 2 : index
    %c1_175 = arith.constant 1 : index
    %c0_176 = arith.constant 0 : index
    %115 = vector.load %arg1[%c0_172, %c1_173, %c2_174, %c1_175, %c0_176] : memref<1x9x4x17x24xbf16, #tpu.memory_space<vmem>>, vector<1x8x1x16x24xbf16>
    %116 = vector.shape_cast %115 : vector<1x8x1x16x24xbf16> to vector<8x16x24xbf16>
    %117 = vector.shape_cast %116 : vector<8x16x24xbf16> to vector<128x24xbf16>
    %c6_177 = arith.constant 6 : index
    %c1_178 = arith.constant 1 : index
    %c0_179 = arith.constant 0 : index
    %c0_180 = arith.constant 0 : index
    %118 = vector.load %arg2[%c6_177, %c1_178, %c0_179, %c0_180] : memref<8x2x24x32xbf16, #tpu.memory_space<vmem>>, vector<1x1x24x32xbf16>
    %119 = vector.shape_cast %118 : vector<1x1x24x32xbf16> to vector<24x32xbf16>
    %cst_181 = arith.constant dense<0.000000e+00> : vector<128x32xf32>
    %120 = tpu.matmul %117, %119, %cst_181 {dimension_numbers = #tpu.dot_dimension_numbers<[1], [0], [0], [1], [0, 0, 1, 1], [], []>} : vector<128x24xbf16>, vector<24x32xbf16>, vector<128x32xf32> -> vector<128x32xf32>
    %c0_182 = arith.constant 0 : index
    %c0_183 = arith.constant 0 : index
    %121 = vector.load %arg5[%c0_182, %c0_183] : memref<128x32xf32, #tpu.memory_space<vmem>>, vector<128x32xf32>
    %122 = arith.addf %121, %120 : vector<128x32xf32>
    %c0_184 = arith.constant 0 : index
    %c0_185 = arith.constant 0 : index
    %123 = vector.load %arg5[%c0_184, %c0_185] : memref<128x32xf32, #tpu.memory_space<vmem>>, vector<128x32xf32>
    tpu.vector_store %arg5[%c0_184, %c0_185], %122 {strides = array<i32>} : memref<128x32xf32, #tpu.memory_space<vmem>>, vector<128x32xf32>,
    %c0_186 = arith.constant 0 : index
    %c1_187 = arith.constant 1 : index
    %c3_188 = arith.constant 3 : index
    %c0_189 = arith.constant 0 : index
    %c0_190 = arith.constant 0 : index
    %124 = vector.load %arg1[%c0_186, %c1_187, %c3_188, %c0_189, %c0_190] : memref<1x9x4x17x24xbf16, #tpu.memory_space<vmem>>, vector<1x8x1x16x24xbf16>
    %125 = vector.shape_cast %124 : vector<1x8x1x16x24xbf16> to vector<8x16x24xbf16>
    %126 = vector.shape_cast %125 : vector<8x16x24xbf16> to vector<128x24xbf16>
    %c7 = arith.constant 7 : index
    %c0_191 = arith.constant 0 : index
    %c0_192 = arith.constant 0 : index
    %c0_193 = arith.constant 0 : index
    %127 = vector.load %arg2[%c7, %c0_191, %c0_192, %c0_193] : memref<8x2x24x32xbf16, #tpu.memory_space<vmem>>, vector<1x1x24x32xbf16>
    %128 = vector.shape_cast %127 : vector<1x1x24x32xbf16> to vector<24x32xbf16>
    %cst_194 = arith.constant dense<0.000000e+00> : vector<128x32xf32>
    %129 = tpu.matmul %126, %128, %cst_194 {dimension_numbers = #tpu.dot_dimension_numbers<[1], [0], [0], [1], [0, 0, 1, 1], [], []>} : vector<128x24xbf16>, vector<24x32xbf16>, vector<128x32xf32> -> vector<128x32xf32>
    %c0_195 = arith.constant 0 : index
    %c0_196 = arith.constant 0 : index
    %130 = vector.load %arg5[%c0_195, %c0_196] : memref<128x32xf32, #tpu.memory_space<vmem>>, vector<128x32xf32>
    %131 = arith.addf %130, %129 : vector<128x32xf32>
    %c0_197 = arith.constant 0 : index
    %c0_198 = arith.constant 0 : index
    %132 = vector.load %arg5[%c0_197, %c0_198] : memref<128x32xf32, #tpu.memory_space<vmem>>, vector<128x32xf32>
    tpu.vector_store %arg5[%c0_197, %c0_198], %131 {strides = array<i32>} : memref<128x32xf32, #tpu.memory_space<vmem>>, vector<128x32xf32>,
    %c0_199 = arith.constant 0 : index
    %c1_200 = arith.constant 1 : index
    %c3_201 = arith.constant 3 : index
    %c1_202 = arith.constant 1 : index
    %c0_203 = arith.constant 0 : index
    %133 = vector.load %arg1[%c0_199, %c1_200, %c3_201, %c1_202, %c0_203] : memref<1x9x4x17x24xbf16, #tpu.memory_space<vmem>>, vector<1x8x1x16x24xbf16>
    %134 = vector.shape_cast %133 : vector<1x8x1x16x24xbf16> to vector<8x16x24xbf16>
    %135 = vector.shape_cast %134 : vector<8x16x24xbf16> to vector<128x24xbf16>
    %c7_204 = arith.constant 7 : index
    %c1_205 = arith.constant 1 : index
    %c0_206 = arith.constant 0 : index
    %c0_207 = arith.constant 0 : index
    %136 = vector.load %arg2[%c7_204, %c1_205, %c0_206, %c0_207] : memref<8x2x24x32xbf16, #tpu.memory_space<vmem>>, vector<1x1x24x32xbf16>
    %137 = vector.shape_cast %136 : vector<1x1x24x32xbf16> to vector<24x32xbf16>
    %cst_208 = arith.constant dense<0.000000e+00> : vector<128x32xf32>
    %138 = tpu.matmul %135, %137, %cst_208 {dimension_numbers = #tpu.dot_dimension_numbers<[1], [0], [0], [1], [0, 0, 1, 1], [], []>} : vector<128x24xbf16>, vector<24x32xbf16>, vector<128x32xf32> -> vector<128x32xf32>
    %c0_209 = arith.constant 0 : index
    %c0_210 = arith.constant 0 : index
    %139 = vector.load %arg5[%c0_209, %c0_210] : memref<128x32xf32, #tpu.memory_space<vmem>>, vector<128x32xf32>
    %140 = arith.addf %139, %138 : vector<128x32xf32>
    %c0_211 = arith.constant 0 : index
    %c0_212 = arith.constant 0 : index
    %141 = vector.load %arg5[%c0_211, %c0_212] : memref<128x32xf32, #tpu.memory_space<vmem>>, vector<128x32xf32>
    tpu.vector_store %arg5[%c0_211, %c0_212], %140 {strides = array<i32>} : memref<128x32xf32, #tpu.memory_space<vmem>>, vector<128x32xf32>,
    %c0_213 = arith.constant 0 : index
    %c0_214 = arith.constant 0 : index
    %142 = vector.load %arg5[%c0_213, %c0_214] : memref<128x32xf32, #tpu.memory_space<vmem>>, vector<128x32xf32>
    %c0_215 = arith.constant 0 : index
    %c0_216 = arith.constant 0 : index
    %143 = vector.load %arg3[%c0_215, %c0_216] : memref<1x32xf32, #tpu.memory_space<vmem>>, vector<1x32xf32>
    %144 = vector.broadcast %143 : vector<1x32xf32> to vector<128x32xf32>
    %145 = arith.addf %142, %144 : vector<128x32xf32>
    %cst_217 = arith.constant 0.000000e+00 : f32
    %146 = vector.broadcast %cst_217 : f32 to vector<128x32xf32>
    %147 = arith.maximumf %145, %146 : vector<128x32xf32>
    %148 = arith.truncf %147 : vector<128x32xf32> to vector<128x32xbf16>
    %c0_218 = arith.constant 0 : index
    %c0_219 = arith.constant 0 : index
    %c0_220 = arith.constant 0 : index
    %149 = vector.load %arg4[%c0_218, %c0_219, %c0_220] : memref<1x128x32xbf16, #tpu.memory_space<vmem>>, vector<1x128x32xbf16>
    %150 = vector.shape_cast %149 : vector<1x128x32xbf16> to vector<128x32xbf16>
    %151 = vector.shape_cast %148 : vector<128x32xbf16> to vector<1x128x32xbf16>
    tpu.vector_store %arg4[%c0_218, %c0_219, %c0_220], %151 {strides = array<i32>} : memref<1x128x32xbf16, #tpu.memory_space<vmem>>, vector<1x128x32xbf16>,
    return
  }
  func.func @transform_0(%arg0: i32) -> (i32, i32, i32, i32, i32) {
    %c0_i32 = arith.constant 0 : i32
    %c0_i32_0 = arith.constant 0 : i32
    %c0_i32_1 = arith.constant 0 : i32
    %c0_i32_2 = arith.constant 0 : i32
    %c0_i32_3 = arith.constant 0 : i32
    return %arg0, %c0_i32, %c0_i32_0, %c0_i32_1, %c0_i32_2 : i32, i32, i32, i32, i32
  }
  func.func @transform_1(%arg0: i32) -> (i32, i32, i32, i32) {
    %c0_i32 = arith.constant 0 : i32
    %c0_i32_0 = arith.constant 0 : i32
    %c0_i32_1 = arith.constant 0 : i32
    %c0_i32_2 = arith.constant 0 : i32
    %c0_i32_3 = arith.constant 0 : i32
    return %c0_i32, %c0_i32_0, %c0_i32_1, %c0_i32_2 : i32, i32, i32, i32
  }
  func.func @transform_2(%arg0: i32) -> (i32, i32) {
    %c0_i32 = arith.constant 0 : i32
    %c0_i32_0 = arith.constant 0 : i32
    %c0_i32_1 = arith.constant 0 : i32
    return %c0_i32, %c0_i32_0 : i32, i32
  }
  func.func @transform_3(%arg0: i32) -> (i32, i32, i32) {
    %c0_i32 = arith.constant 0 : i32
    %c0_i32_0 = arith.constant 0 : i32
    %c0_i32_1 = arith.constant 0 : i32
    return %arg0, %c0_i32, %c0_i32_0 : i32, i32, i32
  }
}

module attributes {stable_mosaic.version = 11 : i64} {
  func.func @_conv_relu_kernel(%arg0: i32, %arg1: memref<1x5x2x9x64xbf16, #tpu.memory_space<vmem>>, %arg2: memref<4x2x64x64xbf16, #tpu.memory_space<vmem>>, %arg3: memref<1x64xf32, #tpu.memory_space<vmem>>, %arg4: memref<1x32x64xbf16, #tpu.memory_space<vmem>>, %arg5: memref<32x64xf32, #tpu.memory_space<vmem>>) attributes {dimension_semantics = [#tpu.dimension_semantics<parallel>], iteration_bounds = array<i64: 2>, scalar_prefetch = 0 : i64, scratch_operands = 1 : i64, tpu.core_type = #tpu.core_type<tc>, window_params = [{transform_indices = @transform_0, window_bounds = array<i64: 1, 5, 2, 9, 64>}, {pipeline_mode = #tpu.pipeline_mode<synchronous>, transform_indices = @transform_1, window_bounds = array<i64: 4, 2, 64, 64>}, {pipeline_mode = #tpu.pipeline_mode<synchronous>, transform_indices = @transform_2, window_bounds = array<i64: 1, 64>}, {transform_indices = @transform_3, window_bounds = array<i64: 1, 32, 64>}]} {
    %c0 = arith.constant 0 : index
    %c0_0 = arith.constant 0 : index
    %c0_1 = arith.constant 0 : index
    %c0_2 = arith.constant 0 : index
    %c0_3 = arith.constant 0 : index
    %0 = vector.load %arg1[%c0, %c0_0, %c0_1, %c0_2, %c0_3] : memref<1x5x2x9x64xbf16, #tpu.memory_space<vmem>>, vector<1x4x1x8x64xbf16>
    %1 = vector.shape_cast %0 : vector<1x4x1x8x64xbf16> to vector<4x8x64xbf16>
    %2 = vector.shape_cast %1 : vector<4x8x64xbf16> to vector<32x64xbf16>
    %c0_4 = arith.constant 0 : index
    %c0_5 = arith.constant 0 : index
    %c0_6 = arith.constant 0 : index
    %c0_7 = arith.constant 0 : index
    %3 = vector.load %arg2[%c0_4, %c0_5, %c0_6, %c0_7] : memref<4x2x64x64xbf16, #tpu.memory_space<vmem>>, vector<1x1x64x64xbf16>
    %4 = vector.shape_cast %3 : vector<1x1x64x64xbf16> to vector<64x64xbf16>
    %cst = arith.constant dense<0.000000e+00> : vector<32x64xf32>
    %5 = tpu.matmul %2, %4, %cst {dimension_numbers = #tpu.dot_dimension_numbers<[1], [0], [0], [1], [0, 0, 1, 1], [], []>} : vector<32x64xbf16>, vector<64x64xbf16>, vector<32x64xf32> -> vector<32x64xf32>
    %c0_8 = arith.constant 0 : index
    %c0_9 = arith.constant 0 : index
    %6 = vector.load %arg5[%c0_8, %c0_9] : memref<32x64xf32, #tpu.memory_space<vmem>>, vector<32x64xf32>
    tpu.vector_store %arg5[%c0_8, %c0_9], %5 {strides = array<i32>} : memref<32x64xf32, #tpu.memory_space<vmem>>, vector<32x64xf32>,
    %c0_10 = arith.constant 0 : index
    %c0_11 = arith.constant 0 : index
    %c0_12 = arith.constant 0 : index
    %c1 = arith.constant 1 : index
    %c0_13 = arith.constant 0 : index
    %7 = vector.load %arg1[%c0_10, %c0_11, %c0_12, %c1, %c0_13] : memref<1x5x2x9x64xbf16, #tpu.memory_space<vmem>>, vector<1x4x1x8x64xbf16>
    %8 = vector.shape_cast %7 : vector<1x4x1x8x64xbf16> to vector<4x8x64xbf16>
    %9 = vector.shape_cast %8 : vector<4x8x64xbf16> to vector<32x64xbf16>
    %c0_14 = arith.constant 0 : index
    %c1_15 = arith.constant 1 : index
    %c0_16 = arith.constant 0 : index
    %c0_17 = arith.constant 0 : index
    %10 = vector.load %arg2[%c0_14, %c1_15, %c0_16, %c0_17] : memref<4x2x64x64xbf16, #tpu.memory_space<vmem>>, vector<1x1x64x64xbf16>
    %11 = vector.shape_cast %10 : vector<1x1x64x64xbf16> to vector<64x64xbf16>
    %cst_18 = arith.constant dense<0.000000e+00> : vector<32x64xf32>
    %12 = tpu.matmul %9, %11, %cst_18 {dimension_numbers = #tpu.dot_dimension_numbers<[1], [0], [0], [1], [0, 0, 1, 1], [], []>} : vector<32x64xbf16>, vector<64x64xbf16>, vector<32x64xf32> -> vector<32x64xf32>
    %c0_19 = arith.constant 0 : index
    %c0_20 = arith.constant 0 : index
    %13 = vector.load %arg5[%c0_19, %c0_20] : memref<32x64xf32, #tpu.memory_space<vmem>>, vector<32x64xf32>
    %14 = arith.addf %13, %12 : vector<32x64xf32>
    %c0_21 = arith.constant 0 : index
    %c0_22 = arith.constant 0 : index
    %15 = vector.load %arg5[%c0_21, %c0_22] : memref<32x64xf32, #tpu.memory_space<vmem>>, vector<32x64xf32>
    tpu.vector_store %arg5[%c0_21, %c0_22], %14 {strides = array<i32>} : memref<32x64xf32, #tpu.memory_space<vmem>>, vector<32x64xf32>,
    %c0_23 = arith.constant 0 : index
    %c0_24 = arith.constant 0 : index
    %c1_25 = arith.constant 1 : index
    %c0_26 = arith.constant 0 : index
    %c0_27 = arith.constant 0 : index
    %16 = vector.load %arg1[%c0_23, %c0_24, %c1_25, %c0_26, %c0_27] : memref<1x5x2x9x64xbf16, #tpu.memory_space<vmem>>, vector<1x4x1x8x64xbf16>
    %17 = vector.shape_cast %16 : vector<1x4x1x8x64xbf16> to vector<4x8x64xbf16>
    %18 = vector.shape_cast %17 : vector<4x8x64xbf16> to vector<32x64xbf16>
    %c1_28 = arith.constant 1 : index
    %c0_29 = arith.constant 0 : index
    %c0_30 = arith.constant 0 : index
    %c0_31 = arith.constant 0 : index
    %19 = vector.load %arg2[%c1_28, %c0_29, %c0_30, %c0_31] : memref<4x2x64x64xbf16, #tpu.memory_space<vmem>>, vector<1x1x64x64xbf16>
    %20 = vector.shape_cast %19 : vector<1x1x64x64xbf16> to vector<64x64xbf16>
    %cst_32 = arith.constant dense<0.000000e+00> : vector<32x64xf32>
    %21 = tpu.matmul %18, %20, %cst_32 {dimension_numbers = #tpu.dot_dimension_numbers<[1], [0], [0], [1], [0, 0, 1, 1], [], []>} : vector<32x64xbf16>, vector<64x64xbf16>, vector<32x64xf32> -> vector<32x64xf32>
    %c0_33 = arith.constant 0 : index
    %c0_34 = arith.constant 0 : index
    %22 = vector.load %arg5[%c0_33, %c0_34] : memref<32x64xf32, #tpu.memory_space<vmem>>, vector<32x64xf32>
    %23 = arith.addf %22, %21 : vector<32x64xf32>
    %c0_35 = arith.constant 0 : index
    %c0_36 = arith.constant 0 : index
    %24 = vector.load %arg5[%c0_35, %c0_36] : memref<32x64xf32, #tpu.memory_space<vmem>>, vector<32x64xf32>
    tpu.vector_store %arg5[%c0_35, %c0_36], %23 {strides = array<i32>} : memref<32x64xf32, #tpu.memory_space<vmem>>, vector<32x64xf32>,
    %c0_37 = arith.constant 0 : index
    %c0_38 = arith.constant 0 : index
    %c1_39 = arith.constant 1 : index
    %c1_40 = arith.constant 1 : index
    %c0_41 = arith.constant 0 : index
    %25 = vector.load %arg1[%c0_37, %c0_38, %c1_39, %c1_40, %c0_41] : memref<1x5x2x9x64xbf16, #tpu.memory_space<vmem>>, vector<1x4x1x8x64xbf16>
    %26 = vector.shape_cast %25 : vector<1x4x1x8x64xbf16> to vector<4x8x64xbf16>
    %27 = vector.shape_cast %26 : vector<4x8x64xbf16> to vector<32x64xbf16>
    %c1_42 = arith.constant 1 : index
    %c1_43 = arith.constant 1 : index
    %c0_44 = arith.constant 0 : index
    %c0_45 = arith.constant 0 : index
    %28 = vector.load %arg2[%c1_42, %c1_43, %c0_44, %c0_45] : memref<4x2x64x64xbf16, #tpu.memory_space<vmem>>, vector<1x1x64x64xbf16>
    %29 = vector.shape_cast %28 : vector<1x1x64x64xbf16> to vector<64x64xbf16>
    %cst_46 = arith.constant dense<0.000000e+00> : vector<32x64xf32>
    %30 = tpu.matmul %27, %29, %cst_46 {dimension_numbers = #tpu.dot_dimension_numbers<[1], [0], [0], [1], [0, 0, 1, 1], [], []>} : vector<32x64xbf16>, vector<64x64xbf16>, vector<32x64xf32> -> vector<32x64xf32>
    %c0_47 = arith.constant 0 : index
    %c0_48 = arith.constant 0 : index
    %31 = vector.load %arg5[%c0_47, %c0_48] : memref<32x64xf32, #tpu.memory_space<vmem>>, vector<32x64xf32>
    %32 = arith.addf %31, %30 : vector<32x64xf32>
    %c0_49 = arith.constant 0 : index
    %c0_50 = arith.constant 0 : index
    %33 = vector.load %arg5[%c0_49, %c0_50] : memref<32x64xf32, #tpu.memory_space<vmem>>, vector<32x64xf32>
    tpu.vector_store %arg5[%c0_49, %c0_50], %32 {strides = array<i32>} : memref<32x64xf32, #tpu.memory_space<vmem>>, vector<32x64xf32>,
    %c0_51 = arith.constant 0 : index
    %c1_52 = arith.constant 1 : index
    %c0_53 = arith.constant 0 : index
    %c0_54 = arith.constant 0 : index
    %c0_55 = arith.constant 0 : index
    %34 = vector.load %arg1[%c0_51, %c1_52, %c0_53, %c0_54, %c0_55] : memref<1x5x2x9x64xbf16, #tpu.memory_space<vmem>>, vector<1x4x1x8x64xbf16>
    %35 = vector.shape_cast %34 : vector<1x4x1x8x64xbf16> to vector<4x8x64xbf16>
    %36 = vector.shape_cast %35 : vector<4x8x64xbf16> to vector<32x64xbf16>
    %c2 = arith.constant 2 : index
    %c0_56 = arith.constant 0 : index
    %c0_57 = arith.constant 0 : index
    %c0_58 = arith.constant 0 : index
    %37 = vector.load %arg2[%c2, %c0_56, %c0_57, %c0_58] : memref<4x2x64x64xbf16, #tpu.memory_space<vmem>>, vector<1x1x64x64xbf16>
    %38 = vector.shape_cast %37 : vector<1x1x64x64xbf16> to vector<64x64xbf16>
    %cst_59 = arith.constant dense<0.000000e+00> : vector<32x64xf32>
    %39 = tpu.matmul %36, %38, %cst_59 {dimension_numbers = #tpu.dot_dimension_numbers<[1], [0], [0], [1], [0, 0, 1, 1], [], []>} : vector<32x64xbf16>, vector<64x64xbf16>, vector<32x64xf32> -> vector<32x64xf32>
    %c0_60 = arith.constant 0 : index
    %c0_61 = arith.constant 0 : index
    %40 = vector.load %arg5[%c0_60, %c0_61] : memref<32x64xf32, #tpu.memory_space<vmem>>, vector<32x64xf32>
    %41 = arith.addf %40, %39 : vector<32x64xf32>
    %c0_62 = arith.constant 0 : index
    %c0_63 = arith.constant 0 : index
    %42 = vector.load %arg5[%c0_62, %c0_63] : memref<32x64xf32, #tpu.memory_space<vmem>>, vector<32x64xf32>
    tpu.vector_store %arg5[%c0_62, %c0_63], %41 {strides = array<i32>} : memref<32x64xf32, #tpu.memory_space<vmem>>, vector<32x64xf32>,
    %c0_64 = arith.constant 0 : index
    %c1_65 = arith.constant 1 : index
    %c0_66 = arith.constant 0 : index
    %c1_67 = arith.constant 1 : index
    %c0_68 = arith.constant 0 : index
    %43 = vector.load %arg1[%c0_64, %c1_65, %c0_66, %c1_67, %c0_68] : memref<1x5x2x9x64xbf16, #tpu.memory_space<vmem>>, vector<1x4x1x8x64xbf16>
    %44 = vector.shape_cast %43 : vector<1x4x1x8x64xbf16> to vector<4x8x64xbf16>
    %45 = vector.shape_cast %44 : vector<4x8x64xbf16> to vector<32x64xbf16>
    %c2_69 = arith.constant 2 : index
    %c1_70 = arith.constant 1 : index
    %c0_71 = arith.constant 0 : index
    %c0_72 = arith.constant 0 : index
    %46 = vector.load %arg2[%c2_69, %c1_70, %c0_71, %c0_72] : memref<4x2x64x64xbf16, #tpu.memory_space<vmem>>, vector<1x1x64x64xbf16>
    %47 = vector.shape_cast %46 : vector<1x1x64x64xbf16> to vector<64x64xbf16>
    %cst_73 = arith.constant dense<0.000000e+00> : vector<32x64xf32>
    %48 = tpu.matmul %45, %47, %cst_73 {dimension_numbers = #tpu.dot_dimension_numbers<[1], [0], [0], [1], [0, 0, 1, 1], [], []>} : vector<32x64xbf16>, vector<64x64xbf16>, vector<32x64xf32> -> vector<32x64xf32>
    %c0_74 = arith.constant 0 : index
    %c0_75 = arith.constant 0 : index
    %49 = vector.load %arg5[%c0_74, %c0_75] : memref<32x64xf32, #tpu.memory_space<vmem>>, vector<32x64xf32>
    %50 = arith.addf %49, %48 : vector<32x64xf32>
    %c0_76 = arith.constant 0 : index
    %c0_77 = arith.constant 0 : index
    %51 = vector.load %arg5[%c0_76, %c0_77] : memref<32x64xf32, #tpu.memory_space<vmem>>, vector<32x64xf32>
    tpu.vector_store %arg5[%c0_76, %c0_77], %50 {strides = array<i32>} : memref<32x64xf32, #tpu.memory_space<vmem>>, vector<32x64xf32>,
    %c0_78 = arith.constant 0 : index
    %c1_79 = arith.constant 1 : index
    %c1_80 = arith.constant 1 : index
    %c0_81 = arith.constant 0 : index
    %c0_82 = arith.constant 0 : index
    %52 = vector.load %arg1[%c0_78, %c1_79, %c1_80, %c0_81, %c0_82] : memref<1x5x2x9x64xbf16, #tpu.memory_space<vmem>>, vector<1x4x1x8x64xbf16>
    %53 = vector.shape_cast %52 : vector<1x4x1x8x64xbf16> to vector<4x8x64xbf16>
    %54 = vector.shape_cast %53 : vector<4x8x64xbf16> to vector<32x64xbf16>
    %c3 = arith.constant 3 : index
    %c0_83 = arith.constant 0 : index
    %c0_84 = arith.constant 0 : index
    %c0_85 = arith.constant 0 : index
    %55 = vector.load %arg2[%c3, %c0_83, %c0_84, %c0_85] : memref<4x2x64x64xbf16, #tpu.memory_space<vmem>>, vector<1x1x64x64xbf16>
    %56 = vector.shape_cast %55 : vector<1x1x64x64xbf16> to vector<64x64xbf16>
    %cst_86 = arith.constant dense<0.000000e+00> : vector<32x64xf32>
    %57 = tpu.matmul %54, %56, %cst_86 {dimension_numbers = #tpu.dot_dimension_numbers<[1], [0], [0], [1], [0, 0, 1, 1], [], []>} : vector<32x64xbf16>, vector<64x64xbf16>, vector<32x64xf32> -> vector<32x64xf32>
    %c0_87 = arith.constant 0 : index
    %c0_88 = arith.constant 0 : index
    %58 = vector.load %arg5[%c0_87, %c0_88] : memref<32x64xf32, #tpu.memory_space<vmem>>, vector<32x64xf32>
    %59 = arith.addf %58, %57 : vector<32x64xf32>
    %c0_89 = arith.constant 0 : index
    %c0_90 = arith.constant 0 : index
    %60 = vector.load %arg5[%c0_89, %c0_90] : memref<32x64xf32, #tpu.memory_space<vmem>>, vector<32x64xf32>
    tpu.vector_store %arg5[%c0_89, %c0_90], %59 {strides = array<i32>} : memref<32x64xf32, #tpu.memory_space<vmem>>, vector<32x64xf32>,
    %c0_91 = arith.constant 0 : index
    %c1_92 = arith.constant 1 : index
    %c1_93 = arith.constant 1 : index
    %c1_94 = arith.constant 1 : index
    %c0_95 = arith.constant 0 : index
    %61 = vector.load %arg1[%c0_91, %c1_92, %c1_93, %c1_94, %c0_95] : memref<1x5x2x9x64xbf16, #tpu.memory_space<vmem>>, vector<1x4x1x8x64xbf16>
    %62 = vector.shape_cast %61 : vector<1x4x1x8x64xbf16> to vector<4x8x64xbf16>
    %63 = vector.shape_cast %62 : vector<4x8x64xbf16> to vector<32x64xbf16>
    %c3_96 = arith.constant 3 : index
    %c1_97 = arith.constant 1 : index
    %c0_98 = arith.constant 0 : index
    %c0_99 = arith.constant 0 : index
    %64 = vector.load %arg2[%c3_96, %c1_97, %c0_98, %c0_99] : memref<4x2x64x64xbf16, #tpu.memory_space<vmem>>, vector<1x1x64x64xbf16>
    %65 = vector.shape_cast %64 : vector<1x1x64x64xbf16> to vector<64x64xbf16>
    %cst_100 = arith.constant dense<0.000000e+00> : vector<32x64xf32>
    %66 = tpu.matmul %63, %65, %cst_100 {dimension_numbers = #tpu.dot_dimension_numbers<[1], [0], [0], [1], [0, 0, 1, 1], [], []>} : vector<32x64xbf16>, vector<64x64xbf16>, vector<32x64xf32> -> vector<32x64xf32>
    %c0_101 = arith.constant 0 : index
    %c0_102 = arith.constant 0 : index
    %67 = vector.load %arg5[%c0_101, %c0_102] : memref<32x64xf32, #tpu.memory_space<vmem>>, vector<32x64xf32>
    %68 = arith.addf %67, %66 : vector<32x64xf32>
    %c0_103 = arith.constant 0 : index
    %c0_104 = arith.constant 0 : index
    %69 = vector.load %arg5[%c0_103, %c0_104] : memref<32x64xf32, #tpu.memory_space<vmem>>, vector<32x64xf32>
    tpu.vector_store %arg5[%c0_103, %c0_104], %68 {strides = array<i32>} : memref<32x64xf32, #tpu.memory_space<vmem>>, vector<32x64xf32>,
    %c0_105 = arith.constant 0 : index
    %c0_106 = arith.constant 0 : index
    %70 = vector.load %arg5[%c0_105, %c0_106] : memref<32x64xf32, #tpu.memory_space<vmem>>, vector<32x64xf32>
    %c0_107 = arith.constant 0 : index
    %c0_108 = arith.constant 0 : index
    %71 = vector.load %arg3[%c0_107, %c0_108] : memref<1x64xf32, #tpu.memory_space<vmem>>, vector<1x64xf32>
    %72 = vector.broadcast %71 : vector<1x64xf32> to vector<32x64xf32>
    %73 = arith.addf %70, %72 : vector<32x64xf32>
    %cst_109 = arith.constant 0.000000e+00 : f32
    %74 = vector.broadcast %cst_109 : f32 to vector<32x64xf32>
    %75 = arith.maximumf %73, %74 : vector<32x64xf32>
    %76 = arith.truncf %75 : vector<32x64xf32> to vector<32x64xbf16>
    %c0_110 = arith.constant 0 : index
    %c0_111 = arith.constant 0 : index
    %c0_112 = arith.constant 0 : index
    %77 = vector.load %arg4[%c0_110, %c0_111, %c0_112] : memref<1x32x64xbf16, #tpu.memory_space<vmem>>, vector<1x32x64xbf16>
    %78 = vector.shape_cast %77 : vector<1x32x64xbf16> to vector<32x64xbf16>
    %79 = vector.shape_cast %76 : vector<32x64xbf16> to vector<1x32x64xbf16>
    tpu.vector_store %arg4[%c0_110, %c0_111, %c0_112], %79 {strides = array<i32>} : memref<1x32x64xbf16, #tpu.memory_space<vmem>>, vector<1x32x64xbf16>,
    return
  }
  func.func @transform_0(%arg0: i32) -> (i32, i32, i32, i32, i32) {
    %c0_i32 = arith.constant 0 : i32
    %c0_i32_0 = arith.constant 0 : i32
    %c0_i32_1 = arith.constant 0 : i32
    %c0_i32_2 = arith.constant 0 : i32
    %c0_i32_3 = arith.constant 0 : i32
    return %arg0, %c0_i32, %c0_i32_0, %c0_i32_1, %c0_i32_2 : i32, i32, i32, i32, i32
  }
  func.func @transform_1(%arg0: i32) -> (i32, i32, i32, i32) {
    %c0_i32 = arith.constant 0 : i32
    %c0_i32_0 = arith.constant 0 : i32
    %c0_i32_1 = arith.constant 0 : i32
    %c0_i32_2 = arith.constant 0 : i32
    %c0_i32_3 = arith.constant 0 : i32
    return %c0_i32, %c0_i32_0, %c0_i32_1, %c0_i32_2 : i32, i32, i32, i32
  }
  func.func @transform_2(%arg0: i32) -> (i32, i32) {
    %c0_i32 = arith.constant 0 : i32
    %c0_i32_0 = arith.constant 0 : i32
    %c0_i32_1 = arith.constant 0 : i32
    return %c0_i32, %c0_i32_0 : i32, i32
  }
  func.func @transform_3(%arg0: i32) -> (i32, i32, i32) {
    %c0_i32 = arith.constant 0 : i32
    %c0_i32_0 = arith.constant 0 : i32
    %c0_i32_1 = arith.constant 0 : i32
    return %arg0, %c0_i32, %c0_i32_0 : i32, i32, i32
  }
}

module attributes {stable_mosaic.version = 11 : i64} {
  func.func @_conv_relu_kernel(%arg0: i32, %arg1: memref<1x6x1x10x64xbf16, #tpu.memory_space<vmem>>, %arg2: memref<3x3x64x64xbf16, #tpu.memory_space<vmem>>, %arg3: memref<1x64xf32, #tpu.memory_space<vmem>>, %arg4: memref<1x32x64xbf16, #tpu.memory_space<vmem>>, %arg5: memref<32x64xf32, #tpu.memory_space<vmem>>) attributes {dimension_semantics = [#tpu.dimension_semantics<parallel>], iteration_bounds = array<i64: 2>, scalar_prefetch = 0 : i64, scratch_operands = 1 : i64, tpu.core_type = #tpu.core_type<tc>, window_params = [{transform_indices = @transform_0, window_bounds = array<i64: 1, 6, 1, 10, 64>}, {pipeline_mode = #tpu.pipeline_mode<synchronous>, transform_indices = @transform_1, window_bounds = array<i64: 3, 3, 64, 64>}, {pipeline_mode = #tpu.pipeline_mode<synchronous>, transform_indices = @transform_2, window_bounds = array<i64: 1, 64>}, {transform_indices = @transform_3, window_bounds = array<i64: 1, 32, 64>}]} {
    %c0 = arith.constant 0 : index
    %c0_0 = arith.constant 0 : index
    %c0_1 = arith.constant 0 : index
    %c0_2 = arith.constant 0 : index
    %c0_3 = arith.constant 0 : index
    %0 = vector.load %arg1[%c0, %c0_0, %c0_1, %c0_2, %c0_3] : memref<1x6x1x10x64xbf16, #tpu.memory_space<vmem>>, vector<1x4x1x8x64xbf16>
    %1 = vector.shape_cast %0 : vector<1x4x1x8x64xbf16> to vector<4x8x64xbf16>
    %2 = vector.shape_cast %1 : vector<4x8x64xbf16> to vector<32x64xbf16>
    %c0_4 = arith.constant 0 : index
    %c0_5 = arith.constant 0 : index
    %c0_6 = arith.constant 0 : index
    %c0_7 = arith.constant 0 : index
    %3 = vector.load %arg2[%c0_4, %c0_5, %c0_6, %c0_7] : memref<3x3x64x64xbf16, #tpu.memory_space<vmem>>, vector<1x1x64x64xbf16>
    %4 = vector.shape_cast %3 : vector<1x1x64x64xbf16> to vector<64x64xbf16>
    %cst = arith.constant dense<0.000000e+00> : vector<32x64xf32>
    %5 = tpu.matmul %2, %4, %cst {dimension_numbers = #tpu.dot_dimension_numbers<[1], [0], [0], [1], [0, 0, 1, 1], [], []>} : vector<32x64xbf16>, vector<64x64xbf16>, vector<32x64xf32> -> vector<32x64xf32>
    %c0_8 = arith.constant 0 : index
    %c0_9 = arith.constant 0 : index
    %6 = vector.load %arg5[%c0_8, %c0_9] : memref<32x64xf32, #tpu.memory_space<vmem>>, vector<32x64xf32>
    tpu.vector_store %arg5[%c0_8, %c0_9], %5 {strides = array<i32>} : memref<32x64xf32, #tpu.memory_space<vmem>>, vector<32x64xf32>,
    %c0_10 = arith.constant 0 : index
    %c0_11 = arith.constant 0 : index
    %c0_12 = arith.constant 0 : index
    %c1 = arith.constant 1 : index
    %c0_13 = arith.constant 0 : index
    %7 = vector.load %arg1[%c0_10, %c0_11, %c0_12, %c1, %c0_13] : memref<1x6x1x10x64xbf16, #tpu.memory_space<vmem>>, vector<1x4x1x8x64xbf16>
    %8 = vector.shape_cast %7 : vector<1x4x1x8x64xbf16> to vector<4x8x64xbf16>
    %9 = vector.shape_cast %8 : vector<4x8x64xbf16> to vector<32x64xbf16>
    %c0_14 = arith.constant 0 : index
    %c1_15 = arith.constant 1 : index
    %c0_16 = arith.constant 0 : index
    %c0_17 = arith.constant 0 : index
    %10 = vector.load %arg2[%c0_14, %c1_15, %c0_16, %c0_17] : memref<3x3x64x64xbf16, #tpu.memory_space<vmem>>, vector<1x1x64x64xbf16>
    %11 = vector.shape_cast %10 : vector<1x1x64x64xbf16> to vector<64x64xbf16>
    %cst_18 = arith.constant dense<0.000000e+00> : vector<32x64xf32>
    %12 = tpu.matmul %9, %11, %cst_18 {dimension_numbers = #tpu.dot_dimension_numbers<[1], [0], [0], [1], [0, 0, 1, 1], [], []>} : vector<32x64xbf16>, vector<64x64xbf16>, vector<32x64xf32> -> vector<32x64xf32>
    %c0_19 = arith.constant 0 : index
    %c0_20 = arith.constant 0 : index
    %13 = vector.load %arg5[%c0_19, %c0_20] : memref<32x64xf32, #tpu.memory_space<vmem>>, vector<32x64xf32>
    %14 = arith.addf %13, %12 : vector<32x64xf32>
    %c0_21 = arith.constant 0 : index
    %c0_22 = arith.constant 0 : index
    %15 = vector.load %arg5[%c0_21, %c0_22] : memref<32x64xf32, #tpu.memory_space<vmem>>, vector<32x64xf32>
    tpu.vector_store %arg5[%c0_21, %c0_22], %14 {strides = array<i32>} : memref<32x64xf32, #tpu.memory_space<vmem>>, vector<32x64xf32>,
    %c0_23 = arith.constant 0 : index
    %c0_24 = arith.constant 0 : index
    %c0_25 = arith.constant 0 : index
    %c2 = arith.constant 2 : index
    %c0_26 = arith.constant 0 : index
    %16 = vector.load %arg1[%c0_23, %c0_24, %c0_25, %c2, %c0_26] : memref<1x6x1x10x64xbf16, #tpu.memory_space<vmem>>, vector<1x4x1x8x64xbf16>
    %17 = vector.shape_cast %16 : vector<1x4x1x8x64xbf16> to vector<4x8x64xbf16>
    %18 = vector.shape_cast %17 : vector<4x8x64xbf16> to vector<32x64xbf16>
    %c0_27 = arith.constant 0 : index
    %c2_28 = arith.constant 2 : index
    %c0_29 = arith.constant 0 : index
    %c0_30 = arith.constant 0 : index
    %19 = vector.load %arg2[%c0_27, %c2_28, %c0_29, %c0_30] : memref<3x3x64x64xbf16, #tpu.memory_space<vmem>>, vector<1x1x64x64xbf16>
    %20 = vector.shape_cast %19 : vector<1x1x64x64xbf16> to vector<64x64xbf16>
    %cst_31 = arith.constant dense<0.000000e+00> : vector<32x64xf32>
    %21 = tpu.matmul %18, %20, %cst_31 {dimension_numbers = #tpu.dot_dimension_numbers<[1], [0], [0], [1], [0, 0, 1, 1], [], []>} : vector<32x64xbf16>, vector<64x64xbf16>, vector<32x64xf32> -> vector<32x64xf32>
    %c0_32 = arith.constant 0 : index
    %c0_33 = arith.constant 0 : index
    %22 = vector.load %arg5[%c0_32, %c0_33] : memref<32x64xf32, #tpu.memory_space<vmem>>, vector<32x64xf32>
    %23 = arith.addf %22, %21 : vector<32x64xf32>
    %c0_34 = arith.constant 0 : index
    %c0_35 = arith.constant 0 : index
    %24 = vector.load %arg5[%c0_34, %c0_35] : memref<32x64xf32, #tpu.memory_space<vmem>>, vector<32x64xf32>
    tpu.vector_store %arg5[%c0_34, %c0_35], %23 {strides = array<i32>} : memref<32x64xf32, #tpu.memory_space<vmem>>, vector<32x64xf32>,
    %c0_36 = arith.constant 0 : index
    %c1_37 = arith.constant 1 : index
    %c0_38 = arith.constant 0 : index
    %c0_39 = arith.constant 0 : index
    %c0_40 = arith.constant 0 : index
    %25 = vector.load %arg1[%c0_36, %c1_37, %c0_38, %c0_39, %c0_40] : memref<1x6x1x10x64xbf16, #tpu.memory_space<vmem>>, vector<1x4x1x8x64xbf16>
    %26 = vector.shape_cast %25 : vector<1x4x1x8x64xbf16> to vector<4x8x64xbf16>
    %27 = vector.shape_cast %26 : vector<4x8x64xbf16> to vector<32x64xbf16>
    %c1_41 = arith.constant 1 : index
    %c0_42 = arith.constant 0 : index
    %c0_43 = arith.constant 0 : index
    %c0_44 = arith.constant 0 : index
    %28 = vector.load %arg2[%c1_41, %c0_42, %c0_43, %c0_44] : memref<3x3x64x64xbf16, #tpu.memory_space<vmem>>, vector<1x1x64x64xbf16>
    %29 = vector.shape_cast %28 : vector<1x1x64x64xbf16> to vector<64x64xbf16>
    %cst_45 = arith.constant dense<0.000000e+00> : vector<32x64xf32>
    %30 = tpu.matmul %27, %29, %cst_45 {dimension_numbers = #tpu.dot_dimension_numbers<[1], [0], [0], [1], [0, 0, 1, 1], [], []>} : vector<32x64xbf16>, vector<64x64xbf16>, vector<32x64xf32> -> vector<32x64xf32>
    %c0_46 = arith.constant 0 : index
    %c0_47 = arith.constant 0 : index
    %31 = vector.load %arg5[%c0_46, %c0_47] : memref<32x64xf32, #tpu.memory_space<vmem>>, vector<32x64xf32>
    %32 = arith.addf %31, %30 : vector<32x64xf32>
    %c0_48 = arith.constant 0 : index
    %c0_49 = arith.constant 0 : index
    %33 = vector.load %arg5[%c0_48, %c0_49] : memref<32x64xf32, #tpu.memory_space<vmem>>, vector<32x64xf32>
    tpu.vector_store %arg5[%c0_48, %c0_49], %32 {strides = array<i32>} : memref<32x64xf32, #tpu.memory_space<vmem>>, vector<32x64xf32>,
    %c0_50 = arith.constant 0 : index
    %c1_51 = arith.constant 1 : index
    %c0_52 = arith.constant 0 : index
    %c1_53 = arith.constant 1 : index
    %c0_54 = arith.constant 0 : index
    %34 = vector.load %arg1[%c0_50, %c1_51, %c0_52, %c1_53, %c0_54] : memref<1x6x1x10x64xbf16, #tpu.memory_space<vmem>>, vector<1x4x1x8x64xbf16>
    %35 = vector.shape_cast %34 : vector<1x4x1x8x64xbf16> to vector<4x8x64xbf16>
    %36 = vector.shape_cast %35 : vector<4x8x64xbf16> to vector<32x64xbf16>
    %c1_55 = arith.constant 1 : index
    %c1_56 = arith.constant 1 : index
    %c0_57 = arith.constant 0 : index
    %c0_58 = arith.constant 0 : index
    %37 = vector.load %arg2[%c1_55, %c1_56, %c0_57, %c0_58] : memref<3x3x64x64xbf16, #tpu.memory_space<vmem>>, vector<1x1x64x64xbf16>
    %38 = vector.shape_cast %37 : vector<1x1x64x64xbf16> to vector<64x64xbf16>
    %cst_59 = arith.constant dense<0.000000e+00> : vector<32x64xf32>
    %39 = tpu.matmul %36, %38, %cst_59 {dimension_numbers = #tpu.dot_dimension_numbers<[1], [0], [0], [1], [0, 0, 1, 1], [], []>} : vector<32x64xbf16>, vector<64x64xbf16>, vector<32x64xf32> -> vector<32x64xf32>
    %c0_60 = arith.constant 0 : index
    %c0_61 = arith.constant 0 : index
    %40 = vector.load %arg5[%c0_60, %c0_61] : memref<32x64xf32, #tpu.memory_space<vmem>>, vector<32x64xf32>
    %41 = arith.addf %40, %39 : vector<32x64xf32>
    %c0_62 = arith.constant 0 : index
    %c0_63 = arith.constant 0 : index
    %42 = vector.load %arg5[%c0_62, %c0_63] : memref<32x64xf32, #tpu.memory_space<vmem>>, vector<32x64xf32>
    tpu.vector_store %arg5[%c0_62, %c0_63], %41 {strides = array<i32>} : memref<32x64xf32, #tpu.memory_space<vmem>>, vector<32x64xf32>,
    %c0_64 = arith.constant 0 : index
    %c1_65 = arith.constant 1 : index
    %c0_66 = arith.constant 0 : index
    %c2_67 = arith.constant 2 : index
    %c0_68 = arith.constant 0 : index
    %43 = vector.load %arg1[%c0_64, %c1_65, %c0_66, %c2_67, %c0_68] : memref<1x6x1x10x64xbf16, #tpu.memory_space<vmem>>, vector<1x4x1x8x64xbf16>
    %44 = vector.shape_cast %43 : vector<1x4x1x8x64xbf16> to vector<4x8x64xbf16>
    %45 = vector.shape_cast %44 : vector<4x8x64xbf16> to vector<32x64xbf16>
    %c1_69 = arith.constant 1 : index
    %c2_70 = arith.constant 2 : index
    %c0_71 = arith.constant 0 : index
    %c0_72 = arith.constant 0 : index
    %46 = vector.load %arg2[%c1_69, %c2_70, %c0_71, %c0_72] : memref<3x3x64x64xbf16, #tpu.memory_space<vmem>>, vector<1x1x64x64xbf16>
    %47 = vector.shape_cast %46 : vector<1x1x64x64xbf16> to vector<64x64xbf16>
    %cst_73 = arith.constant dense<0.000000e+00> : vector<32x64xf32>
    %48 = tpu.matmul %45, %47, %cst_73 {dimension_numbers = #tpu.dot_dimension_numbers<[1], [0], [0], [1], [0, 0, 1, 1], [], []>} : vector<32x64xbf16>, vector<64x64xbf16>, vector<32x64xf32> -> vector<32x64xf32>
    %c0_74 = arith.constant 0 : index
    %c0_75 = arith.constant 0 : index
    %49 = vector.load %arg5[%c0_74, %c0_75] : memref<32x64xf32, #tpu.memory_space<vmem>>, vector<32x64xf32>
    %50 = arith.addf %49, %48 : vector<32x64xf32>
    %c0_76 = arith.constant 0 : index
    %c0_77 = arith.constant 0 : index
    %51 = vector.load %arg5[%c0_76, %c0_77] : memref<32x64xf32, #tpu.memory_space<vmem>>, vector<32x64xf32>
    tpu.vector_store %arg5[%c0_76, %c0_77], %50 {strides = array<i32>} : memref<32x64xf32, #tpu.memory_space<vmem>>, vector<32x64xf32>,
    %c0_78 = arith.constant 0 : index
    %c2_79 = arith.constant 2 : index
    %c0_80 = arith.constant 0 : index
    %c0_81 = arith.constant 0 : index
    %c0_82 = arith.constant 0 : index
    %52 = vector.load %arg1[%c0_78, %c2_79, %c0_80, %c0_81, %c0_82] : memref<1x6x1x10x64xbf16, #tpu.memory_space<vmem>>, vector<1x4x1x8x64xbf16>
    %53 = vector.shape_cast %52 : vector<1x4x1x8x64xbf16> to vector<4x8x64xbf16>
    %54 = vector.shape_cast %53 : vector<4x8x64xbf16> to vector<32x64xbf16>
    %c2_83 = arith.constant 2 : index
    %c0_84 = arith.constant 0 : index
    %c0_85 = arith.constant 0 : index
    %c0_86 = arith.constant 0 : index
    %55 = vector.load %arg2[%c2_83, %c0_84, %c0_85, %c0_86] : memref<3x3x64x64xbf16, #tpu.memory_space<vmem>>, vector<1x1x64x64xbf16>
    %56 = vector.shape_cast %55 : vector<1x1x64x64xbf16> to vector<64x64xbf16>
    %cst_87 = arith.constant dense<0.000000e+00> : vector<32x64xf32>
    %57 = tpu.matmul %54, %56, %cst_87 {dimension_numbers = #tpu.dot_dimension_numbers<[1], [0], [0], [1], [0, 0, 1, 1], [], []>} : vector<32x64xbf16>, vector<64x64xbf16>, vector<32x64xf32> -> vector<32x64xf32>
    %c0_88 = arith.constant 0 : index
    %c0_89 = arith.constant 0 : index
    %58 = vector.load %arg5[%c0_88, %c0_89] : memref<32x64xf32, #tpu.memory_space<vmem>>, vector<32x64xf32>
    %59 = arith.addf %58, %57 : vector<32x64xf32>
    %c0_90 = arith.constant 0 : index
    %c0_91 = arith.constant 0 : index
    %60 = vector.load %arg5[%c0_90, %c0_91] : memref<32x64xf32, #tpu.memory_space<vmem>>, vector<32x64xf32>
    tpu.vector_store %arg5[%c0_90, %c0_91], %59 {strides = array<i32>} : memref<32x64xf32, #tpu.memory_space<vmem>>, vector<32x64xf32>,
    %c0_92 = arith.constant 0 : index
    %c2_93 = arith.constant 2 : index
    %c0_94 = arith.constant 0 : index
    %c1_95 = arith.constant 1 : index
    %c0_96 = arith.constant 0 : index
    %61 = vector.load %arg1[%c0_92, %c2_93, %c0_94, %c1_95, %c0_96] : memref<1x6x1x10x64xbf16, #tpu.memory_space<vmem>>, vector<1x4x1x8x64xbf16>
    %62 = vector.shape_cast %61 : vector<1x4x1x8x64xbf16> to vector<4x8x64xbf16>
    %63 = vector.shape_cast %62 : vector<4x8x64xbf16> to vector<32x64xbf16>
    %c2_97 = arith.constant 2 : index
    %c1_98 = arith.constant 1 : index
    %c0_99 = arith.constant 0 : index
    %c0_100 = arith.constant 0 : index
    %64 = vector.load %arg2[%c2_97, %c1_98, %c0_99, %c0_100] : memref<3x3x64x64xbf16, #tpu.memory_space<vmem>>, vector<1x1x64x64xbf16>
    %65 = vector.shape_cast %64 : vector<1x1x64x64xbf16> to vector<64x64xbf16>
    %cst_101 = arith.constant dense<0.000000e+00> : vector<32x64xf32>
    %66 = tpu.matmul %63, %65, %cst_101 {dimension_numbers = #tpu.dot_dimension_numbers<[1], [0], [0], [1], [0, 0, 1, 1], [], []>} : vector<32x64xbf16>, vector<64x64xbf16>, vector<32x64xf32> -> vector<32x64xf32>
    %c0_102 = arith.constant 0 : index
    %c0_103 = arith.constant 0 : index
    %67 = vector.load %arg5[%c0_102, %c0_103] : memref<32x64xf32, #tpu.memory_space<vmem>>, vector<32x64xf32>
    %68 = arith.addf %67, %66 : vector<32x64xf32>
    %c0_104 = arith.constant 0 : index
    %c0_105 = arith.constant 0 : index
    %69 = vector.load %arg5[%c0_104, %c0_105] : memref<32x64xf32, #tpu.memory_space<vmem>>, vector<32x64xf32>
    tpu.vector_store %arg5[%c0_104, %c0_105], %68 {strides = array<i32>} : memref<32x64xf32, #tpu.memory_space<vmem>>, vector<32x64xf32>,
    %c0_106 = arith.constant 0 : index
    %c2_107 = arith.constant 2 : index
    %c0_108 = arith.constant 0 : index
    %c2_109 = arith.constant 2 : index
    %c0_110 = arith.constant 0 : index
    %70 = vector.load %arg1[%c0_106, %c2_107, %c0_108, %c2_109, %c0_110] : memref<1x6x1x10x64xbf16, #tpu.memory_space<vmem>>, vector<1x4x1x8x64xbf16>
    %71 = vector.shape_cast %70 : vector<1x4x1x8x64xbf16> to vector<4x8x64xbf16>
    %72 = vector.shape_cast %71 : vector<4x8x64xbf16> to vector<32x64xbf16>
    %c2_111 = arith.constant 2 : index
    %c2_112 = arith.constant 2 : index
    %c0_113 = arith.constant 0 : index
    %c0_114 = arith.constant 0 : index
    %73 = vector.load %arg2[%c2_111, %c2_112, %c0_113, %c0_114] : memref<3x3x64x64xbf16, #tpu.memory_space<vmem>>, vector<1x1x64x64xbf16>
    %74 = vector.shape_cast %73 : vector<1x1x64x64xbf16> to vector<64x64xbf16>
    %cst_115 = arith.constant dense<0.000000e+00> : vector<32x64xf32>
    %75 = tpu.matmul %72, %74, %cst_115 {dimension_numbers = #tpu.dot_dimension_numbers<[1], [0], [0], [1], [0, 0, 1, 1], [], []>} : vector<32x64xbf16>, vector<64x64xbf16>, vector<32x64xf32> -> vector<32x64xf32>
    %c0_116 = arith.constant 0 : index
    %c0_117 = arith.constant 0 : index
    %76 = vector.load %arg5[%c0_116, %c0_117] : memref<32x64xf32, #tpu.memory_space<vmem>>, vector<32x64xf32>
    %77 = arith.addf %76, %75 : vector<32x64xf32>
    %c0_118 = arith.constant 0 : index
    %c0_119 = arith.constant 0 : index
    %78 = vector.load %arg5[%c0_118, %c0_119] : memref<32x64xf32, #tpu.memory_space<vmem>>, vector<32x64xf32>
    tpu.vector_store %arg5[%c0_118, %c0_119], %77 {strides = array<i32>} : memref<32x64xf32, #tpu.memory_space<vmem>>, vector<32x64xf32>,
    %c0_120 = arith.constant 0 : index
    %c0_121 = arith.constant 0 : index
    %79 = vector.load %arg5[%c0_120, %c0_121] : memref<32x64xf32, #tpu.memory_space<vmem>>, vector<32x64xf32>
    %c0_122 = arith.constant 0 : index
    %c0_123 = arith.constant 0 : index
    %80 = vector.load %arg3[%c0_122, %c0_123] : memref<1x64xf32, #tpu.memory_space<vmem>>, vector<1x64xf32>
    %81 = vector.broadcast %80 : vector<1x64xf32> to vector<32x64xf32>
    %82 = arith.addf %79, %81 : vector<32x64xf32>
    %cst_124 = arith.constant 0.000000e+00 : f32
    %83 = vector.broadcast %cst_124 : f32 to vector<32x64xf32>
    %84 = arith.maximumf %82, %83 : vector<32x64xf32>
    %85 = arith.truncf %84 : vector<32x64xf32> to vector<32x64xbf16>
    %c0_125 = arith.constant 0 : index
    %c0_126 = arith.constant 0 : index
    %c0_127 = arith.constant 0 : index
    %86 = vector.load %arg4[%c0_125, %c0_126, %c0_127] : memref<1x32x64xbf16, #tpu.memory_space<vmem>>, vector<1x32x64xbf16>
    %87 = vector.shape_cast %86 : vector<1x32x64xbf16> to vector<32x64xbf16>
    %88 = vector.shape_cast %85 : vector<32x64xbf16> to vector<1x32x64xbf16>
    tpu.vector_store %arg4[%c0_125, %c0_126, %c0_127], %88 {strides = array<i32>} : memref<1x32x64xbf16, #tpu.memory_space<vmem>>, vector<1x32x64xbf16>,
    return
  }
  func.func @transform_0(%arg0: i32) -> (i32, i32, i32, i32, i32) {
    %c0_i32 = arith.constant 0 : i32
    %c0_i32_0 = arith.constant 0 : i32
    %c0_i32_1 = arith.constant 0 : i32
    %c0_i32_2 = arith.constant 0 : i32
    %c0_i32_3 = arith.constant 0 : i32
    return %arg0, %c0_i32, %c0_i32_0, %c0_i32_1, %c0_i32_2 : i32, i32, i32, i32, i32
  }
  func.func @transform_1(%arg0: i32) -> (i32, i32, i32, i32) {
    %c0_i32 = arith.constant 0 : i32
    %c0_i32_0 = arith.constant 0 : i32
    %c0_i32_1 = arith.constant 0 : i32
    %c0_i32_2 = arith.constant 0 : i32
    %c0_i32_3 = arith.constant 0 : i32
    return %c0_i32, %c0_i32_0, %c0_i32_1, %c0_i32_2 : i32, i32, i32, i32
  }
  func.func @transform_2(%arg0: i32) -> (i32, i32) {
    %c0_i32 = arith.constant 0 : i32
    %c0_i32_0 = arith.constant 0 : i32
    %c0_i32_1 = arith.constant 0 : i32
    return %c0_i32, %c0_i32_0 : i32, i32
  }
  func.func @transform_3(%arg0: i32) -> (i32, i32, i32) {
    %c0_i32 = arith.constant 0 : i32
    %c0_i32_0 = arith.constant 0 : i32
    %c0_i32_1 = arith.constant 0 : i32
    return %arg0, %c0_i32, %c0_i32_0 : i32, i32, i32
  }
}

module attributes {stable_mosaic.version = 11 : i64} {
  func.func @_policy_head_kernel(%arg0: i32, %arg1: i32, %arg2: memref<16x1024xbf16, #tpu.memory_space<vmem>>, %arg3: memref<1024x512xi8, #tpu.memory_space<vmem>>, %arg4: memref<1x512xf32, #tpu.memory_space<vmem>>, %arg5: memref<1x512xf32, #tpu.memory_space<vmem>>, %arg6: memref<16x3xf32, #tpu.memory_space<vmem>>, %arg7: memref<512x256xbf16, #tpu.memory_space<vmem>>, %arg8: memref<3x256xf32, #tpu.memory_space<vmem>>, %arg9: memref<1x256xf32, #tpu.memory_space<vmem>>, %arg10: memref<256x128xbf16, #tpu.memory_space<vmem>>, %arg11: memref<1x128xf32, #tpu.memory_space<vmem>>, %arg12: memref<128x2xbf16, #tpu.memory_space<vmem>>, %arg13: memref<1x2xf32, #tpu.memory_space<vmem>>, %arg14: memref<1x2xf32, #tpu.memory_space<vmem>>, %arg15: memref<16x2xf32, #tpu.memory_space<vmem>>, %arg16: memref<1x2xf32, #tpu.memory_space<vmem>>, %arg17: memref<16x512xf32, #tpu.memory_space<vmem>>) attributes {dimension_semantics = [#tpu.dimension_semantics<parallel>, #tpu.dimension_semantics<arbitrary>], iteration_bounds = array<i64: 1, 2>, scalar_prefetch = 0 : i64, scratch_operands = 1 : i64, tpu.core_type = #tpu.core_type<tc>, window_params = [{transform_indices = @transform_0, window_bounds = array<i64: 16, 1024>}, {transform_indices = @transform_1, window_bounds = array<i64: 1024, 512>}, {pipeline_mode = #tpu.pipeline_mode<synchronous>, transform_indices = @transform_2, window_bounds = array<i64: 1, 512>}, {pipeline_mode = #tpu.pipeline_mode<synchronous>, transform_indices = @transform_3, window_bounds = array<i64: 1, 512>}, {transform_indices = @transform_4, window_bounds = array<i64: 16, 3>}, {pipeline_mode = #tpu.pipeline_mode<synchronous>, transform_indices = @transform_5, window_bounds = array<i64: 512, 256>}, {pipeline_mode = #tpu.pipeline_mode<synchronous>, transform_indices = @transform_6, window_bounds = array<i64: 3, 256>}, {pipeline_mode = #tpu.pipeline_mode<synchronous>, transform_indices = @transform_7, window_bounds = array<i64: 1, 256>}, {pipeline_mode = #tpu.pipeline_mode<synchronous>, transform_indices = @transform_8, window_bounds = array<i64: 256, 128>}, {pipeline_mode = #tpu.pipeline_mode<synchronous>, transform_indices = @transform_9, window_bounds = array<i64: 1, 128>}, {pipeline_mode = #tpu.pipeline_mode<synchronous>, transform_indices = @transform_10, window_bounds = array<i64: 128, 2>}, {pipeline_mode = #tpu.pipeline_mode<synchronous>, transform_indices = @transform_11, window_bounds = array<i64: 1, 2>}, {pipeline_mode = #tpu.pipeline_mode<synchronous>, transform_indices = @transform_12, window_bounds = array<i64: 1, 2>}, {transform_indices = @transform_13, window_bounds = array<i64: 16, 2>}, {pipeline_mode = #tpu.pipeline_mode<synchronous>, transform_indices = @transform_14, window_bounds = array<i64: 1, 2>}]} {
    %c0_i32 = arith.constant 0 : i32
    %0 = arith.cmpi eq, %arg1, %c0_i32 : i32
    %1 = arith.extui %0 : i1 to i32
    %c0_i32_0 = arith.constant 0 : i32
    %2 = arith.cmpi ne, %1, %c0_i32_0 : i32
    scf.if %2 {
      %cst_9 = arith.constant 0.000000e+00 : f32
      %13 = vector.broadcast %cst_9 : f32 to vector<16x512xf32>
      %c0_10 = arith.constant 0 : index
      %c0_11 = arith.constant 0 : index
      %14 = vector.load %arg17[%c0_10, %c0_11] : memref<16x512xf32, #tpu.memory_space<vmem>>, vector<16x512xf32>
      tpu.vector_store %arg17[%c0_10, %c0_11], %13 {strides = array<i32>} : memref<16x512xf32, #tpu.memory_space<vmem>>, vector<16x512xf32>,
    } else {
    }
    %c0 = arith.constant 0 : index
    %c0_1 = arith.constant 0 : index
    %3 = vector.load %arg17[%c0, %c0_1] : memref<16x512xf32, #tpu.memory_space<vmem>>, vector<16x512xf32>
    %c0_2 = arith.constant 0 : index
    %c0_3 = arith.constant 0 : index
    %4 = vector.load %arg2[%c0_2, %c0_3] : memref<16x1024xbf16, #tpu.memory_space<vmem>>, vector<16x1024xbf16>
    %c0_4 = arith.constant 0 : index
    %c0_5 = arith.constant 0 : index
    %5 = vector.load %arg3[%c0_4, %c0_5] : memref<1024x512xi8, #tpu.memory_space<vmem>>, vector<1024x512xi8>
    %6 = arith.sitofp %5 : vector<1024x512xi8> to vector<1024x512xbf16>
    %cst = arith.constant dense<0.000000e+00> : vector<16x512xf32>
    %7 = tpu.matmul %4, %6, %cst {dimension_numbers = #tpu.dot_dimension_numbers<[1], [0], [0], [1], [0, 0, 1, 1], [], []>} : vector<16x1024xbf16>, vector<1024x512xbf16>, vector<16x512xf32> -> vector<16x512xf32>
    %8 = arith.addf %3, %7 : vector<16x512xf32>
    %c0_6 = arith.constant 0 : index
    %c0_7 = arith.constant 0 : index
    %9 = vector.load %arg17[%c0_6, %c0_7] : memref<16x512xf32, #tpu.memory_space<vmem>>, vector<16x512xf32>
    tpu.vector_store %arg17[%c0_6, %c0_7], %8 {strides = array<i32>} : memref<16x512xf32, #tpu.memory_space<vmem>>, vector<16x512xf32>,
    %c1_i32 = arith.constant 1 : i32
    %10 = arith.cmpi eq, %arg1, %c1_i32 : i32
    %11 = arith.extui %10 : i1 to i32
    %c0_i32_8 = arith.constant 0 : i32
    %12 = arith.cmpi ne, %11, %c0_i32_8 : i32
    scf.if %12 {
      %c0_9 = arith.constant 0 : index
      %c0_10 = arith.constant 0 : index
      %13 = vector.load %arg17[%c0_9, %c0_10] : memref<16x512xf32, #tpu.memory_space<vmem>>, vector<16x512xf32>
      %c0_11 = arith.constant 0 : index
      %c0_12 = arith.constant 0 : index
      %14 = vector.load %arg4[%c0_11, %c0_12] : memref<1x512xf32, #tpu.memory_space<vmem>>, vector<1x512xf32>
      %15 = vector.broadcast %14 : vector<1x512xf32> to vector<16x512xf32>
      %16 = arith.mulf %13, %15 : vector<16x512xf32>
      %c0_13 = arith.constant 0 : index
      %c0_14 = arith.constant 0 : index
      %17 = vector.load %arg5[%c0_13, %c0_14] : memref<1x512xf32, #tpu.memory_space<vmem>>, vector<1x512xf32>
      %18 = vector.broadcast %17 : vector<1x512xf32> to vector<16x512xf32>
      %19 = arith.addf %16, %18 : vector<16x512xf32>
      %cst_15 = arith.constant 0.000000e+00 : f32
      %20 = vector.broadcast %cst_15 : f32 to vector<16x512xf32>
      %21 = arith.maximumf %19, %20 : vector<16x512xf32>
      %22 = arith.truncf %21 : vector<16x512xf32> to vector<16x512xbf16>
      %c0_16 = arith.constant 0 : index
      %c0_17 = arith.constant 0 : index
      %23 = vector.load %arg7[%c0_16, %c0_17] : memref<512x256xbf16, #tpu.memory_space<vmem>>, vector<512x256xbf16>
      %cst_18 = arith.constant dense<0.000000e+00> : vector<16x256xf32>
      %24 = tpu.matmul %22, %23, %cst_18 {dimension_numbers = #tpu.dot_dimension_numbers<[1], [0], [0], [1], [0, 0, 1, 1], [], []>} : vector<16x512xbf16>, vector<512x256xbf16>, vector<16x256xf32> -> vector<16x256xf32>
      %c0_19 = arith.constant 0 : index
      %c0_20 = arith.constant 0 : index
      %25 = vector.load %arg6[%c0_19, %c0_20] : memref<16x3xf32, #tpu.memory_space<vmem>>, vector<16x3xf32>
      %c0_21 = arith.constant 0 : index
      %c0_22 = arith.constant 0 : index
      %26 = vector.load %arg8[%c0_21, %c0_22] : memref<3x256xf32, #tpu.memory_space<vmem>>, vector<3x256xf32>
      %cst_23 = arith.constant dense<0.000000e+00> : vector<16x256xf32>
      %27 = tpu.matmul %25, %26, %cst_23 {dimension_numbers = #tpu.dot_dimension_numbers<[1], [0], [0], [1], [0, 0, 1, 1], [], []>} : vector<16x3xf32>, vector<3x256xf32>, vector<16x256xf32> -> vector<16x256xf32>
      %28 = arith.addf %24, %27 : vector<16x256xf32>
      %c0_24 = arith.constant 0 : index
      %c0_25 = arith.constant 0 : index
      %29 = vector.load %arg9[%c0_24, %c0_25] : memref<1x256xf32, #tpu.memory_space<vmem>>, vector<1x256xf32>
      %30 = vector.broadcast %29 : vector<1x256xf32> to vector<16x256xf32>
      %31 = arith.addf %28, %30 : vector<16x256xf32>
      %cst_26 = arith.constant 0.000000e+00 : f32
      %32 = vector.broadcast %cst_26 : f32 to vector<16x256xf32>
      %33 = arith.maximumf %31, %32 : vector<16x256xf32>
      %34 = arith.truncf %33 : vector<16x256xf32> to vector<16x256xbf16>
      %c0_27 = arith.constant 0 : index
      %c0_28 = arith.constant 0 : index
      %35 = vector.load %arg10[%c0_27, %c0_28] : memref<256x128xbf16, #tpu.memory_space<vmem>>, vector<256x128xbf16>
      %cst_29 = arith.constant dense<0.000000e+00> : vector<16x128xf32>
      %36 = tpu.matmul %34, %35, %cst_29 {dimension_numbers = #tpu.dot_dimension_numbers<[1], [0], [0], [1], [0, 0, 1, 1], [], []>} : vector<16x256xbf16>, vector<256x128xbf16>, vector<16x128xf32> -> vector<16x128xf32>
      %c0_30 = arith.constant 0 : index
      %c0_31 = arith.constant 0 : index
      %37 = vector.load %arg11[%c0_30, %c0_31] : memref<1x128xf32, #tpu.memory_space<vmem>>, vector<1x128xf32>
      %38 = vector.broadcast %37 : vector<1x128xf32> to vector<16x128xf32>
      %39 = arith.addf %36, %38 : vector<16x128xf32>
      %cst_32 = arith.constant 0.000000e+00 : f32
      %40 = vector.broadcast %cst_32 : f32 to vector<16x128xf32>
      %41 = arith.maximumf %39, %40 : vector<16x128xf32>
      %42 = arith.truncf %41 : vector<16x128xf32> to vector<16x128xbf16>
      %c0_33 = arith.constant 0 : index
      %c0_34 = arith.constant 0 : index
      %43 = vector.load %arg12[%c0_33, %c0_34] : memref<128x2xbf16, #tpu.memory_space<vmem>>, vector<128x2xbf16>
      %cst_35 = arith.constant dense<0.000000e+00> : vector<16x2xf32>
      %44 = tpu.matmul %42, %43, %cst_35 {dimension_numbers = #tpu.dot_dimension_numbers<[1], [0], [0], [1], [0, 0, 1, 1], [], []>} : vector<16x128xbf16>, vector<128x2xbf16>, vector<16x2xf32> -> vector<16x2xf32>
      %c0_36 = arith.constant 0 : index
      %c0_37 = arith.constant 0 : index
      %45 = vector.load %arg13[%c0_36, %c0_37] : memref<1x2xf32, #tpu.memory_space<vmem>>, vector<1x2xf32>
      %46 = vector.broadcast %45 : vector<1x2xf32> to vector<16x2xf32>
      %47 = arith.addf %44, %46 : vector<16x2xf32>
      %c0_38 = arith.constant 0 : index
      %c0_39 = arith.constant 0 : index
      %48 = vector.load %arg15[%c0_38, %c0_39] : memref<16x2xf32, #tpu.memory_space<vmem>>, vector<16x2xf32>
      tpu.vector_store %arg15[%c0_38, %c0_39], %47 {strides = array<i32>} : memref<16x2xf32, #tpu.memory_space<vmem>>, vector<16x2xf32>,
      %c0_40 = arith.constant 0 : index
      %c0_41 = arith.constant 0 : index
      %49 = vector.load %arg14[%c0_40, %c0_41] : memref<1x2xf32, #tpu.memory_space<vmem>>, vector<1x2xf32>
      %cst_42 = arith.constant -2.000000e+01 : f32
      %cst_43 = arith.constant 2.000000e+00 : f32
      %50 = vector.broadcast %cst_42 : f32 to vector<1x2xf32>
      %51 = arith.maximumf %50, %49 : vector<1x2xf32>
      %52 = vector.broadcast %cst_43 : f32 to vector<1x2xf32>
      %53 = arith.minimumf %52, %51 : vector<1x2xf32>
      %54 = math.exp %53 : vector<1x2xf32>
      %c0_44 = arith.constant 0 : index
      %c0_45 = arith.constant 0 : index
      %55 = vector.load %arg16[%c0_44, %c0_45] : memref<1x2xf32, #tpu.memory_space<vmem>>, vector<1x2xf32>
      tpu.vector_store %arg16[%c0_44, %c0_45], %54 {strides = array<i32>} : memref<1x2xf32, #tpu.memory_space<vmem>>, vector<1x2xf32>,
    } else {
    }
    return
  }
  func.func @transform_0(%arg0: i32, %arg1: i32) -> (i32, i32) {
    %c0_i32 = arith.constant 0 : i32
    return %arg0, %arg1 : i32, i32
  }
  func.func @transform_1(%arg0: i32, %arg1: i32) -> (i32, i32) {
    %c0_i32 = arith.constant 0 : i32
    %c0_i32_0 = arith.constant 0 : i32
    return %arg1, %c0_i32 : i32, i32
  }
  func.func @transform_2(%arg0: i32, %arg1: i32) -> (i32, i32) {
    %c0_i32 = arith.constant 0 : i32
    %c0_i32_0 = arith.constant 0 : i32
    %c0_i32_1 = arith.constant 0 : i32
    return %c0_i32, %c0_i32_0 : i32, i32
  }
  func.func @transform_3(%arg0: i32, %arg1: i32) -> (i32, i32) {
    %c0_i32 = arith.constant 0 : i32
    %c0_i32_0 = arith.constant 0 : i32
    %c0_i32_1 = arith.constant 0 : i32
    return %c0_i32, %c0_i32_0 : i32, i32
  }
  func.func @transform_4(%arg0: i32, %arg1: i32) -> (i32, i32) {
    %c0_i32 = arith.constant 0 : i32
    %c0_i32_0 = arith.constant 0 : i32
    return %arg0, %c0_i32 : i32, i32
  }
  func.func @transform_5(%arg0: i32, %arg1: i32) -> (i32, i32) {
    %c0_i32 = arith.constant 0 : i32
    %c0_i32_0 = arith.constant 0 : i32
    %c0_i32_1 = arith.constant 0 : i32
    return %c0_i32, %c0_i32_0 : i32, i32
  }
  func.func @transform_6(%arg0: i32, %arg1: i32) -> (i32, i32) {
    %c0_i32 = arith.constant 0 : i32
    %c0_i32_0 = arith.constant 0 : i32
    %c0_i32_1 = arith.constant 0 : i32
    return %c0_i32, %c0_i32_0 : i32, i32
  }
  func.func @transform_7(%arg0: i32, %arg1: i32) -> (i32, i32) {
    %c0_i32 = arith.constant 0 : i32
    %c0_i32_0 = arith.constant 0 : i32
    %c0_i32_1 = arith.constant 0 : i32
    return %c0_i32, %c0_i32_0 : i32, i32
  }
  func.func @transform_8(%arg0: i32, %arg1: i32) -> (i32, i32) {
    %c0_i32 = arith.constant 0 : i32
    %c0_i32_0 = arith.constant 0 : i32
    %c0_i32_1 = arith.constant 0 : i32
    return %c0_i32, %c0_i32_0 : i32, i32
  }
  func.func @transform_9(%arg0: i32, %arg1: i32) -> (i32, i32) {
    %c0_i32 = arith.constant 0 : i32
    %c0_i32_0 = arith.constant 0 : i32
    %c0_i32_1 = arith.constant 0 : i32
    return %c0_i32, %c0_i32_0 : i32, i32
  }
  func.func @transform_10(%arg0: i32, %arg1: i32) -> (i32, i32) {
    %c0_i32 = arith.constant 0 : i32
    %c0_i32_0 = arith.constant 0 : i32
    %c0_i32_1 = arith.constant 0 : i32
    return %c0_i32, %c0_i32_0 : i32, i32
  }
  func.func @transform_11(%arg0: i32, %arg1: i32) -> (i32, i32) {
    %c0_i32 = arith.constant 0 : i32
    %c0_i32_0 = arith.constant 0 : i32
    %c0_i32_1 = arith.constant 0 : i32
    return %c0_i32, %c0_i32_0 : i32, i32
  }
  func.func @transform_12(%arg0: i32, %arg1: i32) -> (i32, i32) {
    %c0_i32 = arith.constant 0 : i32
    %c0_i32_0 = arith.constant 0 : i32
    %c0_i32_1 = arith.constant 0 : i32
    return %c0_i32, %c0_i32_0 : i32, i32
  }
  func.func @transform_13(%arg0: i32, %arg1: i32) -> (i32, i32) {
    %c0_i32 = arith.constant 0 : i32
    %c0_i32_0 = arith.constant 0 : i32
    return %arg0, %c0_i32 : i32, i32
  }
  func.func @transform_14(%arg0: i32, %arg1: i32) -> (i32, i32) {
    %c0_i32 = arith.constant 0 : i32
    %c0_i32_0 = arith.constant 0 : i32
    %c0_i32_1 = arith.constant 0 : i32
    return %c0_i32, %c0_i32_0 : i32, i32
  }
}

</mosaic_0001>

<bundles_post_ra>
// kernel: ppo_policy_forward.4
= control target key start
LH: loop header
LB: loop body
LE: loop exit
PB: predicated region body
PF: predicated region fallthrough
CT: control target
= control target key end

     0   :  { %s5754_s12 = smov 0   ;;  %s7200_s0 = inlined_call_operand.vmem [shape: bf16[2,9,4,17,24], index: 0, kind: input, shape index: {}]   ;;  %s7201_s1 = inlined_call_operand.vmem [shape: bf16[8,2,24,32], index: 1, kind: input, shape index: {}]   ;;  %s7202_s2 = inlined_call_operand.vmem [shape: f32[1,32], index: 2, kind: input, shape index: {}]   ;;  %s7203_s3 = inlined_call_operand.vmem [shape: bf16[2,128,32], index: 3, kind: output, shape index: {}]  }
   0x1 LB: > { %s4852_s13 = sadd.s32 4294967295, %s5732_s12   ;;  %p4856_p0 = scmp.ge.s32.totalorder %s5732_s12, 1  ;;  %s5732_s12 = sphi %s5754_s12, %s13_s12  }
   0x2   : > { %p137_p1 = scmp.lt.s32.totalorder %s5732_s12, 3 }
   0x4   : > { %p138_p2 = pnand %p4856_p0, %p137_p1 }
   0x5   : > { %p161_p3 = scmp.lt.s32.totalorder (!%p138_p2), %s4852_s13, 1 }
   0x6   : > { %141 = sbr.rel (%p138_p2) target bundleno = 702 (0x2be), region = 32 }
   0xb   : > { %v190_v0 = vld [vmem:[%s7201_s1 + $0x8] sm:$0xf]  ;;  %v4937_v1 = vld [vmem:[%s7201_s1 + $0x20] sm:$0xf]  ;;  %v5039_v4 = vld [vmem:[%s7201_s1 + $0x38] sm:$0xf] }
   0xc   : > { %v236_v2 = vunpack.c.l.b16 %v190_v0  ;;  %v781_v3 = vunpack.c.l.b16 %v4937_v1  ;;  %v4906_v5 = vld [vmem:[%s7201_s1 + $0x14] sm:$0xf]  ;;  %vm265_vm0 = vcmask 1043456   ;;  %v1352_v6 = vunpack.c.l.b16 %v5039_v4  ;;  %s7207_s13 = smov (!%p161_p3, %s4852_s13), 1  ;;  %v5008_v10 = vld [vmem:[%s7201_s1 + $0x2c] sm:$0xf] }
   0xd   : > { %v587_v7 = vunpack.c.l.b16 %v4906_v5  ;;  %v5110_v11 = vld [vmem:[%s7201_s1 + $0x44] sm:$0xf]  ;;  %v1158_v14 = vunpack.c.l.b16 %v5008_v10  ;;  %v5141_v16 = vld [vmem:[%s7201_s1 + $0x50] sm:$0xf]  ;;  %s5716_s28 = smul.u32 432, %s7207_s13  ;;  %vm240_vm1 = vcmask 195584  }
   0xe   : > { %v238_v8 = vpack.c.b16 %v236_v2, %v236_v2  ;;  %v783_v9 = vpack.c.b16 %v781_v3, %v781_v3  ;;  %v1354_v12 = vpack.c.b16 %v1352_v6, %v1352_v6  ;;  %v1729_v15 = vunpack.c.l.b16 %v5110_v11  ;;  %v5644_v20 = vld [vmem:[%s7201_s1] sm:$0xff]  ;;  %v5654_v22 = vld [vmem:[%s7201_s1 + $0x18] sm:$0xff]  ;;  %v5645_v26 = vld [vmem:[%s7201_s1 + $0xc] sm:$0xff]  ;;  %s5635_s7 = sshll.u32 %s7207_s13, 6 }
   0xf   : > { %v589_v13 = vpack.c.b16 %v587_v7, %v587_v7  ;;  %v1923_v19 = vunpack.c.l.b16 %v5141_v16  ;;  %vm359_vm2 = vsmask.f32 3328  ;;  %v1160_v23 = vpack.c.b16 %v1158_v14, %v1158_v14  ;;  %s5798_s8 = scalar_lea.vmem %s7200_s0, %s5716_s28  ;;  %v5212_v28 = vld [vmem:[%s7201_s1 + $0x5c] sm:$0xf]  ;;  %v5655_v42 = vld [vmem:[%s7201_s1 + $0x24] sm:$0xff]  ;;  %s7099_s11 = scalar_lea.vmem %s7203_s3, %s5635_s7 }
  0x10   : > { %v267_v17 = vsel %vm265_vm0, %v238_v8, 0  ;;  %v810_v18 = vsel %vm265_vm0, %v783_v9, 0  ;;  %v1731_v24 = vpack.c.b16 %v1729_v15, %v1729_v15  ;;  %v1381_v25 = vsel %vm265_vm0, %v1354_v12, 0  ;;  %v5636_v29 = vld [vmem:[%s5798_s8] sm:$0xff]  ;;  %v5646_v30 = vld [vmem:[%s5798_s8 + $0xc] sm:$0xff] }
  0x11   : > { %275 = vmatpush.bf16.msra.mxu0 %v267_v17  ;;  %818 = vmatpush.bf16.msra.mxu2 %v810_v18  ;;  %v616_v21 = vsel %vm265_vm0, %v589_v13, 0  ;;  %vm360_vm3 = vsmask.f32 7440  ;;  %v1925_v27 = vpack.c.b16 %v1923_v19, %v1923_v19  ;;  %v335_v31 = vld [vmem:[%s5798_s8] sm:$0xf]  ;;  %v1187_v32 = vsel %vm265_vm0, %v1160_v23, 0 }
  0x12   : > { %624 = vmatpush.bf16.msra.mxu1 %v616_v21  ;;  %v1758_v33 = vsel %vm265_vm0, %v1731_v24, 0  ;;  %v2300_v34 = vunpack.c.l.b16 %v5212_v28  ;;  %v336_v35 = vld [vmem:[%s5798_s8 + $0x4] sm:$0xf]  ;;  %v337_v36 = vld [vmem:[%s5798_s8 + $0x8] sm:$0x1]  ;;  %v363_v37 = vshrl.u32 %v335_v31, 16  ;;  %1195 = vmatpush.bf16.msra.mxu3 %v1187_v32  ;;  %vm5826_vm4 = vmor %vm359_vm2, %vm360_vm3 }
  0x13   : > { %v366_v38 = vshll.u32 %v335_v31, 16  ;;  %v372_v39 = vshll.u32 %v336_v35, 16  ;;  %v376_v40 = vshrl.u32 %v336_v35, 16  ;;  %v382_v41 = vshll.u32 %v337_v36, 16  ;;  %v4982_v46 = vld [vmem:[%s5798_s8 + $0xc] sm:$0xf] }
  0x14   : > { %v1952_v43 = vsel %vm265_vm0, %v1925_v27, 0  ;;  %v365_v44 = vrot.slane %v363_v37, 4  ;;  %v4983_v47 = vld [vmem:[%s5798_s8 + $0x10] sm:$0xf]  ;;  %v4984_v50 = vld [vmem:[%s5798_s8 + $0x14] sm:$0x1]  ;;  %v2302_v52 = vpack.c.b16 %v2300_v34, %v2300_v34 }
  0x15   : > { %276 = vmatpush.bf16.msra.mxu0 %v5644_v20  ;;  %819 = vmatpush.bf16.msra.mxu2 %v5654_v22  ;;  %v368_v45 = vrot.slane %v366_v38, 5  ;;  %v374_v48 = vrot.slane %v372_v39, 5  ;;  %v378_v49 = vrot.slane %v376_v40, 4  ;;  %v934_v51 = vshrl.u32 %v4982_v46, 16  ;;  %v338_v57 = vld [vmem:[%s5798_s8 + $0x30] sm:$0xf] }
  0x16   : > { %625 = vmatpush.bf16.msra.mxu1 %v5645_v26  ;;  %v937_v54 = vshll.u32 %v4982_v46, 16  ;;  %v943_v55 = vshll.u32 %v4983_v47, 16  ;;  %v947_v56 = vshrl.u32 %v4983_v47, 16  ;;  %v384_v60 = vrot.slane %v382_v41, 5  ;;  %1196 = vmatpush.bf16.msra.mxu3 %v5655_v42  ;;  %v339_v63 = vld [vmem:[%s5798_s8 + $0x34] sm:$0xf] }
  0x17   : > { %v369_v53 = vor.u32 %v368_v45, %v365_v44  ;;  %v379_v59 = vor.u32 %v378_v49, %v374_v48  ;;  %v936_v61 = vrot.slane %v934_v51, 4  ;;  %v953_v62 = vshll.u32 %v4984_v50, 16  ;;  %v340_v11 = vld [vmem:[%s5798_s8 + $0x38] sm:$0x1]  ;;  %v4985_v17 = vld [vmem:[%s5798_s8 + $0x3c] sm:$0xf] }
  0x18   : > { %4896 = vmatmul.msk.bf16.vlgmr.msra.gmra.mxu0 %vm240_vm1, %v5636_v29  ;;  %4974 = vmatmul.msk.bf16.vlgmr.msra.gmra.mxu2 %vm240_vm1, %v5646_v30  ;;  %v939_v1 = vrot.slane %v937_v54, 5  ;;  %v945_v2 = vrot.slane %v943_v55, 5  ;;  %v949_v3 = vrot.slane %v947_v56, 4  ;;  %v387_v6 = vshrl.u32 %v338_v57, 16  ;;  %v4986_v26 = vld [vmem:[%s5798_s8 + $0x40] sm:$0xf] }
  0x19   : > { %1389 = vmatpush.bf16.msrb.mxu0 %v1381_v25  ;;  %1960 = vmatpush.bf16.msrb.mxu2 %v1952_v43  ;;  %v370_v0 = vrot.slane %v369_v53, 4  ;;  %v380_v4 = vrot.slane %v379_v59, 4  ;;  %v955_v5 = vrot.slane %v953_v62, 5  ;;  %v390_v7 = vshll.u32 %v338_v57, 16  ;;  %v4987_v35 = vld [vmem:[%s5798_s8 + $0x44] sm:$0x1] }
  0x1a   : > { %1766 = vmatpush.bf16.msrb.mxu1 %v1758_v33  ;;  %v940_v9 = vor.u32 %v939_v1, %v936_v61  ;;  %v950_v10 = vor.u32 %v949_v3, %v945_v2  ;;  %v396_v12 = vshll.u32 %v339_v63, 16  ;;  %v389_v15 = vrot.slane %v387_v6, 4  ;;  %v341_v39 = vld [vmem:[%s5798_s8 + $0x60] sm:$0xf]  ;;  %v342_v44 = vld [vmem:[%s5798_s8 + $0x64] sm:$0xf] }
  0x1b   : > { %v375_v8 = vsel %vm5826_vm4, %v370_v0, %v374_v48  ;;  %v385_v13 = vsel %vm5826_vm4, %v380_v4, %v384_v60  ;;  %v392_v16 = vrot.slane %v390_v7, 5  ;;  %v400_v23 = vshrl.u32 %v339_v63, 16  ;;  %v5637_v45 = vld [vmem:[%s5798_s8 + $0x30] sm:$0xff]  ;;  %v5647_v46 = vld [vmem:[%s5798_s8 + $0x3c] sm:$0xff]  ;;  %v4988_v60 = vld [vmem:[%s5798_s8 + $0x6c] sm:$0xf] }
  0x1c   : > { %v558_v14 = vunpack.c.l.b16 %v375_v8  ;;  %v559_v18 = vunpack.c.l.b16 %v385_v13  ;;  %v941_v19 = vrot.slane %v940_v9, 4  ;;  %v951_v20 = vrot.slane %v950_v10, 4  ;;  %v4989_v10 = vld [vmem:[%s5798_s8 + $0x70] sm:$0xf] }
  0x1d   : > { %v398_v21 = vrot.slane %v396_v12, 5  ;;  %v393_v22 = vor.u32 %v392_v16, %v389_v15  ;;  %v406_v24 = vshll.u32 %v340_v11, 16  ;;  %v2329_v25 = vsel %vm265_vm0, %v2302_v52, 0 }
  0x1e   : > { %v574_v27 = vpack.c.b16 %v559_v18, %v558_v14  ;;  %v946_v28 = vsel %vm5826_vm4, %v941_v19, %v945_v2  ;;  %v956_v29 = vsel %vm5826_vm4, %v951_v20, %v955_v5  ;;  %2337 = vmatpush.bf16.msrb.mxu3 %v2329_v25  ;;  %v958_v30 = vshrl.u32 %v4985_v17, 16  ;;  %v343_v5 = vld [vmem:[%s5798_s8 + $0x68] sm:$0x1] }
  0x1f   : > { %v1129_v31 = vunpack.c.l.b16 %v946_v28  ;;  %v1130_v32 = vunpack.c.l.b16 %v956_v29  ;;  %v394_v33 = vrot.slane %v393_v22, 4  ;;  %v402_v34 = vrot.slane %v400_v23, 4  ;;  %v4990_v23 = vld [vmem:[%s5798_s8 + $0x74] sm:$0x1] }
  0x20   : > { %4911 = vmatmul.msk.bf16.vlgmr.msra.gmra.mxu1 %vm240_vm1, %v574_v27  ;;  %v960_v36 = vrot.slane %v958_v30, 4  ;;  %v961_v37 = vshll.u32 %v4985_v17, 16  ;;  %v967_v38 = vshll.u32 %v4986_v26, 16  ;;  %v408_v42 = vrot.slane %v406_v24, 5 }
  0x21   : > { %v1145_v40 = vpack.c.b16 %v1130_v32, %v1129_v31  ;;  %v403_v41 = vor.u32 %v402_v34, %v398_v21  ;;  %v971_v43 = vshrl.u32 %v4986_v26, 16  ;;  %v399_v47 = vsel %vm5826_vm4, %v394_v33, %v398_v21  ;;  %v344_v31 = vld [vmem:[%s5798_s8 + $0x90] sm:$0xf]  ;;  %v345_v34 = vld [vmem:[%s5798_s8 + $0x94] sm:$0xf] }
  0x22   : > { %v963_v48 = vrot.slane %v961_v37, 5  ;;  %v969_v49 = vrot.slane %v967_v38, 5  ;;  %v977_v50 = vshll.u32 %v4987_v35, 16  ;;  %v411_v53 = vshrl.u32 %v341_v39, 16  ;;  %v5638_v35 = vld [vmem:[%s5798_s8 + $0x60] sm:$0xff] }
  0x23   : > { %5013 = vmatmul.msk.bf16.vlgmr.msra.gmra.mxu3 %vm240_vm1, %v1145_v40  ;;  %v404_v51 = vrot.slane %v403_v41, 4  ;;  %v973_v52 = vrot.slane %v971_v43, 4  ;;  %v414_v54 = vshll.u32 %v341_v39, 16  ;;  %v420_v57 = vshll.u32 %v342_v44, 16 }
  0x24   : > { %v964_v55 = vor.u32 %v963_v48, %v960_v36  ;;  %v979_v56 = vrot.slane %v977_v50, 5  ;;  %v424_v59 = vshrl.u32 %v342_v44, 16  ;;  %v413_v63 = vrot.slane %v411_v53, 4  ;;  %v5648_v36 = vld [vmem:[%s5798_s8 + $0x6c] sm:$0xff]  ;;  %v346_v53 = vld [vmem:[%s5798_s8 + $0x98] sm:$0x1] }
  0x25   : > { %v409_v61 = vsel %vm5826_vm4, %v404_v51, %v408_v42  ;;  %v974_v62 = vor.u32 %v973_v52, %v969_v49  ;;  %v416_v0 = vrot.slane %v414_v54, 5  ;;  %v422_v2 = vrot.slane %v420_v57, 5  ;;  %v5664_v52 = vld [vmem:[%s7201_s1 + $0x30] sm:$0xff] }
  0x26   : > { %v965_v1 = vrot.slane %v964_v55, 4  ;;  %v426_v3 = vrot.slane %v424_v59, 4  ;;  %v982_v6 = vshrl.u32 %v4988_v60, 16  ;;  %v560_v7 = vunpack.c.l.b16 %v399_v47  ;;  %v4992_v47 = vld [vmem:[%s5798_s8 + $0xa0] sm:$0xf]  ;;  %1390 = vmatpush.bf16.msrb.mxu0 %v5664_v52 }
  0x27   : > { %v975_v4 = vrot.slane %v974_v62, 4  ;;  %v561_v8 = vunpack.c.l.b16 %v409_v61  ;;  %v985_v11 = vshll.u32 %v4988_v60, 16  ;;  %v417_v13 = vor.u32 %v416_v0, %v413_v63 }
  0x28   : > { %4897 = vmatmul.msk.bf16.gmra.mxu0 %vm240_vm1, %v5637_v45  ;;  %4975 = vmatmul.msk.bf16.gmra.mxu2 %vm240_vm1, %v5647_v46  ;;  %v970_v9 = vsel %vm5826_vm4, %v965_v1, %v969_v49  ;;  %v427_v14 = vor.u32 %v426_v3, %v422_v2  ;;  %v430_v15 = vshll.u32 %v343_v5, 16  ;;  %v984_v16 = vrot.slane %v982_v6, 4  ;;  %v4991_v46 = vld [vmem:[%s5798_s8 + $0x9c] sm:$0xf]  ;;  %v4993_v5 = vld [vmem:[%s5798_s8 + $0xa4] sm:$0x1] }
  0x29   : > { %v980_v12 = vsel %vm5826_vm4, %v975_v4, %v979_v56  ;;  %v987_v17 = vrot.slane %v985_v11, 5  ;;  %v1131_v18 = vunpack.c.l.b16 %v970_v9  ;;  %v991_v20 = vshll.u32 %v4989_v10, 16 }
  0x2a   : > { %v1132_v19 = vunpack.c.l.b16 %v980_v12  ;;  %v995_v21 = vshrl.u32 %v4989_v10, 16  ;;  %v575_v22 = vpack.c.b16 %v561_v8, %v560_v7  ;;  %v418_v26 = vrot.slane %v417_v13, 4 }
  0x2b   : > { %v993_v24 = vrot.slane %v991_v20, 5  ;;  %v988_v27 = vor.u32 %v987_v17, %v984_v16  ;;  %v428_v29 = vrot.slane %v427_v14, 4  ;;  %v432_v30 = vrot.slane %v430_v15, 5  ;;  %v347_v17 = vld [vmem:[%s5798_s8 + $0xc0] sm:$0xf]  ;;  %v5639_v20 = vld [vmem:[%s5798_s8 + $0x90] sm:$0xff] }
  0x2c   : > { %v997_v25 = vrot.slane %v995_v21, 4  ;;  %v1146_v28 = vpack.c.b16 %v1132_v19, %v1131_v18  ;;  %v1001_v33 = vshll.u32 %v4990_v23, 16  ;;  %v423_v37 = vsel %vm5826_vm4, %v418_v26, %v422_v2  ;;  %v5665_v18 = vld [vmem:[%s7201_s1 + $0x3c] sm:$0xff]  ;;  %v5674_v19 = vld [vmem:[%s7201_s1 + $0x48] sm:$0xff]  ;;  %v348_v21 = vld [vmem:[%s5798_s8 + $0xc4] sm:$0xf] }
  0x2d   : > { %v989_v38 = vrot.slane %v988_v27, 4  ;;  %v435_v39 = vshrl.u32 %v344_v31, 16  ;;  %v433_v40 = vsel %vm5826_vm4, %v428_v29, %v432_v30  ;;  %v438_v41 = vshll.u32 %v344_v31, 16  ;;  %1767 = vmatpush.bf16.msrb.mxu1 %v5665_v18  ;;  %1961 = vmatpush.bf16.msrb.mxu2 %v5674_v19 }
  0x2e   : > { %v998_v32 = vor.u32 %v997_v25, %v993_v24  ;;  %v444_v42 = vshll.u32 %v345_v34, 16  ;;  %v448_v43 = vshrl.u32 %v345_v34, 16  ;;  %v1003_v45 = vrot.slane %v1001_v33, 5  ;;  %v4995_v25 = vld [vmem:[%s5798_s8 + $0xd0] sm:$0xf] }
  0x2f   : > { %v562_v48 = vunpack.c.l.b16 %v423_v37  ;;  %v563_v49 = vunpack.c.l.b16 %v433_v40  ;;  %v994_v50 = vsel %vm5826_vm4, %v989_v38, %v993_v24  ;;  %v437_v51 = vrot.slane %v435_v39, 4  ;;  %v4994_v24 = vld [vmem:[%s5798_s8 + $0xcc] sm:$0xf] }
  0x30   : > { %4912 = vmatmul.msk.bf16.gmra.mxu1 %vm240_vm1, %v575_v22  ;;  %v999_v44 = vrot.slane %v998_v32, 4  ;;  %v440_v54 = vrot.slane %v438_v41, 5  ;;  %v446_v55 = vrot.slane %v444_v42, 5  ;;  %v450_v56 = vrot.slane %v448_v43, 4  ;;  %v5649_v22 = vld [vmem:[%s5798_s8 + $0x9c] sm:$0xff] }
  0x31   : > { %v1006_v57 = vshrl.u32 %v4991_v46, 16  ;;  %v1009_v60 = vshll.u32 %v4991_v46, 16  ;;  %v1015_v61 = vshll.u32 %v4992_v47, 16  ;;  %v1019_v62 = vshrl.u32 %v4992_v47, 16  ;;  %v349_v46 = vld [vmem:[%s5798_s8 + $0xc8] sm:$0x1] }
  0x32   : > { %v1004_v59 = vsel %vm5826_vm4, %v999_v44, %v1003_v45  ;;  %v576_v63 = vpack.c.b16 %v563_v49, %v562_v48  ;;  %v454_v0 = vshll.u32 %v346_v53, 16  ;;  %v1133_v1 = vunpack.c.l.b16 %v994_v50 }
  0x33   : > { %5014 = vmatmul.msk.bf16.gmra.mxu3 %vm240_vm1, %v1146_v28  ;;  %v1134_v2 = vunpack.c.l.b16 %v1004_v59  ;;  %v441_v3 = vor.u32 %v440_v54, %v437_v51  ;;  %v451_v4 = vor.u32 %v450_v56, %v446_v55  ;;  %v1008_v6 = vrot.slane %v1006_v57, 4  ;;  %v4996_v51 = vld [vmem:[%s5798_s8 + $0xd4] sm:$0x1] }
  0x34   : > { %v1011_v7 = vrot.slane %v1009_v60, 5  ;;  %v1017_v8 = vrot.slane %v1015_v61, 5  ;;  %v1021_v9 = vrot.slane %v1019_v62, 4  ;;  %v1025_v10 = vshll.u32 %v4993_v5, 16 }
  0x35   : > { %v1147_v11 = vpack.c.b16 %v1134_v2, %v1133_v1  ;;  %v442_v12 = vrot.slane %v441_v3, 4  ;;  %v452_v13 = vrot.slane %v451_v4, 4  ;;  %v456_v14 = vrot.slane %v454_v0, 5  ;;  %v351_v0 = vld [vmem:[%s5798_s8 + $0xf4] sm:$0xf] }
  0x36   : > { %v1012_v15 = vor.u32 %v1011_v7, %v1008_v6  ;;  %v1022_v16 = vor.u32 %v1021_v9, %v1017_v8  ;;  %v1027_v23 = vrot.slane %v1025_v10, 5  ;;  %v459_v28 = vshrl.u32 %v347_v17, 16  ;;  %v5675_v3 = vld [vmem:[%s7201_s1 + $0x54] sm:$0xff]  ;;  %v5650_v9 = vld [vmem:[%s5798_s8 + $0xcc] sm:$0xff] }
  0x37   : > { %v447_v26 = vsel %vm5826_vm4, %v442_v12, %v446_v55  ;;  %v457_v27 = vsel %vm5826_vm4, %v452_v13, %v456_v14  ;;  %v462_v29 = vshll.u32 %v347_v17, 16  ;;  %v468_v32 = vshll.u32 %v348_v21, 16  ;;  %2338 = vmatpush.bf16.msrb.mxu3 %v5675_v3  ;;  %v4997_v14 = vld [vmem:[%s5798_s8 + $0xfc] sm:$0xf] }
  0x38   : > { %4898 = vmatmul.msk.bf16.gmra.mxu0 %vm240_vm1, %v5638_v35  ;;  %4976 = vmatmul.msk.bf16.gmra.mxu2 %vm240_vm1, %v5648_v36  ;;  %v1013_v30 = vrot.slane %v1012_v15, 4  ;;  %v1023_v31 = vrot.slane %v1022_v16, 4  ;;  %v472_v33 = vshrl.u32 %v348_v21, 16  ;;  %v1030_v34 = vshrl.u32 %v4994_v24, 16  ;;  %v4998_v15 = vld [vmem:[%s5798_s8 + $0x100] sm:$0xf] }
  0x39   : > { %v1033_v35 = vshll.u32 %v4994_v24, 16  ;;  %v1039_v36 = vshll.u32 %v4995_v25, 16  ;;  %v1043_v37 = vshrl.u32 %v4995_v25, 16  ;;  %v564_v38 = vunpack.c.l.b16 %v447_v26  ;;  %v352_v24 = vld [vmem:[%s5798_s8 + $0xf8] sm:$0x1] }
  0x3a   : > { %v565_v39 = vunpack.c.l.b16 %v457_v27  ;;  %v461_v40 = vrot.slane %v459_v28, 4  ;;  %v464_v41 = vrot.slane %v462_v29, 5  ;;  %v1018_v42 = vsel %vm5826_vm4, %v1013_v30, %v1017_v8  ;;  %v5640_v8 = vld [vmem:[%s5798_s8 + $0xc0] sm:$0xff] }
  0x3b   : > { %v1028_v43 = vsel %vm5826_vm4, %v1023_v31, %v1027_v23  ;;  %v470_v44 = vrot.slane %v468_v32, 5  ;;  %v474_v45 = vrot.slane %v472_v33, 4  ;;  %v1032_v47 = vrot.slane %v1030_v34, 4 }
  0x3c   : > { %v1035_v48 = vrot.slane %v1033_v35, 5  ;;  %v1041_v49 = vrot.slane %v1039_v36, 5  ;;  %v1045_v50 = vrot.slane %v1043_v37, 4  ;;  %v1135_v52 = vunpack.c.l.b16 %v1018_v42 }
  0x3d   : > { %v1136_v53 = vunpack.c.l.b16 %v1028_v43  ;;  %v577_v54 = vpack.c.b16 %v565_v39, %v564_v38  ;;  %v465_v55 = vor.u32 %v464_v41, %v461_v40  ;;  %v478_v56 = vshll.u32 %v349_v46, 16  ;;  %v4999_v41 = vld [vmem:[%s5798_s8 + $0x104] sm:$0x1] }
  0x3e   : > { %v475_v57 = vor.u32 %v474_v45, %v470_v44  ;;  %v1036_v59 = vor.u32 %v1035_v48, %v1032_v47  ;;  %v1046_v60 = vor.u32 %v1045_v50, %v1041_v49  ;;  %v1049_v61 = vshll.u32 %v4996_v51, 16  ;;  %v353_v50 = vld [vmem:[%s5798_s8 + $0x120] sm:$0xf]  ;;  %v354_v51 = vld [vmem:[%s5798_s8 + $0x124] sm:$0xf] }
  0x3f   : > { %v1148_v62 = vpack.c.b16 %v1136_v53, %v1135_v52  ;;  %v466_v1 = vrot.slane %v465_v55, 4  ;;  %v480_v2 = vrot.slane %v478_v56, 5  ;;  %v492_v12 = vshll.u32 %v351_v0, 16  ;;  %v5651_v52 = vld [vmem:[%s5798_s8 + $0xfc] sm:$0xff]  ;;  %v5001_v55 = vld [vmem:[%s5798_s8 + $0x130] sm:$0xf] }
  0x40   : > { %4913 = vmatmul.msk.bf16.gmra.mxu1 %vm240_vm1, %v576_v63  ;;  %v350_v63 = vld [vmem:[%s5798_s8 + $0xf0] sm:$0xf]  ;;  %v476_v4 = vrot.slane %v475_v57, 4  ;;  %v1037_v5 = vrot.slane %v1036_v59, 4  ;;  %v1047_v6 = vrot.slane %v1046_v60, 4  ;;  %v1051_v7 = vrot.slane %v1049_v61, 5 }
  0x41   : > { %v483_v10 = vshrl.u32 %v350_v63, 16  ;;  %v496_v13 = vshrl.u32 %v351_v0, 16  ;;  %v471_v16 = vsel %vm5826_vm4, %v466_v1, %v470_v44  ;;  %v1054_v25 = vshrl.u32 %v4997_v14, 16 }
  0x42   : > { %v481_v17 = vsel %vm5826_vm4, %v476_v4, %v480_v2  ;;  %v1042_v18 = vsel %vm5826_vm4, %v1037_v5, %v1041_v49  ;;  %v1052_v19 = vsel %vm5826_vm4, %v1047_v6, %v1051_v7  ;;  %v1057_v26 = vshll.u32 %v4997_v14, 16  ;;  %v5641_v49 = vld [vmem:[%s5798_s8 + $0xf0] sm:$0xff] }
  0x43   : > { %5015 = vmatmul.msk.bf16.gmra.mxu3 %vm240_vm1, %v1147_v11  ;;  %v486_v11 = vshll.u32 %v350_v63, 16  ;;  %v498_v23 = vrot.slane %v496_v13, 4  ;;  %v1063_v27 = vshll.u32 %v4998_v15, 16  ;;  %v1067_v28 = vshrl.u32 %v4998_v15, 16  ;;  %v355_v13 = vld [vmem:[%s5798_s8 + $0x128] sm:$0x1] }
  0x44   : > { %v566_v29 = vunpack.c.l.b16 %v471_v16  ;;  %v567_v30 = vunpack.c.l.b16 %v481_v17  ;;  %v1137_v31 = vunpack.c.l.b16 %v1042_v18  ;;  %v1138_v32 = vunpack.c.l.b16 %v1052_v19  ;;  %v5002_v18 = vld [vmem:[%s5798_s8 + $0x134] sm:$0x1] }
  0x45   : > { %v488_v21 = vrot.slane %v486_v11, 5  ;;  %v502_v35 = vshll.u32 %v352_v24, 16  ;;  %v1056_v36 = vrot.slane %v1054_v25, 4  ;;  %v1059_v37 = vrot.slane %v1057_v26, 5 }
  0x46   : > { %v1065_v38 = vrot.slane %v1063_v27, 5  ;;  %v1069_v39 = vrot.slane %v1067_v28, 4  ;;  %v578_v40 = vpack.c.b16 %v567_v30, %v566_v29  ;;  %v1149_v42 = vpack.c.b16 %v1138_v32, %v1137_v31  ;;  %v356_v28 = vld [vmem:[%s5798_s8 + $0x150] sm:$0xf]  ;;  %v357_v30 = vld [vmem:[%s5798_s8 + $0x154] sm:$0xf] }
  0x47   : > { %v504_v44 = vrot.slane %v502_v35, 5  ;;  %v1060_v46 = vor.u32 %v1059_v37, %v1056_v36  ;;  %v1073_v48 = vshll.u32 %v4999_v41, 16  ;;  %v507_v61 = vshrl.u32 %v353_v50, 16 }
  0x48   : > { %4899 = vmatmul.msk.bf16.gmra.mxu0 %vm240_vm1, %v5639_v20  ;;  %4977 = vmatmul.msk.bf16.gmra.mxu2 %vm240_vm1, %v5649_v22  ;;  %v485_v20 = vrot.slane %v483_v10, 4  ;;  %v494_v22 = vrot.slane %v492_v12, 5  ;;  %v1070_v47 = vor.u32 %v1069_v39, %v1065_v38  ;;  %v516_v63 = vshll.u32 %v354_v51, 16  ;;  %v5652_v39 = vld [vmem:[%s5798_s8 + $0x12c] sm:$0xff] }
  0x49   : > { %v1061_v57 = vrot.slane %v1060_v46, 4  ;;  %v1075_v60 = vrot.slane %v1073_v48, 5  ;;  %v520_v0 = vshrl.u32 %v354_v51, 16  ;;  %v1087_v3 = vshll.u32 %v5001_v55, 16 }
  0x4a   : > { %v489_v33 = vor.u32 %v488_v21, %v485_v20  ;;  %v499_v34 = vor.u32 %v498_v23, %v494_v22  ;;  %v1071_v59 = vrot.slane %v1070_v47, 4  ;;  %v1091_v4 = vshrl.u32 %v5001_v55, 16  ;;  %v358_v55 = vld [vmem:[%s5798_s8 + $0x158] sm:$0x1] }
  0x4b   : > { %v1066_v7 = vsel %vm5826_vm4, %v1061_v57, %v1065_v38  ;;  %v518_v11 = vrot.slane %v516_v63, 5  ;;  %v522_v12 = vrot.slane %v520_v0, 4  ;;  %v1089_v16 = vrot.slane %v1087_v3, 5  ;;  %v5642_v38 = vld [vmem:[%s5798_s8 + $0x120] sm:$0xff] }
  0x4c   : > { %v490_v43 = vrot.slane %v489_v33, 4  ;;  %v500_v45 = vrot.slane %v499_v34, 4  ;;  %v1093_v17 = vrot.slane %v1091_v4, 4  ;;  %v1139_v19 = vunpack.c.l.b16 %v1066_v7 }
  0x4d   : > { %v523_v23 = vor.u32 %v522_v12, %v518_v11  ;;  %v526_v24 = vshll.u32 %v355_v13, 16  ;;  %v1097_v27 = vshll.u32 %v5002_v18, 16  ;;  %v531_v37 = vshrl.u32 %v356_v28, 16 }
  0x4e   : > { %v495_v53 = vsel %vm5826_vm4, %v490_v43, %v494_v22  ;;  %v505_v56 = vsel %vm5826_vm4, %v500_v45, %v504_v44  ;;  %v1094_v26 = vor.u32 %v1093_v17, %v1089_v16  ;;  %v540_v41 = vshll.u32 %v357_v30, 16  ;;  %v5003_v43 = vld [vmem:[%s5798_s8 + $0x15c] sm:$0xf]  ;;  %v5004_v45 = vld [vmem:[%s5798_s8 + $0x160] sm:$0xf] }
  0x4f   : > { %v568_v5 = vunpack.c.l.b16 %v495_v53  ;;  %v569_v6 = vunpack.c.l.b16 %v505_v56  ;;  %v524_v32 = vrot.slane %v523_v23, 4  ;;  %v528_v33 = vrot.slane %v526_v24, 5  ;;  %v5186_v24 = vld [vmem:[%s5798_s8 + $0x24] sm:$0xf] }
  0x50   : > { %4914 = vmatmul.msk.bf16.gmra.mxu1 %vm240_vm1, %v577_v54  ;;  %v5000_v54 = vld [vmem:[%s5798_s8 + $0x12c] sm:$0xf]  ;;  %v1095_v35 = vrot.slane %v1094_v26, 4  ;;  %v1099_v36 = vrot.slane %v1097_v27, 5  ;;  %v542_v51 = vrot.slane %v540_v41, 5  ;;  %v1102_v53 = vshrl.u32 %v5003_v43, 16 }
  0x51   : > { %v1078_v1 = vshrl.u32 %v5000_v54, 16  ;;  %v1081_v2 = vshll.u32 %v5000_v54, 16  ;;  %v579_v21 = vpack.c.b16 %v569_v6, %v568_v5  ;;  %v529_v46 = vsel %vm5826_vm4, %v524_v32, %v528_v33  ;;  %v5243_v54 = vld [vmem:[%s7201_s1 + $0x68] sm:$0xf] }
  0x52   : > { %v1100_v48 = vsel %vm5826_vm4, %v1095_v35, %v1099_v36  ;;  %v1105_v56 = vshll.u32 %v5003_v43, 16  ;;  %v1111_v57 = vshll.u32 %v5004_v45, 16  ;;  %v550_v4 = vshll.u32 %v358_v55, 16 }
  0x53   : > { %5016 = vmatmul.msk.bf16.gmra.mxu3 %vm240_vm1, %v1148_v62  ;;  %v510_v62 = vshll.u32 %v353_v50, 16  ;;  %v1080_v14 = vrot.slane %v1078_v1, 4  ;;  %v1083_v15 = vrot.slane %v1081_v2, 5  ;;  %v1142_v0 = vunpack.c.l.b16 %v1100_v48 }
  0x54   : > { %v1104_v5 = vrot.slane %v1102_v53, 4  ;;  %v1107_v6 = vrot.slane %v1105_v56, 5  ;;  %v1113_v7 = vrot.slane %v1111_v57, 5  ;;  %v2079_v35 = vshll.u32 %v5186_v24, 16 }
  0x55   : > { %v512_v10 = vrot.slane %v510_v62, 5  ;;  %v1084_v25 = vor.u32 %v1083_v15, %v1080_v14  ;;  %v571_v62 = vunpack.c.l.b16 %v529_v46  ;;  %v552_v14 = vrot.slane %v550_v4, 5  ;;  %v5086_v46 = vld [vmem:[%s5798_s8 + $0x20] sm:$0x1] }
  0x56   : > { %vm318_vm5 = vcmask 261120   ;;  %vm4780_vm6 = vcmask 257024  }
  0x57   : > { %v1085_v34 = vrot.slane %v1084_v25, 4 }
  0x58   : > { %4900 = vmatmul.msk.bf16.gmra.mxu0 %vm240_vm1, %v5640_v8  ;;  %4978 = vmatmul.msk.bf16.gmra.mxu2 %vm240_vm1, %v5650_v9  ;;  %v1076_v8 = vsel %vm5826_vm4, %v1071_v59, %v1075_v60  ;;  %v509_v9 = vrot.slane %v507_v61, 4  ;;  %v1115_v59 = vshrl.u32 %v5004_v45, 16  ;;  %v2494_v60 = vunpack.c.l.b16 %v5243_v54 }
  0x59   : > { %v1140_v20 = vunpack.c.l.b16 %v1076_v8  ;;  %v1090_v47 = vsel %vm5826_vm4, %v1085_v34, %v1089_v16  ;;  %v1108_v16 = vor.u32 %v1107_v6, %v1104_v5  ;;  %v2076_v34 = vshrl.u32 %v5186_v24, 16 }
  0x5a   : > { %v513_v22 = vor.u32 %v512_v10, %v509_v9  ;;  %v1141_v63 = vunpack.c.l.b16 %v1090_v47  ;;  %v2496_v1 = vpack.c.b16 %v2494_v60, %v2494_v60  ;;  %v1117_v8 = vrot.slane %v1115_v59, 4  ;;  %v5188_v47 = vld [vmem:[%s5798_s8 + $0x2c] sm:$0x1] }
  0x5b   : > { %v1150_v29 = vpack.c.b16 %v1140_v20, %v1139_v19  ;;  %v5084_v19 = vld [vmem:[%s5798_s8 + $0x18] sm:$0xf]  ;;  %v5085_v20 = vld [vmem:[%s5798_s8 + $0x1c] sm:$0xf]  ;;  %v1109_v26 = vrot.slane %v1108_v16, 4  ;;  %v2078_v48 = vrot.slane %v2076_v34, 4 }
  0x5c   : > { %v514_v31 = vrot.slane %v513_v22, 4  ;;  %v2523_v9 = vsel %vm265_vm0, %v2496_v1, 0  ;;  %v1151_v12 = vpack.c.b16 %v1142_v0, %v1141_v63  ;;  %v1118_v17 = vor.u32 %v1117_v8, %v1113_v7  ;;  %v5653_v22 = vld [vmem:[%s5798_s8 + $0x15c] sm:$0xff]  ;;  %v5088_v8 = vld [vmem:[%s5798_s8 + $0x4c] sm:$0xf] }
  0x5d   : > { %2531 = vmatpush.bf16.msra.mxu0 %v2523_v9  ;;  %v1514_v32 = vshll.u32 %v5085_v20, 16  ;;  %v1518_v33 = vshrl.u32 %v5085_v20, 16 }
  0x5e   : > { %v519_v44 = vsel %vm5826_vm4, %v514_v31, %v518_v11  ;;  %v5005_v11 = vld [vmem:[%s5798_s8 + $0x164] sm:$0x1]  ;;  %v1119_v27 = vrot.slane %v1118_v17, 4  ;;  %v1508_v31 = vshll.u32 %v5084_v19, 16 }
  0x5f   : > { %v570_v61 = vunpack.c.l.b16 %v519_v44  ;;  %v1121_v18 = vshll.u32 %v5005_v11, 16  ;;  %v5998_v44 = vrot.slane %v1514_v32, 5  ;;  %v1520_v45 = vrot.slane %v1518_v33, 4 }
  0x60   : > { %4915 = vmatmul.msk.bf16.gmra.mxu1 %vm240_vm1, %v578_v40  ;;  %v534_v40 = vshll.u32 %v356_v28, 16  ;;  %v1510_v43 = vrot.slane %v1508_v31, 5 }
  0x61   : > { %v580_v10 = vpack.c.b16 %v571_v62, %v570_v61  ;;  %v1123_v28 = vrot.slane %v1121_v18, 5  ;;  %v1521_v61 = vor.u32 %v1520_v45, %v5998_v44  ;;  %v1524_v62 = vshll.u32 %v5086_v46, 16 }
  0x62   : > { %v536_v50 = vrot.slane %v534_v40, 5  ;;  %v1114_v40 = vsel %vm5826_vm4, %v1109_v26, %v1113_v7  ;;  %v5087_v7 = vld [vmem:[%s5798_s8 + $0x48] sm:$0xf] }
  0x63   : > { %5017 = vmatmul.msk.bf16.gmra.mxu3 %vm240_vm1, %v1149_v42  ;;  %v544_v42 = vshrl.u32 %v357_v30, 16  ;;  %v1505_v30 = vshrl.u32 %v5084_v19, 16  ;;  %v1124_v41 = vsel %vm5826_vm4, %v1119_v27, %v1123_v28  ;;  %v1143_v54 = vunpack.c.l.b16 %v1114_v40  ;;  %v5190_v28 = vld [vmem:[%s5798_s8 + $0x58] sm:$0xf] }
  0x64   : > { %v1144_v55 = vunpack.c.l.b16 %v1124_v41  ;;  %v1526_v11 = vrot.slane %v1524_v62, 5  ;;  %v1529_v17 = vshrl.u32 %v5087_v7, 16  ;;  %v1532_v18 = vshll.u32 %v5087_v7, 16  ;;  %v5667_v7 = vld [vmem:[%s5798_s8 + $0x54] sm:$0xff] }
  0x65   : > { %v1538_v19 = vshll.u32 %v5088_v8, 16  ;;  %v2109_v40 = vshll.u32 %v5190_v28, 16  ;;  %v2113_v41 = vshrl.u32 %v5190_v28, 16 }
  0x66   : > { %v1152_v4 = vpack.c.b16 %v1144_v55, %v1143_v54  ;;  %v1534_v31 = vrot.slane %v1532_v18, 5 }
  0x67   : > { %v6038_v32 = vrot.slane %v1538_v19, 5  ;;  %v6046_v54 = vrot.slane %v2109_v40, 5  ;;  %v2115_v55 = vrot.slane %v2113_v41, 4 }
  0x68   : > { %4901 = vmatmul.msk.bf16.gmra.mxu0 %vm240_vm1, %v5641_v49  ;;  %4979 = vmatmul.msk.bf16.gmra.mxu2 %vm240_vm1, %v5651_v52  ;;  %v533_v49 = vrot.slane %v531_v37, 4  ;;  %v546_v52 = vrot.slane %v544_v42, 4  ;;  %v1507_v42 = vrot.slane %v1505_v30, 4  ;;  %v1531_v30 = vrot.slane %v1529_v17, 4 }
  0x6a   : > { %v537_v2 = vor.u32 %v536_v50, %v533_v49  ;;  %v547_v3 = vor.u32 %v546_v52, %v542_v51  ;;  %v2081_v49 = vrot.slane %v2079_v35, 5  ;;  %v5314_v50 = vld [vmem:[%s7201_s1 + $0x74] sm:$0xf]  ;;  %v1511_v60 = vor.u32 %v1510_v43, %v1507_v42 }
  0x6b   : > { %v2871_v56 = vunpack.c.l.b16 %v5314_v50  ;;  %v1535_v46 = vor.u32 %v1534_v31, %v1531_v30 }
  0x6c   : > { %v538_v13 = vrot.slane %v537_v2, 4  ;;  %v548_v15 = vrot.slane %v547_v3, 4  ;;  %v2082_v1 = vor.u32 %v2081_v49, %v2078_v48  ;;  %v2095_v2 = vshll.u32 %v5188_v47, 16 }
  0x6d   : > { %v2873_v63 = vpack.c.b16 %v2871_v56, %v2871_v56  ;;  %v1512_v9 = vrot.slane %v1511_v60, 4  ;;  %v1536_v60 = vrot.slane %v1535_v46, 4 }
  0x6e   : > { %v543_v23 = vsel %vm5826_vm4, %v538_v13, %v542_v51  ;;  %v553_v25 = vsel %vm5826_vm4, %v548_v15, %v552_v14  ;;  %v5345_v51 = vld [vmem:[%s7201_s1 + $0x80] sm:$0xf]  ;;  %v2097_v13 = vrot.slane %v2095_v2, 5  ;;  %v5656_v14 = vld [vmem:[%s5798_s8 + $0x18] sm:$0xff]  ;;  %v5666_v15 = vld [vmem:[%s5798_s8 + $0x24] sm:$0xff] }
  0x6f   : > { %v3065_v57 = vunpack.c.l.b16 %v5345_v51  ;;  %v2900_v5 = vsel %vm265_vm0, %v2873_v63, 0  ;;  %v1517_v24 = vsel %vm5826_vm4, %v1512_v9, %v5998_v44  ;;  %v5192_v9 = vld [vmem:[%s5798_s8 + $0x84] sm:$0xf] }
  0x70   : > { %4916 = vmatmul.msk.bf16.gmra.mxu1 %vm240_vm1, %v579_v21  ;;  %v5643_v21 = vld [vmem:[%s5798_s8 + $0x150] sm:$0xff] }
  0x71   : > { %v3067_v0 = vpack.c.b16 %v3065_v57, %v3065_v57  ;;  %2908 = vmatpush.bf16.msra.mxu1 %v2900_v5  ;;  %v5191_v57 = vld [vmem:[%s5798_s8 + $0x5c] sm:$0x1] }
  0x72   : > { %v2119_v2 = vshll.u32 %v5191_v57, 16 }
  0x73   : > { %5018 = vmatmul.msk.bf16.gmra.mxu3 %vm240_vm1, %v1150_v29  ;;  %v5187_v29 = vld [vmem:[%s5798_s8 + $0x28] sm:$0xf]  ;;  %v3094_v6 = vsel %vm265_vm0, %v3067_v0, 0 }
  0x74   : > { %v2085_v36 = vshll.u32 %v5187_v29, 16  ;;  %v2089_v37 = vshrl.u32 %v5187_v29, 16  ;;  %3102 = vmatpush.bf16.msra.mxu2 %v3094_v6  ;;  %v5091_v6 = vld [vmem:[%s5798_s8 + $0x7c] sm:$0xf]  ;;  %v2121_v18 = vrot.slane %v2119_v2, 5 }
  0x75   : > { %v1562_v19 = vshll.u32 %v5091_v6, 16 }
  0x76   : > { %v6008_v52 = vrot.slane %v2085_v36, 5  ;;  %v2091_v53 = vrot.slane %v2089_v37, 4  ;;  %v1700_v37 = vunpack.c.l.b16 %v1517_v24 }
  0x78   : > { %4902 = vmatmul.msk.bf16.gmra.mxu0 %vm240_vm1, %v5642_v38  ;;  %4980 = vmatmul.msk.bf16.gmra.mxu2 %vm240_vm1, %v5652_v39  ;;  %v572_v38 = vunpack.c.l.b16 %v543_v23  ;;  %v573_v39 = vunpack.c.l.b16 %v553_v25  ;;  %v2092_v3 = vor.u32 %v2091_v53, %v6008_v52  ;;  %v5189_v23 = vld [vmem:[%s5798_s8 + $0x54] sm:$0xf] }
  0x79   : > { %v2100_v35 = vshrl.u32 %v5189_v23, 16  ;;  %v2103_v36 = vshll.u32 %v5189_v23, 16  ;;  %v2127_v23 = vshll.u32 %v5192_v9, 16 }
  0x7a   : > { %v581_v59 = vpack.c.b16 %v573_v39, %v572_v38  ;;  %v2093_v16 = vrot.slane %v2092_v3, 4  ;;  %v5089_v39 = vld [vmem:[%s5798_s8 + $0x50] sm:$0x1]  ;;  %v5090_v3 = vld [vmem:[%s5798_s8 + $0x78] sm:$0xf] }
  0x7b   : > { %v1548_v50 = vshll.u32 %v5089_v39, 16  ;;  %v2102_v51 = vrot.slane %v2100_v35, 4  ;;  %v5092_v39 = vld [vmem:[%s5798_s8 + $0x80] sm:$0x1]  ;;  %v2129_v41 = vrot.slane %v2127_v23, 5 }
  0x7c   : > { %v2098_v29 = vsel %vm5826_vm4, %v2093_v16, %v2097_v13  ;;  %v1556_v16 = vshll.u32 %v5090_v3, 16 }
  0x7d   : > { %v2272_v45 = vunpack.c.l.b16 %v2098_v29  ;;  %v1550_v63 = vrot.slane %v1548_v50, 5 }
  0x80   : > { %4917 = vmatmul.msk.bf16.gmra.mxu1 %vm240_vm1, %v580_v10  ;;  %v1522_v10 = vrot.slane %v1521_v61, 4 }
  0x82   : > { %v1527_v25 = vsel %vm5826_vm4, %v1522_v10, %v1526_v11  ;;  %v5193_v10 = vld [vmem:[%s5798_s8 + $0x88] sm:$0xf] }
  0x83   : > { %5019 = vmatmul.msk.bf16.gmra.mxu3 %vm240_vm1, %v1151_v12  ;;  %v2083_v12 = vrot.slane %v2082_v1, 4  ;;  %v1701_v38 = vunpack.c.l.b16 %v1527_v25  ;;  %v2116_v1 = vor.u32 %v2115_v55, %v6046_v54  ;;  %v2133_v24 = vshll.u32 %v5193_v10, 16 }
  0x84   : > { %v2137_v25 = vshrl.u32 %v5193_v10, 16 }
  0x85   : > { %v2088_v26 = vsel %vm5826_vm4, %v2083_v12, %v6008_v52  ;;  %v2105_v52 = vrot.slane %v2103_v36, 5  ;;  %v1716_v53 = vpack.c.b16 %v1701_v38, %v1700_v37  ;;  %v2117_v17 = vrot.slane %v2116_v1, 4 }
  0x86   : > { %v2271_v44 = vunpack.c.l.b16 %v2088_v26  ;;  %v6076_v36 = vrot.slane %v1562_v19, 5  ;;  %v5196_v19 = vld [vmem:[%s5798_s8 + $0xb8] sm:$0xf] }
  0x87   : > { %v2106_v0 = vor.u32 %v2105_v52, %v2102_v51  ;;  %v2122_v35 = vsel %vm5826_vm4, %v2117_v17, %v2121_v18  ;;  %v1572_v51 = vshll.u32 %v5092_v39, 16  ;;  %v5195_v18 = vld [vmem:[%s5798_s8 + $0xb4] sm:$0xf] }
  0x88   : > { %4903 = vmatmul.msk.bf16.gmra.mxu0 %vm240_vm1, %v5643_v21  ;;  %4981 = vmatmul.msk.bf16.gmra.mxu2 %vm240_vm1, %v5653_v22  ;;  %v1542_v21 = vshrl.u32 %v5088_v8, 16  ;;  %v5416_v22 = vld [vmem:[%s7201_s1 + $0x8c] sm:$0xf]  ;;  %v2287_v61 = vpack.c.b16 %v2272_v45, %v2271_v44  ;;  %v1541_v8 = vsel %vm5826_vm4, %v1536_v60, %v6038_v32  ;;  %v2139_v44 = vrot.slane %v2137_v25, 4 }
  0x89   : > { %v3442_v27 = vunpack.c.l.b16 %v5416_v22  ;;  %v2124_v22 = vshrl.u32 %v5192_v9, 16  ;;  %v1702_v28 = vunpack.c.l.b16 %v1541_v8  ;;  %v5194_v45 = vld [vmem:[%s5798_s8 + $0x8c] sm:$0x1]  ;;  %v1574_v2 = vrot.slane %v1572_v51, 5 }
  0x8a   : > { %v1544_v33 = vrot.slane %v1542_v21, 4 }
  0x8b   : > { %v3444_v34 = vpack.c.b16 %v3442_v27, %v3442_v27  ;;  %v2126_v40 = vrot.slane %v2124_v22, 4 }
  0x8c   : > { %v1545_v49 = vor.u32 %v1544_v33, %v6038_v32  ;;  %v1558_v33 = vrot.slane %v1556_v16, 5 }
  0x8d   : > { %v3471_v43 = vsel %vm265_vm0, %v3444_v34, 0 }
  0x8e   : > { %3479 = vmatpush.bf16.msra.mxu3 %v3471_v43  ;;  %v1546_v62 = vrot.slane %v1545_v49, 4  ;;  %v6081_v43 = vrot.slane %v2133_v24, 5 }
  0x90   : > { %4918 = vmatmul.msk.bf16.gmra.mxu1 %vm240_vm1, %v581_v59  ;;  %v1551_v13 = vsel %vm5826_vm4, %v1546_v62, %v1550_v63  ;;  %v2140_v55 = vor.u32 %v2139_v44, %v6081_v43  ;;  %v5093_v62 = vld [vmem:[%s5798_s8 + $0xa8] sm:$0xf]  ;;  %v5094_v63 = vld [vmem:[%s5798_s8 + $0xac] sm:$0xf] }
  0x91   : > { %v1703_v30 = vunpack.c.l.b16 %v1551_v13  ;;  %v1580_v13 = vshll.u32 %v5093_v62, 16  ;;  %v1590_v17 = vshrl.u32 %v5094_v63, 16 }
  0x92   : > { %v2141_v8 = vrot.slane %v2140_v55, 4 }
  0x93   : > { %5020 = vmatmul.msk.bf16.gmra.mxu3 %vm240_vm1, %v1152_v4  ;;  %v5657_v4 = vld [vmem:[%s5798_s8 + $0x48] sm:$0xff]  ;;  %v1717_v49 = vpack.c.b16 %v1703_v30, %v1702_v28 }
  0x95   : > { %v278_v20 = vpop.f32.mrf.mxu0 }
  0x96   : > { %319 = vst.msk [vmem:[#allocation2] sm:$0xff] %vm318_vm5, %v278_v20  ;;  %v1566_v20 = vshrl.u32 %v5091_v6, 16 }
  0x98   : > { %5076 = vmatmul.msk.bf16.vlgmr.msrb.gmra.mxu0 %vm240_vm1, %v5656_v14  ;;  %5178 = vmatmul.msk.bf16.vlgmr.msrb.gmra.mxu2 %vm240_vm1, %v5666_v15  ;;  %v2107_v14 = vrot.slane %v2106_v0, 4  ;;  %v1553_v15 = vshrl.u32 %v5090_v3, 16  ;;  %v1568_v37 = vrot.slane %v1566_v20, 4 }
  0x9a   : > { %v2112_v31 = vsel %vm5826_vm4, %v2107_v14, %v6046_v54  ;;  %v1555_v32 = vrot.slane %v1553_v15, 4  ;;  %v2130_v54 = vor.u32 %v2129_v41, %v2126_v40  ;;  %v1586_v14 = vshll.u32 %v5094_v63, 16 }
  0x9b   : > { %v6041_v42 = vpop.f32.mrf.mxu2  ;;  %v2161_v40 = vshrl.u32 %v5196_v19, 16 }
  0x9c   : > { %v1559_v50 = vor.u32 %v1558_v33, %v1555_v32  ;;  %v6116_v30 = vrot.slane %v1586_v14, 5  ;;  %v1592_v32 = vrot.slane %v1590_v17, 4  ;;  %v2148_v33 = vshrl.u32 %v5195_v18, 16  ;;  %v5669_v17 = vld [vmem:[%s5798_s8 + $0xb4] sm:$0xff] }
  0x9d   : > { %v280_v47 = vpop.f32.mrf.mxu0  ;;  %v667_v48 = vld [vmem:[#allocation2] sm:$0xff]  ;;  %v627_v56 = vpop.f32.mrf.mxu1  ;;  %v2163_v55 = vrot.slane %v2161_v40, 4 }
  0x9e   : > { %320 = vst.msk [vmem:[#allocation2 + $0x8] sm:$0xff] %vm318_vm5, %v280_v47  ;;  %v683_v59 = vadd.f32 %v667_v48, %v627_v56  ;;  %v2273_v47 = vunpack.c.l.b16 %v2112_v31  ;;  %v2274_v48 = vunpack.c.l.b16 %v2122_v35  ;;  %v2143_v56 = vshll.u32 %v5194_v45, 16 }
  0x9f   : > { %v1560_v1 = vrot.slane %v1559_v50, 4  ;;  %v2157_v35 = vshll.u32 %v5196_v19, 16 }
  0xa0   : > { %699 = vst.msk [vmem:[#allocation2] sm:$0xff] %vm318_vm5, %v683_v59  ;;  %5115 = vmatmul.msk.bf16.vlgmr.msrb.gmra.mxu1 %vm240_vm1, %v1716_v53  ;;  %v1569_v53 = vor.u32 %v1568_v37, %v6076_v36  ;;  %v2145_v9 = vrot.slane %v2143_v56, 5  ;;  %v5684_v56 = vld [vmem:[%s7201_s1 + $0x60] sm:$0xff] }
  0xa1   : > { %v6124_v51 = vrot.slane %v2157_v35, 5  ;;  %2532 = vmatpush.bf16.msra.mxu0 %v5684_v56  ;;  %v5098_v35 = vld [vmem:[%s5798_s8 + $0xe0] sm:$0x1] }
  0xa2   : > { %v1570_v6 = vrot.slane %v1569_v53, 4  ;;  %v2146_v24 = vsel %vm5826_vm4, %v2141_v8, %v2145_v9 }
  0xa3   : > { %v6054_v5 = vpop.f32.mrf.mxu2  ;;  %5217 = vmatmul.msk.bf16.vlgmr.msrb.gmra.mxu3 %vm240_vm1, %v2287_v61  ;;  %v2288_v61 = vpack.c.b16 %v2274_v48, %v2273_v47  ;;  %v2164_v9 = vor.u32 %v2163_v55, %v6124_v51 }
  0xa4   : > { %v1575_v22 = vsel %vm5826_vm4, %v1570_v6, %v1574_v2 }
  0xa5   : > { %v283_v11 = vpop.f32.mrf.mxu0  ;;  %v668_v12 = vld [vmem:[#allocation2 + $0x8] sm:$0xff]  ;;  %v629_v21 = vpop.f32.mrf.mxu1  ;;  %v1705_v39 = vunpack.c.l.b16 %v1575_v22 }
  0xa6   : > { %321 = vst.msk [vmem:[#allocation2 + $0x10] sm:$0xff] %vm318_vm5, %v283_v11  ;;  %v684_v26 = vadd.f32 %v668_v12, %v629_v21  ;;  %v1198_v27 = vpop.f32.mrf.mxu3  ;;  %v5658_v11 = vld [vmem:[%s5798_s8 + $0x78] sm:$0xff]  ;;  %v1577_v12 = vshrl.u32 %v5093_v62, 16  ;;  %v1565_v21 = vsel %vm5826_vm4, %v1560_v1, %v6076_v36  ;;  %v5199_v22 = vld [vmem:[%s5798_s8 + $0xe8] sm:$0xf] }
  0xa7   : > { %v861_v29 = vld [vmem:[#allocation2] sm:$0xff]  ;;  %v1704_v37 = vunpack.c.l.b16 %v1565_v21 }
  0xa8   : > { %5077 = vmatmul.msk.bf16.gmra.mxu0 %vm240_vm1, %v5657_v4  ;;  %5179 = vmatmul.msk.bf16.gmra.mxu2 %vm240_vm1, %v5667_v7  ;;  %v877_v34 = vadd.f32 %v861_v29, %v6041_v42  ;;  %700 = vst.msk [vmem:[#allocation2 + $0x8] sm:$0xff] %vm318_vm5, %v684_v26  ;;  %v2131_v7 = vrot.slane %v2130_v54, 4  ;;  %v1579_v28 = vrot.slane %v1577_v12, 4  ;;  %v1582_v29 = vrot.slane %v1580_v13, 5  ;;  %v5197_v54 = vld [vmem:[%s5798_s8 + $0xbc] sm:$0x1] }
  0xa9   : > { %v1718_v53 = vpack.c.b16 %v1705_v39, %v1704_v37  ;;  %v2185_v37 = vshrl.u32 %v5199_v22, 16 }
  0xaa   : > { %893 = vst.msk [vmem:[#allocation2] sm:$0xff] %vm318_vm5, %v877_v34  ;;  %v2136_v23 = vsel %vm5826_vm4, %v2131_v7, %v6081_v43  ;;  %v2151_v34 = vshll.u32 %v5195_v18, 16  ;;  %v2167_v7 = vshll.u32 %v5197_v54, 16 }
  0xab   : > { %v6078_v38 = vpop.f32.mrf.mxu2  ;;  %v2275_v44 = vunpack.c.l.b16 %v2136_v23  ;;  %v2187_v54 = vrot.slane %v2185_v37, 4 }
  0xac   : > { %v2153_v50 = vrot.slane %v2151_v34, 5 }
  0xad   : > { %v285_v42 = vpop.f32.mrf.mxu0  ;;  %v669_v46 = vld [vmem:[#allocation2 + $0x10] sm:$0xff]  ;;  %v632_v52 = vpop.f32.mrf.mxu1 }
  0xae   : > { %322 = vst.msk [vmem:[#allocation2 + $0x18] sm:$0xff] %vm318_vm5, %v285_v42  ;;  %v685_v57 = vadd.f32 %v669_v46, %v632_v52  ;;  %v1200_v59 = vpop.f32.mrf.mxu3  ;;  %v2276_v42 = vunpack.c.l.b16 %v2146_v24  ;;  %v1583_v46 = vor.u32 %v1582_v29, %v1579_v28  ;;  %v2165_v24 = vrot.slane %v2164_v9, 4 }
  0xaf   : > { %v862_v60 = vld [vmem:[#allocation2 + $0x8] sm:$0xff] }
  0xb0   : > { %v878_v0 = vadd.f32 %v862_v60, %v6054_v5  ;;  %701 = vst.msk [vmem:[#allocation2 + $0x10] sm:$0xff] %vm318_vm5, %v685_v57  ;;  %5116 = vmatmul.msk.bf16.gmra.mxu1 %vm240_vm1, %v1717_v49  ;;  %v5668_v5 = vld [vmem:[%s5798_s8 + $0x84] sm:$0xff]  ;;  %v2150_v49 = vrot.slane %v2148_v33, 4  ;;  %v2289_v62 = vpack.c.b16 %v2276_v42, %v2275_v44  ;;  %v1584_v63 = vrot.slane %v1583_v46, 4 }
  0xb1   : > { %v1238_v3 = vld [vmem:[#allocation2] sm:$0xff] }
  0xb2   : > { %894 = vst.msk [vmem:[#allocation2 + $0x8] sm:$0xff] %vm318_vm5, %v878_v0  ;;  %v1254_v10 = vadd.f32 %v1238_v3, %v1198_v27  ;;  %v5095_v27 = vld [vmem:[%s5798_s8 + $0xb0] sm:$0x1]  ;;  %v5097_v0 = vld [vmem:[%s5798_s8 + $0xdc] sm:$0xf]  ;;  %v2154_v6 = vor.u32 %v2153_v50, %v2150_v49  ;;  %v1589_v19 = vsel %vm5826_vm4, %v1584_v63, %v6116_v30  ;;  %v1620_v49 = vshll.u32 %v5098_v35, 16 }
  0xb3   : > { %v6093_v4 = vpop.f32.mrf.mxu2  ;;  %5218 = vmatmul.msk.bf16.gmra.mxu3 %vm240_vm1, %v2288_v61  ;;  %v1596_v47 = vshll.u32 %v5095_v27, 16  ;;  %v1610_v13 = vshll.u32 %v5097_v0, 16  ;;  %v1614_v14 = vshrl.u32 %v5097_v0, 16  ;;  %v1706_v40 = vunpack.c.l.b16 %v1589_v19  ;;  %v5660_v19 = vld [vmem:[%s5798_s8 + $0xd8] sm:$0xff] }
  0xb4   : > { %1270 = vst.msk [vmem:[#allocation2] sm:$0xff] %vm318_vm5, %v1254_v10  ;;  %v2155_v21 = vrot.slane %v2154_v6, 4 }
  0xb5   : > { %v288_v15 = vpop.f32.mrf.mxu0  ;;  %v670_v16 = vld [vmem:[#allocation2 + $0x18] sm:$0xff]  ;;  %v634_v20 = vpop.f32.mrf.mxu1  ;;  %v1598_v3 = vrot.slane %v1596_v47, 5  ;;  %v6155_v29 = vrot.slane %v1610_v13, 5 }
  0xb6   : > { %323 = vst.msk [vmem:[#allocation2 + $0x20] sm:$0xff] %vm318_vm5, %v288_v15  ;;  %v686_v25 = vadd.f32 %v670_v16, %v634_v20  ;;  %v1203_v26 = vpop.f32.mrf.mxu3  ;;  %v5659_v16 = vld [vmem:[%s5798_s8 + $0xa8] sm:$0xff] }
  0xb7   : > { %v863_v31 = vld [vmem:[#allocation2 + $0x10] sm:$0xff] }
  0xb8   : > { %5078 = vmatmul.msk.bf16.gmra.mxu0 %vm240_vm1, %v5658_v11  ;;  %5180 = vmatmul.msk.bf16.gmra.mxu2 %vm240_vm1, %v5668_v5  ;;  %v879_v36 = vadd.f32 %v863_v31, %v6078_v38  ;;  %702 = vst.msk [vmem:[#allocation2 + $0x18] sm:$0xff] %vm318_vm5, %v686_v25  ;;  %v1593_v38 = vor.u32 %v1592_v32, %v6116_v30  ;;  %v2169_v25 = vrot.slane %v2167_v7, 5  ;;  %v1616_v31 = vrot.slane %v1614_v14, 4  ;;  %v5100_v14 = vld [vmem:[%s5798_s8 + $0x10c] sm:$0xf] }
  0xb9   : > { %v1239_v41 = vld [vmem:[#allocation2 + $0x8] sm:$0xff] }
  0xba   : > { %895 = vst.msk [vmem:[#allocation2 + $0x10] sm:$0xff] %vm318_vm5, %v879_v36  ;;  %v1255_v45 = vadd.f32 %v1239_v41, %v1200_v59  ;;  %v5096_v59 = vld [vmem:[%s5798_s8 + $0xd8] sm:$0xf]  ;;  %v1594_v2 = vrot.slane %v1593_v38, 4  ;;  %v2181_v36 = vshll.u32 %v5199_v22, 16  ;;  %v2170_v42 = vsel %vm5826_vm4, %v2165_v24, %v2169_v25 }
  0xbb   : > { %v6120_v43 = vpop.f32.mrf.mxu2  ;;  %v1601_v10 = vshrl.u32 %v5096_v59, 16  ;;  %v1604_v11 = vshll.u32 %v5096_v59, 16  ;;  %v1617_v38 = vor.u32 %v1616_v31, %v6155_v29  ;;  %v5200_v59 = vld [vmem:[%s5798_s8 + $0xec] sm:$0x1]  ;;  %v5695_v31 = vld [vmem:[%s7201_s1 + $0x84] sm:$0xff] }
  0xbc   : > { %1271 = vst.msk [vmem:[#allocation2 + $0x8] sm:$0xff] %vm318_vm5, %v1255_v45  ;;  %v1599_v20 = vsel %vm5826_vm4, %v1594_v2, %v1598_v3  ;;  %v2160_v45 = vsel %vm5826_vm4, %v2155_v21, %v6124_v51  ;;  %v5685_v51 = vld [vmem:[%s7201_s1 + $0x6c] sm:$0xff]  ;;  %v1622_v2 = vrot.slane %v1620_v49, 5  ;;  %v2191_v9 = vshll.u32 %v5200_v59, 16  ;;  %3480 = vmatpush.bf16.msra.mxu3 %v5695_v31 }
  0xbd   : > { %v290_v48 = vpop.f32.mrf.mxu0  ;;  %v671_v52 = vld [vmem:[#allocation2 + $0x20] sm:$0xff]  ;;  %v637_v57 = vpop.f32.mrf.mxu1  ;;  %v1606_v27 = vrot.slane %v1604_v11, 5  ;;  %v1707_v41 = vunpack.c.l.b16 %v1599_v20  ;;  %v2277_v56 = vunpack.c.l.b16 %v2160_v45  ;;  %2909 = vmatpush.bf16.msra.mxu1 %v5685_v51  ;;  %v5101_v51 = vld [vmem:[%s5798_s8 + $0x110] sm:$0x1] }
  0xbe   : > { %324 = vst.msk [vmem:[#allocation2 + $0x28] sm:$0xff] %vm318_vm5, %v290_v48  ;;  %v687_v60 = vadd.f32 %v671_v52, %v637_v57  ;;  %v6133_v61 = vpop.f32.mrf.mxu3  ;;  %v2278_v57 = vunpack.c.l.b16 %v2170_v42  ;;  %v5670_v20 = vld [vmem:[%s5798_s8 + $0xe4] sm:$0xff]  ;;  %v2193_v22 = vrot.slane %v2191_v9, 5 }
  0xbf   : > { %v864_v1 = vld [vmem:[#allocation2 + $0x18] sm:$0xff] }
  0xc0   : > { %v880_v8 = vadd.f32 %v864_v1, %v6093_v4  ;;  %703 = vst.msk [vmem:[#allocation2 + $0x20] sm:$0xff] %vm318_vm5, %v687_v60  ;;  %5117 = vmatmul.msk.bf16.gmra.mxu1 %vm240_vm1, %v1718_v53  ;;  %v5198_v4 = vld [vmem:[%s5798_s8 + $0xe4] sm:$0xf]  ;;  %v6175_v53 = vrot.slane %v2181_v36, 5  ;;  %v1618_v1 = vrot.slane %v1617_v38, 4  ;;  %v2290_v11 = vpack.c.b16 %v2278_v57, %v2277_v56 }
  0xc1   : > { %v1240_v5 = vld [vmem:[#allocation2 + $0x10] sm:$0xff]  ;;  %v2172_v30 = vshrl.u32 %v5198_v4, 16  ;;  %v2175_v32 = vshll.u32 %v5198_v4, 16 }
  0xc2   : > { %896 = vst.msk [vmem:[#allocation2 + $0x18] sm:$0xff] %vm318_vm5, %v880_v8  ;;  %v1256_v15 = vadd.f32 %v1240_v5, %v1203_v26  ;;  %v1603_v26 = vrot.slane %v1601_v10, 4  ;;  %v2188_v8 = vor.u32 %v2187_v54, %v6175_v53  ;;  %v5099_v5 = vld [vmem:[%s5798_s8 + $0x108] sm:$0xf]  ;;  %v1623_v4 = vsel %vm5826_vm4, %v1618_v1, %v1622_v2  ;;  %v5203_v2 = vld [vmem:[%s5798_s8 + $0x11c] sm:$0x1] }
  0xc3   : > { %v6140_v12 = vpop.f32.mrf.mxu2  ;;  %5219 = vmatmul.msk.bf16.gmra.mxu3 %vm240_vm1, %v2289_v62  ;;  %v2174_v50 = vrot.slane %v2172_v30, 4  ;;  %v2177_v52 = vrot.slane %v2175_v32, 5  ;;  %v1719_v62 = vpack.c.b16 %v1707_v41, %v1706_v40  ;;  %v1628_v25 = vshll.u32 %v5099_v5, 16  ;;  %v5202_v30 = vld [vmem:[%s5798_s8 + $0x118] sm:$0xf] }
  0xc4   : > { %1272 = vst.msk [vmem:[#allocation2 + $0x10] sm:$0xff] %vm318_vm5, %v1256_v15  ;;  %v1607_v46 = vor.u32 %v1606_v27, %v1603_v26  ;;  %v2189_v21 = vrot.slane %v2188_v8, 4  ;;  %v1634_v26 = vshll.u32 %v5100_v14, 16  ;;  %v5201_v27 = vld [vmem:[%s5798_s8 + $0x114] sm:$0xf]  ;;  %v2205_v42 = vshll.u32 %v5202_v30, 16 }
  0xc5   : > { %v293_v18 = vpop.f32.mrf.mxu0  ;;  %v672_v23 = vld [vmem:[#allocation2 + $0x28] sm:$0xff]  ;;  %v639_v28 = vpop.f32.mrf.mxu1  ;;  %v2178_v3 = vor.u32 %v2177_v52, %v2174_v50  ;;  %v2199_v45 = vshll.u32 %v5201_v27, 16  ;;  %v1630_v38 = vrot.slane %v1628_v25, 5  ;;  %v1644_v1 = vshll.u32 %v5101_v51, 16  ;;  %v5102_v8 = vld [vmem:[%s5798_s8 + $0x138] sm:$0xf] }
  0xc6   : > { %325 = vst.msk [vmem:[#allocation2 + $0x30] sm:$0xff] %vm318_vm5, %v293_v18  ;;  %v688_v33 = vadd.f32 %v672_v23, %v639_v28  ;;  %v1208_v34 = vpop.f32.mrf.mxu3  ;;  %v1608_v0 = vrot.slane %v1607_v46, 4  ;;  %v1625_v23 = vshrl.u32 %v5099_v5, 16  ;;  %v2209_v46 = vshrl.u32 %v5202_v30, 16 }
  0xc7   : > { %v865_v39 = vld [vmem:[#allocation2 + $0x20] sm:$0xff]  ;;  %v2179_v18 = vrot.slane %v2178_v3, 4  ;;  %v6216_v49 = vrot.slane %v1634_v26, 5  ;;  %v6222_v59 = vrot.slane %v2205_v42, 5 }
  0xc8   : > { %5079 = vmatmul.msk.bf16.gmra.mxu0 %vm240_vm1, %v5659_v16  ;;  %5181 = vmatmul.msk.bf16.gmra.mxu2 %vm240_vm1, %v5669_v17  ;;  %v881_v44 = vadd.f32 %v865_v39, %v6120_v43  ;;  %704 = vst.msk [vmem:[#allocation2 + $0x28] sm:$0xff] %vm318_vm5, %v688_v33  ;;  %v1613_v17 = vsel %vm5826_vm4, %v1608_v0, %v6155_v29  ;;  %v1638_v29 = vshrl.u32 %v5100_v14, 16  ;;  %v1627_v40 = vrot.slane %v1625_v23, 4  ;;  %v5661_v23 = vld [vmem:[%s5798_s8 + $0x108] sm:$0xff] }
  0xc9   : > { %v1241_v47 = vld [vmem:[#allocation2 + $0x18] sm:$0xff]  ;;  %v1708_v33 = vunpack.c.l.b16 %v1613_v17  ;;  %v2184_v37 = vsel %vm5826_vm4, %v2179_v18, %v6175_v53  ;;  %v2194_v39 = vsel %vm5826_vm4, %v2189_v21, %v2193_v22  ;;  %v1652_v21 = vshll.u32 %v5102_v8, 16 }
  0xca   : > { %897 = vst.msk [vmem:[#allocation2 + $0x20] sm:$0xff] %vm318_vm5, %v881_v44  ;;  %v1257_v43 = vadd.f32 %v1241_v47, %v6133_v61  ;;  %v5694_v61 = vld [vmem:[%s7201_s1 + $0x78] sm:$0xff]  ;;  %v2196_v44 = vshrl.u32 %v5201_v27, 16  ;;  %v1640_v50 = vrot.slane %v1638_v29, 4  ;;  %v2279_v54 = vunpack.c.l.b16 %v2184_v37 }
  0xcb   : > { %v6167_v48 = vpop.f32.mrf.mxu2  ;;  %3103 = vmatpush.bf16.msra.mxu2 %v5694_v61  ;;  %v1654_v37 = vrot.slane %v1652_v21, 5 }
  0xcc   : > { %1273 = vst.msk [vmem:[#allocation2 + $0x18] sm:$0xff] %vm318_vm5, %v1257_v43  ;;  %v2198_v57 = vrot.slane %v2196_v44, 4  ;;  %v1641_v0 = vor.u32 %v1640_v50, %v6216_v49 }
  0xcd   : > { %v295_v55 = vpop.f32.mrf.mxu0  ;;  %v673_v60 = vld [vmem:[#allocation2 + $0x30] sm:$0xff]  ;;  %v642_v63 = vpop.f32.mrf.mxu1 }
  0xce   : > { %326 = vst.msk [vmem:[#allocation2 + $0x38] sm:$0xff] %vm318_vm5, %v295_v55  ;;  %v689_v6 = vadd.f32 %v673_v60, %v642_v63  ;;  %v1210_v7 = vpop.f32.mrf.mxu3  ;;  %v2280_v55 = vunpack.c.l.b16 %v2194_v39  ;;  %v2211_v60 = vrot.slane %v2209_v46, 4  ;;  %v1631_v63 = vor.u32 %v1630_v38, %v1627_v40 }
  0xcf   : > { %v866_v10 = vld [vmem:[#allocation2 + $0x28] sm:$0xff]  ;;  %v1642_v17 = vrot.slane %v1641_v0, 4 }
  0xd0   : > { %v882_v13 = vadd.f32 %v866_v10, %v6140_v12  ;;  %705 = vst.msk [vmem:[#allocation2 + $0x30] sm:$0xff] %vm318_vm5, %v689_v6  ;;  %5118 = vmatmul.msk.bf16.gmra.mxu1 %vm240_vm1, %v1719_v62  ;;  %v2291_v10 = vpack.c.b16 %v2280_v55, %v2279_v54  ;;  %v2212_v5 = vor.u32 %v2211_v60, %v6222_v59  ;;  %v5104_v60 = vld [vmem:[%s5798_s8 + $0x140] sm:$0x1] }
  0xd1   : > { %v1242_v15 = vld [vmem:[#allocation2 + $0x20] sm:$0xff] }
  0xd2   : > { %898 = vst.msk [vmem:[#allocation2 + $0x28] sm:$0xff] %vm318_vm5, %v882_v13  ;;  %v1258_v12 = vadd.f32 %v1242_v15, %v1208_v34  ;;  %v1709_v34 = vunpack.c.l.b16 %v1623_v4  ;;  %v2215_v13 = vshll.u32 %v5203_v2, 16  ;;  %v1632_v15 = vrot.slane %v1631_v63, 4 }
  0xd3   : > { %v6189_v16 = vpop.f32.mrf.mxu2  ;;  %5220 = vmatmul.msk.bf16.gmra.mxu3 %vm240_vm1, %v2290_v11  ;;  %v1646_v4 = vrot.slane %v1644_v1, 5  ;;  %v2213_v27 = vrot.slane %v2212_v5, 4 }
  0xd4   : > { %1274 = vst.msk [vmem:[#allocation2 + $0x20] sm:$0xff] %vm318_vm5, %v1258_v12  ;;  %v1720_v61 = vpack.c.b16 %v1709_v34, %v1708_v33  ;;  %v1637_v31 = vsel %vm5826_vm4, %v1632_v15, %v6216_v49  ;;  %v5205_v34 = vld [vmem:[%s5798_s8 + $0x148] sm:$0xf] }
  0xd5   : > { %v298_v24 = vpop.f32.mrf.mxu0  ;;  %v674_v28 = vld [vmem:[#allocation2 + $0x38] sm:$0xff]  ;;  %v644_v32 = vpop.f32.mrf.mxu1  ;;  %v1647_v30 = vsel %vm5826_vm4, %v1642_v17, %v1646_v4  ;;  %v1710_v42 = vunpack.c.l.b16 %v1637_v31  ;;  %v2233_v38 = vshrl.u32 %v5205_v34, 16  ;;  %v5105_v4 = vld [vmem:[%s5798_s8 + $0x168] sm:$0xf] }
  0xd6   : > { %327 = vst.msk [vmem:[#allocation2 + $0x40] sm:$0xff] %vm318_vm5, %v298_v24  ;;  %v690_v35 = vadd.f32 %v674_v28, %v644_v32  ;;  %v1213_v36 = vpop.f32.mrf.mxu3  ;;  %v5671_v24 = vld [vmem:[%s5798_s8 + $0x114] sm:$0xff]  ;;  %v2217_v28 = vrot.slane %v2215_v13, 5  ;;  %v1711_v46 = vunpack.c.l.b16 %v1647_v30 }
  0xd7   : > { %v867_v41 = vld [vmem:[#allocation2 + $0x30] sm:$0xff]  ;;  %v2235_v0 = vrot.slane %v2233_v38, 4 }
  0xd8   : > { %5080 = vmatmul.msk.bf16.gmra.mxu0 %vm240_vm1, %v5660_v19  ;;  %5182 = vmatmul.msk.bf16.gmra.mxu2 %vm240_vm1, %v5670_v20  ;;  %v883_v47 = vadd.f32 %v867_v41, %v6167_v48  ;;  %706 = vst.msk [vmem:[#allocation2 + $0x38] sm:$0xff] %vm318_vm5, %v690_v35  ;;  %v2201_v48 = vrot.slane %v2199_v45, 5  ;;  %v5103_v19 = vld [vmem:[%s5798_s8 + $0x13c] sm:$0xf]  ;;  %v1649_v20 = vshrl.u32 %v5102_v8, 16  ;;  %v1721_v2 = vpack.c.b16 %v1711_v46, %v1710_v42 }
  0xd9   : > { %v1243_v52 = vld [vmem:[#allocation2 + $0x28] sm:$0xff]  ;;  %v1658_v32 = vshll.u32 %v5103_v19, 16  ;;  %v1662_v33 = vshrl.u32 %v5103_v19, 16 }
  0xda   : > { %899 = vst.msk [vmem:[#allocation2 + $0x30] sm:$0xff] %vm318_vm5, %v883_v47  ;;  %v1259_v53 = vadd.f32 %v1243_v52, %v1210_v7  ;;  %v2202_v11 = vor.u32 %v2201_v48, %v2198_v57  ;;  %v2229_v47 = vshll.u32 %v5205_v34, 16  ;;  %v2218_v52 = vsel %vm5826_vm4, %v2213_v27, %v2217_v28  ;;  %v5672_v27 = vld [vmem:[%s5798_s8 + $0x144] sm:$0xff] }
  0xdb   : > { %v6218_v43 = vpop.f32.mrf.mxu2  ;;  %v1660_v51 = vrot.slane %v1658_v32, 5  ;;  %v2282_v63 = vunpack.c.l.b16 %v2218_v52  ;;  %v1676_v28 = vshll.u32 %v5105_v4, 16 }
  0xdc   : > { %1275 = vst.msk [vmem:[#allocation2 + $0x28] sm:$0xff] %vm318_vm5, %v1259_v53  ;;  %v2203_v26 = vrot.slane %v2202_v11, 4 }
  0xdd   : > { %v300_v56 = vpop.f32.mrf.mxu0  ;;  %v675_v62 = vld [vmem:[#allocation2 + $0x40] sm:$0xff]  ;;  %v647_v3 = vpop.f32.mrf.mxu1  ;;  %v1678_v46 = vrot.slane %v1676_v28, 5 }
  0xde   : > { %328 = vst.msk [vmem:[#allocation2 + $0x48] sm:$0xff] %vm318_vm5, %v300_v56  ;;  %v691_v6 = vadd.f32 %v675_v62, %v647_v3  ;;  %v1215_v7 = vpop.f32.mrf.mxu3  ;;  %v2208_v50 = vsel %vm5826_vm4, %v2203_v26, %v6222_v59  ;;  %v1664_v56 = vrot.slane %v1662_v33, 4  ;;  %v6262_v59 = vrot.slane %v2229_v47, 5  ;;  %v5206_v3 = vld [vmem:[%s5798_s8 + $0x14c] sm:$0x1]  ;;  %v5662_v26 = vld [vmem:[%s5798_s8 + $0x138] sm:$0xff] }
  0xdf   : > { %v868_v9 = vld [vmem:[#allocation2 + $0x38] sm:$0xff]  ;;  %v2239_v17 = vshll.u32 %v5206_v3, 16 }
  0xe0   : > { %v884_v14 = vadd.f32 %v868_v9, %v6189_v16  ;;  %707 = vst.msk [vmem:[#allocation2 + $0x40] sm:$0xff] %vm318_vm5, %v691_v6  ;;  %5119 = vmatmul.msk.bf16.gmra.mxu1 %vm240_vm1, %v1720_v61  ;;  %v5204_v16 = vld [vmem:[%s5798_s8 + $0x144] sm:$0xf]  ;;  %v2281_v61 = vunpack.c.l.b16 %v2208_v50  ;;  %v1665_v9 = vor.u32 %v1664_v56, %v1660_v51  ;;  %v2236_v15 = vor.u32 %v2235_v0, %v6262_v59  ;;  %v5107_v50 = vld [vmem:[%s5798_s8 + $0x170] sm:$0x1] }
  0xe1   : > { %v1244_v18 = vld [vmem:[#allocation2 + $0x30] sm:$0xff]  ;;  %v2220_v39 = vshrl.u32 %v5204_v16, 16  ;;  %v2223_v40 = vshll.u32 %v5204_v16, 16  ;;  %v2241_v32 = vrot.slane %v2239_v17, 5  ;;  %v1692_v0 = vshll.u32 %v5107_v50, 16 }
  0xe2   : > { %900 = vst.msk [vmem:[#allocation2 + $0x38] sm:$0xff] %vm318_vm5, %v884_v14  ;;  %v1260_v22 = vadd.f32 %v1244_v18, %v1213_v36  ;;  %v1651_v36 = vrot.slane %v1649_v20, 4  ;;  %v2292_v14 = vpack.c.b16 %v2282_v63, %v2281_v61  ;;  %v5106_v18 = vld [vmem:[%s5798_s8 + $0x16c] sm:$0xf]  ;;  %v2237_v30 = vrot.slane %v2236_v15, 4 }
  0xe3   : > { %v6233_v12 = vpop.f32.mrf.mxu2  ;;  %5221 = vmatmul.msk.bf16.gmra.mxu3 %vm240_vm1, %v2291_v10  ;;  %v2222_v57 = vrot.slane %v2220_v39, 4  ;;  %v2225_v48 = vrot.slane %v2223_v40, 5  ;;  %v1686_v33 = vshrl.u32 %v5106_v18, 16 }
  0xe4   : > { %1276 = vst.msk [vmem:[#allocation2 + $0x30] sm:$0xff] %vm318_vm5, %v1260_v22  ;;  %v1655_v55 = vor.u32 %v1654_v37, %v1651_v36 }
  0xe5   : > { %v303_v25 = vpop.f32.mrf.mxu0  ;;  %v676_v29 = vld [vmem:[#allocation2 + $0x48] sm:$0xff]  ;;  %v649_v35 = vpop.f32.mrf.mxu1  ;;  %v2226_v10 = vor.u32 %v2225_v48, %v2222_v57  ;;  %v1688_v52 = vrot.slane %v1686_v33, 4 }
  0xe6   : > { %329 = vst.msk [vmem:[#allocation2 + $0x50] sm:$0xff] %vm318_vm5, %v303_v25  ;;  %v692_v41 = vadd.f32 %v676_v29, %v649_v35  ;;  %v1218_v44 = vpop.f32.mrf.mxu3  ;;  %v1656_v8 = vrot.slane %v1655_v55, 4  ;;  %v1682_v29 = vshll.u32 %v5106_v18, 16  ;;  %v5207_v35 = vld [vmem:[%s5798_s8 + $0x174] sm:$0xf] }
  0xe7   : > { %v869_v45 = vld [vmem:[#allocation2 + $0x40] sm:$0xff]  ;;  %v2227_v16 = vrot.slane %v2226_v10, 4 }
  0xe8   : > { %5081 = vmatmul.msk.bf16.gmra.mxu0 %vm240_vm1, %v5661_v23  ;;  %5183 = vmatmul.msk.bf16.gmra.mxu2 %vm240_vm1, %v5671_v24  ;;  %v885_v49 = vadd.f32 %v869_v45, %v6218_v43  ;;  %708 = vst.msk [vmem:[#allocation2 + $0x48] sm:$0xff] %vm318_vm5, %v692_v41  ;;  %v1661_v22 = vsel %vm5826_vm4, %v1656_v8, %v1660_v51  ;;  %v1666_v23 = vrot.slane %v1665_v9, 4  ;;  %v5208_v41 = vld [vmem:[%s5798_s8 + $0x178] sm:$0xf]  ;;  %v6292_v47 = vrot.slane %v1682_v29, 5 }
  0xe9   : > { %v1245_v53 = vld [vmem:[#allocation2 + $0x38] sm:$0xff]  ;;  %v1712_v39 = vunpack.c.l.b16 %v1661_v22  ;;  %v2232_v40 = vsel %vm5826_vm4, %v2227_v16, %v6262_v59  ;;  %v2244_v51 = vshrl.u32 %v5207_v35, 16  ;;  %v2253_v57 = vshll.u32 %v5208_v41, 16 }
  0xea   : > { %901 = vst.msk [vmem:[#allocation2 + $0x40] sm:$0xff] %vm318_vm5, %v885_v49  ;;  %v1261_v43 = vadd.f32 %v1245_v53, %v1215_v7  ;;  %v1668_v7 = vshll.u32 %v5104_v60, 16  ;;  %v2242_v49 = vsel %vm5826_vm4, %v2237_v30, %v2241_v32  ;;  %v2247_v53 = vshll.u32 %v5207_v35, 16  ;;  %v5673_v35 = vld [vmem:[%s5798_s8 + $0x174] sm:$0xff] }
  0xeb   : > { %v6258_v54 = vpop.f32.mrf.mxu2  ;;  %v2257_v48 = vshrl.u32 %v5208_v41, 16  ;;  %v2284_v63 = vunpack.c.l.b16 %v2242_v49  ;;  %v2246_v3 = vrot.slane %v2244_v51, 4 }
  0xec   : > { %1277 = vst.msk [vmem:[#allocation2 + $0x38] sm:$0xff] %vm318_vm5, %v1261_v43  ;;  %v1670_v24 = vrot.slane %v1668_v7, 5  ;;  %v6305_v7 = vrot.slane %v2253_v57, 5 }
  0xed   : > { %v305_v62 = vpop.f32.mrf.mxu0  ;;  %v677_v1 = vld [vmem:[#allocation2 + $0x50] sm:$0xff]  ;;  %v652_v6 = vpop.f32.mrf.mxu1  ;;  %v2259_v10 = vrot.slane %v2257_v48, 4 }
  0xee   : > { %330 = vst.msk [vmem:[#allocation2 + $0x58] sm:$0xff] %vm318_vm5, %v305_v62  ;;  %v693_v11 = vadd.f32 %v677_v1, %v652_v6  ;;  %v1220_v5 = vpop.f32.mrf.mxu3  ;;  %v1671_v37 = vsel %vm5826_vm4, %v1666_v23, %v1670_v24  ;;  %v2283_v62 = vunpack.c.l.b16 %v2232_v40  ;;  %v2249_v6 = vrot.slane %v2247_v53, 5 }
  0xef   : > { %v870_v13 = vld [vmem:[#allocation2 + $0x48] sm:$0xff]  ;;  %v1713_v56 = vunpack.c.l.b16 %v1671_v37 }
  0xf0   : > { %v886_v19 = vadd.f32 %v870_v13, %v6233_v12  ;;  %709 = vst.msk [vmem:[#allocation2 + $0x50] sm:$0xff] %vm318_vm5, %v693_v11  ;;  %5120 = vmatmul.msk.bf16.gmra.mxu1 %vm240_vm1, %v1721_v2  ;;  %v1673_v12 = vshrl.u32 %v5105_v4, 16  ;;  %v1689_v2 = vor.u32 %v1688_v52, %v6292_v47  ;;  %v5447_v11 = vld [vmem:[%s7201_s1 + $0x98] sm:$0xf]  ;;  %v2293_v4 = vpack.c.b16 %v2284_v63, %v2283_v62 }
  0xf1   : > { %v1246_v20 = vld [vmem:[#allocation2 + $0x40] sm:$0xff]  ;;  %v1722_v9 = vpack.c.b16 %v1713_v56, %v1712_v39  ;;  %v3636_v13 = vunpack.c.l.b16 %v5447_v11  ;;  %v2250_v24 = vor.u32 %v2249_v6, %v2246_v3  ;;  %v5290_v56 = vld [vmem:[%s5798_s8 + $0x38] sm:$0x1] }
  0xf2   : > { %902 = vst.msk [vmem:[#allocation2 + $0x48] sm:$0xff] %vm318_vm5, %v886_v19  ;;  %v1262_v25 = vadd.f32 %v1246_v20, %v1218_v44  ;;  %v1675_v42 = vrot.slane %v1673_v12, 4  ;;  %v1694_v19 = vrot.slane %v1692_v0, 5  ;;  %v5289_v20 = vld [vmem:[%s5798_s8 + $0x34] sm:$0xf]  ;;  %v1690_v23 = vrot.slane %v1689_v2, 4 }
  0xf3   : > { %v6273_v21 = vpop.f32.mrf.mxu2  ;;  %5222 = vmatmul.msk.bf16.gmra.mxu3 %vm240_vm1, %v2292_v14  ;;  %v5288_v14 = vld [vmem:[%s5798_s8 + $0x30] sm:$0xf]  ;;  %v2656_v32 = vshll.u32 %v5289_v20, 16  ;;  %v2660_v33 = vshrl.u32 %v5289_v20, 16  ;;  %v2251_v41 = vrot.slane %v2250_v24, 4 }
  0xf4   : > { %1278 = vst.msk [vmem:[#allocation2 + $0x40] sm:$0xff] %vm318_vm5, %v1262_v25  ;;  %v1679_v59 = vor.u32 %v1678_v46, %v1675_v42  ;;  %v3638_v25 = vpack.c.b16 %v3636_v13, %v3636_v13  ;;  %v2647_v12 = vshrl.u32 %v5288_v14, 16  ;;  %v2650_v28 = vshll.u32 %v5288_v14, 16 }
  0xf5   : > { %v308_v31 = vpop.f32.mrf.mxu0  ;;  %v678_v34 = vld [vmem:[#allocation2 + $0x58] sm:$0xff]  ;;  %v654_v36 = vpop.f32.mrf.mxu1  ;;  %v1695_v40 = vsel %vm5826_vm4, %v1690_v23, %v1694_v19  ;;  %v6335_v52 = vrot.slane %v2656_v32, 5  ;;  %v2662_v51 = vrot.slane %v2660_v33, 4  ;;  %v2256_v0 = vsel %vm5826_vm4, %v2251_v41, %v6305_v7 }
  0xf6   : > { %331 = vst.msk [vmem:[#allocation2 + $0x60] sm:$0xff] %vm318_vm5, %v308_v31  ;;  %v694_v44 = vadd.f32 %v678_v34, %v654_v36  ;;  %v1223_v45 = vpop.f32.mrf.mxu3  ;;  %v1680_v18 = vrot.slane %v1679_v59, 4  ;;  %v3665_v30 = vsel %vm265_vm0, %v3638_v25, 0  ;;  %v5663_v34 = vld [vmem:[%s5798_s8 + $0x168] sm:$0xff]  ;;  %v5390_v36 = vld [vmem:[%s5798_s8 + $0x3c] sm:$0xf]  ;;  %v1715_v63 = vunpack.c.l.b16 %v1695_v40 }
  0xf7   : > { %v871_v38 = vld [vmem:[#allocation2 + $0x50] sm:$0xff]  ;;  %3673 = vmatpush.bf16.msrb.mxu0 %v3665_v30  ;;  %v2652_v49 = vrot.slane %v2650_v28, 5  ;;  %v3221_v57 = vshll.u32 %v5390_v36, 16  ;;  %v2663_v6 = vor.u32 %v2662_v51, %v6335_v52  ;;  %v2285_v14 = vunpack.c.l.b16 %v2256_v0  ;;  %v5686_v41 = vld [vmem:[%s5798_s8 + $0x3c] sm:$0xff] }
  0xf8   : > { %5082 = vmatmul.msk.bf16.gmra.mxu0 %vm240_vm1, %v5662_v26  ;;  %5184 = vmatmul.msk.bf16.gmra.mxu2 %vm240_vm1, %v5672_v27  ;;  %v887_v55 = vadd.f32 %v871_v38, %v6258_v54  ;;  %710 = vst.msk [vmem:[#allocation2 + $0x58] sm:$0xff] %vm318_vm5, %v694_v44  ;;  %v5209_v54 = vld [vmem:[%s5798_s8 + $0x17c] sm:$0x1]  ;;  %v2260_v27 = vor.u32 %v2259_v10, %v6305_v7  ;;  %v5391_v44 = vld [vmem:[%s5798_s8 + $0x40] sm:$0xf]  ;;  %v2649_v38 = vrot.slane %v2647_v12, 4 }
  0xf9   : > { %v1247_v43 = vld [vmem:[#allocation2 + $0x48] sm:$0xff]  ;;  %v2263_v16 = vshll.u32 %v5209_v54, 16  ;;  %v1685_v39 = vsel %vm5826_vm4, %v1680_v18, %v6292_v47  ;;  %v3218_v47 = vshrl.u32 %v5390_v36, 16  ;;  %v3227_v48 = vshll.u32 %v5391_v44, 16  ;;  %v5518_v7 = vld [vmem:[%s7201_s1 + $0xa4] sm:$0xf] }
  0xfa   : > { %903 = vst.msk [vmem:[#allocation2 + $0x50] sm:$0xff] %vm318_vm5, %v887_v55  ;;  %v1263_v61 = vadd.f32 %v1247_v43, %v1220_v5  ;;  %v2261_v42 = vrot.slane %v2260_v27, 4  ;;  %v3231_v43 = vshrl.u32 %v5391_v44, 16  ;;  %v2653_v2 = vor.u32 %v2652_v49, %v2649_v38  ;;  %v5392_v18 = vld [vmem:[%s5798_s8 + $0x44] sm:$0x1] }
  0xfb   : > { %v6299_v60 = vpop.f32.mrf.mxu2  ;;  %v2265_v46 = vrot.slane %v2263_v16, 5  ;;  %v3223_v10 = vrot.slane %v3221_v57, 5  ;;  %v6357_v11 = vrot.slane %v3227_v48, 5  ;;  %v2664_v24 = vrot.slane %v2663_v6, 4  ;;  %v5291_v36 = vld [vmem:[%s5798_s8 + $0x60] sm:$0xf] }
  0xfc   : > { %1279 = vst.msk [vmem:[#allocation2 + $0x48] sm:$0xff] %vm318_vm5, %v1263_v61  ;;  %v1714_v61 = vunpack.c.l.b16 %v1685_v39  ;;  %v3237_v30 = vshll.u32 %v5392_v18, 16  ;;  %v5676_v39 = vld [vmem:[%s5798_s8 + $0x30] sm:$0xff] }
  0xfd   : > { %v310_v1 = vpop.f32.mrf.mxu0  ;;  %v679_v8 = vld [vmem:[#allocation2 + $0x60] sm:$0xff]  ;;  %v657_v5 = vpop.f32.mrf.mxu1 }
  0xfe   : > { %332 = vst.msk [vmem:[#allocation2 + $0x68] sm:$0xff] %vm318_vm5, %v310_v1  ;;  %v695_v15 = vadd.f32 %v679_v8, %v657_v5  ;;  %v6312_v17 = vpop.f32.mrf.mxu3  ;;  %v2266_v1 = vsel %vm5826_vm4, %v2261_v42, %v2265_v46  ;;  %v2666_v8 = vshll.u32 %v5290_v56, 16  ;;  %v3233_v5 = vrot.slane %v3231_v43, 4  ;;  %v5393_v43 = vld [vmem:[%s5798_s8 + $0x6c] sm:$0xf] }
  0xff   : > { %v872_v22 = vld [vmem:[#allocation2 + $0x58] sm:$0xff]  ;;  %v1723_v20 = vpack.c.b16 %v1715_v63, %v1714_v61  ;;  %v3239_v49 = vrot.slane %v3237_v30, 5 }
 0x100   : > { %v888_v26 = vadd.f32 %v872_v22, %v6273_v21  ;;  %711 = vst.msk [vmem:[#allocation2 + $0x60] sm:$0xff] %vm318_vm5, %v695_v15  ;;  %5121 = vmatmul.msk.bf16.gmra.mxu1 %vm240_vm1, %v1722_v9  ;;  %v3220_v9 = vrot.slane %v3218_v47, 4  ;;  %v2286_v15 = vunpack.c.l.b16 %v2266_v1  ;;  %v2654_v22 = vrot.slane %v2653_v2, 4  ;;  %v1432_v47 = vld [vmem:[#allocation2] sm:$0xff]  ;;  %v5394_v1 = vld [vmem:[%s5798_s8 + $0x70] sm:$0xf] }
 0x101   : > { %v1248_v29 = vld [vmem:[#allocation2 + $0x50] sm:$0xff]  ;;  %v2668_v16 = vrot.slane %v2666_v8, 5  ;;  %v3255_v18 = vshrl.u32 %v5394_v1, 16 }
 0x102   : > { %904 = vst.msk [vmem:[#allocation2 + $0x58] sm:$0xff] %vm318_vm5, %v888_v26  ;;  %v1264_v21 = vadd.f32 %v1248_v29, %v1223_v45  ;;  %v3224_v28 = vor.u32 %v3223_v10, %v3220_v9  ;;  %v3234_v29 = vor.u32 %v3233_v5, %v6357_v11  ;;  %v2294_v33 = vpack.c.b16 %v2286_v15, %v2285_v14  ;;  %v5293_v14 = vld [vmem:[%s5798_s8 + $0x68] sm:$0x1] }
 0x103   : > { %v6319_v31 = vpop.f32.mrf.mxu2  ;;  %5223 = vmatmul.msk.bf16.gmra.mxu3 %vm240_vm1, %v2293_v4  ;;  %v4013_v4 = vunpack.c.l.b16 %v5518_v7  ;;  %v2659_v44 = vsel %vm5826_vm4, %v2654_v22, %v6335_v52  ;;  %v2671_v52 = vshrl.u32 %v5291_v36, 16  ;;  %v3242_v5 = vshrl.u32 %v5393_v43, 16 }
 0x104   : > { %1280 = vst.msk [vmem:[#allocation2 + $0x50] sm:$0xff] %vm318_vm5, %v1264_v21  ;;  %v3225_v46 = vrot.slane %v3224_v28, 4  ;;  %v3235_v38 = vrot.slane %v3234_v29, 4  ;;  %v6388_v48 = vunpack.c.l.b16 %v2659_v44  ;;  %v3245_v15 = vshll.u32 %v5393_v43, 16  ;;  %v5295_v44 = vld [vmem:[%s5798_s8 + $0x94] sm:$0xf] }
 0x105   : > { %v313_v37 = vpop.f32.mrf.mxu0  ;;  %v680_v45 = vld [vmem:[#allocation2 + $0x68] sm:$0xff]  ;;  %v659_v50 = vpop.f32.mrf.mxu1  ;;  %v4015_v25 = vpack.c.b16 %v4013_v4, %v4013_v4  ;;  %v3251_v4 = vshll.u32 %v5394_v1, 16  ;;  %v2690_v28 = vshll.u32 %v5293_v14, 16  ;;  %v3244_v29 = vrot.slane %v3242_v5, 4 }
 0x106   : > { %333 = vst.msk [vmem:[#allocation2 + $0x70] sm:$0xff] %vm318_vm5, %v313_v37  ;;  %v696_v53 = vadd.f32 %v680_v45, %v659_v50  ;;  %v6338_v55 = vpop.f32.mrf.mxu3  ;;  %v2669_v45 = vsel %vm5826_vm4, %v2664_v24, %v2668_v16  ;;  %v5292_v50 = vld [vmem:[%s5798_s8 + $0x64] sm:$0xf]  ;;  %v3230_v6 = vsel %vm5826_vm4, %v3225_v46, %v6357_v11  ;;  %v3240_v8 = vsel %vm5826_vm4, %v3235_v38, %v3239_v49  ;;  %v5687_v43 = vld [vmem:[%s5798_s8 + $0x6c] sm:$0xff] }
 0x107   : > { %v873_v62 = vld [vmem:[#allocation2 + $0x60] sm:$0xff]  ;;  %v4042_v21 = vsel %vm265_vm0, %v4015_v25, 0  ;;  %v2843_v61 = vunpack.c.l.b16 %v2669_v45  ;;  %v2680_v63 = vshll.u32 %v5292_v50, 16  ;;  %v3413_v24 = vunpack.c.l.b16 %v3230_v6  ;;  %v1433_v25 = vld [vmem:[#allocation2 + $0x8] sm:$0xff] }
 0x108   : > { %5083 = vmatmul.msk.bf16.gmra.mxu0 %vm240_vm1, %v5663_v34  ;;  %5185 = vmatmul.msk.bf16.gmra.mxu2 %vm240_vm1, %v5673_v35  ;;  %v889_v59 = vadd.f32 %v873_v62, %v6299_v60  ;;  %712 = vst.msk [vmem:[#allocation2 + $0x68] sm:$0xff] %vm318_vm5, %v696_v53  ;;  %v2674_v53 = vshll.u32 %v5291_v36, 16  ;;  %v5395_v36 = vld [vmem:[%s5798_s8 + $0x74] sm:$0x1]  ;;  %v2692_v46 = vrot.slane %v2690_v28, 5 }
 0x109   : > { %v1249_v54 = vld [vmem:[#allocation2 + $0x58] sm:$0xff]  ;;  %4050 = vmatpush.bf16.msrb.mxu1 %v4042_v21  ;;  %v6408_v11 = vrot.slane %v2680_v63, 5  ;;  %v1434_v63 = vld [vmem:[#allocation2 + $0x10] sm:$0xff] }
 0x10a   : > { %905 = vst.msk [vmem:[#allocation2 + $0x60] sm:$0xff] %vm318_vm5, %v889_v59  ;;  %v1265_v60 = vadd.f32 %v1249_v54, %v6312_v17  ;;  %v5549_v17 = vld [vmem:[%s7201_s1 + $0xb0] sm:$0xf]  ;;  %v2684_v59 = vshrl.u32 %v5292_v50, 16  ;;  %v2676_v7 = vrot.slane %v2674_v53, 5 }
 0x10b   : > { %v6349_v3 = vpop.f32.mrf.mxu2  ;;  %v4207_v26 = vunpack.c.l.b16 %v5549_v17 }
 0x10c   : > { %1281 = vst.msk [vmem:[#allocation2 + $0x58] sm:$0xff] %vm318_vm5, %v1265_v60  ;;  %v2673_v60 = vrot.slane %v2671_v52, 4  ;;  %v2686_v22 = vrot.slane %v2684_v59, 4 }
 0x10d   : > { %v315_v13 = vpop.f32.mrf.mxu0  ;;  %v681_v19 = vld [vmem:[#allocation2 + $0x70] sm:$0xff]  ;;  %v662_v23 = vpop.f32.mrf.mxu1  ;;  %v4209_v34 = vpack.c.b16 %v4207_v26, %v4207_v26  ;;  %v3414_v26 = vunpack.c.l.b16 %v3240_v8 }
 0x10e   : > { %334 = vst.msk [vmem:[#allocation2 + $0x78] sm:$0xff] %vm318_vm5, %v315_v13  ;;  %v697_v27 = vadd.f32 %v681_v19, %v662_v23  ;;  %v6365_v12 = vpop.f32.mrf.mxu3 }
 0x10f   : > { %v874_v32 = vld [vmem:[#allocation2 + $0x68] sm:$0xff] }
 0x110   : > { %v890_v35 = vadd.f32 %v874_v32, %v6319_v31  ;;  %713 = vst.msk [vmem:[#allocation2 + $0x70] sm:$0xff] %vm318_vm5, %v697_v27  ;;  %5122 = vmatmul.msk.bf16.gmra.mxu1 %vm240_vm1, %v1723_v20  ;;  %v4236_v31 = vsel %vm265_vm0, %v4209_v34, 0  ;;  %v2677_v27 = vor.u32 %v2676_v7, %v2673_v60  ;;  %v3247_v32 = vrot.slane %v3245_v15, 5 }
 0x111   : > { %v1250_v37 = vld [vmem:[#allocation2 + $0x60] sm:$0xff]  ;;  %4244 = vmatpush.bf16.msrb.mxu2 %v4236_v31  ;;  %v3429_v31 = vpack.c.b16 %v3414_v26, %v3413_v24 }
 0x112   : > { %906 = vst.msk [vmem:[#allocation2 + $0x68] sm:$0xff] %vm318_vm5, %v890_v35  ;;  %v1266_v42 = vadd.f32 %v1250_v37, %v6338_v55  ;;  %v5620_v55 = vld [vmem:[%s7201_s1 + $0xbc] sm:$0xf]  ;;  %v2687_v35 = vor.u32 %v2686_v22, %v6408_v11  ;;  %v3248_v49 = vor.u32 %v3247_v32, %v3244_v29 }
 0x113   : > { %v6374_v40 = vpop.f32.mrf.mxu2  ;;  %5224 = vmatmul.msk.bf16.gmra.mxu3 %vm240_vm1, %v2294_v33  ;;  %v4584_v0 = vunpack.c.l.b16 %v5620_v55  ;;  %v6415_v33 = vrot.slane %v3251_v4, 5  ;;  %v5677_v55 = vld [vmem:[%s5798_s8 + $0x60] sm:$0xff]  ;;  %v5296_v4 = vld [vmem:[%s5798_s8 + $0x98] sm:$0x1] }
 0x114   : > { %1282 = vst.msk [vmem:[#allocation2 + $0x60] sm:$0xff] %vm318_vm5, %v1266_v42  ;;  %v2678_v42 = vrot.slane %v2677_v27, 4  ;;  %v2688_v53 = vrot.slane %v2687_v35, 4  ;;  %v1435_v35 = vld [vmem:[#allocation2 + $0x18] sm:$0xff] }
 0x115   : > { %v1392_v51 = vpop.f32.mrf.mxu0  ;;  %v682_v56 = vld [vmem:[#allocation2 + $0x78] sm:$0xff]  ;;  %v664_v62 = vpop.f32.mrf.mxu1  ;;  %v4586_v10 = vpack.c.b16 %v4584_v0, %v4584_v0 }
 0x116   : > { %v1448_v57 = vadd.f32 %v1432_v47, %v1392_v51  ;;  %v698_v2 = vadd.f32 %v682_v56, %v664_v62  ;;  %v1233_v54 = vpop.f32.mrf.mxu3  ;;  %v3261_v51 = vshll.u32 %v5395_v36, 16  ;;  %v2708_v62 = vshrl.u32 %v5295_v44, 16  ;;  %v5396_v0 = vld [vmem:[%s5798_s8 + $0x9c] sm:$0xf] }
 0x117   : > { %v875_v9 = vld [vmem:[#allocation2 + $0x70] sm:$0xff]  ;;  %v4613_v17 = vsel %vm265_vm0, %v4586_v10, 0  ;;  %v2683_v59 = vsel %vm5826_vm4, %v2678_v42, %v6408_v11  ;;  %v2693_v7 = vsel %vm5826_vm4, %v2688_v53, %v2692_v46  ;;  %v3269_v11 = vshll.u32 %v5396_v0, 16 }
 0x118   : > { %1464 = vst.msk [vmem:[#allocation2] sm:$0xff] %vm318_vm5, %v1448_v57  ;;  %5280 = vmatmul.msk.bf16.vlgmr.msra.gmra.mxu0 %vm240_vm1, %v5676_v39  ;;  %5382 = vmatmul.msk.bf16.vlgmr.msra.gmra.mxu2 %vm240_vm1, %v5686_v41  ;;  %v891_v13 = vadd.f32 %v875_v9, %v6349_v3  ;;  %v2858_v3 = vpack.c.b16 %v2843_v61, %v6388_v48  ;;  %v5294_v41 = vld [vmem:[%s5798_s8 + $0x90] sm:$0xf]  ;;  %v2704_v48 = vshll.u32 %v5295_v44, 16  ;;  %v3263_v8 = vrot.slane %v3261_v51, 5 }
 0x119   : > { %714 = vst.msk [vmem:[#allocation2 + $0x78] sm:$0xff] %vm318_vm5, %v698_v2  ;;  %v1251_v19 = vld [vmem:[#allocation2 + $0x68] sm:$0xff]  ;;  %4621 = vmatpush.bf16.msrb.mxu3 %v4613_v17  ;;  %v2695_v56 = vshrl.u32 %v5294_v41, 16  ;;  %v2698_v57 = vshll.u32 %v5294_v41, 16  ;;  %v3249_v2 = vrot.slane %v3248_v49, 4  ;;  %v2844_v17 = vunpack.c.l.b16 %v2683_v59  ;;  %v5688_v59 = vld [vmem:[%s5798_s8 + $0x9c] sm:$0xff] }
 0x11a   : > { %907 = vst.msk [vmem:[#allocation2 + $0x70] sm:$0xff] %vm318_vm5, %v891_v13  ;;  %v1267_v23 = vadd.f32 %v1251_v19, %v6365_v12  ;;  %v3257_v12 = vrot.slane %v3255_v18, 4  ;;  %v6442_v13 = vrot.slane %v2704_v48, 5  ;;  %v2710_v18 = vrot.slane %v2708_v62, 4 }
 0x11b   : > { %v6406_v20 = vpop.f32.mrf.mxu2  ;;  %v2697_v10 = vrot.slane %v2695_v56, 4  ;;  %v2700_v5 = vrot.slane %v2698_v57, 5  ;;  %v3266_v19 = vshrl.u32 %v5396_v0, 16 }
 0x11c   : > { %1283 = vst.msk [vmem:[#allocation2 + $0x68] sm:$0xff] %vm318_vm5, %v1267_v23  ;;  %v3258_v50 = vor.u32 %v3257_v12, %v6415_v33  ;;  %v2711_v32 = vor.u32 %v2710_v18, %v6442_v13  ;;  %v5400_v18 = vld [vmem:[%s5798_s8 + $0xd0] sm:$0xf] }
 0x11d   : > { %v1394_v16 = vpop.f32.mrf.mxu0  ;;  %v1769_v21 = vpop.f32.mrf.mxu1  ;;  %v2701_v29 = vor.u32 %v2700_v5, %v2697_v10  ;;  %v3268_v12 = vrot.slane %v3266_v19, 4  ;;  %v5399_v5 = vld [vmem:[%s5798_s8 + $0xcc] sm:$0xf] }
 0x11e   : > { %v1449_v30 = vadd.f32 %v1433_v25, %v1394_v16  ;;  %v6420_v39 = vpop.f32.mrf.mxu3  ;;  %v3259_v6 = vrot.slane %v3258_v50, 4  ;;  %v2845_v16 = vunpack.c.l.b16 %v2693_v7  ;;  %v3254_v25 = vsel %vm5826_vm4, %v3249_v2, %v6415_v33  ;;  %v5298_v2 = vld [vmem:[%s5798_s8 + $0xc4] sm:$0xf] }
 0x11f   : > { %v1809_v34 = vld [vmem:[#allocation2] sm:$0xff]  ;;  %v3415_v33 = vunpack.c.l.b16 %v3254_v25  ;;  %v2712_v50 = vrot.slane %v2711_v32, 4  ;;  %v3303_v32 = vshrl.u32 %v5400_v18, 16 }
 0x120   : > { %1465 = vst.msk [vmem:[#allocation2 + $0x8] sm:$0xff] %vm318_vm5, %v1449_v30  ;;  %v1825_v37 = vadd.f32 %v1809_v34, %v1769_v21  ;;  %v876_v45 = vld [vmem:[#allocation2 + $0x78] sm:$0xff]  ;;  %5319 = vmatmul.msk.bf16.vlgmr.msra.gmra.mxu1 %vm240_vm1, %v2858_v3  ;;  %v3264_v26 = vsel %vm5826_vm4, %v3259_v6, %v3263_v8  ;;  %v2714_v30 = vshll.u32 %v5296_v4, 16  ;;  %v3271_v21 = vrot.slane %v3269_v11, 5  ;;  %v1436_v8 = vld [vmem:[#allocation2 + $0x20] sm:$0xff] }
 0x121   : > { %v892_v38 = vadd.f32 %v876_v45, %v6374_v40  ;;  %v1252_v47 = vld [vmem:[#allocation2 + $0x70] sm:$0xff]  ;;  %v3416_v36 = vunpack.c.l.b16 %v3264_v26  ;;  %v2859_v45 = vpack.c.b16 %v2845_v16, %v2844_v17  ;;  %v2732_v4 = vshrl.u32 %v5298_v2, 16 }
 0x122   : > { %1841 = vst.msk [vmem:[#allocation2] sm:$0xff] %vm318_vm5, %v1825_v37  ;;  %v1268_v40 = vadd.f32 %v1252_v47, %v1233_v54  ;;  %v5397_v54 = vld [vmem:[%s5798_s8 + $0xa0] sm:$0xf]  ;;  %v2716_v51 = vrot.slane %v2714_v30, 5  ;;  %v3272_v47 = vor.u32 %v3271_v21, %v3268_v12  ;;  %v3290_v26 = vshrl.u32 %v5399_v5, 16 }
 0x123   : > { %v6428_v52 = vpop.f32.mrf.mxu2  ;;  %908 = vst.msk [vmem:[#allocation2 + $0x78] sm:$0xff] %vm318_vm5, %v892_v38  ;;  %5421 = vmatmul.msk.bf16.vlgmr.msra.gmra.mxu3 %vm240_vm1, %v3429_v31  ;;  %v3275_v23 = vshll.u32 %v5397_v54, 16  ;;  %v3279_v3 = vshrl.u32 %v5397_v54, 16  ;;  %v5398_v31 = vld [vmem:[%s5798_s8 + $0xa4] sm:$0x1]  ;;  %v3430_v56 = vpack.c.b16 %v3416_v36, %v3415_v33  ;;  %v3293_v30 = vshll.u32 %v5399_v5, 16 }
 0x124   : > { %1284 = vst.msk [vmem:[#allocation2 + $0x70] sm:$0xff] %vm318_vm5, %v1268_v40  ;;  %v3285_v48 = vshll.u32 %v5398_v31, 16  ;;  %v5689_v5 = vld [vmem:[%s5798_s8 + $0xcc] sm:$0xff] }
 0x125   : > { %v1397_v61 = vpop.f32.mrf.mxu0  ;;  %v1771_v9 = vpop.f32.mrf.mxu1  ;;  %v6460_v37 = vrot.slane %v3275_v23, 5  ;;  %v3281_v41 = vrot.slane %v3279_v3, 4 }
 0x126   : > { %v1450_v1 = vadd.f32 %v1434_v63, %v1397_v61  ;;  %v2340_v15 = vpop.f32.mrf.mxu3  ;;  %v5678_v63 = vld [vmem:[%s5798_s8 + $0x90] sm:$0xff] }
 0x127   : > { %v1810_v60 = vld [vmem:[#allocation2 + $0x8] sm:$0xff]  ;;  %v3282_v57 = vor.u32 %v3281_v41, %v6460_v37 }
 0x128   : > { %1466 = vst.msk [vmem:[#allocation2 + $0x10] sm:$0xff] %vm318_vm5, %v1450_v1  ;;  %v1826_v14 = vadd.f32 %v1810_v60, %v1771_v9  ;;  %5281 = vmatmul.msk.bf16.gmra.mxu0 %vm240_vm1, %v5677_v55  ;;  %5383 = vmatmul.msk.bf16.gmra.mxu2 %vm240_vm1, %v5687_v43  ;;  %v5297_v55 = vld [vmem:[%s5798_s8 + $0xc0] sm:$0xf]  ;;  %v3273_v1 = vrot.slane %v3272_v47, 4  ;;  %v3287_v9 = vrot.slane %v3285_v48, 5 }
 0x129   : > { %v2003_v22 = vld [vmem:[#allocation2] sm:$0xff]  ;;  %v3283_v54 = vrot.slane %v3282_v57, 4  ;;  %v2719_v60 = vshrl.u32 %v5297_v55, 16  ;;  %v2722_v7 = vshll.u32 %v5297_v55, 16  ;;  %v5301_v55 = vld [vmem:[%s5798_s8 + $0xf4] sm:$0xf] }
 0x12a   : > { %v2019_v24 = vadd.f32 %v2003_v22, %v6406_v20  ;;  %1842 = vst.msk [vmem:[#allocation2 + $0x8] sm:$0xff] %vm318_vm5, %v1826_v14  ;;  %v1253_v27 = vld [vmem:[#allocation2 + $0x78] sm:$0xff]  ;;  %v3278_v23 = vsel %vm5826_vm4, %v3273_v1, %v6460_v37 }
 0x12b   : > { %v6455_v28 = vpop.f32.mrf.mxu2  ;;  %v1269_v20 = vadd.f32 %v1253_v27, %v6420_v39  ;;  %v2702_v39 = vrot.slane %v2701_v29, 4  ;;  %v2721_v16 = vrot.slane %v2719_v60, 4  ;;  %v2724_v25 = vrot.slane %v2722_v7, 5  ;;  %v5299_v29 = vld [vmem:[%s5798_s8 + $0xc8] sm:$0x1] }
 0x12c   : > { %2035 = vst.msk [vmem:[#allocation2] sm:$0xff] %vm318_vm5, %v2019_v24  ;;  %v3288_v24 = vsel %vm5826_vm4, %v3283_v54, %v3287_v9  ;;  %v3417_v37 = vunpack.c.l.b16 %v3278_v23  ;;  %v2738_v31 = vshll.u32 %v5299_v29, 16  ;;  %v2752_v7 = vshll.u32 %v5301_v55, 16 }
 0x12d   : > { %v1399_v34 = vpop.f32.mrf.mxu0  ;;  %1285 = vst.msk [vmem:[#allocation2 + $0x78] sm:$0xff] %vm318_vm5, %v1269_v20  ;;  %v1774_v42 = vpop.f32.mrf.mxu1  ;;  %v2707_v0 = vsel %vm5826_vm4, %v2702_v39, %v6442_v13  ;;  %v3299_v20 = vshll.u32 %v5400_v18, 16  ;;  %v3295_v39 = vrot.slane %v3293_v30, 5  ;;  %v5402_v18 = vld [vmem:[%s5798_s8 + $0xfc] sm:$0xf] }
 0x12e   : > { %v1451_v44 = vadd.f32 %v1435_v35, %v1399_v34  ;;  %v2342_v49 = vpop.f32.mrf.mxu3  ;;  %v2846_v22 = vunpack.c.l.b16 %v2707_v0  ;;  %v2734_v35 = vrot.slane %v2732_v4, 4 }
 0x12f   : > { %v1811_v46 = vld [vmem:[#allocation2 + $0x10] sm:$0xff] }
 0x130   : > { %1467 = vst.msk [vmem:[#allocation2 + $0x18] sm:$0xff] %vm318_vm5, %v1451_v44  ;;  %v1827_v38 = vadd.f32 %v1811_v46, %v1774_v42  ;;  %5320 = vmatmul.msk.bf16.gmra.mxu1 %vm240_vm1, %v2859_v45  ;;  %v3418_v44 = vunpack.c.l.b16 %v3288_v24  ;;  %v2725_v45 = vor.u32 %v2724_v25, %v2721_v16  ;;  %v3292_v42 = vrot.slane %v3290_v26, 4 }
 0x131   : > { %v2004_v53 = vld [vmem:[#allocation2 + $0x8] sm:$0xff] }
 0x132   : > { %v2020_v40 = vadd.f32 %v2004_v53, %v6428_v52  ;;  %1843 = vst.msk [vmem:[#allocation2 + $0x10] sm:$0xff] %vm318_vm5, %v1827_v38  ;;  %v2717_v52 = vsel %vm5826_vm4, %v2712_v50, %v2716_v51  ;;  %v6504_v38 = vrot.slane %v3299_v20, 5  ;;  %v3305_v50 = vrot.slane %v3303_v32, 4  ;;  %v5302_v20 = vld [vmem:[%s5798_s8 + $0xf8] sm:$0x1] }
 0x133   : > { %v2380_v43 = vld [vmem:[#allocation2] sm:$0xff]  ;;  %v6470_v62 = vpop.f32.mrf.mxu2  ;;  %5422 = vmatmul.msk.bf16.gmra.mxu3 %vm240_vm1, %v3430_v56  ;;  %v2847_v17 = vunpack.c.l.b16 %v2717_v52  ;;  %v5401_v56 = vld [vmem:[%s5798_s8 + $0xd4] sm:$0x1]  ;;  %v3296_v52 = vor.u32 %v3295_v39, %v3292_v42  ;;  %v2762_v39 = vshll.u32 %v5302_v20, 16 }
 0x134   : > { %2036 = vst.msk [vmem:[#allocation2 + $0x8] sm:$0xff] %vm318_vm5, %v2020_v40  ;;  %v2396_v61 = vadd.f32 %v2380_v43, %v2340_v15  ;;  %v2728_v15 = vshll.u32 %v5298_v2, 16  ;;  %v5300_v40 = vld [vmem:[%s5798_s8 + $0xf0] sm:$0xf]  ;;  %v3306_v1 = vor.u32 %v3305_v50, %v6504_v38  ;;  %v3309_v2 = vshll.u32 %v5401_v56, 16 }
 0x135   : > { %v1402_v6 = vpop.f32.mrf.mxu0  ;;  %v1776_v14 = vpop.f32.mrf.mxu1  ;;  %v2860_v36 = vpack.c.b16 %v2847_v17, %v2846_v22  ;;  %v2743_v9 = vshrl.u32 %v5300_v40, 16  ;;  %v2746_v60 = vshll.u32 %v5300_v40, 16  ;;  %v3297_v22 = vrot.slane %v3296_v52, 4 }
 0x136   : > { %2412 = vst.msk [vmem:[#allocation2] sm:$0xff] %vm318_vm5, %v2396_v61  ;;  %v1452_v10 = vadd.f32 %v1436_v8, %v1402_v6  ;;  %v6487_v11 = vpop.f32.mrf.mxu3  ;;  %v6500_v34 = vrot.slane %v2728_v15, 5  ;;  %v3431_v61 = vpack.c.b16 %v3418_v44, %v3417_v37  ;;  %v1438_v15 = vld [vmem:[#allocation2 + $0x30] sm:$0xff]  ;;  %v3307_v17 = vrot.slane %v3306_v1, 4 }
 0x137   : > { %v1812_v13 = vld [vmem:[#allocation2 + $0x18] sm:$0xff]  ;;  %v3311_v23 = vrot.slane %v3309_v2, 5  ;;  %v2745_v25 = vrot.slane %v2743_v9, 4  ;;  %v2748_v26 = vrot.slane %v2746_v60, 5  ;;  %v3302_v44 = vsel %vm5826_vm4, %v3297_v22, %v6504_v38 }
 0x138   : > { %1468 = vst.msk [vmem:[#allocation2 + $0x20] sm:$0xff] %vm318_vm5, %v1452_v10  ;;  %v1828_v19 = vadd.f32 %v1812_v13, %v1776_v14  ;;  %5282 = vmatmul.msk.bf16.gmra.mxu0 %vm240_vm1, %v5678_v63  ;;  %5384 = vmatmul.msk.bf16.gmra.mxu2 %vm240_vm1, %v5688_v59  ;;  %v2735_v53 = vor.u32 %v2734_v35, %v6500_v34  ;;  %v2726_v63 = vrot.slane %v2725_v45, 4  ;;  %v2740_v59 = vrot.slane %v2738_v31, 5  ;;  %v5679_v10 = vld [vmem:[%s5798_s8 + $0xc0] sm:$0xff] }
 0x139   : > { %v2005_v3 = vld [vmem:[#allocation2 + $0x10] sm:$0xff]  ;;  %v2756_v14 = vshrl.u32 %v5301_v55, 16  ;;  %v3312_v45 = vsel %vm5826_vm4, %v3307_v17, %v3311_v23  ;;  %v3419_v56 = vunpack.c.l.b16 %v3302_v44  ;;  %v5304_v23 = vld [vmem:[%s5798_s8 + $0x124] sm:$0xf] }
 0x13a   : > { %v2021_v27 = vadd.f32 %v2005_v3, %v6455_v28  ;;  %1844 = vst.msk [vmem:[#allocation2 + $0x18] sm:$0xff] %vm318_vm5, %v1828_v19  ;;  %v1437_v28 = vld [vmem:[#allocation2 + $0x28] sm:$0xff]  ;;  %v2736_v54 = vrot.slane %v2735_v53, 4  ;;  %v2731_v4 = vsel %vm5826_vm4, %v2726_v63, %v6500_v34  ;;  %v3317_v34 = vshll.u32 %v5402_v18, 16  ;;  %v1439_v53 = vld [vmem:[#allocation2 + $0x38] sm:$0xff] }
 0x13b   : > { %v2381_v12 = vld [vmem:[#allocation2 + $0x8] sm:$0xff]  ;;  %v6498_v21 = vpop.f32.mrf.mxu2  ;;  %v2758_v32 = vrot.slane %v2756_v14, 4  ;;  %v5404_v63 = vld [vmem:[%s5798_s8 + $0x104] sm:$0x1]  ;;  %v5303_v14 = vld [vmem:[%s5798_s8 + $0x120] sm:$0xf] }
 0x13c   : > { %2037 = vst.msk [vmem:[#allocation2 + $0x10] sm:$0xff] %vm318_vm5, %v2021_v27  ;;  %v2397_v33 = vadd.f32 %v2381_v12, %v2342_v49  ;;  %v5704_v49 = vld [vmem:[%s7201_s1 + $0x90] sm:$0xff]  ;;  %v2741_v16 = vsel %vm5826_vm4, %v2736_v54, %v2740_v59  ;;  %v6535_v27 = vrot.slane %v2752_v7, 5  ;;  %v3314_v12 = vshrl.u32 %v5402_v18, 16 }
 0x13d   : > { %v1404_v41 = vpop.f32.mrf.mxu0  ;;  %v1779_v51 = vpop.f32.mrf.mxu1  ;;  %3674 = vmatpush.bf16.msrb.mxu0 %v5704_v49  ;;  %v5705_v49 = vld [vmem:[%s7201_s1 + $0x9c] sm:$0xff]  ;;  %v2764_v54 = vrot.slane %v2762_v39, 5  ;;  %v5680_v18 = vld [vmem:[%s5798_s8 + $0xf0] sm:$0xff] }
 0x13e   : > { %2413 = vst.msk [vmem:[#allocation2 + $0x8] sm:$0xff] %vm318_vm5, %v2397_v33  ;;  %v1453_v46 = vadd.f32 %v1437_v28, %v1404_v41  ;;  %v6512_v48 = vpop.f32.mrf.mxu3  ;;  %v2848_v33 = vunpack.c.l.b16 %v2731_v4  ;;  %v2849_v28 = vunpack.c.l.b16 %v2741_v16  ;;  %v3316_v38 = vrot.slane %v3314_v12, 4  ;;  %4051 = vmatpush.bf16.msrb.mxu1 %v5705_v49 }
 0x13f   : > { %v1813_v47 = vld [vmem:[#allocation2 + $0x20] sm:$0xff]  ;;  %v2776_v12 = vshll.u32 %v5304_v23, 16 }
 0x140   : > { %1469 = vst.msk [vmem:[#allocation2 + $0x28] sm:$0xff] %vm318_vm5, %v1453_v46  ;;  %v1829_v57 = vadd.f32 %v1813_v47, %v1779_v51  ;;  %5321 = vmatmul.msk.bf16.gmra.mxu1 %vm240_vm1, %v2860_v36  ;;  %v2749_v46 = vor.u32 %v2748_v26, %v2745_v25  ;;  %v3319_v51 = vrot.slane %v3317_v34, 5  ;;  %v2767_v25 = vshrl.u32 %v5303_v14, 16 }
 0x141   : > { %v2006_v43 = vld [vmem:[#allocation2 + $0x18] sm:$0xff]  ;;  %v2770_v26 = vshll.u32 %v5303_v14, 16  ;;  %v2780_v34 = vshrl.u32 %v5304_v23, 16  ;;  %v5307_v14 = vld [vmem:[%s5798_s8 + $0x154] sm:$0xf] }
 0x142   : > { %v2022_v0 = vadd.f32 %v2006_v43, %v6470_v62  ;;  %1845 = vst.msk [vmem:[#allocation2 + $0x20] sm:$0xff] %vm318_vm5, %v1829_v57  ;;  %v3420_v57 = vunpack.c.l.b16 %v3312_v45  ;;  %v2750_v52 = vrot.slane %v2749_v46, 4  ;;  %v3320_v9 = vor.u32 %v3319_v51, %v3316_v38 }
 0x143   : > { %v2382_v6 = vld [vmem:[#allocation2 + $0x10] sm:$0xff]  ;;  %v6520_v8 = vpop.f32.mrf.mxu2  ;;  %5423 = vmatmul.msk.bf16.gmra.mxu3 %vm240_vm1, %v3431_v61  ;;  %v5714_v61 = vld [vmem:[%s7201_s1 + $0xa8] sm:$0xff]  ;;  %v2772_v46 = vrot.slane %v2770_v26, 5  ;;  %v2800_v26 = vshll.u32 %v5307_v14, 16 }
 0x144   : > { %2038 = vst.msk [vmem:[#allocation2 + $0x18] sm:$0xff] %vm318_vm5, %v2022_v0  ;;  %v2398_v62 = vadd.f32 %v2382_v6, %v6487_v11  ;;  %v5403_v11 = vld [vmem:[%s5798_s8 + $0x100] sm:$0xf]  ;;  %4245 = vmatpush.bf16.msrb.mxu2 %v5714_v61  ;;  %v3432_v7 = vpack.c.b16 %v3420_v57, %v3419_v56  ;;  %v2755_v22 = vsel %vm5826_vm4, %v2750_v52, %v6535_v27  ;;  %v3321_v17 = vrot.slane %v3320_v9, 4 }
 0x145   : > { %v1407_v13 = vpop.f32.mrf.mxu0  ;;  %v1781_v3 = vpop.f32.mrf.mxu1  ;;  %v3323_v36 = vshll.u32 %v5403_v11, 16  ;;  %v3327_v37 = vshrl.u32 %v5403_v11, 16  ;;  %v6602_v56 = vrot.slane %v2776_v12, 5  ;;  %v2782_v57 = vrot.slane %v2780_v34, 4  ;;  %v5408_v34 = vld [vmem:[%s5798_s8 + $0x15c] sm:$0xf] }
 0x146   : > { %2414 = vst.msk [vmem:[#allocation2 + $0x10] sm:$0xff] %vm318_vm5, %v2398_v62  ;;  %v1454_v19 = vadd.f32 %v1438_v15, %v1407_v13  ;;  %v2350_v30 = vpop.f32.mrf.mxu3 }
 0x147   : > { %v1814_v24 = vld [vmem:[#allocation2 + $0x28] sm:$0xff]  ;;  %v6556_v40 = vrot.slane %v3323_v36, 5  ;;  %v3329_v55 = vrot.slane %v3327_v37, 4  ;;  %v2850_v37 = vunpack.c.l.b16 %v2755_v22 }
 0x148   : > { %1470 = vst.msk [vmem:[#allocation2 + $0x30] sm:$0xff] %vm318_vm5, %v1454_v19  ;;  %v1830_v29 = vadd.f32 %v1814_v24, %v1781_v3  ;;  %5283 = vmatmul.msk.bf16.gmra.mxu0 %vm240_vm1, %v5679_v10  ;;  %5385 = vmatmul.msk.bf16.gmra.mxu2 %vm240_vm1, %v5689_v5  ;;  %v3333_v10 = vshll.u32 %v5404_v63, 16  ;;  %v5690_v19 = vld [vmem:[%s5798_s8 + $0xfc] sm:$0xff] }
 0x149   : > { %v2007_v35 = vld [vmem:[#allocation2 + $0x20] sm:$0xff]  ;;  %v3330_v62 = vor.u32 %v3329_v55, %v6556_v40 }
 0x14a   : > { %v2023_v41 = vadd.f32 %v2007_v35, %v6498_v21  ;;  %1846 = vst.msk [vmem:[#allocation2 + $0x28] sm:$0xff] %vm318_vm5, %v1830_v29  ;;  %v2759_v21 = vor.u32 %v2758_v32, %v6535_v27  ;;  %v1440_v3 = vld [vmem:[#allocation2 + $0x40] sm:$0xff]  ;;  %v3335_v16 = vrot.slane %v3333_v10, 5  ;;  %v5715_v27 = vld [vmem:[%s7201_s1 + $0xb4] sm:$0xff]  ;;  %v5406_v35 = vld [vmem:[%s5798_s8 + $0x130] sm:$0xf] }
 0x14b   : > { %v2383_v31 = vld [vmem:[#allocation2 + $0x18] sm:$0xff]  ;;  %v6548_v42 = vpop.f32.mrf.mxu2  ;;  %v3331_v24 = vrot.slane %v3330_v62, 4  ;;  %4622 = vmatpush.bf16.msrb.mxu3 %v5715_v27  ;;  %v3347_v38 = vshll.u32 %v5406_v35, 16  ;;  %v3351_v51 = vshrl.u32 %v5406_v35, 16  ;;  %v5691_v27 = vld [vmem:[%s5798_s8 + $0x12c] sm:$0xff] }
 0x14c   : > { %2039 = vst.msk [vmem:[#allocation2 + $0x20] sm:$0xff] %vm318_vm5, %v2023_v41  ;;  %v2399_v50 = vadd.f32 %v2383_v31, %v6512_v48  ;;  %v2861_v48 = vpack.c.b16 %v2849_v28, %v2848_v33  ;;  %v2760_v6 = vrot.slane %v2759_v21, 4  ;;  %v3326_v28 = vsel %vm5826_vm4, %v3321_v17, %v6556_v40  ;;  %v5305_v21 = vld [vmem:[%s5798_s8 + $0x128] sm:$0x1] }
 0x14d   : > { %v1409_v47 = vpop.f32.mrf.mxu0  ;;  %v1784_v59 = vpop.f32.mrf.mxu1  ;;  %v3336_v45 = vsel %vm5826_vm4, %v3331_v24, %v3335_v16  ;;  %v2769_v31 = vrot.slane %v2767_v25, 4 }
 0x14e   : > { %2415 = vst.msk [vmem:[#allocation2 + $0x18] sm:$0xff] %vm318_vm5, %v2399_v50  ;;  %v1455_v43 = vadd.f32 %v1439_v53, %v1409_v47  ;;  %v6564_v2 = vpop.f32.mrf.mxu3  ;;  %v3422_v61 = vunpack.c.l.b16 %v3336_v45 }
 0x14f   : > { %v1815_v0 = vld [vmem:[#allocation2 + $0x30] sm:$0xff]  ;;  %v2773_v63 = vor.u32 %v2772_v46, %v2769_v31 }
 0x150   : > { %1471 = vst.msk [vmem:[#allocation2 + $0x38] sm:$0xff] %vm318_vm5, %v1455_v43  ;;  %v1831_v1 = vadd.f32 %v1815_v0, %v1784_v59  ;;  %5322 = vmatmul.msk.bf16.gmra.mxu1 %vm240_vm1, %v2861_v48  ;;  %v3421_v43 = vunpack.c.l.b16 %v3326_v28  ;;  %v1441_v48 = vld [vmem:[#allocation2 + $0x48] sm:$0xff]  ;;  %v2786_v59 = vshll.u32 %v5305_v21, 16 }
 0x151   : > { %v2008_v60 = vld [vmem:[#allocation2 + $0x28] sm:$0xff] }
 0x152   : > { %v2024_v5 = vadd.f32 %v2008_v60, %v6520_v8  ;;  %1847 = vst.msk [vmem:[#allocation2 + $0x30] sm:$0xff] %vm318_vm5, %v1831_v1  ;;  %v2765_v8 = vsel %vm5826_vm4, %v2760_v6, %v2764_v54  ;;  %v6607_v6 = vrot.slane %v3347_v38, 5  ;;  %v3353_v54 = vrot.slane %v3351_v51, 4 }
 0x153   : > { %v2384_v13 = vld [vmem:[#allocation2 + $0x20] sm:$0xff]  ;;  %v6571_v15 = vpop.f32.mrf.mxu2  ;;  %5424 = vmatmul.msk.bf16.gmra.mxu3 %vm240_vm1, %v3432_v7  ;;  %v2851_v41 = vunpack.c.l.b16 %v2765_v8  ;;  %v2783_v60 = vor.u32 %v2782_v57, %v6602_v56  ;;  %v5407_v7 = vld [vmem:[%s5798_s8 + $0x134] sm:$0x1]  ;;  %v3362_v51 = vshrl.u32 %v5408_v34, 16 }
 0x154   : > { %2040 = vst.msk [vmem:[#allocation2 + $0x28] sm:$0xff] %vm318_vm5, %v2024_v5  ;;  %v2400_v4 = vadd.f32 %v2384_v13, %v2350_v30  ;;  %v5405_v30 = vld [vmem:[%s5798_s8 + $0x12c] sm:$0xf]  ;;  %v5306_v5 = vld [vmem:[%s5798_s8 + $0x150] sm:$0xf]  ;;  %v3354_v17 = vor.u32 %v3353_v54, %v6607_v6  ;;  %v3357_v23 = vshll.u32 %v5407_v7, 16 }
 0x155   : > { %v1412_v11 = vpop.f32.mrf.mxu0  ;;  %v1786_v20 = vpop.f32.mrf.mxu1  ;;  %v3338_v39 = vshrl.u32 %v5405_v30, 16  ;;  %v3341_v49 = vshll.u32 %v5405_v30, 16  ;;  %v2862_v55 = vpack.c.b16 %v2851_v41, %v2850_v37  ;;  %v2784_v24 = vrot.slane %v2783_v60, 4  ;;  %v1443_v60 = vld [vmem:[#allocation2 + $0x58] sm:$0xff] }
 0x156   : > { %2416 = vst.msk [vmem:[#allocation2 + $0x20] sm:$0xff] %vm318_vm5, %v2400_v4  ;;  %v1456_v29 = vadd.f32 %v1440_v3, %v1412_v11  ;;  %v2355_v36 = vpop.f32.mrf.mxu3  ;;  %v3433_v4 = vpack.c.b16 %v3422_v61, %v3421_v43  ;;  %v2791_v16 = vshrl.u32 %v5306_v5, 16  ;;  %v2794_v25 = vshll.u32 %v5306_v5, 16 }
 0x157   : > { %v1816_v32 = vld [vmem:[#allocation2 + $0x38] sm:$0xff]  ;;  %v3340_v0 = vrot.slane %v3338_v39, 4  ;;  %v3343_v1 = vrot.slane %v3341_v49, 5  ;;  %v2804_v30 = vshrl.u32 %v5307_v14, 16  ;;  %v3355_v37 = vrot.slane %v3354_v17, 4 }
 0x158   : > { %1472 = vst.msk [vmem:[#allocation2 + $0x40] sm:$0xff] %vm318_vm5, %v1456_v29  ;;  %v1832_v33 = vadd.f32 %v1816_v32, %v1786_v20  ;;  %5284 = vmatmul.msk.bf16.gmra.mxu0 %vm240_vm1, %v5680_v18  ;;  %5386 = vmatmul.msk.bf16.gmra.mxu2 %vm240_vm1, %v5690_v19  ;;  %v2774_v18 = vrot.slane %v2773_v63, 4  ;;  %v2788_v19 = vrot.slane %v2786_v59, 5  ;;  %v5681_v29 = vld [vmem:[%s5798_s8 + $0x120] sm:$0xff]  ;;  %v1442_v32 = vld [vmem:[#allocation2 + $0x50] sm:$0xff]  ;;  %v3359_v41 = vrot.slane %v3357_v23, 5 }
 0x159   : > { %v2009_v44 = vld [vmem:[#allocation2 + $0x30] sm:$0xff]  ;;  %v3344_v8 = vor.u32 %v3343_v1, %v3340_v0  ;;  %v2793_v31 = vrot.slane %v2791_v16, 4  ;;  %v2796_v46 = vrot.slane %v2794_v25, 5  ;;  %v6634_v39 = vrot.slane %v2800_v26, 5  ;;  %v5308_v49 = vld [vmem:[%s5798_s8 + $0x158] sm:$0x1] }
 0x15a   : > { %v2025_v50 = vadd.f32 %v2009_v44, %v6548_v42  ;;  %1848 = vst.msk [vmem:[#allocation2 + $0x38] sm:$0xff] %vm318_vm5, %v1832_v33  ;;  %v2779_v12 = vsel %vm5826_vm4, %v2774_v18, %v6602_v56  ;;  %v2789_v45 = vsel %vm5826_vm4, %v2784_v24, %v2788_v19  ;;  %v2806_v38 = vrot.slane %v2804_v30, 4 }
 0x15b   : > { %v2385_v47 = vld [vmem:[#allocation2 + $0x28] sm:$0xff]  ;;  %v6600_v53 = vpop.f32.mrf.mxu2  ;;  %v3345_v33 = vrot.slane %v3344_v8, 4  ;;  %v2852_v57 = vunpack.c.l.b16 %v2779_v12  ;;  %v3360_v61 = vsel %vm5826_vm4, %v3355_v37, %v3359_v41  ;;  %v2797_v0 = vor.u32 %v2796_v46, %v2793_v31  ;;  %v5692_v12 = vld [vmem:[%s5798_s8 + $0x15c] sm:$0xff] }
 0x15c   : > { %2041 = vst.msk [vmem:[#allocation2 + $0x30] sm:$0xff] %vm318_vm5, %v2025_v50  ;;  %v2401_v40 = vadd.f32 %v2385_v47, %v6564_v2  ;;  %v3365_v47 = vshll.u32 %v5408_v34, 16  ;;  %v2807_v1 = vor.u32 %v2806_v38, %v6634_v39  ;;  %v3364_v54 = vrot.slane %v3362_v51, 4  ;;  %v1444_v41 = vld [vmem:[#allocation2 + $0x60] sm:$0xff]  ;;  %v5411_v46 = vld [vmem:[%s5798_s8 + $0x18c] sm:$0xf] }
 0x15d   : > { %v1414_v42 = vpop.f32.mrf.mxu0  ;;  %v1789_v9 = vpop.f32.mrf.mxu1  ;;  %v3424_v7 = vunpack.c.l.b16 %v3360_v61  ;;  %v5412_v38 = vld [vmem:[%s5798_s8 + $0x190] sm:$0xf]  ;;  %v3386_v61 = vshrl.u32 %v5411_v46, 16 }
 0x15e   : > { %2417 = vst.msk [vmem:[#allocation2 + $0x28] sm:$0xff] %vm318_vm5, %v2401_v40  ;;  %v1457_v52 = vadd.f32 %v1441_v48, %v1414_v42  ;;  %v6612_v10 = vpop.f32.mrf.mxu3  ;;  %v2853_v42 = vunpack.c.l.b16 %v2789_v45  ;;  %v3350_v48 = vsel %vm5826_vm4, %v3345_v33, %v6607_v6  ;;  %v2808_v17 = vrot.slane %v2807_v1, 4  ;;  %v5310_v33 = vld [vmem:[%s5798_s8 + $0x184] sm:$0xf] }
 0x15f   : > { %v1817_v2 = vld [vmem:[#allocation2 + $0x40] sm:$0xff]  ;;  %v3423_v6 = vunpack.c.l.b16 %v3350_v48  ;;  %v3399_v1 = vshrl.u32 %v5412_v38, 16 }
 0x160   : > { %1473 = vst.msk [vmem:[#allocation2 + $0x48] sm:$0xff] %vm318_vm5, %v1457_v52  ;;  %v1833_v62 = vadd.f32 %v1817_v2, %v1789_v9  ;;  %5323 = vmatmul.msk.bf16.gmra.mxu1 %vm240_vm1, %v2862_v55  ;;  %v2810_v52 = vshll.u32 %v5308_v49, 16  ;;  %v3367_v9 = vrot.slane %v3365_v47, 5  ;;  %v2828_v49 = vshrl.u32 %v5310_v33, 16 }
 0x161   : > { %v2010_v13 = vld [vmem:[#allocation2 + $0x38] sm:$0xff]  ;;  %v3434_v16 = vpack.c.b16 %v3424_v7, %v3423_v6 }
 0x162   : > { %v2026_v22 = vadd.f32 %v2010_v13, %v6571_v15  ;;  %1849 = vst.msk [vmem:[#allocation2 + $0x40] sm:$0xff] %vm318_vm5, %v1833_v62  ;;  %v2863_v13 = vpack.c.b16 %v2853_v42, %v2852_v57  ;;  %v2812_v23 = vrot.slane %v2810_v52, 5  ;;  %v3389_v52 = vshll.u32 %v5411_v46, 16 }
 0x163   : > { %v2386_v11 = vld [vmem:[#allocation2 + $0x30] sm:$0xff]  ;;  %v6620_v3 = vpop.f32.mrf.mxu2  ;;  %5425 = vmatmul.msk.bf16.gmra.mxu3 %vm240_vm1, %v3433_v4  ;;  %v5410_v4 = vld [vmem:[%s5798_s8 + $0x164] sm:$0x1] }
 0x164   : > { %2042 = vst.msk [vmem:[#allocation2 + $0x38] sm:$0xff] %vm318_vm5, %v2026_v22  ;;  %v2402_v15 = vadd.f32 %v2386_v11, %v2355_v36  ;;  %v5409_v36 = vld [vmem:[%s5798_s8 + $0x160] sm:$0xf]  ;;  %v3368_v11 = vor.u32 %v3367_v9, %v3364_v54  ;;  %v3381_v26 = vshll.u32 %v5410_v4, 16 }
 0x165   : > { %v1417_v20 = vpop.f32.mrf.mxu0  ;;  %v1791_v28 = vpop.f32.mrf.mxu1  ;;  %v3371_v40 = vshll.u32 %v5409_v36, 16  ;;  %v3375_v55 = vshrl.u32 %v5409_v36, 16 }
 0x166   : > { %2418 = vst.msk [vmem:[#allocation2 + $0x30] sm:$0xff] %vm318_vm5, %v2402_v15  ;;  %v1458_v35 = vadd.f32 %v1442_v32, %v1417_v20  ;;  %v2360_v21 = vpop.f32.mrf.mxu3  ;;  %v5682_v32 = vld [vmem:[%s5798_s8 + $0x150] sm:$0xff] }
 0x167   : > { %v1818_v44 = vld [vmem:[#allocation2 + $0x48] sm:$0xff]  ;;  %v6652_v62 = vrot.slane %v3371_v40, 5  ;;  %v3377_v5 = vrot.slane %v3375_v55, 4 }
 0x168   : > { %1474 = vst.msk [vmem:[#allocation2 + $0x50] sm:$0xff] %vm318_vm5, %v1458_v35  ;;  %v1834_v50 = vadd.f32 %v1818_v44, %v1791_v28  ;;  %5285 = vmatmul.msk.bf16.gmra.mxu0 %vm240_vm1, %v5681_v29  ;;  %5387 = vmatmul.msk.bf16.gmra.mxu2 %vm240_vm1, %v5691_v27  ;;  %v5309_v29 = vld [vmem:[%s5798_s8 + $0x180] sm:$0xf]  ;;  %v3369_v35 = vrot.slane %v3368_v11, 4  ;;  %v3383_v28 = vrot.slane %v3381_v26, 5 }
 0x169   : > { %v2011_v56 = vld [vmem:[#allocation2 + $0x40] sm:$0xff]  ;;  %v3378_v25 = vor.u32 %v3377_v5, %v6652_v62  ;;  %v2815_v44 = vshrl.u32 %v5309_v29, 16  ;;  %v2818_v45 = vshll.u32 %v5309_v29, 16  ;;  %v5492_v26 = vld [vmem:[%s5798_s8 + $0x48] sm:$0xf] }
 0x16a   : > { %v2027_v43 = vadd.f32 %v2011_v56, %v6600_v53  ;;  %1850 = vst.msk [vmem:[#allocation2 + $0x48] sm:$0xff] %vm318_vm5, %v1834_v50  ;;  %v3374_v40 = vsel %vm5826_vm4, %v3369_v35, %v6652_v62 }
 0x16b   : > { %v2387_v63 = vld [vmem:[#allocation2 + $0x38] sm:$0xff]  ;;  %v6647_v59 = vpop.f32.mrf.mxu2  ;;  %v3379_v36 = vrot.slane %v3378_v25, 4  ;;  %v2817_v42 = vrot.slane %v2815_v44, 4  ;;  %v2820_v48 = vrot.slane %v2818_v45, 5  ;;  %v3425_v62 = vunpack.c.l.b16 %v3374_v40  ;;  %v5683_v45 = vld [vmem:[%s5798_s8 + $0x180] sm:$0xff] }
 0x16c   : > { %2043 = vst.msk [vmem:[#allocation2 + $0x40] sm:$0xff] %vm318_vm5, %v2027_v43  ;;  %v2403_v53 = vadd.f32 %v2387_v63, %v6612_v10  ;;  %v2798_v10 = vrot.slane %v2797_v0, 4  ;;  %v5311_v0 = vld [vmem:[%s5798_s8 + $0x188] sm:$0x1] }
 0x16d   : > { %v1419_v2 = vpop.f32.mrf.mxu0  ;;  %v1794_v18 = vpop.f32.mrf.mxu1  ;;  %v3384_v43 = vsel %vm5826_vm4, %v3379_v36, %v3383_v28  ;;  %v2834_v4 = vshll.u32 %v5311_v0, 16  ;;  %v3789_v36 = vshrl.u32 %v5492_v26, 16  ;;  %v3792_v28 = vshll.u32 %v5492_v26, 16 }
 0x16e   : > { %2419 = vst.msk [vmem:[#allocation2 + $0x38] sm:$0xff] %vm318_vm5, %v2403_v53  ;;  %v1459_v14 = vadd.f32 %v1443_v60, %v1419_v2  ;;  %v2362_v8 = vpop.f32.mrf.mxu3  ;;  %v2803_v34 = vsel %vm5826_vm4, %v2798_v10, %v6634_v39  ;;  %v3395_v53 = vshll.u32 %v5412_v38, 16  ;;  %v2830_v60 = vrot.slane %v2828_v49, 4  ;;  %v5594_v49 = vld [vmem:[%s5798_s8 + $0x54] sm:$0xf] }
 0x16f   : > { %v1819_v19 = vld [vmem:[#allocation2 + $0x50] sm:$0xff]  ;;  %v2854_v56 = vunpack.c.l.b16 %v2803_v34  ;;  %v3391_v10 = vrot.slane %v3389_v52, 5 }
 0x170   : > { %1475 = vst.msk [vmem:[#allocation2 + $0x58] sm:$0xff] %vm318_vm5, %v1459_v14  ;;  %v1835_v22 = vadd.f32 %v1819_v19, %v1794_v18  ;;  %5324 = vmatmul.msk.bf16.gmra.mxu1 %vm240_vm1, %v2863_v13  ;;  %v3426_v14 = vunpack.c.l.b16 %v3384_v43  ;;  %v2821_v13 = vor.u32 %v2820_v48, %v2817_v42  ;;  %v3388_v18 = vrot.slane %v3386_v61, 4  ;;  %v5494_v52 = vld [vmem:[%s5798_s8 + $0x50] sm:$0x1] }
 0x171   : > { %v2012_v24 = vld [vmem:[#allocation2 + $0x48] sm:$0xff]  ;;  %v3791_v42 = vrot.slane %v3789_v36, 4  ;;  %v3794_v48 = vrot.slane %v3792_v28, 5 }
 0x172   : > { %v2028_v15 = vadd.f32 %v2012_v24, %v6620_v3  ;;  %1851 = vst.msk [vmem:[#allocation2 + $0x50] sm:$0xff] %vm318_vm5, %v1835_v22  ;;  %v2813_v3 = vsel %vm5826_vm4, %v2808_v17, %v2812_v23  ;;  %v6694_v22 = vrot.slane %v3395_v53, 5  ;;  %v3401_v17 = vrot.slane %v3399_v1, 4  ;;  %v5413_v24 = vld [vmem:[%s5798_s8 + $0x194] sm:$0x1] }
 0x173   : > { %v2388_v27 = vld [vmem:[#allocation2 + $0x40] sm:$0xff]  ;;  %v6662_v30 = vpop.f32.mrf.mxu2  ;;  %5426 = vmatmul.msk.bf16.gmra.mxu3 %vm240_vm1, %v3434_v16  ;;  %v2855_v57 = vunpack.c.l.b16 %v2813_v3  ;;  %v3392_v34 = vor.u32 %v3391_v10, %v3388_v18  ;;  %v3405_v35 = vshll.u32 %v5413_v24, 16  ;;  %v4360_v1 = vshrl.u32 %v5594_v49, 16 }
 0x174   : > { %2044 = vst.msk [vmem:[#allocation2 + $0x48] sm:$0xff] %vm318_vm5, %v2028_v15  ;;  %v2404_v20 = vadd.f32 %v2388_v27, %v2360_v21  ;;  %v2824_v21 = vshll.u32 %v5310_v33, 16  ;;  %v5493_v15 = vld [vmem:[%s5798_s8 + $0x4c] sm:$0xf]  ;;  %v3435_v27 = vpack.c.b16 %v3426_v14, %v3425_v62  ;;  %v3402_v3 = vor.u32 %v3401_v17, %v6694_v22 }
 0x175   : > { %v1422_v37 = vpop.f32.mrf.mxu0  ;;  %v1796_v50 = vpop.f32.mrf.mxu1  ;;  %v2864_v7 = vpack.c.b16 %v2855_v57, %v2854_v56  ;;  %v3798_v44 = vshll.u32 %v5493_v15, 16  ;;  %v3802_v46 = vshrl.u32 %v5493_v15, 16  ;;  %v3407_v57 = vrot.slane %v3405_v35, 5 }
 0x176   : > { %2420 = vst.msk [vmem:[#allocation2 + $0x40] sm:$0xff] %vm318_vm5, %v2404_v20  ;;  %v1460_v31 = vadd.f32 %v1444_v41, %v1422_v37  ;;  %v2365_v47 = vpop.f32.mrf.mxu3  ;;  %v6690_v2 = vrot.slane %v2824_v21, 5  ;;  %v2822_v20 = vrot.slane %v2821_v13, 4  ;;  %v3403_v56 = vrot.slane %v3402_v3, 4 }
 0x177   : > { %v1820_v39 = vld [vmem:[#allocation2 + $0x58] sm:$0xff]  ;;  %v6721_v61 = vrot.slane %v3798_v44, 5  ;;  %v3804_v53 = vrot.slane %v3802_v46, 4  ;;  %v3795_v18 = vor.u32 %v3794_v48, %v3791_v42  ;;  %v4362_v17 = vrot.slane %v4360_v1, 4  ;;  %v5597_v48 = vld [vmem:[%s5798_s8 + $0x84] sm:$0xf] }
 0x178   : > { %1476 = vst.msk [vmem:[#allocation2 + $0x60] sm:$0xff] %vm318_vm5, %v1460_v31  ;;  %v1836_v51 = vadd.f32 %v1820_v39, %v1796_v50  ;;  %5286 = vmatmul.msk.bf16.gmra.mxu0 %vm240_vm1, %v5682_v32  ;;  %5388 = vmatmul.msk.bf16.gmra.mxu2 %vm240_vm1, %v5692_v12  ;;  %v2831_v11 = vor.u32 %v2830_v60, %v6690_v2  ;;  %v2836_v32 = vrot.slane %v2834_v4, 5  ;;  %v5693_v31 = vld [vmem:[%s5798_s8 + $0x18c] sm:$0xff] }
 0x179   : > { %v2013_v55 = vld [vmem:[#allocation2 + $0x50] sm:$0xff]  ;;  %v2827_v21 = vsel %vm5826_vm4, %v2822_v20, %v6690_v2  ;;  %v3408_v14 = vsel %vm5826_vm4, %v3403_v56, %v3407_v57  ;;  %v3805_v10 = vor.u32 %v3804_v53, %v6721_v61  ;;  %v2574_v57 = vld [vmem:[#allocation2] sm:$0xff]  ;;  %v5598_v53 = vld [vmem:[%s5798_s8 + $0x88] sm:$0xf] }
 0x17a   : > { %v2029_v63 = vadd.f32 %v2013_v55, %v6647_v59  ;;  %1852 = vst.msk [vmem:[#allocation2 + $0x58] sm:$0xff] %vm318_vm5, %v1836_v51  ;;  %v1445_v59 = vld [vmem:[#allocation2 + $0x68] sm:$0xff]  ;;  %v2832_v41 = vrot.slane %v2831_v11, 4  ;;  %v1446_v39 = vld [vmem:[#allocation2 + $0x70] sm:$0xff]  ;;  %v3393_v51 = vrot.slane %v3392_v34, 4  ;;  %v2856_v60 = vunpack.c.l.b16 %v2827_v21  ;;  %v1447_v11 = vld [vmem:[#allocation2 + $0x78] sm:$0xff] }
 0x17b   : > { %v2389_v54 = vld [vmem:[#allocation2 + $0x48] sm:$0xff]  ;;  %v6688_v9 = vpop.f32.mrf.mxu2  ;;  %v3428_v24 = vunpack.c.l.b16 %v3408_v14  ;;  %v3806_v3 = vrot.slane %v3805_v10, 4  ;;  %v5706_v21 = vld [vmem:[%s5798_s8 + $0x54] sm:$0xff]  ;;  %v4384_v14 = vshrl.u32 %v5597_v48, 16  ;;  %v4397_v10 = vshrl.u32 %v5598_v53, 16 }
 0x17c   : > { %2045 = vst.msk [vmem:[#allocation2 + $0x50] sm:$0xff] %vm318_vm5, %v2029_v63  ;;  %v2405_v6 = vadd.f32 %v2389_v54, %v2362_v8  ;;  %v2837_v43 = vsel %vm5826_vm4, %v2832_v41, %v2836_v32  ;;  %v4363_v54 = vshll.u32 %v5594_v49, 16 }
 0x17d   : > { %v1424_v5 = vpop.f32.mrf.mxu0  ;;  %v1799_v23 = vpop.f32.mrf.mxu1 }
 0x17e   : > { %2421 = vst.msk [vmem:[#allocation2 + $0x48] sm:$0xff] %vm318_vm5, %v2405_v6  ;;  %v1461_v19 = vadd.f32 %v1445_v59, %v1424_v5  ;;  %v6699_v25 = vpop.f32.mrf.mxu3  ;;  %v2857_v5 = vunpack.c.l.b16 %v2837_v43  ;;  %v3398_v59 = vsel %vm5826_vm4, %v3393_v51, %v6694_v22  ;;  %v5496_v51 = vld [vmem:[%s5798_s8 + $0x7c] sm:$0xf] }
 0x17f   : > { %v1821_v8 = vld [vmem:[#allocation2 + $0x60] sm:$0xff]  ;;  %v3427_v22 = vunpack.c.l.b16 %v3398_v59 }
 0x180   : > { %1477 = vst.msk [vmem:[#allocation2 + $0x68] sm:$0xff] %vm318_vm5, %v1461_v19  ;;  %v1837_v16 = vadd.f32 %v1821_v8, %v1799_v23  ;;  %5325 = vmatmul.msk.bf16.gmra.mxu1 %vm240_vm1, %v2864_v7  ;;  %v3808_v19 = vshll.u32 %v5494_v52, 16  ;;  %v4365_v23 = vrot.slane %v4363_v54, 5  ;;  %v3826_v52 = vshrl.u32 %v5496_v51, 16 }
 0x181   : > { %v2014_v29 = vld [vmem:[#allocation2 + $0x58] sm:$0xff]  ;;  %v3436_v36 = vpack.c.b16 %v3428_v24, %v3427_v22 }
 0x182   : > { %v2030_v12 = vadd.f32 %v2014_v29, %v6662_v30  ;;  %1853 = vst.msk [vmem:[#allocation2 + $0x60] sm:$0xff] %vm318_vm5, %v1837_v16  ;;  %v2865_v29 = vpack.c.b16 %v2857_v5, %v2856_v60  ;;  %v3810_v35 = vrot.slane %v3808_v19, 5  ;;  %v4387_v19 = vshll.u32 %v5597_v48, 16 }
 0x183   : > { %v2390_v33 = vld [vmem:[#allocation2 + $0x50] sm:$0xff]  ;;  %v6707_v37 = vpop.f32.mrf.mxu2  ;;  %5427 = vmatmul.msk.bf16.gmra.mxu3 %vm240_vm1, %v3435_v27  ;;  %v5596_v27 = vld [vmem:[%s5798_s8 + $0x5c] sm:$0x1] }
 0x184   : > { %2046 = vst.msk [vmem:[#allocation2 + $0x58] sm:$0xff] %vm318_vm5, %v2030_v12  ;;  %v2406_v30 = vadd.f32 %v2390_v33, %v2365_v47  ;;  %v5595_v47 = vld [vmem:[%s5798_s8 + $0x58] sm:$0xf]  ;;  %v4366_v33 = vor.u32 %v4365_v23, %v4362_v17  ;;  %v4379_v44 = vshll.u32 %v5596_v27, 16 }
 0x185   : > { %v1427_v50 = vpop.f32.mrf.mxu0  ;;  %v1801_v40 = vpop.f32.mrf.mxu1  ;;  %v4369_v6 = vshll.u32 %v5595_v47, 16  ;;  %v4373_v7 = vshrl.u32 %v5595_v47, 16 }
 0x186   : > { %2422 = vst.msk [vmem:[#allocation2 + $0x50] sm:$0xff] %vm318_vm5, %v2406_v30  ;;  %v1462_v38 = vadd.f32 %v1446_v39, %v1427_v50  ;;  %v2370_v0 = vpop.f32.mrf.mxu3  ;;  %v5696_v39 = vld [vmem:[%s5798_s8 + $0x48] sm:$0xff] }
 0x187   : > { %v1822_v55 = vld [vmem:[#allocation2 + $0x68] sm:$0xff]  ;;  %v6739_v16 = vrot.slane %v4369_v6, 5  ;;  %v4375_v26 = vrot.slane %v4373_v7, 4 }
 0x188   : > { %1478 = vst.msk [vmem:[#allocation2 + $0x70] sm:$0xff] %vm318_vm5, %v1462_v38  ;;  %v1838_v63 = vadd.f32 %v1822_v55, %v1801_v40  ;;  %5287 = vmatmul.msk.bf16.gmra.mxu0 %vm240_vm1, %v5683_v45  ;;  %5389 = vmatmul.msk.bf16.gmra.mxu2 %vm240_vm1, %v5693_v31  ;;  %v5495_v45 = vld [vmem:[%s5798_s8 + $0x78] sm:$0xf]  ;;  %v4367_v38 = vrot.slane %v4366_v33, 4  ;;  %v4381_v40 = vrot.slane %v4379_v44, 5 }
 0x189   : > { %v2015_v2 = vld [vmem:[#allocation2 + $0x60] sm:$0xff]  ;;  %v4376_v28 = vor.u32 %v4375_v26, %v6739_v16  ;;  %v3813_v55 = vshrl.u32 %v5495_v45, 16  ;;  %v3816_v43 = vshll.u32 %v5495_v45, 16  ;;  %v5498_v44 = vld [vmem:[%s5798_s8 + $0xa8] sm:$0xf] }
 0x18a   : > { %v2031_v62 = vadd.f32 %v2015_v2, %v6688_v9  ;;  %1854 = vst.msk [vmem:[#allocation2 + $0x68] sm:$0xff] %vm318_vm5, %v1838_v63  ;;  %v4372_v6 = vsel %vm5826_vm4, %v4367_v38, %v6739_v16 }
 0x18b   : > { %v2391_v13 = vld [vmem:[#allocation2 + $0x58] sm:$0xff]  ;;  %v6734_v4 = vpop.f32.mrf.mxu2  ;;  %v4377_v47 = vrot.slane %v4376_v28, 4  ;;  %v3815_v5 = vrot.slane %v3813_v55, 4  ;;  %v3818_v59 = vrot.slane %v3816_v43, 5  ;;  %v4555_v16 = vunpack.c.l.b16 %v4372_v6 }
 0x18c   : > { %2047 = vst.msk [vmem:[#allocation2 + $0x60] sm:$0xff] %vm318_vm5, %v2031_v62  ;;  %v2407_v9 = vadd.f32 %v2391_v13, %v6699_v25  ;;  %v3796_v25 = vrot.slane %v3795_v18, 4  ;;  %v5497_v18 = vld [vmem:[%s5798_s8 + $0x80] sm:$0x1]  ;;  %v5697_v43 = vld [vmem:[%s5798_s8 + $0x78] sm:$0xff] }
 0x18d   : > { %v1429_v8 = vpop.f32.mrf.mxu0  ;;  %v1804_v20 = vpop.f32.mrf.mxu1  ;;  %v4382_v62 = vsel %vm5826_vm4, %v4377_v47, %v4381_v40  ;;  %v3832_v27 = vshll.u32 %v5497_v18, 16  ;;  %v3837_v47 = vshrl.u32 %v5498_v44, 16  ;;  %v3840_v40 = vshll.u32 %v5498_v44, 16 }
 0x18e   : > { %2423 = vst.msk [vmem:[#allocation2 + $0x58] sm:$0xff] %vm318_vm5, %v2407_v9  ;;  %v1463_v15 = vadd.f32 %v1447_v11, %v1429_v8  ;;  %v2372_v34 = vpop.f32.mrf.mxu3  ;;  %v3801_v49 = vsel %vm5826_vm4, %v3796_v25, %v6721_v61  ;;  %v4393_v9 = vshll.u32 %v5598_v53, 16  ;;  %v3828_v11 = vrot.slane %v3826_v52, 4  ;;  %v5600_v52 = vld [vmem:[%s5798_s8 + $0xb4] sm:$0xf] }
 0x18f   : > { %v1823_v32 = vld [vmem:[#allocation2 + $0x70] sm:$0xff]  ;;  %v3984_v2 = vunpack.c.l.b16 %v3801_v49  ;;  %v4389_v25 = vrot.slane %v4387_v19, 5 }
 0x190   : > { %1479 = vst.msk [vmem:[#allocation2 + $0x78] sm:$0xff] %vm318_vm5, %v1463_v15  ;;  %v1839_v12 = vadd.f32 %v1823_v32, %v1804_v20  ;;  %5326 = vmatmul.msk.bf16.gmra.mxu1 %vm240_vm1, %v2865_v29  ;;  %v4556_v15 = vunpack.c.l.b16 %v4382_v62  ;;  %v3819_v29 = vor.u32 %v3818_v59, %v3815_v5  ;;  %v4386_v20 = vrot.slane %v4384_v14, 4  ;;  %v5500_v19 = vld [vmem:[%s5798_s8 + $0xb0] sm:$0x1] }
 0x191   : > { %v2016_v41 = vld [vmem:[#allocation2 + $0x68] sm:$0xff]  ;;  %v3839_v5 = vrot.slane %v3837_v47, 4  ;;  %v3842_v59 = vrot.slane %v3840_v40, 5 }
 0x192   : > { %v2032_v30 = vadd.f32 %v2016_v41, %v6707_v37  ;;  %1855 = vst.msk [vmem:[#allocation2 + $0x70] sm:$0xff] %vm318_vm5, %v1839_v12  ;;  %v3811_v37 = vsel %vm5826_vm4, %v3806_v3, %v3810_v35  ;;  %v6781_v12 = vrot.slane %v4393_v9, 5  ;;  %v4399_v3 = vrot.slane %v4397_v10, 4  ;;  %v5599_v41 = vld [vmem:[%s5798_s8 + $0x8c] sm:$0x1] }
 0x193   : > { %v2392_v31 = vld [vmem:[#allocation2 + $0x60] sm:$0xff]  ;;  %v6749_v46 = vpop.f32.mrf.mxu2  ;;  %5428 = vmatmul.msk.bf16.gmra.mxu3 %vm240_vm1, %v3436_v36  ;;  %v3985_v60 = vunpack.c.l.b16 %v3811_v37  ;;  %v4390_v49 = vor.u32 %v4389_v25, %v4386_v20  ;;  %v4403_v38 = vshll.u32 %v5599_v41, 16  ;;  %v4408_v10 = vshrl.u32 %v5600_v52, 16 }
 0x194   : > { %2048 = vst.msk [vmem:[#allocation2 + $0x68] sm:$0xff] %vm318_vm5, %v2032_v30  ;;  %v2408_v50 = vadd.f32 %v2392_v31, %v2370_v0  ;;  %v3822_v0 = vshll.u32 %v5496_v51, 16  ;;  %v5499_v30 = vld [vmem:[%s5798_s8 + $0xac] sm:$0xf]  ;;  %v4571_v31 = vpack.c.b16 %v4556_v15, %v4555_v16  ;;  %v4400_v37 = vor.u32 %v4399_v3, %v6781_v12 }
 0x195   : > { %v2534_v56 = vpop.f32.mrf.mxu0  ;;  %v1806_v63 = vpop.f32.mrf.mxu1  ;;  %v4000_v24 = vpack.c.b16 %v3985_v60, %v3984_v2  ;;  %v3846_v55 = vshll.u32 %v5499_v30, 16  ;;  %v3850_v48 = vshrl.u32 %v5499_v30, 16  ;;  %v4405_v60 = vrot.slane %v4403_v38, 5 }
 0x196   : > { %2424 = vst.msk [vmem:[#allocation2 + $0x60] sm:$0xff] %vm318_vm5, %v2408_v50  ;;  %v2590_v42 = vadd.f32 %v2574_v57, %v2534_v56  ;;  %v2375_v54 = vpop.f32.mrf.mxu3  ;;  %v6777_v8 = vrot.slane %v3822_v0, 5  ;;  %v3820_v50 = vrot.slane %v3819_v29, 4  ;;  %v4401_v2 = vrot.slane %v4400_v37, 4 }
 0x197   : > { %v1824_v61 = vld [vmem:[#allocation2 + $0x78] sm:$0xff]  ;;  %v6808_v14 = vrot.slane %v3846_v55, 5  ;;  %v3852_v9 = vrot.slane %v3850_v48, 4  ;;  %v3843_v20 = vor.u32 %v3842_v59, %v3839_v5  ;;  %v4410_v3 = vrot.slane %v4408_v10, 4  ;;  %v5603_v59 = vld [vmem:[%s5798_s8 + $0xe4] sm:$0xf] }
 0x198   : > { %v1840_v1 = vadd.f32 %v1824_v61, %v1806_v63  ;;  %2606 = vst.msk [vmem:[#allocation2] sm:$0xff] %vm318_vm5, %v2590_v42  ;;  %5484 = vmatmul.msk.bf16.vlgmr.msrb.gmra.mxu0 %vm240_vm1, %v5696_v39  ;;  %5586 = vmatmul.msk.bf16.vlgmr.msrb.gmra.mxu2 %vm240_vm1, %v5706_v21  ;;  %v3829_v33 = vor.u32 %v3828_v11, %v6777_v8  ;;  %v3834_v39 = vrot.slane %v3832_v27, 5  ;;  %v5707_v42 = vld [vmem:[%s5798_s8 + $0x84] sm:$0xff]  ;;  %v2576_v61 = vld [vmem:[#allocation2 + $0x10] sm:$0xff] }
 0x199   : > { %v2017_v7 = vld [vmem:[#allocation2 + $0x70] sm:$0xff]  ;;  %v3825_v0 = vsel %vm5826_vm4, %v3820_v50, %v6777_v8  ;;  %v4406_v15 = vsel %vm5826_vm4, %v4401_v2, %v4405_v60  ;;  %v3853_v25 = vor.u32 %v3852_v9, %v6808_v14  ;;  %v2578_v60 = vld [vmem:[#allocation2 + $0x20] sm:$0xff]  ;;  %v5604_v9 = vld [vmem:[%s5798_s8 + $0xe8] sm:$0xf] }
 0x19a   : > { %v2033_v13 = vadd.f32 %v2017_v7, %v6734_v4  ;;  %1856 = vst.msk [vmem:[#allocation2 + $0x78] sm:$0xff] %vm318_vm5, %v1840_v1  ;;  %v2575_v4 = vld [vmem:[#allocation2 + $0x8] sm:$0xff]  ;;  %v3830_v57 = vrot.slane %v3829_v33, 4  ;;  %v4391_v1 = vrot.slane %v4390_v49, 4  ;;  %v3986_v11 = vunpack.c.l.b16 %v3825_v0  ;;  %v2577_v33 = vld [vmem:[#allocation2 + $0x18] sm:$0xff] }
 0x19b   : > { %v2393_v17 = vld [vmem:[#allocation2 + $0x68] sm:$0xff]  ;;  %v6775_v23 = vpop.f32.mrf.mxu2  ;;  %v4558_v41 = vunpack.c.l.b16 %v4406_v15  ;;  %v3854_v37 = vrot.slane %v3853_v25, 4  ;;  %v5708_v0 = vld [vmem:[%s5798_s8 + $0xb4] sm:$0xff]  ;;  %v4432_v15 = vshrl.u32 %v5603_v59, 16  ;;  %v4445_v25 = vshrl.u32 %v5604_v9, 16 }
 0x19c   : > { %2049 = vst.msk [vmem:[#allocation2 + $0x70] sm:$0xff] %vm318_vm5, %v2033_v13  ;;  %v2409_v22 = vadd.f32 %v2393_v17, %v2372_v34  ;;  %v3835_v62 = vsel %vm5826_vm4, %v3830_v57, %v3834_v39  ;;  %v4411_v17 = vshll.u32 %v5600_v52, 16 }
 0x19d   : > { %v2536_v26 = vpop.f32.mrf.mxu0  ;;  %v2911_v35 = vpop.f32.mrf.mxu1 }
 0x19e   : > { %2425 = vst.msk [vmem:[#allocation2 + $0x68] sm:$0xff] %vm318_vm5, %v2409_v22  ;;  %v2591_v32 = vadd.f32 %v2575_v4, %v2536_v26  ;;  %v6786_v28 = vpop.f32.mrf.mxu3  ;;  %v3987_v26 = vunpack.c.l.b16 %v3835_v62  ;;  %v4396_v4 = vsel %vm5826_vm4, %v4391_v1, %v6781_v12  ;;  %v5502_v1 = vld [vmem:[%s5798_s8 + $0xdc] sm:$0xf] }
 0x19f   : > { %v2951_v34 = vld [vmem:[#allocation2] sm:$0xff]  ;;  %v4557_v12 = vunpack.c.l.b16 %v4396_v4 }
 0x1a0   : > { %2607 = vst.msk [vmem:[#allocation2 + $0x8] sm:$0xff] %vm318_vm5, %v2591_v32  ;;  %v2967_v36 = vadd.f32 %v2951_v34, %v2911_v35  ;;  %5523 = vmatmul.msk.bf16.vlgmr.msrb.gmra.mxu1 %vm240_vm1, %v4000_v24  ;;  %v3856_v32 = vshll.u32 %v5500_v19, 16  ;;  %v4413_v35 = vrot.slane %v4411_v17, 5  ;;  %v3874_v19 = vshrl.u32 %v5502_v1, 16 }
 0x1a1   : > { %v2018_v45 = vld [vmem:[#allocation2 + $0x78] sm:$0xff]  ;;  %v4572_v47 = vpack.c.b16 %v4558_v41, %v4557_v12 }
 0x1a2   : > { %v2034_v21 = vadd.f32 %v2018_v45, %v6749_v46  ;;  %2983 = vst.msk [vmem:[#allocation2] sm:$0xff] %vm318_vm5, %v2967_v36  ;;  %v4001_v45 = vpack.c.b16 %v3987_v26, %v3986_v11  ;;  %v3858_v38 = vrot.slane %v3856_v32, 5  ;;  %v4435_v32 = vshll.u32 %v5603_v59, 16 }
 0x1a3   : > { %v2394_v51 = vld [vmem:[#allocation2 + $0x70] sm:$0xff]  ;;  %v6794_v56 = vpop.f32.mrf.mxu2  ;;  %5625 = vmatmul.msk.bf16.vlgmr.msrb.gmra.mxu3 %vm240_vm1, %v4571_v31  ;;  %v5602_v31 = vld [vmem:[%s5798_s8 + $0xbc] sm:$0x1] }
 0x1a4   : > { %2050 = vst.msk [vmem:[#allocation2 + $0x78] sm:$0xff] %vm318_vm5, %v2034_v21  ;;  %v2410_v46 = vadd.f32 %v2394_v51, %v2375_v54  ;;  %v5601_v54 = vld [vmem:[%s5798_s8 + $0xb8] sm:$0xf]  ;;  %v4414_v51 = vor.u32 %v4413_v35, %v4410_v3  ;;  %v4427_v55 = vshll.u32 %v5602_v31, 16 }
 0x1a5   : > { %v2539_v63 = vpop.f32.mrf.mxu0  ;;  %v2913_v6 = vpop.f32.mrf.mxu1  ;;  %v4417_v22 = vshll.u32 %v5601_v54, 16  ;;  %v4421_v24 = vshrl.u32 %v5601_v54, 16 }
 0x1a6   : > { %2426 = vst.msk [vmem:[#allocation2 + $0x70] sm:$0xff] %vm318_vm5, %v2410_v46  ;;  %v2592_v53 = vadd.f32 %v2576_v61, %v2539_v63  ;;  %v3482_v18 = vpop.f32.mrf.mxu3  ;;  %v5698_v61 = vld [vmem:[%s5798_s8 + $0xa8] sm:$0xff] }
 0x1a7   : > { %v2952_v7 = vld [vmem:[#allocation2 + $0x8] sm:$0xff]  ;;  %v6826_v36 = vrot.slane %v4417_v22, 5  ;;  %v4423_v44 = vrot.slane %v4421_v24, 4 }
 0x1a8   : > { %2608 = vst.msk [vmem:[#allocation2 + $0x10] sm:$0xff] %vm318_vm5, %v2592_v53  ;;  %v2968_v13 = vadd.f32 %v2952_v7, %v2913_v6  ;;  %5485 = vmatmul.msk.bf16.gmra.mxu0 %vm240_vm1, %v5697_v43  ;;  %5587 = vmatmul.msk.bf16.gmra.mxu2 %vm240_vm1, %v5707_v42  ;;  %v5501_v43 = vld [vmem:[%s5798_s8 + $0xd8] sm:$0xf]  ;;  %v4415_v53 = vrot.slane %v4414_v51, 4  ;;  %v4429_v6 = vrot.slane %v4427_v55, 5 }
 0x1a9   : > { %v3145_v8 = vld [vmem:[#allocation2] sm:$0xff]  ;;  %v4424_v40 = vor.u32 %v4423_v44, %v6826_v36  ;;  %v3861_v7 = vshrl.u32 %v5501_v43, 16  ;;  %v3864_v62 = vshll.u32 %v5501_v43, 16  ;;  %v5504_v55 = vld [vmem:[%s5798_s8 + $0x108] sm:$0xf] }
 0x1aa   : > { %v3161_v16 = vadd.f32 %v3145_v8, %v6775_v23  ;;  %2984 = vst.msk [vmem:[#allocation2 + $0x8] sm:$0xff] %vm318_vm5, %v2968_v13  ;;  %v4420_v22 = vsel %vm5826_vm4, %v4415_v53, %v6826_v36 }
 0x1ab   : > { %v2395_v29 = vld [vmem:[#allocation2 + $0x78] sm:$0xff]  ;;  %v6821_v27 = vpop.f32.mrf.mxu2  ;;  %v4425_v54 = vrot.slane %v4424_v40, 4  ;;  %v3863_v26 = vrot.slane %v3861_v7, 4  ;;  %v3866_v4 = vrot.slane %v3864_v62, 5  ;;  %v4559_v36 = vunpack.c.l.b16 %v4420_v22 }
 0x1ac   : > { %3177 = vst.msk [vmem:[#allocation2] sm:$0xff] %vm318_vm5, %v3161_v16  ;;  %v2411_v23 = vadd.f32 %v2395_v29, %v6786_v28  ;;  %v3844_v28 = vrot.slane %v3843_v20, 4  ;;  %v5503_v20 = vld [vmem:[%s5798_s8 + $0xe0] sm:$0x1]  ;;  %v5699_v62 = vld [vmem:[%s5798_s8 + $0xd8] sm:$0xff] }
 0x1ad   : > { %v2541_v34 = vpop.f32.mrf.mxu0  ;;  %v2916_v50 = vpop.f32.mrf.mxu1  ;;  %v4430_v16 = vsel %vm5826_vm4, %v4425_v54, %v4429_v6  ;;  %v3880_v31 = vshll.u32 %v5503_v20, 16  ;;  %v3885_v54 = vshrl.u32 %v5504_v55, 16  ;;  %v3888_v6 = vshll.u32 %v5504_v55, 16 }
 0x1ae   : > { %2427 = vst.msk [vmem:[#allocation2 + $0x78] sm:$0xff] %vm318_vm5, %v2411_v23  ;;  %v2593_v30 = vadd.f32 %v2577_v33, %v2541_v34  ;;  %v3484_v49 = vpop.f32.mrf.mxu3  ;;  %v3849_v52 = vsel %vm5826_vm4, %v3844_v28, %v6808_v14  ;;  %v4441_v23 = vshll.u32 %v5604_v9, 16  ;;  %v3876_v33 = vrot.slane %v3874_v19, 4  ;;  %v5606_v19 = vld [vmem:[%s5798_s8 + $0x114] sm:$0xf] }
 0x1af   : > { %v2953_v39 = vld [vmem:[#allocation2 + $0x10] sm:$0xff]  ;;  %v3988_v8 = vunpack.c.l.b16 %v3849_v52  ;;  %v4437_v28 = vrot.slane %v4435_v32, 5 }
 0x1b0   : > { %2609 = vst.msk [vmem:[#allocation2 + $0x18] sm:$0xff] %vm318_vm5, %v2593_v30  ;;  %v2969_v21 = vadd.f32 %v2953_v39, %v2916_v50  ;;  %5524 = vmatmul.msk.bf16.gmra.mxu1 %vm240_vm1, %v4001_v45  ;;  %v4560_v30 = vunpack.c.l.b16 %v4430_v16  ;;  %v3867_v45 = vor.u32 %v3866_v4, %v3863_v26  ;;  %v4434_v50 = vrot.slane %v4432_v15, 4  ;;  %v5506_v32 = vld [vmem:[%s5798_s8 + $0x110] sm:$0x1] }
 0x1b1   : > { %v3146_v57 = vld [vmem:[#allocation2 + $0x8] sm:$0xff]  ;;  %v3887_v26 = vrot.slane %v3885_v54, 4  ;;  %v3890_v4 = vrot.slane %v3888_v6, 5 }
 0x1b2   : > { %v3162_v46 = vadd.f32 %v3146_v57, %v6794_v56  ;;  %2985 = vst.msk [vmem:[#allocation2 + $0x10] sm:$0xff] %vm318_vm5, %v2969_v21  ;;  %v3859_v56 = vsel %vm5826_vm4, %v3854_v37, %v3858_v38  ;;  %v6868_v21 = vrot.slane %v4441_v23, 5  ;;  %v4447_v37 = vrot.slane %v4445_v25, 4  ;;  %v5605_v57 = vld [vmem:[%s5798_s8 + $0xec] sm:$0x1] }
 0x1b3   : > { %v3522_v42 = vld [vmem:[#allocation2] sm:$0xff]  ;;  %v6836_v48 = vpop.f32.mrf.mxu2  ;;  %5626 = vmatmul.msk.bf16.gmra.mxu3 %vm240_vm1, %v4572_v47  ;;  %v3989_v11 = vunpack.c.l.b16 %v3859_v56  ;;  %v4438_v52 = vor.u32 %v4437_v28, %v4434_v50  ;;  %v4451_v53 = vshll.u32 %v5605_v57, 16  ;;  %v4456_v25 = vshrl.u32 %v5606_v19, 16 }
 0x1b4   : > { %3178 = vst.msk [vmem:[#allocation2 + $0x8] sm:$0xff] %vm318_vm5, %v3162_v46  ;;  %v3538_v63 = vadd.f32 %v3522_v42, %v3482_v18  ;;  %v3870_v18 = vshll.u32 %v5502_v1, 16  ;;  %v5505_v46 = vld [vmem:[%s5798_s8 + $0x10c] sm:$0xf]  ;;  %v4573_v42 = vpack.c.b16 %v4560_v30, %v4559_v36  ;;  %v4448_v56 = vor.u32 %v4447_v37, %v6868_v21 }
 0x1b5   : > { %v2544_v2 = vpop.f32.mrf.mxu0  ;;  %v2918_v13 = vpop.f32.mrf.mxu1  ;;  %v4002_v41 = vpack.c.b16 %v3989_v11, %v3988_v8  ;;  %v3894_v7 = vshll.u32 %v5505_v46, 16  ;;  %v3898_v59 = vshrl.u32 %v5505_v46, 16  ;;  %v4453_v11 = vrot.slane %v4451_v53, 5 }
 0x1b6   : > { %3554 = vst.msk [vmem:[#allocation2] sm:$0xff] %vm318_vm5, %v3538_v63  ;;  %v2594_v5 = vadd.f32 %v2578_v60, %v2544_v2  ;;  %v3487_v17 = vpop.f32.mrf.mxu3  ;;  %v6864_v34 = vrot.slane %v3870_v18, 5  ;;  %v3868_v63 = vrot.slane %v3867_v45, 4  ;;  %v4449_v8 = vrot.slane %v4448_v56, 4 }
 0x1b7   : > { %v2954_v14 = vld [vmem:[#allocation2 + $0x18] sm:$0xff]  ;;  %v6895_v15 = vrot.slane %v3894_v7, 5  ;;  %v3900_v23 = vrot.slane %v3898_v59, 4  ;;  %v3891_v50 = vor.u32 %v3890_v4, %v3887_v26  ;;  %v4458_v37 = vrot.slane %v4456_v25, 4  ;;  %v5609_v4 = vld [vmem:[%s5798_s8 + $0x144] sm:$0xf] }
 0x1b8   : > { %2610 = vst.msk [vmem:[#allocation2 + $0x20] sm:$0xff] %vm318_vm5, %v2594_v5  ;;  %v2970_v10 = vadd.f32 %v2954_v14, %v2918_v13  ;;  %5486 = vmatmul.msk.bf16.gmra.mxu0 %vm240_vm1, %v5698_v61  ;;  %5588 = vmatmul.msk.bf16.gmra.mxu2 %vm240_vm1, %v5708_v0  ;;  %v3877_v51 = vor.u32 %v3876_v33, %v6864_v34  ;;  %v3882_v61 = vrot.slane %v3880_v31, 5  ;;  %v5709_v5 = vld [vmem:[%s5798_s8 + $0xe4] sm:$0xff]  ;;  %v2580_v14 = vld [vmem:[#allocation2 + $0x30] sm:$0xff] }
 0x1b9   : > { %v3147_v24 = vld [vmem:[#allocation2 + $0x10] sm:$0xff]  ;;  %v3873_v18 = vsel %vm5826_vm4, %v3868_v63, %v6864_v34  ;;  %v4454_v30 = vsel %vm5826_vm4, %v4449_v8, %v4453_v11  ;;  %v3901_v28 = vor.u32 %v3900_v23, %v6895_v15  ;;  %v2582_v11 = vld [vmem:[#allocation2 + $0x40] sm:$0xff]  ;;  %v5610_v23 = vld [vmem:[%s5798_s8 + $0x148] sm:$0xf] }
 0x1ba   : > { %v3163_v29 = vadd.f32 %v3147_v24, %v6821_v27  ;;  %2986 = vst.msk [vmem:[#allocation2 + $0x18] sm:$0xff] %vm318_vm5, %v2970_v10  ;;  %v2579_v27 = vld [vmem:[#allocation2 + $0x28] sm:$0xff]  ;;  %v3878_v60 = vrot.slane %v3877_v51, 4  ;;  %v4439_v10 = vrot.slane %v4438_v52, 4  ;;  %v3990_v33 = vunpack.c.l.b16 %v3873_v18  ;;  %v2581_v51 = vld [vmem:[#allocation2 + $0x38] sm:$0xff] }
 0x1bb   : > { %v3523_v3 = vld [vmem:[#allocation2 + $0x8] sm:$0xff]  ;;  %v6862_v35 = vpop.f32.mrf.mxu2  ;;  %v4562_v57 = vunpack.c.l.b16 %v4454_v30  ;;  %v3902_v56 = vrot.slane %v3901_v28, 4  ;;  %v5710_v18 = vld [vmem:[%s5798_s8 + $0x114] sm:$0xff]  ;;  %v4480_v30 = vshrl.u32 %v5609_v4, 16  ;;  %v4493_v28 = vshrl.u32 %v5610_v23, 16 }
 0x1bc   : > { %3179 = vst.msk [vmem:[#allocation2 + $0x10] sm:$0xff] %vm318_vm5, %v3163_v29  ;;  %v3539_v12 = vadd.f32 %v3523_v3, %v3484_v49  ;;  %v3883_v16 = vsel %vm5826_vm4, %v3878_v60, %v3882_v61  ;;  %v4459_v3 = vshll.u32 %v5606_v19, 16 }
 0x1bd   : > { %v2546_v44 = vpop.f32.mrf.mxu0  ;;  %v2921_v38 = vpop.f32.mrf.mxu1 }
 0x1be   : > { %3555 = vst.msk [vmem:[#allocation2 + $0x8] sm:$0xff] %vm318_vm5, %v3539_v12  ;;  %v2595_v39 = vadd.f32 %v2579_v27, %v2546_v44  ;;  %v6873_v40 = vpop.f32.mrf.mxu3  ;;  %v3991_v44 = vunpack.c.l.b16 %v3883_v16  ;;  %v4444_v27 = vsel %vm5826_vm4, %v4439_v10, %v6868_v21  ;;  %v5508_v10 = vld [vmem:[%s5798_s8 + $0x13c] sm:$0xf] }
 0x1bf   : > { %v2955_v49 = vld [vmem:[#allocation2 + $0x20] sm:$0xff]  ;;  %v4561_v21 = vunpack.c.l.b16 %v4444_v27 }
 0x1c0   : > { %2611 = vst.msk [vmem:[#allocation2 + $0x28] sm:$0xff] %vm318_vm5, %v2595_v39  ;;  %v2971_v47 = vadd.f32 %v2955_v49, %v2921_v38  ;;  %5525 = vmatmul.msk.bf16.gmra.mxu1 %vm240_vm1, %v4002_v41  ;;  %v3904_v39 = vshll.u32 %v5506_v32, 16  ;;  %v4461_v38 = vrot.slane %v4459_v3, 5  ;;  %v3922_v32 = vshrl.u32 %v5508_v10, 16 }
 0x1c1   : > { %v3148_v43 = vld [vmem:[#allocation2 + $0x18] sm:$0xff]  ;;  %v4574_v54 = vpack.c.b16 %v4562_v57, %v4561_v21 }
 0x1c2   : > { %v3164_v0 = vadd.f32 %v3148_v43, %v6836_v48  ;;  %2987 = vst.msk [vmem:[#allocation2 + $0x20] sm:$0xff] %vm318_vm5, %v2971_v47  ;;  %v4003_v43 = vpack.c.b16 %v3991_v44, %v3990_v33  ;;  %v3906_v53 = vrot.slane %v3904_v39, 5  ;;  %v4483_v39 = vshll.u32 %v5609_v4, 16 }
 0x1c3   : > { %v3524_v1 = vld [vmem:[#allocation2 + $0x10] sm:$0xff]  ;;  %v6881_v2 = vpop.f32.mrf.mxu2  ;;  %5627 = vmatmul.msk.bf16.gmra.mxu3 %vm240_vm1, %v4573_v42  ;;  %v5608_v42 = vld [vmem:[%s5798_s8 + $0x11c] sm:$0x1] }
 0x1c4   : > { %3180 = vst.msk [vmem:[#allocation2 + $0x18] sm:$0xff] %vm318_vm5, %v3164_v0  ;;  %v3540_v48 = vadd.f32 %v3524_v1, %v3487_v17  ;;  %v5607_v17 = vld [vmem:[%s5798_s8 + $0x118] sm:$0xf]  ;;  %v4462_v1 = vor.u32 %v4461_v38, %v4458_v37  ;;  %v4475_v7 = vshll.u32 %v5608_v42, 16 }
 0x1c5   : > { %v2549_v13 = vpop.f32.mrf.mxu0  ;;  %v2923_v22 = vpop.f32.mrf.mxu1  ;;  %v4465_v12 = vshll.u32 %v5607_v17, 16  ;;  %v4469_v41 = vshrl.u32 %v5607_v17, 16 }
 0x1c6   : > { %3556 = vst.msk [vmem:[#allocation2 + $0x10] sm:$0xff] %vm318_vm5, %v3540_v48  ;;  %v2596_v9 = vadd.f32 %v2580_v14, %v2549_v13  ;;  %v3492_v20 = vpop.f32.mrf.mxu3  ;;  %v5700_v14 = vld [vmem:[%s5798_s8 + $0x108] sm:$0xff] }
 0x1c7   : > { %v2956_v24 = vld [vmem:[#allocation2 + $0x28] sm:$0xff]  ;;  %v6913_v47 = vrot.slane %v4465_v12, 5  ;;  %v4471_v55 = vrot.slane %v4469_v41, 4 }
 0x1c8   : > { %2612 = vst.msk [vmem:[#allocation2 + $0x30] sm:$0xff] %vm318_vm5, %v2596_v9  ;;  %v2972_v29 = vadd.f32 %v2956_v24, %v2923_v22  ;;  %5487 = vmatmul.msk.bf16.gmra.mxu0 %vm240_vm1, %v5699_v62  ;;  %5589 = vmatmul.msk.bf16.gmra.mxu2 %vm240_vm1, %v5709_v5  ;;  %v5507_v62 = vld [vmem:[%s5798_s8 + $0x138] sm:$0xf]  ;;  %v4463_v9 = vrot.slane %v4462_v1, 4  ;;  %v4477_v22 = vrot.slane %v4475_v7, 5 }
 0x1c9   : > { %v3149_v34 = vld [vmem:[#allocation2 + $0x20] sm:$0xff]  ;;  %v4472_v6 = vor.u32 %v4471_v55, %v6913_v47  ;;  %v3909_v24 = vshrl.u32 %v5507_v62, 16  ;;  %v3912_v16 = vshll.u32 %v5507_v62, 16  ;;  %v5510_v7 = vld [vmem:[%s5798_s8 + $0x168] sm:$0xf] }
 0x1ca   : > { %v3165_v36 = vadd.f32 %v3149_v34, %v6862_v35  ;;  %2988 = vst.msk [vmem:[#allocation2 + $0x28] sm:$0xff] %vm318_vm5, %v2972_v29  ;;  %v4468_v12 = vsel %vm5826_vm4, %v4463_v9, %v6913_v47 }
 0x1cb   : > { %v3525_v45 = vld [vmem:[#allocation2 + $0x18] sm:$0xff]  ;;  %v6908_v31 = vpop.f32.mrf.mxu2  ;;  %v4473_v17 = vrot.slane %v4472_v6, 4  ;;  %v3911_v44 = vrot.slane %v3909_v24, 4  ;;  %v3914_v27 = vrot.slane %v3912_v16, 5  ;;  %v4563_v47 = vunpack.c.l.b16 %v4468_v12 }
 0x1cc   : > { %3181 = vst.msk [vmem:[#allocation2 + $0x20] sm:$0xff] %vm318_vm5, %v3165_v36  ;;  %v3541_v35 = vadd.f32 %v3525_v45, %v6873_v40  ;;  %v3892_v40 = vrot.slane %v3891_v50, 4  ;;  %v5509_v50 = vld [vmem:[%s5798_s8 + $0x140] sm:$0x1]  ;;  %v5701_v16 = vld [vmem:[%s5798_s8 + $0x138] sm:$0xff] }
 0x1cd   : > { %v2551_v49 = vpop.f32.mrf.mxu0  ;;  %v2926_v63 = vpop.f32.mrf.mxu1  ;;  %v4478_v36 = vsel %vm5826_vm4, %v4473_v17, %v4477_v22  ;;  %v3928_v42 = vshll.u32 %v5509_v50, 16  ;;  %v3933_v17 = vshrl.u32 %v5510_v7, 16  ;;  %v3936_v22 = vshll.u32 %v5510_v7, 16 }
 0x1ce   : > { %3557 = vst.msk [vmem:[#allocation2 + $0x18] sm:$0xff] %vm318_vm5, %v3541_v35  ;;  %v2597_v46 = vadd.f32 %v2581_v51, %v2551_v49  ;;  %v3494_v52 = vpop.f32.mrf.mxu3  ;;  %v3897_v19 = vsel %vm5826_vm4, %v3892_v40, %v6895_v15  ;;  %v4489_v35 = vshll.u32 %v5610_v23, 16  ;;  %v3924_v51 = vrot.slane %v3922_v32, 4  ;;  %v5612_v32 = vld [vmem:[%s5798_s8 + $0x174] sm:$0xf] }
 0x1cf   : > { %v2957_v61 = vld [vmem:[#allocation2 + $0x30] sm:$0xff]  ;;  %v3992_v34 = vunpack.c.l.b16 %v3897_v19  ;;  %v4485_v40 = vrot.slane %v4483_v39, 5 }
 0x1d0   : > { %2613 = vst.msk [vmem:[#allocation2 + $0x38] sm:$0xff] %vm318_vm5, %v2597_v46  ;;  %v2973_v0 = vadd.f32 %v2957_v61, %v2926_v63  ;;  %5526 = vmatmul.msk.bf16.gmra.mxu1 %vm240_vm1, %v4003_v43  ;;  %v4564_v46 = vunpack.c.l.b16 %v4478_v36  ;;  %v3915_v43 = vor.u32 %v3914_v27, %v3911_v44  ;;  %v4482_v63 = vrot.slane %v4480_v30, 4  ;;  %v5512_v39 = vld [vmem:[%s5798_s8 + $0x170] sm:$0x1] }
 0x1d1   : > { %v3150_v60 = vld [vmem:[#allocation2 + $0x28] sm:$0xff]  ;;  %v3935_v44 = vrot.slane %v3933_v17, 4  ;;  %v3938_v27 = vrot.slane %v3936_v22, 5 }
 0x1d2   : > { %v3166_v48 = vadd.f32 %v3150_v60, %v6881_v2  ;;  %2989 = vst.msk [vmem:[#allocation2 + $0x30] sm:$0xff] %vm318_vm5, %v2973_v0  ;;  %v3907_v2 = vsel %vm5826_vm4, %v3902_v56, %v3906_v53  ;;  %v6955_v0 = vrot.slane %v4489_v35, 5  ;;  %v4495_v56 = vrot.slane %v4493_v28, 4  ;;  %v5611_v60 = vld [vmem:[%s5798_s8 + $0x14c] sm:$0x1] }
 0x1d3   : > { %v3526_v5 = vld [vmem:[#allocation2 + $0x20] sm:$0xff]  ;;  %v6923_v59 = vpop.f32.mrf.mxu2  ;;  %5628 = vmatmul.msk.bf16.gmra.mxu3 %vm240_vm1, %v4574_v54  ;;  %v3993_v33 = vunpack.c.l.b16 %v3907_v2  ;;  %v4486_v19 = vor.u32 %v4485_v40, %v4482_v63  ;;  %v4499_v9 = vshll.u32 %v5611_v60, 16  ;;  %v4504_v28 = vshrl.u32 %v5612_v32, 16 }
 0x1d4   : > { %3182 = vst.msk [vmem:[#allocation2 + $0x28] sm:$0xff] %vm318_vm5, %v3166_v48  ;;  %v3542_v13 = vadd.f32 %v3526_v5, %v3492_v20  ;;  %v3918_v20 = vshll.u32 %v5508_v10, 16  ;;  %v5511_v48 = vld [vmem:[%s5798_s8 + $0x16c] sm:$0xf]  ;;  %v4575_v5 = vpack.c.b16 %v4564_v46, %v4563_v47  ;;  %v4496_v2 = vor.u32 %v4495_v56, %v6955_v0 }
 0x1d5   : > { %v2554_v8 = vpop.f32.mrf.mxu0  ;;  %v2928_v29 = vpop.f32.mrf.mxu1  ;;  %v4004_v57 = vpack.c.b16 %v3993_v33, %v3992_v34  ;;  %v3942_v24 = vshll.u32 %v5511_v48, 16  ;;  %v3946_v4 = vshrl.u32 %v5511_v48, 16  ;;  %v4501_v33 = vrot.slane %v4499_v9, 5 }
 0x1d6   : > { %3558 = vst.msk [vmem:[#allocation2 + $0x20] sm:$0xff] %vm318_vm5, %v3542_v13  ;;  %v2598_v26 = vadd.f32 %v2582_v11, %v2554_v8  ;;  %v3497_v3 = vpop.f32.mrf.mxu3  ;;  %v6951_v49 = vrot.slane %v3918_v20, 5  ;;  %v3916_v13 = vrot.slane %v3915_v43, 4  ;;  %v4497_v34 = vrot.slane %v4496_v2, 4 }
 0x1d7   : > { %v2958_v15 = vld [vmem:[#allocation2 + $0x38] sm:$0xff]  ;;  %v6982_v30 = vrot.slane %v3942_v24, 5  ;;  %v3948_v35 = vrot.slane %v3946_v4, 4  ;;  %v3939_v63 = vor.u32 %v3938_v27, %v3935_v44  ;;  %v4506_v56 = vrot.slane %v4504_v28, 4  ;;  %v5615_v27 = vld [vmem:[%s5798_s8 + $0x1a4] sm:$0xf] }
 0x1d8   : > { %2614 = vst.msk [vmem:[#allocation2 + $0x40] sm:$0xff] %vm318_vm5, %v2598_v26  ;;  %v2974_v25 = vadd.f32 %v2958_v15, %v2928_v29  ;;  %5488 = vmatmul.msk.bf16.gmra.mxu0 %vm240_vm1, %v5700_v14  ;;  %5590 = vmatmul.msk.bf16.gmra.mxu2 %vm240_vm1, %v5710_v18  ;;  %v3925_v1 = vor.u32 %v3924_v51, %v6951_v49  ;;  %v3930_v14 = vrot.slane %v3928_v42, 5  ;;  %v5711_v26 = vld [vmem:[%s5798_s8 + $0x144] sm:$0xff]  ;;  %v2584_v15 = vld [vmem:[#allocation2 + $0x50] sm:$0xff] }
 0x1d9   : > { %v3151_v41 = vld [vmem:[#allocation2 + $0x30] sm:$0xff]  ;;  %v3921_v20 = vsel %vm5826_vm4, %v3916_v13, %v6951_v49  ;;  %v4502_v46 = vsel %vm5826_vm4, %v4497_v34, %v4501_v33  ;;  %v3949_v40 = vor.u32 %v3948_v35, %v6982_v30  ;;  %v2586_v33 = vld [vmem:[#allocation2 + $0x60] sm:$0xff]  ;;  %v5616_v35 = vld [vmem:[%s5798_s8 + $0x1a8] sm:$0xf] }
 0x1da   : > { %v3167_v45 = vadd.f32 %v3151_v41, %v6908_v31  ;;  %2990 = vst.msk [vmem:[#allocation2 + $0x38] sm:$0xff] %vm318_vm5, %v2974_v25  ;;  %v2583_v31 = vld [vmem:[#allocation2 + $0x48] sm:$0xff]  ;;  %v3926_v11 = vrot.slane %v3925_v1, 4  ;;  %v4487_v25 = vrot.slane %v4486_v19, 4  ;;  %v3994_v51 = vunpack.c.l.b16 %v3921_v20  ;;  %v2585_v1 = vld [vmem:[#allocation2 + $0x58] sm:$0xff] }
 0x1db   : > { %v3527_v37 = vld [vmem:[#allocation2 + $0x28] sm:$0xff]  ;;  %v6949_v38 = vpop.f32.mrf.mxu2  ;;  %v4566_v60 = vunpack.c.l.b16 %v4502_v46  ;;  %v3950_v2 = vrot.slane %v3949_v40, 4  ;;  %v5712_v20 = vld [vmem:[%s5798_s8 + $0x174] sm:$0xff]  ;;  %v4528_v46 = vshrl.u32 %v5615_v27, 16 }
 0x1dc   : > { %3183 = vst.msk [vmem:[#allocation2 + $0x30] sm:$0xff] %vm318_vm5, %v3167_v45  ;;  %v3543_v21 = vadd.f32 %v3527_v37, %v3494_v52  ;;  %v3931_v36 = vsel %vm5826_vm4, %v3926_v11, %v3930_v14  ;;  %v4507_v37 = vshll.u32 %v5612_v32, 16 }
 0x1dd   : > { %v2556_v55 = vpop.f32.mrf.mxu0  ;;  %v2931_v53 = vpop.f32.mrf.mxu1 }
 0x1de   : > { %3559 = vst.msk [vmem:[#allocation2 + $0x28] sm:$0xff] %vm318_vm5, %v3543_v21  ;;  %v2599_v61 = vadd.f32 %v2583_v31, %v2556_v55  ;;  %v6960_v6 = vpop.f32.mrf.mxu3  ;;  %v3995_v55 = vunpack.c.l.b16 %v3931_v36  ;;  %v4492_v31 = vsel %vm5826_vm4, %v4487_v25, %v6955_v0  ;;  %v5514_v25 = vld [vmem:[%s5798_s8 + $0x19c] sm:$0xf] }
 0x1df   : > { %v2959_v52 = vld [vmem:[#allocation2 + $0x40] sm:$0xff]  ;;  %v4565_v0 = vunpack.c.l.b16 %v4492_v31 }
 0x1e0   : > { %2615 = vst.msk [vmem:[#allocation2 + $0x48] sm:$0xff] %vm318_vm5, %v2599_v61  ;;  %v2975_v54 = vadd.f32 %v2959_v52, %v2931_v53  ;;  %5527 = vmatmul.msk.bf16.gmra.mxu1 %vm240_vm1, %v4004_v57  ;;  %v3952_v61 = vshll.u32 %v5512_v39, 16  ;;  %v4509_v53 = vrot.slane %v4507_v37, 5  ;;  %v3970_v39 = vshrl.u32 %v5514_v25, 16 }
 0x1e1   : > { %v3152_v62 = vld [vmem:[#allocation2 + $0x38] sm:$0xff]  ;;  %v4576_v17 = vpack.c.b16 %v4566_v60, %v4565_v0  ;;  %v5515_v60 = vld [vmem:[%s5798_s8 + $0x1a0] sm:$0x1] }
 0x1e2   : > { %v3168_v18 = vadd.f32 %v3152_v62, %v6923_v59  ;;  %2991 = vst.msk [vmem:[#allocation2 + $0x40] sm:$0xff] %vm318_vm5, %v2975_v54  ;;  %v4005_v62 = vpack.c.b16 %v3995_v55, %v3994_v51  ;;  %v3954_v9 = vrot.slane %v3952_v61, 5  ;;  %v4537_v61 = vshll.u32 %v5616_v35, 16 }
 0x1e3   : > { %v3528_v10 = vld [vmem:[#allocation2 + $0x30] sm:$0xff]  ;;  %v6968_v8 = vpop.f32.mrf.mxu2  ;;  %5629 = vmatmul.msk.bf16.gmra.mxu3 %vm240_vm1, %v4575_v5  ;;  %v5614_v5 = vld [vmem:[%s5798_s8 + $0x17c] sm:$0x1] }
 0x1e4   : > { %3184 = vst.msk [vmem:[#allocation2 + $0x38] sm:$0xff] %vm318_vm5, %v3168_v18  ;;  %v3544_v59 = vadd.f32 %v3528_v10, %v3497_v3  ;;  %v5613_v3 = vld [vmem:[%s5798_s8 + $0x178] sm:$0xf]  ;;  %v4510_v10 = vor.u32 %v4509_v53, %v4506_v56  ;;  %v4523_v24 = vshll.u32 %v5614_v5, 16  ;;  %v4530_v5 = vrot.slane %v4528_v46, 4 }
 0x1e5   : > { %v2559_v29 = vpop.f32.mrf.mxu0  ;;  %v2933_v12 = vpop.f32.mrf.mxu1  ;;  %v4513_v21 = vshll.u32 %v5613_v3, 16  ;;  %v4517_v57 = vshrl.u32 %v5613_v3, 16 }
 0x1e6   : > { %3560 = vst.msk [vmem:[#allocation2 + $0x30] sm:$0xff] %vm318_vm5, %v3544_v59  ;;  %v2600_v23 = vadd.f32 %v2584_v15, %v2559_v29  ;;  %v3502_v50 = vpop.f32.mrf.mxu3  ;;  %v5702_v15 = vld [vmem:[%s5798_s8 + $0x168] sm:$0xff] }
 0x1e7   : > { %v2960_v41 = vld [vmem:[#allocation2 + $0x48] sm:$0xff]  ;;  %v7000_v54 = vrot.slane %v4513_v21, 5  ;;  %v4519_v7 = vrot.slane %v4517_v57, 4 }
 0x1e8   : > { %2616 = vst.msk [vmem:[#allocation2 + $0x50] sm:$0xff] %vm318_vm5, %v2600_v23  ;;  %v2976_v45 = vadd.f32 %v2960_v41, %v2933_v12  ;;  %5489 = vmatmul.msk.bf16.gmra.mxu0 %vm240_vm1, %v5701_v16  ;;  %5591 = vmatmul.msk.bf16.gmra.mxu2 %vm240_vm1, %v5711_v26  ;;  %v5513_v16 = vld [vmem:[%s5798_s8 + $0x198] sm:$0xf]  ;;  %v4511_v23 = vrot.slane %v4510_v10, 4  ;;  %v4525_v12 = vrot.slane %v4523_v24, 5 }
 0x1e9   : > { %v3153_v49 = vld [vmem:[#allocation2 + $0x40] sm:$0xff]  ;;  %v4520_v22 = vor.u32 %v4519_v7, %v7000_v54  ;;  %v3957_v41 = vshrl.u32 %v5513_v16, 16  ;;  %v3960_v36 = vshll.u32 %v5513_v16, 16  ;;  %v2587_v7 = vld [vmem:[#allocation2 + $0x68] sm:$0xff] }
 0x1ea   : > { %v3169_v47 = vadd.f32 %v3153_v49, %v6949_v38  ;;  %2992 = vst.msk [vmem:[#allocation2 + $0x48] sm:$0xff] %vm318_vm5, %v2976_v45  ;;  %v4516_v21 = vsel %vm5826_vm4, %v4511_v23, %v7000_v54 }
 0x1eb   : > { %v3529_v43 = vld [vmem:[#allocation2 + $0x38] sm:$0xff]  ;;  %v6995_v42 = vpop.f32.mrf.mxu2  ;;  %v4521_v3 = vrot.slane %v4520_v22, 4  ;;  %v3959_v55 = vrot.slane %v3957_v41, 4  ;;  %v3962_v31 = vrot.slane %v3960_v36, 5  ;;  %v2588_v41 = vld [vmem:[#allocation2 + $0x70] sm:$0xff] }
 0x1ec   : > { %3185 = vst.msk [vmem:[#allocation2 + $0x40] sm:$0xff] %vm318_vm5, %v3169_v47  ;;  %v3545_v38 = vadd.f32 %v3529_v43, %v6960_v6  ;;  %v3940_v6 = vrot.slane %v3939_v63, 4  ;;  %v4531_v63 = vshll.u32 %v5615_v27, 16 }
 0x1ed   : > { %v2561_v52 = vpop.f32.mrf.mxu0  ;;  %v2936_v13 = vpop.f32.mrf.mxu1  ;;  %v4526_v47 = vsel %vm5826_vm4, %v4521_v3, %v4525_v12  ;;  %v5713_v3 = vld [vmem:[%s5798_s8 + $0x1a4] sm:$0xff] }
 0x1ee   : > { %3561 = vst.msk [vmem:[#allocation2 + $0x38] sm:$0xff] %vm318_vm5, %v3545_v38  ;;  %v2601_v48 = vadd.f32 %v2585_v1, %v2561_v52  ;;  %v3504_v19 = vpop.f32.mrf.mxu3  ;;  %v3945_v32 = vsel %vm5826_vm4, %v3940_v6, %v6982_v30  ;;  %v4541_v38 = vshrl.u32 %v5616_v35, 16  ;;  %v3972_v52 = vrot.slane %v3970_v39, 4 }
 0x1ef   : > { %v2961_v14 = vld [vmem:[#allocation2 + $0x50] sm:$0xff]  ;;  %v3996_v49 = vunpack.c.l.b16 %v3945_v32  ;;  %v4539_v6 = vrot.slane %v4537_v61, 5 }
 0x1f0   : > { %2617 = vst.msk [vmem:[#allocation2 + $0x58] sm:$0xff] %vm318_vm5, %v2601_v48  ;;  %v2977_v18 = vadd.f32 %v2961_v14, %v2936_v13  ;;  %5528 = vmatmul.msk.bf16.gmra.mxu1 %vm240_vm1, %v4005_v62  ;;  %v4567_v48 = vunpack.c.l.b16 %v4516_v21  ;;  %v4568_v62 = vunpack.c.l.b16 %v4526_v47  ;;  %v4533_v14 = vrot.slane %v4531_v63, 5  ;;  %v2589_v63 = vld [vmem:[#allocation2 + $0x78] sm:$0xff] }
 0x1f1   : > { %v3154_v11 = vld [vmem:[#allocation2 + $0x48] sm:$0xff] }
 0x1f2   : > { %v3170_v59 = vadd.f32 %v3154_v11, %v6968_v8  ;;  %2993 = vst.msk [vmem:[#allocation2 + $0x50] sm:$0xff] %vm318_vm5, %v2977_v18  ;;  %v3955_v8 = vsel %vm5826_vm4, %v3950_v2, %v3954_v9  ;;  %v4543_v18 = vrot.slane %v4541_v38, 4  ;;  %v3976_v11 = vshll.u32 %v5515_v60, 16 }
 0x1f3   : > { %v3530_v26 = vld [vmem:[#allocation2 + $0x40] sm:$0xff]  ;;  %v7010_v4 = vpop.f32.mrf.mxu2  ;;  %5630 = vmatmul.msk.bf16.gmra.mxu3 %vm240_vm1, %v4576_v17  ;;  %v3997_v51 = vunpack.c.l.b16 %v3955_v8 }
 0x1f4   : > { %3186 = vst.msk [vmem:[#allocation2 + $0x48] sm:$0xff] %vm318_vm5, %v3170_v59  ;;  %v3546_v29 = vadd.f32 %v3530_v26, %v3502_v50  ;;  %v3966_v50 = vshll.u32 %v5514_v25, 16  ;;  %v4577_v59 = vpack.c.b16 %v4568_v62, %v4567_v48  ;;  %v3978_v25 = vrot.slane %v3976_v11, 5 }
 0x1f5   : > { %v2564_v34 = vpop.f32.mrf.mxu0  ;;  %v2938_v45 = vpop.f32.mrf.mxu1  ;;  %v4006_v0 = vpack.c.b16 %v3997_v51, %v3996_v49 }
 0x1f6   : > { %3562 = vst.msk [vmem:[#allocation2 + $0x40] sm:$0xff] %vm318_vm5, %v3546_v29  ;;  %v2602_v44 = vadd.f32 %v2586_v33, %v2564_v34  ;;  %v3507_v37 = vpop.f32.mrf.mxu3  ;;  %v3968_v53 = vrot.slane %v3966_v50, 5  ;;  %v4534_v29 = vor.u32 %v4533_v14, %v4530_v5  ;;  %v5703_v33 = vld [vmem:[%s5798_s8 + $0x198] sm:$0xff]  ;;  %v3716_v5 = vld [vmem:[#allocation2] sm:$0xff] }
 0x1f7   : > { %v2962_v30 = vld [vmem:[#allocation2 + $0x58] sm:$0xff] }
 0x1f8   : > { %2618 = vst.msk [vmem:[#allocation2 + $0x60] sm:$0xff] %vm318_vm5, %v2602_v44  ;;  %v2978_v28 = vadd.f32 %v2962_v30, %v2938_v45  ;;  %5490 = vmatmul.msk.bf16.gmra.mxu0 %vm240_vm1, %v5702_v15  ;;  %5592 = vmatmul.msk.bf16.gmra.mxu2 %vm240_vm1, %v5712_v20  ;;  %v3973_v10 = vor.u32 %v3972_v52, %v3968_v53  ;;  %v4535_v44 = vrot.slane %v4534_v29, 4 }
 0x1f9   : > { %v3155_v57 = vld [vmem:[#allocation2 + $0x50] sm:$0xff]  ;;  %v4544_v15 = vor.u32 %v4543_v18, %v4539_v6 }
 0x1fa   : > { %v3171_v43 = vadd.f32 %v3155_v57, %v6995_v42  ;;  %2994 = vst.msk [vmem:[#allocation2 + $0x58] sm:$0xff] %vm318_vm5, %v2978_v28  ;;  %v3963_v42 = vor.u32 %v3962_v31, %v3959_v55  ;;  %v3974_v23 = vrot.slane %v3973_v10, 4  ;;  %v4540_v57 = vsel %vm5826_vm4, %v4535_v44, %v4539_v6 }
 0x1fb   : > { %v3531_v40 = vld [vmem:[#allocation2 + $0x48] sm:$0xff]  ;;  %v3135_v56 = vpop.f32.mrf.mxu2  ;;  %v4545_v27 = vrot.slane %v4544_v15, 4  ;;  %v4569_v61 = vunpack.c.l.b16 %v4540_v57 }
 0x1fc   : > { %3187 = vst.msk [vmem:[#allocation2 + $0x50] sm:$0xff] %vm318_vm5, %v3171_v43  ;;  %v3547_v1 = vadd.f32 %v3531_v40, %v3504_v19  ;;  %v5617_v19 = vld [vmem:[%s5798_s8 + $0x1ac] sm:$0x1]  ;;  %v3964_v16 = vrot.slane %v3963_v42, 4  ;;  %v3979_v39 = vsel %vm5826_vm4, %v3974_v23, %v3978_v25 }
 0x1fd   : > { %v2566_v54 = vpop.f32.mrf.mxu0  ;;  %v2941_v2 = vpop.f32.mrf.mxu1  ;;  %v4547_v20 = vshll.u32 %v5617_v19, 16  ;;  %v3999_v21 = vunpack.c.l.b16 %v3979_v39 }
 0x1fe   : > { %3563 = vst.msk [vmem:[#allocation2 + $0x48] sm:$0xff] %vm318_vm5, %v3547_v1  ;;  %v2603_v13 = vadd.f32 %v2587_v7, %v2566_v54  ;;  %v3509_v22 = vpop.f32.mrf.mxu3 }
 0x1ff   : > { %v2963_v9 = vld [vmem:[#allocation2 + $0x60] sm:$0xff]  ;;  %v4549_v45 = vrot.slane %v4547_v20, 5 }
 0x200   : > { %2619 = vst.msk [vmem:[#allocation2 + $0x68] sm:$0xff] %vm318_vm5, %v2603_v13  ;;  %v2979_v17 = vadd.f32 %v2963_v9, %v2941_v2  ;;  %5529 = vmatmul.msk.bf16.gmra.mxu1 %vm240_vm1, %v4006_v0 }
 0x201   : > { %v3156_v24 = vld [vmem:[#allocation2 + $0x58] sm:$0xff]  ;;  %v4550_v47 = vsel %vm5826_vm4, %v4545_v27, %v4549_v45 }
 0x202   : > { %v3172_v26 = vadd.f32 %v3156_v24, %v7010_v4  ;;  %2995 = vst.msk [vmem:[#allocation2 + $0x60] sm:$0xff] %vm318_vm5, %v2979_v17  ;;  %v3969_v4 = vsel %vm5826_vm4, %v3964_v16, %v3968_v53  ;;  %v4570_v38 = vunpack.c.l.b16 %v4550_v47  ;;  %v3717_v24 = vld [vmem:[#allocation2 + $0x8] sm:$0xff] }
 0x203   : > { %v3532_v32 = vld [vmem:[#allocation2 + $0x50] sm:$0xff]  ;;  %v3137_v8 = vpop.f32.mrf.mxu2  ;;  %5631 = vmatmul.msk.bf16.gmra.mxu3 %vm240_vm1, %v4577_v59  ;;  %v3998_v49 = vunpack.c.l.b16 %v3969_v4 }
 0x204   : > { %3188 = vst.msk [vmem:[#allocation2 + $0x58] sm:$0xff] %vm318_vm5, %v3172_v26  ;;  %v3548_v34 = vadd.f32 %v3532_v32, %v3507_v37  ;;  %v4578_v60 = vpack.c.b16 %v4570_v38, %v4569_v61 }
 0x205   : > { %v2569_v12 = vpop.f32.mrf.mxu0  ;;  %v2943_v30 = vpop.f32.mrf.mxu1 }
 0x206   : > { %3564 = vst.msk [vmem:[#allocation2 + $0x50] sm:$0xff] %vm318_vm5, %v3548_v34  ;;  %v2604_v36 = vadd.f32 %v2588_v41, %v2569_v12  ;;  %v3512_v28 = vpop.f32.mrf.mxu3 }
 0x207   : > { %v2964_v50 = vld [vmem:[#allocation2 + $0x68] sm:$0xff] }
 0x208   : > { %2620 = vst.msk [vmem:[#allocation2 + $0x70] sm:$0xff] %vm318_vm5, %v2604_v36  ;;  %v2980_v35 = vadd.f32 %v2964_v50, %v2943_v30  ;;  %5491 = vmatmul.msk.bf16.gmra.mxu0 %vm240_vm1, %v5703_v33  ;;  %5593 = vmatmul.msk.bf16.gmra.mxu2 %vm240_vm1, %v5713_v3  ;;  %v3718_v33 = vld [vmem:[#allocation2 + $0x10] sm:$0xff] }
 0x209   : > { %v3157_v37 = vld [vmem:[#allocation2 + $0x60] sm:$0xff] }
 0x20a   : > { %v3173_v51 = vadd.f32 %v3157_v37, %v3135_v56  ;;  %2996 = vst.msk [vmem:[#allocation2 + $0x68] sm:$0xff] %vm318_vm5, %v2980_v35  ;;  %v4007_v56 = vpack.c.b16 %v3999_v21, %v3998_v49  ;;  %v3719_v35 = vld [vmem:[#allocation2 + $0x18] sm:$0xff] }
 0x20b   : > { %v3533_v55 = vld [vmem:[#allocation2 + $0x58] sm:$0xff]  ;;  %v3140_v31 = vpop.f32.mrf.mxu2 }
 0x20c   : > { %3189 = vst.msk [vmem:[#allocation2 + $0x60] sm:$0xff] %vm318_vm5, %v3173_v51  ;;  %v3549_v46 = vadd.f32 %v3533_v55, %v3509_v22 }
 0x20d   : > { %v2571_v43 = vpop.f32.mrf.mxu0  ;;  %v2946_v53 = vpop.f32.mrf.mxu1 }
 0x20e   : > { %3565 = vst.msk [vmem:[#allocation2 + $0x58] sm:$0xff] %vm318_vm5, %v3549_v46  ;;  %v2605_v40 = vadd.f32 %v2589_v63, %v2571_v43  ;;  %v3514_v58 = vpop.f32.mrf.mxu3  ;;  %v3720_v63 = vld [vmem:[#allocation2 + $0x20] sm:$0xff] }
 0x20f   : > { %v2965_v52 = vld [vmem:[#allocation2 + $0x70] sm:$0xff] }
 0x210   : > { %2621 = vst.msk [vmem:[#allocation2 + $0x78] sm:$0xff] %vm318_vm5, %v2605_v40  ;;  %v2981_v1 = vadd.f32 %v2965_v52, %v2946_v53  ;;  %5530 = vmatmul.msk.bf16.gmra.mxu1 %vm240_vm1, %v4007_v56 }
 0x211   : > { %v3158_v0 = vld [vmem:[#allocation2 + $0x68] sm:$0xff] }
 0x212   : > { %v3174_v54 = vadd.f32 %v3158_v0, %v3137_v8  ;;  %2997 = vst.msk [vmem:[#allocation2 + $0x70] sm:$0xff] %vm318_vm5, %v2981_v1  ;;  %v7088_v1 = vld [vmem:[%s7202_s2] ss:$0 sm:$0xff] }
 0x213   : > { %v3534_v7 = vld [vmem:[#allocation2 + $0x60] sm:$0xff]  ;;  %v3142_v48 = vpop.f32.mrf.mxu2  ;;  %5632 = vmatmul.msk.bf16.gmra.mxu3 %vm240_vm1, %v4578_v60 }
 0x214   : > { %3190 = vst.msk [vmem:[#allocation2 + $0x68] sm:$0xff] %vm318_vm5, %v3174_v54  ;;  %v3550_v62 = vadd.f32 %v3534_v7, %v3512_v28 }
 0x215   : > { %v3676_v42 = vpop.f32.mrf.mxu0  ;;  %v2948_v14 = vpop.f32.mrf.mxu1 }
 0x216   : > { %3566 = vst.msk [vmem:[#allocation2 + $0x60] sm:$0xff] %vm318_vm5, %v3550_v62  ;;  %v3732_v13 = vadd.f32 %v3716_v5, %v3676_v42  ;;  %v3517_v2 = vpop.f32.mrf.mxu3  ;;  %v3721_v62 = vld [vmem:[#allocation2 + $0x28] sm:$0xff] }
 0x217   : > { %v2966_v6 = vld [vmem:[#allocation2 + $0x78] sm:$0xff] }
 0x218   : > { %v2982_v18 = vadd.f32 %v2966_v6, %v2948_v14  ;;  %3748 = vst.msk [vmem:[#allocation2] sm:$0xff] %vm318_vm5, %v3732_v13 }
 0x219   : > { %v3159_v9 = vld [vmem:[#allocation2 + $0x70] sm:$0xff] }
 0x21a   : > { %v3175_v10 = vadd.f32 %v3159_v9, %v3140_v31  ;;  %2998 = vst.msk [vmem:[#allocation2 + $0x78] sm:$0xff] %vm318_vm5, %v2982_v18 }
 0x21b   : > { %v3535_v11 = vld [vmem:[#allocation2 + $0x68] sm:$0xff]  ;;  %v4247_v19 = vpop.f32.mrf.mxu2 }
 0x21c   : > { %3191 = vst.msk [vmem:[#allocation2 + $0x70] sm:$0xff] %vm318_vm5, %v3175_v10  ;;  %v3551_v17 = vadd.f32 %v3535_v11, %v3514_v58 }
 0x21d   : > { %v3678_v22 = vpop.f32.mrf.mxu0  ;;  %v4053_v16 = vpop.f32.mrf.mxu1 }
 0x21e   : > { %3567 = vst.msk [vmem:[#allocation2 + $0x68] sm:$0xff] %vm318_vm5, %v3551_v17  ;;  %v3733_v59 = vadd.f32 %v3717_v24, %v3678_v22  ;;  %v3519_v15 = vpop.f32.mrf.mxu3 }
 0x21f   : > { %v4093_v26 = vld [vmem:[#allocation2] sm:$0xff] }
 0x220   : > { %3749 = vst.msk [vmem:[#allocation2 + $0x8] sm:$0xff] %vm318_vm5, %v3733_v59  ;;  %v4109_v29 = vadd.f32 %v4093_v26, %v4053_v16  ;;  %v3722_v16 = vld [vmem:[#allocation2 + $0x30] sm:$0xff] }
 0x221   : > { %v3160_v20 = vld [vmem:[#allocation2 + $0x78] sm:$0xff] }
 0x222   : > { %v3176_v32 = vadd.f32 %v3160_v20, %v3142_v48  ;;  %4125 = vst.msk [vmem:[#allocation2] sm:$0xff] %vm318_vm5, %v4109_v29 }
 0x223   : > { %v3536_v8 = vld [vmem:[#allocation2 + $0x70] sm:$0xff]  ;;  %v4249_v23 = vpop.f32.mrf.mxu2 }
 0x224   : > { %3192 = vst.msk [vmem:[#allocation2 + $0x78] sm:$0xff] %vm318_vm5, %v3176_v32  ;;  %v3552_v25 = vadd.f32 %v3536_v8, %v3517_v2 }
 0x225   : > { %v3681_v34 = vpop.f32.mrf.mxu0  ;;  %v4055_v12 = vpop.f32.mrf.mxu1 }
 0x226   : > { %3568 = vst.msk [vmem:[#allocation2 + $0x70] sm:$0xff] %vm318_vm5, %v3552_v25  ;;  %v3734_v3 = vadd.f32 %v3718_v33, %v3681_v34  ;;  %v4624_v36 = vpop.f32.mrf.mxu3 }
 0x227   : > { %v4094_v41 = vld [vmem:[#allocation2 + $0x8] sm:$0xff] }
 0x228   : > { %3750 = vst.msk [vmem:[#allocation2 + $0x10] sm:$0xff] %vm318_vm5, %v3734_v3  ;;  %v4110_v4 = vadd.f32 %v4094_v41, %v4055_v12 }
 0x229   : > { %v4287_v44 = vld [vmem:[#allocation2] sm:$0xff] }
 0x22a   : > { %v4303_v27 = vadd.f32 %v4287_v44, %v4247_v19  ;;  %4126 = vst.msk [vmem:[#allocation2 + $0x8] sm:$0xff] %vm318_vm5, %v4110_v4  ;;  %v3723_v44 = vld [vmem:[#allocation2 + $0x38] sm:$0xff] }
 0x22b   : > { %v3537_v45 = vld [vmem:[#allocation2 + $0x78] sm:$0xff]  ;;  %v4252_v30 = vpop.f32.mrf.mxu2 }
 0x22c   : > { %4319 = vst.msk [vmem:[#allocation2] sm:$0xff] %vm318_vm5, %v4303_v27  ;;  %v3553_v50 = vadd.f32 %v3537_v45, %v3519_v15 }
 0x22d   : > { %v3683_v39 = vpop.f32.mrf.mxu0  ;;  %v4058_v37 = vpop.f32.mrf.mxu1 }
 0x22e   : > { %3569 = vst.msk [vmem:[#allocation2 + $0x78] sm:$0xff] %vm318_vm5, %v3553_v50  ;;  %v3735_v28 = vadd.f32 %v3719_v35, %v3683_v39  ;;  %v4626_v21 = vpop.f32.mrf.mxu3 }
 0x22f   : > { %v4095_v49 = vld [vmem:[#allocation2 + $0x10] sm:$0xff] }
 0x230   : > { %3751 = vst.msk [vmem:[#allocation2 + $0x18] sm:$0xff] %vm318_vm5, %v3735_v28  ;;  %v4111_v51 = vadd.f32 %v4095_v49, %v4058_v37 }
 0x231   : > { %v4288_v57 = vld [vmem:[#allocation2 + $0x8] sm:$0xff] }
 0x232   : > { %v4304_v47 = vadd.f32 %v4288_v57, %v4249_v23  ;;  %4127 = vst.msk [vmem:[#allocation2 + $0x10] sm:$0xff] %vm318_vm5, %v4111_v51 }
 0x233   : > { %v4664_v55 = vld [vmem:[#allocation2] sm:$0xff]  ;;  %v4254_v31 = vpop.f32.mrf.mxu2 }
 0x234   : > { %4320 = vst.msk [vmem:[#allocation2 + $0x8] sm:$0xff] %vm318_vm5, %v4304_v47  ;;  %v4680_v46 = vadd.f32 %v4664_v55, %v4624_v36 }
 0x235   : > { %v3686_v43 = vpop.f32.mrf.mxu0  ;;  %v4060_v38 = vpop.f32.mrf.mxu1 }
 0x236   : > { %4696 = vst.msk [vmem:[#allocation2] sm:$0xff] %vm318_vm5, %v4680_v46  ;;  %v3736_v61 = vadd.f32 %v3720_v63, %v3686_v43  ;;  %v4629_v53 = vpop.f32.mrf.mxu3 }
 0x237   : > { %v4096_v40 = vld [vmem:[#allocation2 + $0x18] sm:$0xff] }
 0x238   : > { %3752 = vst.msk [vmem:[#allocation2 + $0x20] sm:$0xff] %vm318_vm5, %v3736_v61  ;;  %v4112_v56 = vadd.f32 %v4096_v40, %v4060_v38 }
 0x239   : > { %v4289_v52 = vld [vmem:[#allocation2 + $0x10] sm:$0xff] }
 0x23a   : > { %v4305_v58 = vadd.f32 %v4289_v52, %v4252_v30  ;;  %4128 = vst.msk [vmem:[#allocation2 + $0x18] sm:$0xff] %vm318_vm5, %v4112_v56 }
 0x23b   : > { %v4665_v0 = vld [vmem:[#allocation2 + $0x8] sm:$0xff]  ;;  %v4257_v60 = vpop.f32.mrf.mxu2 }
 0x23c   : > { %4321 = vst.msk [vmem:[#allocation2 + $0x10] sm:$0xff] %vm318_vm5, %v4305_v58  ;;  %v4681_v54 = vadd.f32 %v4665_v0, %v4626_v21 }
 0x23d   : > { %v4712_v7 = vld [vmem:[#allocation2] sm:$0xff]  ;;  %v3688_v48 = vpop.f32.mrf.mxu0  ;;  %v4063_v13 = vpop.f32.mrf.mxu1 }
 0x23e   : > { %v4732_v42 = vadd.f32 %v7088_v1, %v4712_v7  ;;  %4697 = vst.msk [vmem:[#allocation2 + $0x8] sm:$0xff] %vm318_vm5, %v4681_v54  ;;  %v3737_v5 = vadd.f32 %v3721_v62, %v3688_v48  ;;  %v4631_v2 = vpop.f32.mrf.mxu3  ;;  %v3725_v62 = vld [vmem:[#allocation2 + $0x48] sm:$0xff] }
 0x23f   : > { %v4097_v14 = vld [vmem:[#allocation2 + $0x20] sm:$0xff] }
 0x240   : > { %v4748_v6 = vmax.f32 %v4732_v42, 0.0  ;;  %3753 = vst.msk [vmem:[#allocation2 + $0x28] sm:$0xff] %vm318_vm5, %v3737_v5  ;;  %v4113_v18 = vadd.f32 %v4097_v14, %v4063_v13 }
 0x241   : > { %v4290_v9 = vld [vmem:[#allocation2 + $0x18] sm:$0xff] }
 0x242   : > { %v4764_v10 = vpack.c.bf16 %v4748_v6, %v4748_v6  ;;  %v4306_v11 = vadd.f32 %v4290_v9, %v4254_v31  ;;  %4129 = vst.msk [vmem:[#allocation2 + $0x20] sm:$0xff] %vm318_vm5, %v4113_v18  ;;  %v3724_v31 = vld [vmem:[#allocation2 + $0x40] sm:$0xff] }
 0x243   : > { %v4666_v19 = vld [vmem:[#allocation2 + $0x10] sm:$0xff]  ;;  %v4259_v17 = vpop.f32.mrf.mxu2 }
 0x244   : > { %4781 = vst.msk [vmem:[%s7099_s11] sm:$0xf] %vm4780_vm6, %v4764_v10  ;;  %v4682_v22 = vadd.f32 %v4666_v19, %v4629_v53 }
 0x245   : > { %v4713_v24 = vld [vmem:[#allocation2 + $0x8] sm:$0xff]  ;;  %4322 = vst.msk [vmem:[#allocation2 + $0x18] sm:$0xff] %vm318_vm5, %v4306_v11  ;;  %v3691_v59 = vpop.f32.mrf.mxu0  ;;  %v4065_v15 = vpop.f32.mrf.mxu1 }
 0x246   : > { %v4733_v26 = vadd.f32 %v7088_v1, %v4713_v24  ;;  %4698 = vst.msk [vmem:[#allocation2 + $0x10] sm:$0xff] %vm318_vm5, %v4682_v22  ;;  %v3738_v29 = vadd.f32 %v3722_v16, %v3691_v59  ;;  %v4634_v23 = vpop.f32.mrf.mxu3  ;;  %v3726_v59 = vld [vmem:[#allocation2 + $0x50] sm:$0xff] }
 0x247   : > { %v4098_v20 = vld [vmem:[#allocation2 + $0x28] sm:$0xff] }
 0x248   : > { %v4749_v32 = vmax.f32 %v4733_v26, 0.0  ;;  %3754 = vst.msk [vmem:[#allocation2 + $0x30] sm:$0xff] %vm318_vm5, %v3738_v29  ;;  %v4114_v8 = vadd.f32 %v4098_v20, %v4065_v15 }
 0x249   : > { %v4291_v25 = vld [vmem:[#allocation2 + $0x20] sm:$0xff] }
 0x24a   : > { %v4765_v34 = vpack.c.bf16 %v4749_v32, %v4749_v32  ;;  %v4307_v33 = vadd.f32 %v4291_v25, %v4257_v60  ;;  %4130 = vst.msk [vmem:[#allocation2 + $0x28] sm:$0xff] %vm318_vm5, %v4114_v8 }
 0x24b   : > { %v4262_v3 = vpop.f32.mrf.mxu2 }
 0x24c   : > { %4782 = vst.msk [vmem:[%s7099_s11 + $0x4] sm:$0xf] %vm4780_vm6, %v4765_v34  ;;  %v4667_v12 = vld [vmem:[#allocation2 + $0x18] sm:$0xff] }
 0x24d   : > { %v4714_v41 = vld [vmem:[#allocation2 + $0x10] sm:$0xff]  ;;  %4323 = vst.msk [vmem:[#allocation2 + $0x20] sm:$0xff] %vm318_vm5, %v4307_v33  ;;  %v4683_v4 = vadd.f32 %v4667_v12, %v4631_v2  ;;  %v3693_v36 = vpop.f32.mrf.mxu0  ;;  %v4068_v30 = vpop.f32.mrf.mxu1 }
 0x24e   : > { %v4734_v27 = vadd.f32 %v7088_v1, %v4714_v41  ;;  %v3739_v45 = vadd.f32 %v3723_v44, %v3693_v36  ;;  %v4636_v28 = vpop.f32.mrf.mxu3  ;;  %v3727_v44 = vld [vmem:[#allocation2 + $0x58] sm:$0xff] }
 0x24f   : > { %4699 = vst.msk [vmem:[#allocation2 + $0x18] sm:$0xff] %vm318_vm5, %v4683_v4  ;;  %v4099_v50 = vld [vmem:[#allocation2 + $0x30] sm:$0xff] }
 0x250   : > { %v4750_v39 = vmax.f32 %v4734_v27, 0.0  ;;  %3755 = vst.msk [vmem:[#allocation2 + $0x38] sm:$0xff] %vm318_vm5, %v3739_v45  ;;  %v4115_v35 = vadd.f32 %v4099_v50, %v4068_v30 }
 0x251   : > { %v4292_v37 = vld [vmem:[#allocation2 + $0x28] sm:$0xff] }
 0x252   : > { %v4766_v49 = vpack.c.bf16 %v4750_v39, %v4750_v39  ;;  %v4308_v51 = vadd.f32 %v4292_v37, %v4259_v17  ;;  %4131 = vst.msk [vmem:[#allocation2 + $0x30] sm:$0xff] %vm318_vm5, %v4115_v35 }
 0x253   : > { %v4264_v21 = vpop.f32.mrf.mxu2 }
 0x254   : > { %4783 = vst.msk [vmem:[%s7099_s11 + $0x8] sm:$0xf] %vm4780_vm6, %v4766_v49  ;;  %v4668_v57 = vld [vmem:[#allocation2 + $0x20] sm:$0xff] }
 0x255   : > { %4324 = vst.msk [vmem:[#allocation2 + $0x28] sm:$0xff] %vm318_vm5, %v4308_v51  ;;  %v4684_v47 = vadd.f32 %v4668_v57, %v4634_v23  ;;  %v3696_v55 = vpop.f32.mrf.mxu0  ;;  %v4070_v61 = vpop.f32.mrf.mxu1 }
 0x256   : > { %v4715_v46 = vld [vmem:[#allocation2 + $0x18] sm:$0xff]  ;;  %v3740_v43 = vadd.f32 %v3724_v31, %v3696_v55  ;;  %v4639_v56 = vpop.f32.mrf.mxu3 }
 0x257   : > { %v4735_v63 = vadd.f32 %v7088_v1, %v4715_v46  ;;  %4700 = vst.msk [vmem:[#allocation2 + $0x20] sm:$0xff] %vm318_vm5, %v4684_v47  ;;  %v4100_v38 = vld [vmem:[#allocation2 + $0x38] sm:$0xff]  ;;  %v3728_v46 = vld [vmem:[#allocation2 + $0x60] sm:$0xff] }
 0x258   : > { %3756 = vst.msk [vmem:[#allocation2 + $0x40] sm:$0xff] %vm318_vm5, %v3740_v43  ;;  %v4116_v40 = vadd.f32 %v4100_v38, %v4070_v61 }
 0x259   : > { %v4751_v53 = vmax.f32 %v4735_v63, 0.0  ;;  %v4293_v52 = vld [vmem:[#allocation2 + $0x30] sm:$0xff] }
 0x25a   : > { %v4309_v58 = vadd.f32 %v4293_v52, %v4262_v3  ;;  %4132 = vst.msk [vmem:[#allocation2 + $0x38] sm:$0xff] %vm318_vm5, %v4116_v40 }
 0x25b   : > { %v4767_v0 = vpack.c.bf16 %v4751_v53, %v4751_v53  ;;  %v4267_v60 = vpop.f32.mrf.mxu2 }
 0x25c   : > { %4325 = vst.msk [vmem:[#allocation2 + $0x30] sm:$0xff] %vm318_vm5, %v4309_v58  ;;  %v4669_v54 = vld [vmem:[#allocation2 + $0x28] sm:$0xff] }
 0x25d   : > { %4784 = vst.msk [vmem:[%s7099_s11 + $0xc] sm:$0xf] %vm4780_vm6, %v4767_v0  ;;  %v4685_v7 = vadd.f32 %v4669_v54, %v4636_v28  ;;  %v3698_v48 = vpop.f32.mrf.mxu0  ;;  %v4073_v14 = vpop.f32.mrf.mxu1 }
 0x25e   : > { %v4716_v42 = vld [vmem:[#allocation2 + $0x20] sm:$0xff]  ;;  %v3741_v5 = vadd.f32 %v3725_v62, %v3698_v48  ;;  %v4641_v2 = vpop.f32.mrf.mxu3 }
 0x25f   : > { %v4736_v13 = vadd.f32 %v7088_v1, %v4716_v42  ;;  %4701 = vst.msk [vmem:[#allocation2 + $0x28] sm:$0xff] %vm318_vm5, %v4685_v7  ;;  %v4101_v6 = vld [vmem:[#allocation2 + $0x40] sm:$0xff]  ;;  %v3729_v42 = vld [vmem:[#allocation2 + $0x68] sm:$0xff] }
 0x260   : > { %3757 = vst.msk [vmem:[#allocation2 + $0x48] sm:$0xff] %vm318_vm5, %v3741_v5  ;;  %v4117_v18 = vadd.f32 %v4101_v6, %v4073_v14 }
 0x261   : > { %v4752_v9 = vmax.f32 %v4736_v13, 0.0  ;;  %v4294_v10 = vld [vmem:[#allocation2 + $0x38] sm:$0xff] }
 0x262   : > { %v4310_v11 = vadd.f32 %v4294_v10, %v4264_v21  ;;  %4133 = vst.msk [vmem:[#allocation2 + $0x40] sm:$0xff] %vm318_vm5, %v4117_v18 }
 0x263   : > { %v4768_v19 = vpack.c.bf16 %v4752_v9, %v4752_v9  ;;  %v4670_v17 = vld [vmem:[#allocation2 + $0x30] sm:$0xff]  ;;  %v4269_v16 = vpop.f32.mrf.mxu2 }
 0x264   : > { %4326 = vst.msk [vmem:[#allocation2 + $0x38] sm:$0xff] %vm318_vm5, %v4310_v11  ;;  %v4686_v22 = vadd.f32 %v4670_v17, %v4639_v56 }
 0x265   : > { %4785 = vst.msk [vmem:[%s7099_s11 + $0x10] sm:$0xf] %vm4780_vm6, %v4768_v19  ;;  %v3701_v24 = vpop.f32.mrf.mxu0  ;;  %v4075_v20 = vpop.f32.mrf.mxu1 }
 0x266   : > { %v4717_v26 = vld [vmem:[#allocation2 + $0x28] sm:$0xff]  ;;  %4702 = vst.msk [vmem:[#allocation2 + $0x30] sm:$0xff] %vm318_vm5, %v4686_v22  ;;  %v3742_v29 = vadd.f32 %v3726_v59, %v3701_v24  ;;  %v4644_v23 = vpop.f32.mrf.mxu3 }
 0x267   : > { %v4737_v15 = vadd.f32 %v7088_v1, %v4717_v26  ;;  %v4102_v32 = vld [vmem:[#allocation2 + $0x48] sm:$0xff] }
 0x268   : > { %3758 = vst.msk [vmem:[#allocation2 + $0x50] sm:$0xff] %vm318_vm5, %v3742_v29  ;;  %v4118_v8 = vadd.f32 %v4102_v32, %v4075_v20 }
 0x269   : > { %v4753_v25 = vmax.f32 %v4737_v15, 0.0  ;;  %v4295_v34 = vld [vmem:[#allocation2 + $0x40] sm:$0xff] }
 0x26a   : > { %v4311_v33 = vadd.f32 %v4295_v34, %v4267_v60  ;;  %4134 = vst.msk [vmem:[#allocation2 + $0x48] sm:$0xff] %vm318_vm5, %v4118_v8 }
 0x26b   : > { %v4769_v3 = vpack.c.bf16 %v4753_v25, %v4753_v25  ;;  %v4671_v12 = vld [vmem:[#allocation2 + $0x38] sm:$0xff]  ;;  %v4272_v39 = vpop.f32.mrf.mxu2 }
 0x26c   : > { %4327 = vst.msk [vmem:[#allocation2 + $0x40] sm:$0xff] %vm318_vm5, %v4311_v33  ;;  %v4687_v41 = vadd.f32 %v4671_v12, %v4641_v2 }
 0x26d   : > { %4786 = vst.msk [vmem:[%s7099_s11 + $0x14] sm:$0xf] %vm4780_vm6, %v4769_v3  ;;  %v4718_v4 = vld [vmem:[#allocation2 + $0x30] sm:$0xff]  ;;  %v3703_v36 = vpop.f32.mrf.mxu0  ;;  %v4078_v30 = vpop.f32.mrf.mxu1 }
 0x26e   : > { %v4738_v27 = vadd.f32 %v7088_v1, %v4718_v4  ;;  %4703 = vst.msk [vmem:[#allocation2 + $0x38] sm:$0xff] %vm318_vm5, %v4687_v41  ;;  %v3743_v45 = vadd.f32 %v3727_v44, %v3703_v36  ;;  %v4646_v37 = vpop.f32.mrf.mxu3  ;;  %v3731_v36 = vld [vmem:[#allocation2 + $0x78] sm:$0xff] }
 0x26f   : > { %v4103_v50 = vld [vmem:[#allocation2 + $0x50] sm:$0xff] }
 0x270   : > { %v4754_v35 = vmax.f32 %v4738_v27, 0.0  ;;  %3759 = vst.msk [vmem:[#allocation2 + $0x58] sm:$0xff] %vm318_vm5, %v3743_v45  ;;  %v4119_v28 = vadd.f32 %v4103_v50, %v4078_v30 }
 0x271   : > { %v4296_v49 = vld [vmem:[#allocation2 + $0x48] sm:$0xff] }
 0x272   : > { %v4770_v51 = vpack.c.bf16 %v4754_v35, %v4754_v35  ;;  %v4312_v21 = vadd.f32 %v4296_v49, %v4269_v16  ;;  %4135 = vst.msk [vmem:[#allocation2 + $0x50] sm:$0xff] %vm318_vm5, %v4119_v28  ;;  %v3730_v16 = vld [vmem:[#allocation2 + $0x70] sm:$0xff] }
 0x273   : > { %v4672_v57 = vld [vmem:[#allocation2 + $0x40] sm:$0xff]  ;;  %v4274_v52 = vpop.f32.mrf.mxu2 }
 0x274   : > { %4787 = vst.msk [vmem:[%s7099_s11 + $0x18] sm:$0xf] %vm4780_vm6, %v4770_v51  ;;  %v4688_v47 = vadd.f32 %v4672_v57, %v4644_v23 }
 0x275   : > { %v4719_v55 = vld [vmem:[#allocation2 + $0x38] sm:$0xff]  ;;  %4328 = vst.msk [vmem:[#allocation2 + $0x48] sm:$0xff] %vm318_vm5, %v4312_v21  ;;  %v3706_v31 = vpop.f32.mrf.mxu0  ;;  %v4080_v61 = vpop.f32.mrf.mxu1 }
 0x276   : > { %v4739_v43 = vadd.f32 %v7088_v1, %v4719_v55  ;;  %4704 = vst.msk [vmem:[#allocation2 + $0x40] sm:$0xff] %vm318_vm5, %v4688_v47  ;;  %v3744_v63 = vadd.f32 %v3728_v46, %v3706_v31  ;;  %v4649_v60 = vpop.f32.mrf.mxu3 }
 0x277   : > { %v4104_v38 = vld [vmem:[#allocation2 + $0x58] sm:$0xff] }
 0x278   : > { %v4755_v40 = vmax.f32 %v4739_v43, 0.0  ;;  %3760 = vst.msk [vmem:[#allocation2 + $0x60] sm:$0xff] %vm318_vm5, %v3744_v63  ;;  %v4120_v56 = vadd.f32 %v4104_v38, %v4080_v61 }
 0x279   : > { %v4297_v53 = vld [vmem:[#allocation2 + $0x50] sm:$0xff] }
 0x27a   : > { %v4771_v58 = vpack.c.bf16 %v4755_v40, %v4755_v40  ;;  %v4313_v0 = vadd.f32 %v4297_v53, %v4272_v39  ;;  %4136 = vst.msk [vmem:[#allocation2 + $0x58] sm:$0xff] %vm318_vm5, %v4120_v56 }
 0x27b   : > { %v4277_v19 = vpop.f32.mrf.mxu2 }
 0x27c   : > { %4788 = vst.msk [vmem:[%s7099_s11 + $0x1c] sm:$0xf] %vm4780_vm6, %v4771_v58  ;;  %v4673_v54 = vld [vmem:[#allocation2 + $0x48] sm:$0xff] }
 0x27d   : > { %v4720_v7 = vld [vmem:[#allocation2 + $0x40] sm:$0xff]  ;;  %4329 = vst.msk [vmem:[#allocation2 + $0x50] sm:$0xff] %vm318_vm5, %v4313_v0  ;;  %v4689_v48 = vadd.f32 %v4673_v54, %v4646_v37  ;;  %v3708_v62 = vpop.f32.mrf.mxu0  ;;  %v4083_v14 = vpop.f32.mrf.mxu1 }
 0x27e   : > { %v4740_v5 = vadd.f32 %v7088_v1, %v4720_v7  ;;  %v3745_v13 = vadd.f32 %v3729_v42, %v3708_v62  ;;  %v4651_v22 = vpop.f32.mrf.mxu3 }
 0x27f   : > { %4705 = vst.msk [vmem:[#allocation2 + $0x48] sm:$0xff] %vm318_vm5, %v4689_v48  ;;  %v4105_v6 = vld [vmem:[#allocation2 + $0x60] sm:$0xff] }
 0x280   : > { %v4756_v18 = vmax.f32 %v4740_v5, 0.0  ;;  %3761 = vst.msk [vmem:[#allocation2 + $0x68] sm:$0xff] %vm318_vm5, %v3745_v13  ;;  %v4121_v2 = vadd.f32 %v4105_v6, %v4083_v14 }
 0x281   : > { %v4298_v9 = vld [vmem:[#allocation2 + $0x58] sm:$0xff] }
 0x282   : > { %v4772_v10 = vpack.c.bf16 %v4756_v18, %v4756_v18  ;;  %v4314_v11 = vadd.f32 %v4298_v9, %v4274_v52  ;;  %4137 = vst.msk [vmem:[#allocation2 + $0x60] sm:$0xff] %vm318_vm5, %v4121_v2 }
 0x283   : > { %v4279_v41 = vpop.f32.mrf.mxu2 }
 0x284   : > { %4789 = vst.msk [vmem:[%s7099_s11 + $0x20] sm:$0xf] %vm4780_vm6, %v4772_v10  ;;  %v4674_v17 = vld [vmem:[#allocation2 + $0x50] sm:$0xff] }
 0x285   : > { %4330 = vst.msk [vmem:[#allocation2 + $0x58] sm:$0xff] %vm318_vm5, %v4314_v11  ;;  %v4690_v24 = vadd.f32 %v4674_v17, %v4649_v60  ;;  %v3711_v59 = vpop.f32.mrf.mxu0  ;;  %v4085_v20 = vpop.f32.mrf.mxu1 }
 0x286   : > { %v4721_v26 = vld [vmem:[#allocation2 + $0x48] sm:$0xff]  ;;  %v3746_v29 = vadd.f32 %v3730_v16, %v3711_v59  ;;  %v4654_v27 = vpop.f32.mrf.mxu3 }
 0x287   : > { %v4741_v15 = vadd.f32 %v7088_v1, %v4721_v26  ;;  %4706 = vst.msk [vmem:[#allocation2 + $0x50] sm:$0xff] %vm318_vm5, %v4690_v24  ;;  %v4106_v32 = vld [vmem:[#allocation2 + $0x68] sm:$0xff] }
 0x288   : > { %3762 = vst.msk [vmem:[#allocation2 + $0x70] sm:$0xff] %vm318_vm5, %v3746_v29  ;;  %v4122_v8 = vadd.f32 %v4106_v32, %v4085_v20 }
 0x289   : > { %v4757_v23 = vmax.f32 %v4741_v15, 0.0  ;;  %v4299_v25 = vld [vmem:[#allocation2 + $0x60] sm:$0xff] }
 0x28a   : > { %v4315_v34 = vadd.f32 %v4299_v25, %v4277_v19  ;;  %4138 = vst.msk [vmem:[#allocation2 + $0x68] sm:$0xff] %vm318_vm5, %v4122_v8 }
 0x28b   : > { %v4773_v33 = vpack.c.bf16 %v4757_v23, %v4757_v23  ;;  %v4282_v31 = vpop.f32.mrf.mxu2 }
 0x28c   : > { %4331 = vst.msk [vmem:[#allocation2 + $0x60] sm:$0xff] %vm318_vm5, %v4315_v34  ;;  %v4675_v3 = vld [vmem:[#allocation2 + $0x58] sm:$0xff] }
 0x28d   : > { %4790 = vst.msk [vmem:[%s7099_s11 + $0x24] sm:$0xf] %vm4780_vm6, %v4773_v33  ;;  %v4691_v12 = vadd.f32 %v4675_v3, %v4651_v22  ;;  %v3713_v4 = vpop.f32.mrf.mxu0  ;;  %v4088_v50 = vpop.f32.mrf.mxu1 }
 0x28e   : > { %v4722_v44 = vld [vmem:[#allocation2 + $0x50] sm:$0xff]  ;;  %v3747_v45 = vadd.f32 %v3731_v36, %v3713_v4  ;;  %v4656_v63 = vpop.f32.mrf.mxu3 }
 0x28f   : > { %v4742_v30 = vadd.f32 %v7088_v1, %v4722_v44  ;;  %4707 = vst.msk [vmem:[#allocation2 + $0x58] sm:$0xff] %vm318_vm5, %v4691_v12  ;;  %v4107_v39 = vld [vmem:[#allocation2 + $0x70] sm:$0xff] }
 0x290   : > { %3763 = vst.msk [vmem:[#allocation2 + $0x78] sm:$0xff] %vm318_vm5, %v3747_v45  ;;  %v4123_v35 = vadd.f32 %v4107_v39, %v4088_v50 }
 0x291   : > { %v4758_v28 = vmax.f32 %v4742_v30, 0.0  ;;  %v4300_v37 = vld [vmem:[#allocation2 + $0x68] sm:$0xff] }
 0x292   : > { %v4316_v49 = vadd.f32 %v4300_v37, %v4279_v41  ;;  %4139 = vst.msk [vmem:[#allocation2 + $0x70] sm:$0xff] %vm318_vm5, %v4123_v35 }
 0x293   : > { %v4774_v51 = vpack.c.bf16 %v4758_v28, %v4758_v28  ;;  %v4676_v21 = vld [vmem:[#allocation2 + $0x60] sm:$0xff]  ;;  %v4284_v7 = vpop.f32.mrf.mxu2 }
 0x294   : > { %4332 = vst.msk [vmem:[#allocation2 + $0x68] sm:$0xff] %vm318_vm5, %v4316_v49  ;;  %v4692_v57 = vadd.f32 %v4676_v21, %v4654_v27 }
 0x295   : > { %4791 = vst.msk [vmem:[%s7099_s11 + $0x28] sm:$0xf] %vm4780_vm6, %v4774_v51  ;;  %v4090_v46 = vpop.f32.mrf.mxu1 }
 0x296   : > { %v4723_v47 = vld [vmem:[#allocation2 + $0x58] sm:$0xff]  ;;  %4708 = vst.msk [vmem:[#allocation2 + $0x60] sm:$0xff] %vm318_vm5, %v4692_v57  ;;  %v4659_v5 = vpop.f32.mrf.mxu3 }
 0x297   : > { %v4743_v55 = vadd.f32 %v7088_v1, %v4723_v47  ;;  %v4108_v43 = vld [vmem:[#allocation2 + $0x78] sm:$0xff] }
 0x298   : > { %v4124_v61 = vadd.f32 %v4108_v43, %v4090_v46 }
 0x299   : > { %v4759_v38 = vmax.f32 %v4743_v55, 0.0  ;;  %v4301_v40 = vld [vmem:[#allocation2 + $0x70] sm:$0xff] }
 0x29a   : > { %v4317_v56 = vadd.f32 %v4301_v40, %v4282_v31  ;;  %4140 = vst.msk [vmem:[#allocation2 + $0x78] sm:$0xff] %vm318_vm5, %v4124_v61 }
 0x29b   : > { %v4775_v53 = vpack.c.bf16 %v4759_v38, %v4759_v38  ;;  %v4677_v52 = vld [vmem:[#allocation2 + $0x68] sm:$0xff] }
 0x29c   : > { %4333 = vst.msk [vmem:[#allocation2 + $0x70] sm:$0xff] %vm318_vm5, %v4317_v56  ;;  %v4693_v58 = vadd.f32 %v4677_v52, %v4656_v63 }
 0x29d   : > { %4792 = vst.msk [vmem:[%s7099_s11 + $0x2c] sm:$0xf] %vm4780_vm6, %v4775_v53  ;;  %v4724_v0 = vld [vmem:[#allocation2 + $0x60] sm:$0xff] }
 0x29e   : > { %v4744_v60 = vadd.f32 %v7088_v1, %v4724_v0  ;;  %4709 = vst.msk [vmem:[#allocation2 + $0x68] sm:$0xff] %vm318_vm5, %v4693_v58  ;;  %v4661_v10 = vpop.f32.mrf.mxu3 }
 0x2a0   : > { %v4760_v54 = vmax.f32 %v4744_v60, 0.0 }
 0x2a1   : > { %v4302_v48 = vld [vmem:[#allocation2 + $0x78] sm:$0xff] }
 0x2a2   : > { %v4776_v62 = vpack.c.bf16 %v4760_v54, %v4760_v54  ;;  %v4318_v42 = vadd.f32 %v4302_v48, %v4284_v7 }
 0x2a3   : > { %v4678_v13 = vld [vmem:[#allocation2 + $0x70] sm:$0xff] }
 0x2a4   : > { %4793 = vst.msk [vmem:[%s7099_s11 + $0x30] sm:$0xf] %vm4780_vm6, %v4776_v62  ;;  %v4694_v14 = vadd.f32 %v4678_v13, %v4659_v5 }
 0x2a5   : > { %v4725_v6 = vld [vmem:[#allocation2 + $0x68] sm:$0xff]  ;;  %4334 = vst.msk [vmem:[#allocation2 + $0x78] sm:$0xff] %vm318_vm5, %v4318_v42 }
 0x2a6   : > { %v4745_v18 = vadd.f32 %v7088_v1, %v4725_v6  ;;  %4710 = vst.msk [vmem:[#allocation2 + $0x70] sm:$0xff] %vm318_vm5, %v4694_v14 }
 0x2a8   : > { %v4761_v2 = vmax.f32 %v4745_v18, 0.0 }
 0x2aa   : > { %v4777_v9 = vpack.c.bf16 %v4761_v2, %v4761_v2 }
 0x2ac   : > { %4794 = vst.msk [vmem:[%s7099_s11 + $0x34] sm:$0xf] %vm4780_vm6, %v4777_v9  ;;  %v4679_v11 = vld [vmem:[#allocation2 + $0x78] sm:$0xff] }
 0x2ad   : > { %v4726_v19 = vld [vmem:[#allocation2 + $0x70] sm:$0xff]  ;;  %v4695_v17 = vadd.f32 %v4679_v11, %v4661_v10 }
 0x2ae   : > { %v4746_v22 = vadd.f32 %v7088_v1, %v4726_v19 }
 0x2af   : > { %4711 = vst.msk [vmem:[#allocation2 + $0x78] sm:$0xff] %vm318_vm5, %v4695_v17 }
 0x2b0   : > { %v4762_v24 = vmax.f32 %v4746_v22, 0.0 }
 0x2b2   : > { %v4778_v59 = vpack.c.bf16 %v4762_v24, %v4762_v24 }
 0x2b4   : > { %4795 = vst.msk [vmem:[%s7099_s11 + $0x38] sm:$0xf] %vm4780_vm6, %v4778_v59 }
 0x2b6   : > { %v4727_v16 = vld [vmem:[#allocation2 + $0x78] sm:$0xff] }
 0x2b7   : > { %v4747_v26 = vadd.f32 %v7088_v1, %v4727_v16 }
 0x2b9   : > { %v4763_v29 = vmax.f32 %v4747_v26, 0.0 }
 0x2bb   : > { %v4779_v15 = vpack.c.bf16 %v4763_v29, %v4763_v29 }
 0x2bd   : > { %4796 = vst.msk [vmem:[%s7099_s11 + $0x3c] sm:$0xf] %vm4780_vm6, %v4779_v15 }
 0x2be PF: > { %s13_s12 = sadd.s32 1, %s5732_s12  }
 0x2bf   : > { %p10_p4 = scmp.ge.s32.totalorder %s13_s12, 4  }
 0x2c1   :  { %12 = sbr.rel (!%p10_p4) target bundleno = 1 (0x1), region = 84 }

// kernel: ppo_policy_forward.5
= control target key start
LH: loop header
LB: loop body
LE: loop exit
PB: predicated region body
PF: predicated region fallthrough
CT: control target
= control target key end

     0   :  { %s1503_s12 = smov 0   ;;  %s1781_s0 = inlined_call_operand.vmem [shape: bf16[2,5,2,9,64], index: 0, kind: input, shape index: {}]   ;;  %s1782_s1 = inlined_call_operand.vmem [shape: bf16[4,2,64,64], index: 1, kind: input, shape index: {}]   ;;  %s1783_s2 = inlined_call_operand.vmem [shape: f32[1,64], index: 2, kind: input, shape index: {}]   ;;  %s1784_s3 = inlined_call_operand.vmem [shape: bf16[2,32,64], index: 3, kind: output, shape index: {}]  }
   0x1 LB: > { %s1146_s13 = sadd.s32 4294967295, %s1481_s12   ;;  %p1150_p0 = scmp.ge.s32.totalorder %s1481_s12, 1  ;;  %s1481_s12 = sphi %s1503_s12, %s13_s12  }
   0x2   : > { %p137_p1 = scmp.lt.s32.totalorder %s1481_s12, 3 }
   0x4   : > { %p138_p2 = pnand %p1150_p0, %p137_p1 }
   0x5   : > { %p161_p3 = scmp.lt.s32.totalorder (!%p138_p2), %s1146_s13, 1 }
   0x6   : > { %141 = sbr.rel (%p138_p2) target bundleno = 263 (0x107), region = 32 }
   0xb   : > { %v1430_v0 = vld [vmem:[%s1782_s1 + $0x18] sm:$0xff]  ;;  %v1429_v3 = vld [vmem:[%s1782_s1 + $0x10] sm:$0xff]  ;;  %s1788_s13 = smov (!%p161_p3, %s1146_s13), 1  ;;  %v1428_v7 = vld [vmem:[%s1782_s1 + $0x8] sm:$0xff]  ;;  %vm256_vm0 = vsmask.f32 3328 }
   0xc   : > { %v1434_v1 = vld [vmem:[%s1782_s1 + $0x38] sm:$0xff]  ;;  %229 = vmatpush.bf16.msra.mxu0 %v1430_v0  ;;  %v1433_v4 = vld [vmem:[%s1782_s1 + $0x30] sm:$0xff]  ;;  %s1465_s28 = smul.u32 80, %s1788_s13  ;;  %v1432_v9 = vld [vmem:[%s1782_s1 + $0x28] sm:$0xff]  ;;  %vm218_vm1 = vcmask 523264   ;;  %s1424_s7 = sshll.u32 %s1788_s13, 4 }
   0xd   : > { %v1440_v2 = vld [vmem:[%s1782_s1 + $0x58] sm:$0xff]  ;;  %364 = vmatpush.bf16.msra.mxu1 %v1434_v1  ;;  %v1439_v5 = vld [vmem:[%s1782_s1 + $0x50] sm:$0xff]  ;;  %v1438_v10 = vld [vmem:[%s1782_s1 + $0x48] sm:$0xff]  ;;  %vm257_vm2 = vsmask.f32 7440  ;;  %s170_s10 = scalar_lea.vmem %s1784_s3, %s1424_s7  ;;  %vm1086_vm4 = vcmask 519168  }
   0xe   : > { %449 = vmatpush.bf16.msra.mxu2 %v1440_v2  ;;  %v1444_v6 = vld [vmem:[%s1782_s1 + $0x78] sm:$0xff]  ;;  %v1443_v8 = vld [vmem:[%s1782_s1 + $0x70] sm:$0xff]  ;;  %s1550_s14 = scalar_lea.vmem %s1781_s0, %s1465_s28  ;;  %v1442_v14 = vld [vmem:[%s1782_s1 + $0x68] sm:$0xff] }
   0xf   : > { %589 = vmatpush.bf16.msra.mxu3 %v1444_v6  ;;  %v1553_v11 = vld [vmem:[%s1550_s14] sm:$0xf]  ;;  %v1556_v12 = vld [vmem:[%s1550_s14 + $0xc] sm:$0xf0]  ;;  %v249_v17 = vld [vmem:[%s1550_s14 + $0x4] sm:$0x1] }
  0x10   : > { %230 = vmatpush.bf16.msra.mxu0 %v1429_v3  ;;  %v248_v13 = vld [vmem:[%s1550_s14] sm:$0xf]  ;;  %v250_v18 = vld [vmem:[%s1550_s14 + $0x10] sm:$0xf]  ;;  %v251_v19 = vld [vmem:[%s1550_s14 + $0x14] sm:$0x1]  ;;  %v1157_v37 = vor.u32 %v1556_v12, %v1553_v11 }
  0x11   : > { %365 = vmatpush.bf16.msra.mxu1 %v1433_v4  ;;  %v1427_v15 = vld [vmem:[%s1782_s1] sm:$0xff]  ;;  %v260_v21 = vshrl.u32 %v248_v13, 16  ;;  %v263_v22 = vshll.u32 %v248_v13, 16  ;;  %v269_v23 = vshll.u32 %v249_v17, 16  ;;  %v274_v24 = vshrl.u32 %v250_v18, 16  ;;  %v1450_v26 = vld [vmem:[%s1782_s1 + $0x98] sm:$0xff]  ;;  %vm1596_vm3 = vmor %vm256_vm0, %vm257_vm2 }
  0x12   : > { %450 = vmatpush.bf16.msra.mxu2 %v1439_v5  ;;  %v1431_v16 = vld [vmem:[%s1782_s1 + $0x20] sm:$0xff]  ;;  %v1220_v25 = vld [vmem:[%s1550_s14 + $0x8] sm:$0xf]  ;;  %v277_v27 = vshll.u32 %v250_v18, 16  ;;  %v283_v28 = vshll.u32 %v251_v19, 16  ;;  %v1454_v31 = vld [vmem:[%s1782_s1 + $0xb8] sm:$0xff] }
  0x13   : > { %v1437_v20 = vld [vmem:[%s1782_s1 + $0x40] sm:$0xff]  ;;  %590 = vmatpush.bf16.msra.mxu3 %v1443_v8  ;;  %v1435_v29 = vld [vmem:[%s1550_s14 + $0x14] sm:$0xf0]  ;;  %v1244_v30 = vld [vmem:[%s1550_s14 + $0x8] sm:$0xf]  ;;  %v262_v32 = vrot.slane %v260_v21, 4 }
  0x14   : > { %231 = vmatpush.bf16.msra.mxu0 %v1428_v7  ;;  %v265_v33 = vrot.slane %v263_v22, 5  ;;  %v271_v34 = vrot.slane %v269_v23, 5  ;;  %v276_v35 = vrot.slane %v274_v24, 4  ;;  %v1245_v36 = vld [vmem:[%s1550_s14 + $0xc] sm:$0x1]  ;;  %v279_v38 = vrot.slane %v277_v27, 5 }
  0x15   : > { %366 = vmatpush.bf16.msra.mxu1 %v1432_v9  ;;  %v285_v39 = vrot.slane %v283_v28, 5  ;;  %v1221_v40 = vor.u32 %v1435_v29, %v1220_v25  ;;  %v1246_v41 = vld [vmem:[%s1550_s14 + $0x18] sm:$0xf]  ;;  %v1247_v42 = vld [vmem:[%s1550_s14 + $0x1c] sm:$0x1]  ;;  %v1441_v44 = vld [vmem:[%s1782_s1 + $0x60] sm:$0xff] }
  0x16   : > { %451 = vmatpush.bf16.msra.mxu2 %v1438_v10  ;;  %v266_v43 = vor.u32 %v265_v33, %v262_v32  ;;  %v485_v45 = vshrl.u32 %v1244_v30, 16  ;;  %v488_v46 = vshll.u32 %v1244_v30, 16  ;;  %v494_v47 = vshll.u32 %v1245_v36, 16  ;;  %v1460_v48 = vld [vmem:[%s1782_s1 + $0xd8] sm:$0xff]  ;;  %v1449_v57 = vld [vmem:[%s1782_s1 + $0x90] sm:$0xff] }
  0x17   : > { %591 = vmatpush.bf16.msra.mxu3 %v1442_v14  ;;  %v280_v50 = vor.u32 %v279_v38, %v276_v35  ;;  %v499_v51 = vshrl.u32 %v1246_v41, 16  ;;  %v502_v52 = vshll.u32 %v1246_v41, 16  ;;  %v508_v53 = vshll.u32 %v1247_v42, 16  ;;  %v252_v58 = vld [vmem:[%s1550_s14 + $0x20] sm:$0xf]  ;;  %v1453_v5 = vld [vmem:[%s1782_s1 + $0xb0] sm:$0xff] }
  0x18   : > { %232 = vmatpush.bf16.msra.mxu0 %v1427_v15  ;;  %v267_v54 = vrot.slane %v266_v43, 4  ;;  %v487_v55 = vrot.slane %v485_v45, 4  ;;  %v490_v56 = vrot.slane %v488_v46, 5  ;;  %v496_v60 = vrot.slane %v494_v47, 5  ;;  %v253_v63 = vld [vmem:[%s1550_s14 + $0x24] sm:$0x1] }
  0x19   : > { %367 = vmatpush.bf16.msra.mxu1 %v1431_v16  ;;  %v281_v59 = vrot.slane %v280_v50, 4  ;;  %v501_v61 = vrot.slane %v499_v51, 4  ;;  %v504_v62 = vrot.slane %v502_v52, 5  ;;  %v510_v2 = vrot.slane %v508_v53, 5  ;;  %v254_v3 = vld [vmem:[%s1550_s14 + $0x30] sm:$0xf] }
  0x1a   : > { %452 = vmatpush.bf16.msra.mxu2 %v1437_v20  ;;  %v272_v0 = vsel %vm1596_vm3, %v267_v54, %v271_v34  ;;  %v491_v1 = vor.u32 %v490_v56, %v487_v55  ;;  %v288_v4 = vshrl.u32 %v252_v58, 16  ;;  %v255_v9 = vld [vmem:[%s1550_s14 + $0x34] sm:$0x1]  ;;  %v291_v10 = vshll.u32 %v252_v58, 16  ;;  %v1448_v16 = vld [vmem:[%s1782_s1 + $0x88] sm:$0xff]  ;;  %v1447_v35 = vld [vmem:[%s1782_s1 + $0x80] sm:$0xff] }
  0x1b   : > { %1178 = vmatmul.msk.bf16.vlgmr.msra.gmra.mxu0 %vm218_vm1, %v1157_v37  ;;  %592 = vmatpush.bf16.msra.mxu3 %v1441_v44  ;;  %v286_v6 = vsel %vm1596_vm3, %v281_v59, %v285_v39  ;;  %v324_v7 = vunpack.c.l.b16 %v272_v0  ;;  %v505_v8 = vor.u32 %v504_v62, %v501_v61  ;;  %v1459_v11 = vld [vmem:[%s1782_s1 + $0xd0] sm:$0xff]  ;;  %v297_v15 = vshll.u32 %v253_v63, 16  ;;  %v1625_v23 = vld [vmem:[%s1550_s14 + $0x20] sm:$0xf]  ;;  %v1248_v27 = vld [vmem:[%s1550_s14 + $0x28] sm:$0xf] }
  0x1c   : > { %674 = vmatpush.bf16.msrb.mxu0 %v1450_v26  ;;  %v325_v12 = vunpack.c.l.b16 %v286_v6  ;;  %v492_v13 = vrot.slane %v491_v1, 4  ;;  %v290_v14 = vrot.slane %v288_v4, 4  ;;  %v293_v18 = vrot.slane %v291_v10, 5  ;;  %v1628_v24 = vld [vmem:[%s1550_s14 + $0x2c] sm:$0xf0]  ;;  %v1464_v37 = vld [vmem:[%s1782_s1 + $0xf8] sm:$0xff] }
  0x1d   : > { %814 = vmatpush.bf16.msrb.mxu1 %v1454_v31  ;;  %1242 = vmatmul.msk.bf16.vlgmr.msra.gmra.mxu2 %vm218_vm1, %v1221_v40  ;;  %v506_v17 = vrot.slane %v505_v8, 4  ;;  %v302_v19 = vshrl.u32 %v254_v3, 16  ;;  %v305_v20 = vshll.u32 %v254_v3, 16  ;;  %v299_v25 = vrot.slane %v297_v15, 5  ;;  %v1249_v28 = vld [vmem:[%s1550_s14 + $0x2c] sm:$0x1] }
  0x1e   : > { %899 = vmatpush.bf16.msrb.mxu2 %v1460_v48  ;;  %v328_v21 = vpack.c.b16 %v325_v12, %v324_v7  ;;  %v497_v22 = vsel %vm1596_vm3, %v492_v13, %v496_v60  ;;  %v311_v26 = vshll.u32 %v255_v9, 16  ;;  %v294_v31 = vor.u32 %v293_v18, %v290_v14  ;;  %v1635_v33 = vld [vmem:[%s1550_s14 + $0x28] sm:$0xf]  ;;  %v1638_v34 = vld [vmem:[%s1550_s14 + $0x34] sm:$0xf0]  ;;  %v1463_v48 = vld [vmem:[%s1782_s1 + $0xf0] sm:$0xff] }
  0x1f   : > { %v511_v29 = vsel %vm1596_vm3, %v506_v17, %v510_v2  ;;  %v549_v30 = vunpack.c.l.b16 %v497_v22  ;;  %v304_v32 = vrot.slane %v302_v19, 4  ;;  %v1250_v36 = vld [vmem:[%s1550_s14 + $0x38] sm:$0xf]  ;;  %v307_v39 = vrot.slane %v305_v20, 5  ;;  %v1251_v41 = vld [vmem:[%s1550_s14 + $0x3c] sm:$0x1]  ;;  %1039 = vmatpush.bf16.msrb.mxu3 %v1464_v37 }
  0x20   : > { %675 = vmatpush.bf16.msrb.mxu0 %v1449_v57  ;;  %1204 = vmatmul.msk.bf16.vlgmr.msra.gmra.mxu1 %vm218_vm1, %v328_v21  ;;  %v550_v38 = vunpack.c.l.b16 %v511_v29  ;;  %v313_v40 = vrot.slane %v311_v26, 5  ;;  %v1452_v42 = vld [vmem:[%s1782_s1 + $0xa8] sm:$0xff]  ;;  %v295_v44 = vrot.slane %v294_v31, 4  ;;  %v513_v45 = vshrl.u32 %v1248_v27, 16  ;;  %v1451_v54 = vld [vmem:[%s1782_s1 + $0xa0] sm:$0xff] }
  0x21   : > { %815 = vmatpush.bf16.msrb.mxu1 %v1453_v5  ;;  %v1458_v43 = vld [vmem:[%s1782_s1 + $0xc8] sm:$0xff]  ;;  %v516_v46 = vshll.u32 %v1248_v27, 16  ;;  %v522_v47 = vshll.u32 %v1249_v28, 16  ;;  %v308_v51 = vor.u32 %v307_v39, %v304_v32  ;;  %v527_v52 = vshrl.u32 %v1250_v36, 16  ;;  %v1316_v55 = vld [vmem:[%s1550_s14 + $0x10] sm:$0xf] }
  0x22   : > { %900 = vmatpush.bf16.msrb.mxu2 %v1459_v11  ;;  %v553_v50 = vpack.c.b16 %v550_v38, %v549_v30  ;;  %v530_v53 = vshll.u32 %v1250_v36, 16  ;;  %v1457_v56 = vld [vmem:[%s1782_s1 + $0xc0] sm:$0xff]  ;;  %v1161_v57 = vor.u32 %v1628_v24, %v1625_v23  ;;  %v300_v58 = vsel %vm1596_vm3, %v295_v44, %v299_v25  ;;  %v1462_v6 = vld [vmem:[%s1782_s1 + $0xe8] sm:$0xff]  ;;  %v1317_v10 = vld [vmem:[%s1550_s14 + $0x14] sm:$0x1] }
  0x23   : > { %v515_v59 = vrot.slane %v513_v45, 4  ;;  %v518_v60 = vrot.slane %v516_v46, 5  ;;  %v309_v61 = vrot.slane %v308_v51, 4  ;;  %v1225_v62 = vor.u32 %v1638_v34, %v1635_v33  ;;  %1040 = vmatpush.bf16.msrb.mxu3 %v1463_v48  ;;  %v1318_v4 = vld [vmem:[%s1550_s14 + $0x20] sm:$0xf] }
  0x24   : > { %676 = vmatpush.bf16.msrb.mxu0 %v1448_v16  ;;  %1276 = vmatmul.msk.bf16.vlgmr.msra.gmra.mxu3 %vm218_vm1, %v553_v50  ;;  %v529_v63 = vrot.slane %v527_v52, 4  ;;  %v532_v0 = vrot.slane %v530_v53, 5  ;;  %v524_v2 = vrot.slane %v522_v47, 5  ;;  %v536_v3 = vshll.u32 %v1251_v41, 16  ;;  %v1319_v17 = vld [vmem:[%s1550_s14 + $0x24] sm:$0x1] }
  0x25   : > { %816 = vmatpush.bf16.msrb.mxu1 %v1452_v42  ;;  %v519_v1 = vor.u32 %v518_v60, %v515_v59  ;;  %v710_v5 = vshrl.u32 %v1316_v55, 16  ;;  %v314_v7 = vsel %vm1596_vm3, %v309_v61, %v313_v40  ;;  %v326_v8 = vunpack.c.l.b16 %v300_v58  ;;  %v1388_v23 = vld [vmem:[%s1550_s14 + $0x18] sm:$0xf]  ;;  %v1461_v27 = vld [vmem:[%s1782_s1 + $0xe0] sm:$0xff]  ;;  %v1390_v28 = vld [vmem:[%s1550_s14 + $0x28] sm:$0xf] }
  0x26   : > { %901 = vmatpush.bf16.msrb.mxu2 %v1458_v43  ;;  %v533_v9 = vor.u32 %v532_v0, %v529_v63  ;;  %v713_v11 = vshll.u32 %v1316_v55, 16  ;;  %v327_v12 = vunpack.c.l.b16 %v314_v7  ;;  %v538_v14 = vrot.slane %v536_v3, 5  ;;  %v1389_v32 = vld [vmem:[%s1550_s14 + $0x1c] sm:$0x1]  ;;  %v1391_v40 = vld [vmem:[%s1550_s14 + $0x2c] sm:$0x1] }
  0x27   : > { %v520_v13 = vrot.slane %v519_v1, 4  ;;  %v712_v15 = vrot.slane %v710_v5, 4  ;;  %v724_v19 = vshrl.u32 %v1318_v4, 16  ;;  %v719_v21 = vshll.u32 %v1317_v10, 16  ;;  %1041 = vmatpush.bf16.msrb.mxu3 %v1462_v6  ;;  %v1322_v55 = vld [vmem:[%s1550_s14 + $0x40] sm:$0xf] }
  0x28   : > { %677 = vmatpush.bf16.msrb.mxu0 %v1447_v35  ;;  %v534_v16 = vrot.slane %v533_v9, 4  ;;  %v715_v18 = vrot.slane %v713_v11, 5  ;;  %v727_v22 = vshll.u32 %v1318_v4, 16  ;;  %v329_v29 = vpack.c.b16 %v327_v12, %v326_v8  ;;  %v1364_v59 = vld [vmem:[%s1550_s14 + $0x18] sm:$0xf] }
  0x29   : > { %817 = vmatpush.bf16.msrb.mxu1 %v1451_v54  ;;  %v525_v20 = vsel %vm1596_vm3, %v520_v13, %v524_v2  ;;  %v726_v26 = vrot.slane %v724_v19, 4  ;;  %v733_v31 = vshll.u32 %v1319_v17, 16  ;;  %v935_v35 = vshrl.u32 %v1388_v23, 16  ;;  %v1320_v54 = vld [vmem:[%s1550_s14 + $0x30] sm:$0xf] }
  0x2a   : > { %902 = vmatpush.bf16.msrb.mxu2 %v1457_v56  ;;  %v539_v24 = vsel %vm1596_vm3, %v534_v16, %v538_v14  ;;  %v716_v25 = vor.u32 %v715_v18, %v712_v15  ;;  %v729_v30 = vrot.slane %v727_v22, 5  ;;  %v551_v33 = vunpack.c.l.b16 %v525_v20  ;;  %v1292_v56 = vld [vmem:[%s1550_s14 + $0x10] sm:$0xf]  ;;  %v1455_v63 = vld [vmem:[%s1550_s14 + $0x24] sm:$0xf0] }
  0x2b   : > { %1179 = vmatmul.msk.bf16.gmra.mxu0 %vm218_vm1, %v1161_v57  ;;  %v552_v34 = vunpack.c.l.b16 %v539_v24  ;;  %v938_v36 = vshll.u32 %v1388_v23, 16  ;;  %v721_v38 = vrot.slane %v719_v21, 5  ;;  %1042 = vmatpush.bf16.msrb.mxu3 %v1461_v27  ;;  %v949_v41 = vshrl.u32 %v1390_v28, 16  ;;  %v1445_v57 = vld [vmem:[%s1550_s14 + $0x1c] sm:$0xf0] }
  0x2c   : > { %v717_v37 = vrot.slane %v716_v25, 4  ;;  %v730_v39 = vor.u32 %v729_v30, %v726_v26  ;;  %v937_v42 = vrot.slane %v935_v35, 4  ;;  %v944_v44 = vshll.u32 %v1389_v32, 16  ;;  %v1392_v9 = vld [vmem:[%s1550_s14 + $0x38] sm:$0xf] }
  0x2d   : > { %1243 = vmatmul.msk.bf16.gmra.mxu2 %vm218_vm1, %v1225_v62  ;;  %v940_v43 = vrot.slane %v938_v36, 5  ;;  %v952_v45 = vshll.u32 %v1390_v28, 16  ;;  %v735_v47 = vrot.slane %v733_v31, 5  ;;  %v951_v48 = vrot.slane %v949_v41, 4  ;;  %v1394_v10 = vld [vmem:[%s1550_s14 + $0x48] sm:$0xf] }
  0x2e   : > { %v731_v46 = vrot.slane %v730_v39, 4  ;;  %v554_v50 = vpack.c.b16 %v552_v34, %v551_v33  ;;  %v958_v53 = vshll.u32 %v1391_v40, 16  ;;  %v722_v58 = vsel %vm1596_vm3, %v717_v37, %v721_v38  ;;  %v1321_v17 = vld [vmem:[%s1550_s14 + $0x34] sm:$0x1]  ;;  %v1323_v20 = vld [vmem:[%s1550_s14 + $0x44] sm:$0x1] }
  0x2f   : > { %v941_v51 = vor.u32 %v940_v43, %v937_v42  ;;  %v954_v52 = vrot.slane %v952_v45, 5  ;;  %v946_v60 = vrot.slane %v944_v44, 5  ;;  %v738_v0 = vshrl.u32 %v1320_v54, 16  ;;  %v1393_v32 = vld [vmem:[%s1550_s14 + $0x3c] sm:$0x1] }
  0x30   : > { %1205 = vmatmul.msk.bf16.gmra.mxu1 %vm218_vm1, %v329_v29  ;;  %v736_v62 = vsel %vm1596_vm3, %v731_v46, %v735_v47  ;;  %v741_v1 = vshll.u32 %v1320_v54, 16  ;;  %v752_v2 = vshrl.u32 %v1322_v55, 16  ;;  %v960_v5 = vrot.slane %v958_v53, 5  ;;  %v1395_v37 = vld [vmem:[%s1550_s14 + $0x4c] sm:$0x1] }
  0x31   : > { %v955_v61 = vor.u32 %v954_v52, %v951_v48  ;;  %v942_v3 = vrot.slane %v941_v51, 4  ;;  %v755_v6 = vshll.u32 %v1322_v55, 16  ;;  %v1293_v7 = vor.u32 %v1445_v57, %v1292_v56  ;;  %v1296_v47 = vld [vmem:[%s1550_s14 + $0x30] sm:$0xf]  ;;  %v1446_v48 = vld [vmem:[%s1550_s14 + $0x3c] sm:$0xf0] }
  0x32   : > { %v1365_v8 = vor.u32 %v1455_v63, %v1364_v59  ;;  %v774_v11 = vunpack.c.l.b16 %v722_v58  ;;  %v775_v12 = vunpack.c.l.b16 %v736_v62  ;;  %v740_v13 = vrot.slane %v738_v0, 4  ;;  %v1368_v51 = vld [vmem:[%s1550_s14 + $0x38] sm:$0xf]  ;;  %v1456_v52 = vld [vmem:[%s1550_s14 + $0x44] sm:$0xf0] }
  0x33   : > { %v956_v4 = vrot.slane %v955_v61, 4  ;;  %v743_v14 = vrot.slane %v741_v1, 5  ;;  %v947_v15 = vsel %vm1596_vm3, %v942_v3, %v946_v60  ;;  %v754_v18 = vrot.slane %v752_v2, 4 }
  0x34   : > { %1277 = vmatmul.msk.bf16.gmra.mxu3 %vm218_vm1, %v554_v50  ;;  %v757_v19 = vrot.slane %v755_v6, 5  ;;  %v963_v21 = vshrl.u32 %v1392_v9, 16  ;;  %v966_v22 = vshll.u32 %v1392_v9, 16  ;;  %v977_v23 = vshrl.u32 %v1394_v10, 16 }
  0x35   : > { %v961_v16 = vsel %vm1596_vm3, %v956_v4, %v960_v5  ;;  %v980_v24 = vshll.u32 %v1394_v10, 16  ;;  %v778_v25 = vpack.c.b16 %v775_v12, %v774_v11  ;;  %v999_v26 = vunpack.c.l.b16 %v947_v15 }
  0x36   : > { %v747_v27 = vshll.u32 %v1321_v17, 16  ;;  %v1000_v28 = vunpack.c.l.b16 %v961_v16  ;;  %v744_v29 = vor.u32 %v743_v14, %v740_v13  ;;  %v758_v30 = vor.u32 %v757_v19, %v754_v18 }
  0x37   : > { %v761_v31 = vshll.u32 %v1323_v20, 16  ;;  %v965_v33 = vrot.slane %v963_v21, 4  ;;  %v968_v34 = vrot.slane %v966_v22, 5  ;;  %v979_v35 = vrot.slane %v977_v23, 4 }
  0x38   : > { %v982_v36 = vrot.slane %v980_v24, 5  ;;  %v749_v38 = vrot.slane %v747_v27, 5  ;;  %v1003_v39 = vpack.c.b16 %v1000_v28, %v999_v26  ;;  %v745_v40 = vrot.slane %v744_v29, 4 }
  0x39   : > { %v763_v41 = vrot.slane %v761_v31, 5  ;;  %v972_v42 = vshll.u32 %v1393_v32, 16  ;;  %v759_v43 = vrot.slane %v758_v30, 4  ;;  %v969_v44 = vor.u32 %v968_v34, %v965_v33 }
  0x3a   : > { %v983_v45 = vor.u32 %v982_v36, %v979_v35  ;;  %v986_v46 = vshll.u32 %v1395_v37, 16  ;;  %v750_v50 = vsel %vm1596_vm3, %v745_v40, %v749_v38  ;;  %v1297_v58 = vor.u32 %v1446_v48, %v1296_v47 }
  0x3b   : > { %1314 = vmatmul.msk.bf16.vlgmr.msrb.gmra.mxu0 %vm218_vm1, %v1293_v7  ;;  %v974_v53 = vrot.slane %v972_v42, 5  ;;  %v764_v54 = vsel %vm1596_vm3, %v759_v43, %v763_v41  ;;  %v970_v55 = vrot.slane %v969_v44, 4  ;;  %v1369_v59 = vor.u32 %v1456_v52, %v1368_v51 }
  0x3c   : > { %v984_v56 = vrot.slane %v983_v45, 4  ;;  %v988_v57 = vrot.slane %v986_v46, 5  ;;  %v776_v60 = vunpack.c.l.b16 %v750_v50  ;;  %v777_v61 = vunpack.c.l.b16 %v764_v54 }
  0x3d   : > { %1386 = vmatmul.msk.bf16.vlgmr.msrb.gmra.mxu2 %vm218_vm1, %v1365_v8  ;;  %v975_v62 = vsel %vm1596_vm3, %v970_v55, %v974_v53 }
  0x3e   : > { %v989_v63 = vsel %vm1596_vm3, %v984_v56, %v988_v57  ;;  %v779_v0 = vpack.c.b16 %v777_v61, %v776_v60  ;;  %v1001_v1 = vunpack.c.l.b16 %v975_v62 }
  0x3f   : > { %v1002_v2 = vunpack.c.l.b16 %v989_v63 }
  0x40   : > { %1348 = vmatmul.msk.bf16.vlgmr.msrb.gmra.mxu1 %vm218_vm1, %v778_v25 }
  0x41   : > { %v1004_v3 = vpack.c.b16 %v1002_v2, %v1001_v1 }
  0x44   : > { %1420 = vmatmul.msk.bf16.vlgmr.msrb.gmra.mxu3 %vm218_vm1, %v1003_v39 }
  0x4b   : > { %1315 = vmatmul.msk.bf16.gmra.mxu0 %vm218_vm1, %v1297_v58 }
  0x4d   : > { %1387 = vmatmul.msk.bf16.gmra.mxu2 %vm218_vm1, %v1369_v59 }
  0x50   : > { %1349 = vmatmul.msk.bf16.gmra.mxu1 %vm218_vm1, %v779_v0 }
  0x54   : > { %1421 = vmatmul.msk.bf16.gmra.mxu3 %vm218_vm1, %v1004_v3 }
  0x98   : > { %v234_v4 = vpop.f32.mrf.mxu0 }
  0x99   : > { %244 = vst.msk [vmem:[#allocation2] sm:$0xff] %vm218_vm1, %v234_v4 }
  0x9d   : > { %v369_v5 = vpop.f32.mrf.mxu1 }
  0xa0   : > { %v379_v6 = vld [vmem:[#allocation2] sm:$0xff]  ;;  %v236_v7 = vpop.f32.mrf.mxu0  ;;  %v454_v8 = vpop.f32.mrf.mxu2 }
  0xa1   : > { %v383_v49 = vadd.f32 %v379_v6, %v369_v5  ;;  %245 = vst.msk [vmem:[#allocation2 + $0x8] sm:$0xff] %vm218_vm1, %v236_v7 }
  0xa3   : > { %387 = vst.msk [vmem:[#allocation2] sm:$0xff] %vm218_vm1, %v383_v49 }
  0xa5   : > { %v371_v9 = vpop.f32.mrf.mxu1 }
  0xa7   : > { %v594_v16 = vpop.f32.mrf.mxu3 }
  0xa8   : > { %v380_v10 = vld [vmem:[#allocation2 + $0x8] sm:$0xff]  ;;  %v239_v11 = vpop.f32.mrf.mxu0  ;;  %v456_v15 = vpop.f32.mrf.mxu2 }
  0xa9   : > { %v384_v12 = vadd.f32 %v380_v10, %v371_v9  ;;  %246 = vst.msk [vmem:[#allocation2 + $0x10] sm:$0xff] %vm218_vm1, %v239_v11 }
  0xaa   : > { %v464_v13 = vld [vmem:[#allocation2] sm:$0xff] }
  0xab   : > { %v468_v14 = vadd.f32 %v464_v13, %v454_v8  ;;  %388 = vst.msk [vmem:[#allocation2 + $0x8] sm:$0xff] %vm218_vm1, %v384_v12 }
  0xad   : > { %472 = vst.msk [vmem:[#allocation2] sm:$0xff] %vm218_vm1, %v468_v14  ;;  %v374_v17 = vpop.f32.mrf.mxu1 }
  0xaf   : > { %v596_v26 = vpop.f32.mrf.mxu3 }
  0xb0   : > { %v381_v18 = vld [vmem:[#allocation2 + $0x10] sm:$0xff]  ;;  %v241_v19 = vpop.f32.mrf.mxu0  ;;  %v459_v25 = vpop.f32.mrf.mxu2 }
  0xb1   : > { %v385_v20 = vadd.f32 %v381_v18, %v374_v17  ;;  %247 = vst.msk [vmem:[#allocation2 + $0x18] sm:$0xff] %vm218_vm1, %v241_v19 }
  0xb2   : > { %v465_v21 = vld [vmem:[#allocation2 + $0x8] sm:$0xff] }
  0xb3   : > { %v469_v22 = vadd.f32 %v465_v21, %v456_v15  ;;  %389 = vst.msk [vmem:[#allocation2 + $0x10] sm:$0xff] %vm218_vm1, %v385_v20  ;;  %v1474_v15 = vld [vmem:[%s1783_s2] ss:$0 sm:$0xff] }
  0xb4   : > { %v604_v23 = vld [vmem:[#allocation2] sm:$0xff] }
  0xb5   : > { %473 = vst.msk [vmem:[#allocation2 + $0x8] sm:$0xff] %vm218_vm1, %v469_v22  ;;  %v608_v24 = vadd.f32 %v604_v23, %v594_v16  ;;  %v376_v27 = vpop.f32.mrf.mxu1 }
  0xb7   : > { %612 = vst.msk [vmem:[#allocation2] sm:$0xff] %vm218_vm1, %v608_v24  ;;  %v599_v38 = vpop.f32.mrf.mxu3 }
  0xb8   : > { %v382_v28 = vld [vmem:[#allocation2 + $0x18] sm:$0xff]  ;;  %v679_v29 = vpop.f32.mrf.mxu0  ;;  %v461_v37 = vpop.f32.mrf.mxu2 }
  0xb9   : > { %v386_v30 = vadd.f32 %v382_v28, %v376_v27 }
  0xba   : > { %v466_v31 = vld [vmem:[#allocation2 + $0x10] sm:$0xff] }
  0xbb   : > { %v470_v32 = vadd.f32 %v466_v31, %v459_v25  ;;  %390 = vst.msk [vmem:[#allocation2 + $0x18] sm:$0xff] %vm218_vm1, %v386_v30 }
  0xbc   : > { %v605_v33 = vld [vmem:[#allocation2 + $0x8] sm:$0xff] }
  0xbd   : > { %474 = vst.msk [vmem:[#allocation2 + $0x10] sm:$0xff] %vm218_vm1, %v470_v32  ;;  %v609_v34 = vadd.f32 %v605_v33, %v596_v26  ;;  %v819_v41 = vpop.f32.mrf.mxu1 }
  0xbe   : > { %v689_v35 = vld [vmem:[#allocation2] sm:$0xff] }
  0xbf   : > { %613 = vst.msk [vmem:[#allocation2 + $0x8] sm:$0xff] %vm218_vm1, %v609_v34  ;;  %v693_v36 = vadd.f32 %v689_v35, %v679_v29  ;;  %v601_v50 = vpop.f32.mrf.mxu3 }
  0xc0   : > { %v681_v40 = vpop.f32.mrf.mxu0  ;;  %v904_v51 = vpop.f32.mrf.mxu2 }
  0xc1   : > { %697 = vst.msk [vmem:[#allocation2] sm:$0xff] %vm218_vm1, %v693_v36 }
  0xc2   : > { %v467_v39 = vld [vmem:[#allocation2 + $0x18] sm:$0xff] }
  0xc3   : > { %v471_v42 = vadd.f32 %v467_v39, %v461_v37 }
  0xc4   : > { %v606_v43 = vld [vmem:[#allocation2 + $0x10] sm:$0xff] }
  0xc5   : > { %475 = vst.msk [vmem:[#allocation2 + $0x18] sm:$0xff] %vm218_vm1, %v471_v42  ;;  %v610_v44 = vadd.f32 %v606_v43, %v599_v38  ;;  %v821_v54 = vpop.f32.mrf.mxu1 }
  0xc6   : > { %v690_v45 = vld [vmem:[#allocation2 + $0x8] sm:$0xff] }
  0xc7   : > { %614 = vst.msk [vmem:[#allocation2 + $0x10] sm:$0xff] %vm218_vm1, %v610_v44  ;;  %v694_v46 = vadd.f32 %v690_v45, %v681_v40  ;;  %v1044_v3 = vpop.f32.mrf.mxu3 }
  0xc8   : > { %v829_v47 = vld [vmem:[#allocation2] sm:$0xff]  ;;  %v684_v53 = vpop.f32.mrf.mxu0  ;;  %v906_v62 = vpop.f32.mrf.mxu2 }
  0xc9   : > { %698 = vst.msk [vmem:[#allocation2 + $0x8] sm:$0xff] %vm218_vm1, %v694_v46  ;;  %v833_v48 = vadd.f32 %v829_v47, %v819_v41 }
  0xcb   : > { %837 = vst.msk [vmem:[#allocation2] sm:$0xff] %vm218_vm1, %v833_v48 }
  0xcc   : > { %v607_v52 = vld [vmem:[#allocation2 + $0x18] sm:$0xff] }
  0xcd   : > { %v611_v55 = vadd.f32 %v607_v52, %v601_v50  ;;  %v824_v1 = vpop.f32.mrf.mxu1 }
  0xce   : > { %v691_v56 = vld [vmem:[#allocation2 + $0x10] sm:$0xff] }
  0xcf   : > { %615 = vst.msk [vmem:[#allocation2 + $0x18] sm:$0xff] %vm218_vm1, %v611_v55  ;;  %v695_v57 = vadd.f32 %v691_v56, %v684_v53  ;;  %v1046_v13 = vpop.f32.mrf.mxu3 }
  0xd0   : > { %v830_v58 = vld [vmem:[#allocation2 + $0x8] sm:$0xff]  ;;  %v686_v63 = vpop.f32.mrf.mxu0  ;;  %v909_v11 = vpop.f32.mrf.mxu2 }
  0xd1   : > { %699 = vst.msk [vmem:[#allocation2 + $0x10] sm:$0xff] %vm218_vm1, %v695_v57  ;;  %v834_v59 = vadd.f32 %v830_v58, %v821_v54 }
  0xd2   : > { %v914_v60 = vld [vmem:[#allocation2] sm:$0xff] }
  0xd3   : > { %838 = vst.msk [vmem:[#allocation2 + $0x8] sm:$0xff] %vm218_vm1, %v834_v59  ;;  %v918_v61 = vadd.f32 %v914_v60, %v904_v51 }
  0xd5   : > { %922 = vst.msk [vmem:[#allocation2] sm:$0xff] %vm218_vm1, %v918_v61  ;;  %v826_v9 = vpop.f32.mrf.mxu1 }
  0xd6   : > { %v692_v0 = vld [vmem:[#allocation2 + $0x18] sm:$0xff] }
  0xd7   : > { %v696_v2 = vadd.f32 %v692_v0, %v686_v63  ;;  %v1049_v26 = vpop.f32.mrf.mxu3 }
  0xd8   : > { %v831_v4 = vld [vmem:[#allocation2 + $0x10] sm:$0xff]  ;;  %v911_v22 = vpop.f32.mrf.mxu2 }
  0xd9   : > { %700 = vst.msk [vmem:[#allocation2 + $0x18] sm:$0xff] %vm218_vm1, %v696_v2  ;;  %v835_v5 = vadd.f32 %v831_v4, %v824_v1 }
  0xda   : > { %v915_v6 = vld [vmem:[#allocation2 + $0x8] sm:$0xff] }
  0xdb   : > { %839 = vst.msk [vmem:[#allocation2 + $0x10] sm:$0xff] %vm218_vm1, %v835_v5  ;;  %v919_v7 = vadd.f32 %v915_v6, %v906_v62 }
  0xdc   : > { %v1054_v49 = vld [vmem:[#allocation2] sm:$0xff] }
  0xdd   : > { %923 = vst.msk [vmem:[#allocation2 + $0x8] sm:$0xff] %vm218_vm1, %v919_v7  ;;  %v1058_v8 = vadd.f32 %v1054_v49, %v1044_v3 }
  0xdf   : > { %1062 = vst.msk [vmem:[#allocation2] sm:$0xff] %vm218_vm1, %v1058_v8  ;;  %v1051_v33 = vpop.f32.mrf.mxu3 }
  0xe0   : > { %v832_v10 = vld [vmem:[#allocation2 + $0x18] sm:$0xff] }
  0xe1   : > { %v836_v12 = vadd.f32 %v832_v10, %v826_v9 }
  0xe2   : > { %v916_v14 = vld [vmem:[#allocation2 + $0x10] sm:$0xff] }
  0xe3   : > { %840 = vst.msk [vmem:[#allocation2 + $0x18] sm:$0xff] %vm218_vm1, %v836_v12  ;;  %v920_v16 = vadd.f32 %v916_v14, %v909_v11 }
  0xe4   : > { %v1055_v17 = vld [vmem:[#allocation2 + $0x8] sm:$0xff] }
  0xe5   : > { %924 = vst.msk [vmem:[#allocation2 + $0x10] sm:$0xff] %vm218_vm1, %v920_v16  ;;  %v1059_v18 = vadd.f32 %v1055_v17, %v1046_v13 }
  0xe6   : > { %v1066_v19 = vld [vmem:[#allocation2] sm:$0xff] }
  0xe7   : > { %v1074_v20 = vadd.f32 %v1474_v15, %v1066_v19  ;;  %1063 = vst.msk [vmem:[#allocation2 + $0x8] sm:$0xff] %vm218_vm1, %v1059_v18 }
  0xe9   : > { %v1078_v21 = vmax.f32 %v1074_v20, 0.0 }
  0xea   : > { %v917_v23 = vld [vmem:[#allocation2 + $0x18] sm:$0xff] }
  0xeb   : > { %v1082_v24 = vpack.c.bf16 %v1078_v21, %v1078_v21  ;;  %v921_v25 = vadd.f32 %v917_v23, %v911_v22 }
  0xec   : > { %v1056_v27 = vld [vmem:[#allocation2 + $0x10] sm:$0xff] }
  0xed   : > { %1087 = vst.msk [vmem:[%s170_s10] sm:$0xf] %vm1086_vm4, %v1082_v24  ;;  %v1060_v28 = vadd.f32 %v1056_v27, %v1049_v26 }
  0xee   : > { %v1067_v29 = vld [vmem:[#allocation2 + $0x8] sm:$0xff]  ;;  %925 = vst.msk [vmem:[#allocation2 + $0x18] sm:$0xff] %vm218_vm1, %v921_v25 }
  0xef   : > { %v1075_v30 = vadd.f32 %v1474_v15, %v1067_v29  ;;  %1064 = vst.msk [vmem:[#allocation2 + $0x10] sm:$0xff] %vm218_vm1, %v1060_v28 }
  0xf1   : > { %v1079_v31 = vmax.f32 %v1075_v30, 0.0 }
  0xf3   : > { %v1083_v32 = vpack.c.bf16 %v1079_v31, %v1079_v31 }
  0xf5   : > { %1088 = vst.msk [vmem:[%s170_s10 + $0x4] sm:$0xf] %vm1086_vm4, %v1083_v32  ;;  %v1057_v34 = vld [vmem:[#allocation2 + $0x18] sm:$0xff] }
  0xf6   : > { %v1068_v35 = vld [vmem:[#allocation2 + $0x10] sm:$0xff]  ;;  %v1061_v36 = vadd.f32 %v1057_v34, %v1051_v33 }
  0xf7   : > { %v1076_v37 = vadd.f32 %v1474_v15, %v1068_v35 }
  0xf8   : > { %1065 = vst.msk [vmem:[#allocation2 + $0x18] sm:$0xff] %vm218_vm1, %v1061_v36 }
  0xf9   : > { %v1080_v38 = vmax.f32 %v1076_v37, 0.0 }
  0xfb   : > { %v1084_v39 = vpack.c.bf16 %v1080_v38, %v1080_v38 }
  0xfd   : > { %1089 = vst.msk [vmem:[%s170_s10 + $0x8] sm:$0xf] %vm1086_vm4, %v1084_v39 }
  0xff   : > { %v1069_v40 = vld [vmem:[#allocation2 + $0x18] sm:$0xff] }
 0x100   : > { %v1077_v41 = vadd.f32 %v1474_v15, %v1069_v40 }
 0x102   : > { %v1081_v42 = vmax.f32 %v1077_v41, 0.0 }
 0x104   : > { %v1085_v43 = vpack.c.bf16 %v1081_v42, %v1081_v42 }
 0x106   : > { %1090 = vst.msk [vmem:[%s170_s10 + $0xc] sm:$0xf] %vm1086_vm4, %v1085_v43 }
 0x107 PF: > { %s13_s12 = sadd.s32 1, %s1481_s12  }
 0x108   : > { %p10_p4 = scmp.ge.s32.totalorder %s13_s12, 4  }
 0x10a   :  { %12 = sbr.rel (!%p10_p4) target bundleno = 1 (0x1), region = 72 }

// kernel: ppo_policy_forward.6
= control target key start
LH: loop header
LB: loop body
LE: loop exit
PB: predicated region body
PF: predicated region fallthrough
CT: control target
= control target key end

     0   :  { %s1645_s12 = smov 0   ;;  %s1970_s0 = inlined_call_operand.vmem [shape: bf16[2,6,1,10,64], index: 0, kind: input, shape index: {}]   ;;  %s1971_s1 = inlined_call_operand.vmem [shape: bf16[3,3,64,64], index: 1, kind: input, shape index: {}]   ;;  %s1972_s2 = inlined_call_operand.vmem [shape: f32[1,64], index: 2, kind: input, shape index: {}]   ;;  %s1973_s3 = inlined_call_operand.vmem [shape: bf16[2,32,64], index: 3, kind: output, shape index: {}]  }
   0x1 LB: > { %s1248_s13 = sadd.s32 4294967295, %s1623_s12   ;;  %p1252_p0 = scmp.ge.s32.totalorder %s1623_s12, 1  ;;  %s1623_s12 = sphi %s1645_s12, %s13_s12  }
   0x2   : > { %p137_p1 = scmp.lt.s32.totalorder %s1623_s12, 3 }
   0x4   : > { %p138_p2 = pnand %p1252_p0, %p137_p1 }
   0x5   : > { %p161_p3 = scmp.lt.s32.totalorder (!%p138_p2), %s1248_s13, 1 }
   0x6   : > { %141 = sbr.rel (%p138_p2) target bundleno = 281 (0x119), region = 32 }
   0xb   : > { %v1566_v0 = vld [vmem:[%s1971_s1 + $0x18] sm:$0xff]  ;;  %v1565_v2 = vld [vmem:[%s1971_s1 + $0x10] sm:$0xff]  ;;  %s1979_s13 = smov (!%p161_p3, %s1248_s13), 1  ;;  %vm407_vm0 = vcmask 1042432   ;;  %vm408_vm1 = vcmask 1046532   ;;  %v1564_v6 = vld [vmem:[%s1971_s1 + $0x8] sm:$0xff] }
   0xc   : > { %v1574_v1 = vld [vmem:[%s1971_s1 + $0x58] sm:$0xff]  ;;  %1603 = vmatpush.bf16.msra.mxu1 %v1566_v0  ;;  %229 = vmatpush.bf16.msra.mxu0 %v1566_v0  ;;  %v1573_v3 = vld [vmem:[%s1971_s1 + $0x50] sm:$0xff]  ;;  %s1607_s24 = smul.u32 48, %s1979_s13  ;;  %vm218_vm2 = vcmask 523264   ;;  %v1572_v7 = vld [vmem:[%s1971_s1 + $0x48] sm:$0xff]  ;;  %s1560_s18 = sshll.u32 %s1979_s13, 4 }
   0xd   : > { %475 = vmatpush.bf16.msra.mxu2 %v1574_v1  ;;  %v1580_v4 = vld [vmem:[%s1971_s1 + $0x78] sm:$0xff]  ;;  %v1579_v5 = vld [vmem:[%s1971_s1 + $0x70] sm:$0xff]  ;;  %vm1685_vm3 = vmor %vm407_vm0, %vm408_vm1  ;;  %vm256_vm4 = vsmask.f32 3328  ;;  %vm257_vm5 = vsmask.f32 7440  ;;  %s170_s21 = scalar_lea.vmem %s1973_s3, %s1560_s18 }
   0xe   : > { %560 = vmatpush.bf16.msra.mxu3 %v1580_v4  ;;  %s1680_s4 = scalar_lea.vmem %s1970_s0, %s1607_s24  ;;  %v1578_v12 = vld [vmem:[%s1971_s1 + $0x68] sm:$0xff]  ;;  %v1563_v13 = vld [vmem:[%s1971_s1] sm:$0xff]  ;;  %v1570_v17 = vld [vmem:[%s1971_s1 + $0x38] sm:$0xff]  ;;  %vm1188_vm7 = vcmask 519168  }
   0xf   : > { %v1690_v9 = vld [vmem:[%s1680_s4 + $0x10] sm:$0xf]  ;;  %v1693_v10 = vld [vmem:[%s1680_s4 + $0x14] sm:$0xf0]  ;;  %v1696_v11 = vld [vmem:[%s1680_s4] sm:$0xf] }
  0x10   : > { %1604 = vmatpush.bf16.msra.mxu1 %v1565_v2  ;;  %230 = vmatpush.bf16.msra.mxu0 %v1565_v2  ;;  %v1705_v14 = vld [vmem:[%s1680_s4 + $0x4] sm:$0xf0]  ;;  %v391_v15 = vld [vmem:[%s1680_s4] sm:$0xe]  ;;  %v392_v16 = vld [vmem:[%s1680_s4 + $0x4] sm:$0x1]  ;;  %v1263_v23 = vor.u32 %v1693_v10, %v1690_v9 }
  0x11   : > { %476 = vmatpush.bf16.msra.mxu2 %v1573_v3  ;;  %v1571_v18 = vld [vmem:[%s1971_s1 + $0x40] sm:$0xff]  ;;  %v393_v19 = vld [vmem:[%s1680_s4 + $0x8] sm:$0xe]  ;;  %v394_v20 = vld [vmem:[%s1680_s4 + $0xc] sm:$0x1]  ;;  %v1308_v21 = vrot.slane %v391_v15, 9  ;;  %v1259_v28 = vor.u32 %v1705_v14, %v1696_v11 }
  0x12   : > { %561 = vmatpush.bf16.msra.mxu3 %v1579_v5  ;;  %v412_v22 = vrot.slane %v392_v16, 5  ;;  %v1309_v24 = vrot.slane %v393_v19, 9  ;;  %v416_v25 = vrot.slane %v394_v20, 5  ;;  %v248_v26 = vld [vmem:[%s1680_s4] sm:$0xf]  ;;  %v1584_v40 = vld [vmem:[%s1971_s1 + $0x98] sm:$0xff]  ;;  %vm1759_vm6 = vmor %vm256_vm4, %vm257_vm5 }
  0x13   : > { %v249_v27 = vld [vmem:[%s1680_s4 + $0x4] sm:$0x1]  ;;  %v250_v30 = vld [vmem:[%s1680_s4 + $0x8] sm:$0xf]  ;;  %v251_v31 = vld [vmem:[%s1680_s4 + $0xc] sm:$0x1] }
  0x14   : > { %1605 = vmatpush.bf16.msra.mxu1 %v1564_v6  ;;  %231 = vmatpush.bf16.msra.mxu0 %v1564_v6  ;;  %v413_v29 = vsel %vm1685_vm3, %v1308_v21, %v412_v22  ;;  %v260_v32 = vshrl.u32 %v248_v26, 16  ;;  %v263_v33 = vshll.u32 %v248_v26, 16  ;;  %v417_v34 = vsel %vm1685_vm3, %v1309_v24, %v416_v25  ;;  %v1577_v38 = vld [vmem:[%s1971_s1 + $0x60] sm:$0xff]  ;;  %v1352_v39 = vld [vmem:[%s1680_s4 + $0x8] sm:$0xf]  ;;  %v1569_v41 = vld [vmem:[%s1971_s1 + $0x30] sm:$0xff] }
  0x15   : > { %477 = vmatpush.bf16.msra.mxu2 %v1572_v7  ;;  %v435_v35 = vunpack.c.l.b16 %v413_v29  ;;  %v269_v36 = vshll.u32 %v249_v27, 16  ;;  %v274_v37 = vshrl.u32 %v250_v30, 16  ;;  %v436_v42 = vunpack.c.l.b16 %v417_v34  ;;  %v395_v46 = vld [vmem:[%s1680_s4 + $0x10] sm:$0xe]  ;;  %v1594_v47 = vld [vmem:[%s1971_s1 + $0xd8] sm:$0xff]  ;;  %v1568_v10 = vld [vmem:[%s1971_s1 + $0x28] sm:$0xff] }
  0x16   : > { %562 = vmatpush.bf16.msra.mxu3 %v1578_v12  ;;  %v262_v43 = vrot.slane %v260_v32, 4  ;;  %v265_v44 = vrot.slane %v263_v33, 5  ;;  %v277_v45 = vshll.u32 %v250_v30, 16  ;;  %v283_v49 = vshll.u32 %v251_v31, 16  ;;  %v1575_v50 = vld [vmem:[%s1680_s4 + $0xc] sm:$0xf0] }
  0x17   : > { %v276_v48 = vrot.slane %v274_v37, 4  ;;  %v1583_v51 = vld [vmem:[%s1971_s1 + $0x90] sm:$0xff]  ;;  %v439_v53 = vpack.c.b16 %v436_v42, %v435_v35  ;;  %v271_v55 = vrot.slane %v269_v36, 5  ;;  %v397_v57 = vld [vmem:[%s1680_s4 + $0x18] sm:$0xe]  ;;  %v1310_v59 = vrot.slane %v395_v46, 9 }
  0x18   : > { %1606 = vmatpush.bf16.msra.mxu1 %v1563_v13  ;;  %232 = vmatpush.bf16.msra.mxu0 %v1563_v13  ;;  %v396_v52 = vld [vmem:[%s1680_s4 + $0x14] sm:$0x1]  ;;  %v266_v54 = vor.u32 %v265_v44, %v262_v43  ;;  %v279_v56 = vrot.slane %v277_v45, 5  ;;  %v398_v58 = vld [vmem:[%s1680_s4 + $0x1c] sm:$0x1]  ;;  %v1311_v61 = vrot.slane %v397_v57, 9  ;;  %v1353_v2 = vor.u32 %v1575_v50, %v1352_v39 }
  0x19   : > { %478 = vmatpush.bf16.msra.mxu2 %v1571_v18  ;;  %v420_v60 = vrot.slane %v396_v52, 5  ;;  %v424_v62 = vrot.slane %v398_v58, 5  ;;  %v252_v63 = vld [vmem:[%s1680_s4 + $0x10] sm:$0xf]  ;;  %v1754_v3 = vld [vmem:[%s1680_s4 + $0x14] sm:$0x1] }
  0x1a   : > { %v267_v0 = vrot.slane %v266_v54, 4  ;;  %v280_v1 = vor.u32 %v279_v56, %v276_v48  ;;  %v288_v4 = vshrl.u32 %v252_v63, 16  ;;  %v285_v6 = vrot.slane %v283_v49, 5  ;;  %563 = vmatpush.bf16.msra.mxu3 %v1577_v38  ;;  %v254_v7 = vld [vmem:[%s1680_s4 + $0x18] sm:$0xf]  ;;  %v1593_v12 = vld [vmem:[%s1971_s1 + $0xd0] sm:$0xff] }
  0x1b   : > { %1281 = vmatmul.msk.bf16.vlgmr.msra.gmra.mxu1 %vm218_vm2, %v1263_v23  ;;  %1280 = vmatmul.msk.bf16.vlgmr.msra.gmra.mxu0 %vm218_vm2, %v1259_v28  ;;  %v291_v9 = vshll.u32 %v252_v63, 16  ;;  %v421_v13 = vsel %vm1685_vm3, %v1310_v59, %v420_v60  ;;  %v425_v14 = vsel %vm1685_vm3, %v1311_v61, %v424_v62  ;;  %v1582_v15 = vld [vmem:[%s1971_s1 + $0x88] sm:$0xff]  ;;  %v297_v16 = vshll.u32 %v1754_v3, 16  ;;  %v1598_v18 = vld [vmem:[%s1971_s1 + $0xf8] sm:$0xff]  ;;  %v1378_v27 = vld [vmem:[%s1680_s4 + $0x10] sm:$0xf] }
  0x1c   : > { %364 = vmatpush.bf16.msrb.mxu1 %v1570_v17  ;;  %700 = vmatpush.bf16.msrb.mxu0 %v1584_v40  ;;  %v281_v11 = vrot.slane %v280_v1, 4  ;;  %v1376_v17 = vld [vmem:[%s1680_s4 + $0x8] sm:$0xf]  ;;  %v272_v19 = vsel %vm1759_vm6, %v267_v0, %v271_v55  ;;  %v255_v20 = vld [vmem:[%s1680_s4 + $0x1c] sm:$0x1]  ;;  %v290_v21 = vrot.slane %v288_v4, 4  ;;  %v437_v38 = vunpack.c.l.b16 %v421_v13 }
  0x1d   : > { %893 = vmatpush.bf16.msrb.mxu2 %v1594_v47  ;;  %1374 = vmatmul.msk.bf16.vlgmr.msra.gmra.mxu3 %vm218_vm2, %v1353_v2  ;;  %v302_v22 = vshrl.u32 %v254_v7, 16  ;;  %v305_v23 = vshll.u32 %v254_v7, 16  ;;  %v1377_v24 = vld [vmem:[%s1680_s4 + $0xc] sm:$0x1]  ;;  %v293_v26 = vrot.slane %v291_v9, 5  ;;  %v1567_v30 = vld [vmem:[%s1971_s1 + $0x20] sm:$0xff]  ;;  %v324_v36 = vunpack.c.l.b16 %v272_v19 }
  0x1e   : > { %1336 = vmatmul.msk.bf16.vlgmr.msra.gmra.mxu2 %vm218_vm2, %v439_v53  ;;  %v286_v25 = vsel %vm1759_vm6, %v281_v11, %v285_v6  ;;  %v1379_v28 = vld [vmem:[%s1680_s4 + $0x14] sm:$0x1]  ;;  %1033 = vmatpush.bf16.msrb.mxu3 %v1598_v18  ;;  %v1592_v29 = vld [vmem:[%s1971_s1 + $0xc8] sm:$0xff]  ;;  %v596_v33 = vshrl.u32 %v1376_v17, 16  ;;  %v599_v34 = vshll.u32 %v1376_v17, 16  ;;  %v1588_v37 = vld [vmem:[%s1971_s1 + $0xb8] sm:$0xff]  ;;  %v438_v39 = vunpack.c.l.b16 %v425_v14 }
  0x1f   : > { %v304_v31 = vrot.slane %v302_v22, 4  ;;  %v307_v32 = vrot.slane %v305_v23, 5  ;;  %v1597_v35 = vld [vmem:[%s1971_s1 + $0xf0] sm:$0xff]  ;;  %v1581_v40 = vld [vmem:[%s1971_s1 + $0x80] sm:$0xff]  ;;  %v325_v42 = vunpack.c.l.b16 %v286_v25  ;;  %v610_v45 = vshrl.u32 %v1378_v27, 16  ;;  %v1586_v11 = vld [vmem:[%s1971_s1 + $0xa8] sm:$0xff] }
  0x20   : > { %365 = vmatpush.bf16.msrb.mxu1 %v1569_v41  ;;  %701 = vmatpush.bf16.msrb.mxu0 %v1583_v51  ;;  %v605_v41 = vshll.u32 %v1377_v24, 16  ;;  %v598_v43 = vrot.slane %v596_v33, 4  ;;  %v601_v44 = vrot.slane %v599_v34, 5  ;;  %v294_v46 = vor.u32 %v293_v26, %v290_v21  ;;  %v1380_v54 = vld [vmem:[%s1680_s4 + $0x18] sm:$0xf]  ;;  %v1587_v55 = vld [vmem:[%s1971_s1 + $0xb0] sm:$0xff] }
  0x21   : > { %894 = vmatpush.bf16.msrb.mxu2 %v1593_v12  ;;  %v311_v47 = vshll.u32 %v255_v20, 16  ;;  %v613_v48 = vshll.u32 %v1378_v27, 16  ;;  %v619_v49 = vshll.u32 %v1379_v28, 16  ;;  %v308_v50 = vor.u32 %v307_v32, %v304_v31  ;;  %v1356_v60 = vld [vmem:[%s1680_s4 + $0x18] sm:$0xf]  ;;  %v1591_v12 = vld [vmem:[%s1971_s1 + $0xc0] sm:$0xff] }
  0x22   : > { %1034 = vmatpush.bf16.msrb.mxu3 %v1597_v35  ;;  %v602_v51 = vor.u32 %v601_v44, %v598_v43  ;;  %v607_v52 = vrot.slane %v605_v41, 5  ;;  %v612_v53 = vrot.slane %v610_v45, 4  ;;  %v328_v57 = vpack.c.b16 %v325_v42, %v324_v36  ;;  %v1576_v61 = vld [vmem:[%s1680_s4 + $0x1c] sm:$0xf0]  ;;  %v1381_v7 = vld [vmem:[%s1680_s4 + $0x1c] sm:$0x1] }
  0x23   : > { %v615_v56 = vrot.slane %v613_v48, 5  ;;  %v440_v58 = vpack.c.b16 %v438_v39, %v437_v38  ;;  %v299_v59 = vrot.slane %v297_v16, 5  ;;  %v295_v63 = vrot.slane %v294_v46, 4  ;;  %v1382_v13 = vld [vmem:[%s1680_s4 + $0x20] sm:$0xf]  ;;  %v1596_v22 = vld [vmem:[%s1971_s1 + $0xe8] sm:$0xff] }
  0x24   : > { %366 = vmatpush.bf16.msrb.mxu1 %v1568_v10  ;;  %702 = vmatpush.bf16.msrb.mxu0 %v1582_v15  ;;  %v603_v62 = vrot.slane %v602_v51, 4  ;;  %v621_v1 = vrot.slane %v619_v49, 5  ;;  %v624_v2 = vshrl.u32 %v1380_v54, 16  ;;  %v309_v3 = vrot.slane %v308_v50, 4  ;;  %v1383_v16 = vld [vmem:[%s1680_s4 + $0x24] sm:$0x1] }
  0x25   : > { %895 = vmatpush.bf16.msrb.mxu2 %v1592_v29  ;;  %v616_v0 = vor.u32 %v615_v56, %v612_v53  ;;  %v313_v4 = vrot.slane %v311_v47, 5  ;;  %v627_v9 = vshll.u32 %v1380_v54, 16  ;;  %v1357_v14 = vor.u32 %v1576_v61, %v1356_v60  ;;  %v1602_v23 = vld [vmem:[%s1971_s1 + $0x118] sm:$0xff]  ;;  %v1486_v28 = vld [vmem:[%s1680_s4 + $0x10] sm:$0xf]  ;;  %v1595_v33 = vld [vmem:[%s1971_s1 + $0xe0] sm:$0xff] }
  0x26   : > { %v608_v6 = vsel %vm1759_vm6, %v603_v62, %v607_v52  ;;  %v626_v17 = vrot.slane %v624_v2, 4  ;;  %v300_v19 = vsel %vm1759_vm6, %v295_v63, %v299_v59  ;;  %v633_v21 = vshll.u32 %v1381_v7, 16  ;;  %v1487_v29 = vld [vmem:[%s1680_s4 + $0x14] sm:$0x1]  ;;  %1035 = vmatpush.bf16.msrb.mxu3 %v1596_v22  ;;  %v1488_v34 = vld [vmem:[%s1680_s4 + $0x18] sm:$0xf] }
  0x27   : > { %v617_v10 = vrot.slane %v616_v0, 4  ;;  %v660_v15 = vunpack.c.l.b16 %v608_v6  ;;  %v629_v18 = vrot.slane %v627_v9, 5  ;;  %v314_v24 = vsel %vm1759_vm6, %v309_v3, %v313_v4  ;;  %v1601_v39 = vld [vmem:[%s1971_s1 + $0x110] sm:$0xff]  ;;  %v1489_v41 = vld [vmem:[%s1680_s4 + $0x1c] sm:$0x1] }
  0x28   : > { %367 = vmatpush.bf16.msrb.mxu1 %v1567_v30  ;;  %703 = vmatpush.bf16.msrb.mxu0 %v1581_v40  ;;  %v638_v26 = vshrl.u32 %v1382_v13, 16  ;;  %v641_v27 = vshll.u32 %v1382_v13, 16  ;;  %v1585_v30 = vld [vmem:[%s1971_s1 + $0xa0] sm:$0xff]  ;;  %v647_v32 = vshll.u32 %v1383_v16, 16  ;;  %v326_v35 = vunpack.c.l.b16 %v300_v19  ;;  %v1462_v59 = vld [vmem:[%s1680_s4 + $0x10] sm:$0xf] }
  0x29   : > { %v622_v20 = vsel %vm1759_vm6, %v617_v10, %v621_v1  ;;  %896 = vmatpush.bf16.msrb.mxu2 %v1591_v12  ;;  %v630_v31 = vor.u32 %v629_v18, %v626_v17  ;;  %v327_v40 = vunpack.c.l.b16 %v314_v24  ;;  %v929_v42 = vshrl.u32 %v1486_v28, 16  ;;  %v1589_v60 = vld [vmem:[%s1680_s4 + $0x14] sm:$0xf0]  ;;  %v1410_v3 = vld [vmem:[%s1680_s4 + $0x8] sm:$0xe] }
  0x2a   : > { %v661_v25 = vunpack.c.l.b16 %v622_v20  ;;  %v643_v38 = vrot.slane %v641_v27, 5  ;;  %v932_v43 = vshll.u32 %v1486_v28, 16  ;;  %v938_v44 = vshll.u32 %v1487_v29, 16  ;;  %1036 = vmatpush.bf16.msrb.mxu3 %v1595_v33  ;;  %v1411_v6 = vld [vmem:[%s1680_s4 + $0xc] sm:$0x1] }
  0x2b   : > { %1306 = vmatmul.msk.bf16.vlgmr.msrb.gmra.mxu1 %vm218_vm2, %v328_v57  ;;  %v635_v45 = vrot.slane %v633_v21, 5  ;;  %v943_v47 = vshrl.u32 %v1488_v34, 16  ;;  %v946_v48 = vshll.u32 %v1488_v34, 16  ;;  %v631_v49 = vrot.slane %v630_v31, 4  ;;  %v1412_v7 = vld [vmem:[%s1680_s4 + $0x10] sm:$0xe] }
  0x2c   : > { %808 = vmatpush.bf16.msra.mxu1 %v1588_v37  ;;  %v664_v36 = vpack.c.b16 %v661_v25, %v660_v15  ;;  %v640_v37 = vrot.slane %v638_v26, 4  ;;  %1141 = vmatpush.bf16.msra.mxu0 %v1602_v23  ;;  %v649_v50 = vrot.slane %v647_v32, 5  ;;  %v931_v51 = vrot.slane %v929_v42, 4  ;;  %v1413_v9 = vld [vmem:[%s1680_s4 + $0x14] sm:$0x1]  ;;  %v1600_v21 = vld [vmem:[%s1971_s1 + $0x108] sm:$0xff] }
  0x2d   : > { %1375 = vmatmul.msk.bf16.gmra.mxu3 %vm218_vm2, %v1357_v14  ;;  %v934_v52 = vrot.slane %v932_v43, 5  ;;  %v945_v54 = vrot.slane %v943_v47, 4  ;;  %v952_v56 = vshll.u32 %v1489_v41, 16  ;;  %v636_v63 = vsel %vm1759_vm6, %v631_v49, %v635_v45  ;;  %v1599_v23 = vld [vmem:[%s1971_s1 + $0x100] sm:$0xff]  ;;  %v1492_v27 = vld [vmem:[%s1680_s4 + $0x28] sm:$0xf] }
  0x2e   : > { %1337 = vmatmul.msk.bf16.gmra.mxu2 %vm218_vm2, %v440_v58  ;;  %1408 = vmatmul.msk.bf16.vlgmr.msrb.gmra.mxu0 %vm218_vm2, %v664_v36  ;;  %v644_v46 = vor.u32 %v643_v38, %v640_v37  ;;  %v940_v58 = vrot.slane %v938_v44, 5  ;;  %v329_v2 = vpack.c.b16 %v327_v40, %v326_v35  ;;  %v1463_v10 = vor.u32 %v1589_v60, %v1462_v59  ;;  %v1490_v24 = vld [vmem:[%s1680_s4 + $0x20] sm:$0xf]  ;;  %v1491_v25 = vld [vmem:[%s1680_s4 + $0x24] sm:$0x1] }
  0x2f   : > { %v935_v57 = vor.u32 %v934_v52, %v931_v51  ;;  %v954_v62 = vrot.slane %v952_v56, 5  ;;  %v662_v12 = vunpack.c.l.b16 %v636_v63  ;;  %v1418_v17 = vrot.slane %v1410_v3, 9  ;;  %v1493_v28 = vld [vmem:[%s1680_s4 + $0x2c] sm:$0x1]  ;;  %v1520_v35 = vld [vmem:[%s1680_s4 + $0x10] sm:$0xe] }
  0x30   : > { %809 = vmatpush.bf16.msra.mxu1 %v1587_v55  ;;  %v645_v53 = vrot.slane %v644_v46, 4  ;;  %v948_v55 = vrot.slane %v946_v48, 5  ;;  %1142 = vmatpush.bf16.msra.mxu0 %v1601_v39  ;;  %v745_v18 = vrot.slane %v1411_v6, 5  ;;  %v1419_v19 = vrot.slane %v1412_v7, 9  ;;  %v1521_v40 = vld [vmem:[%s1680_s4 + $0x14] sm:$0x1] }
  0x31   : > { %v936_v1 = vrot.slane %v935_v57, 4  ;;  %v749_v20 = vrot.slane %v1413_v9, 5  ;;  %v957_v29 = vshrl.u32 %v1490_v24, 16  ;;  %v966_v31 = vshll.u32 %v1491_v25, 16  ;;  %v1522_v41 = vld [vmem:[%s1680_s4 + $0x18] sm:$0xe] }
  0x32   : > { %v949_v61 = vor.u32 %v948_v55, %v945_v54  ;;  %v650_v0 = vsel %vm1759_vm6, %v645_v53, %v649_v50  ;;  %v971_v32 = vshrl.u32 %v1492_v27, 16  ;;  %v974_v33 = vshll.u32 %v1492_v27, 16  ;;  %v1523_v46 = vld [vmem:[%s1680_s4 + $0x1c] sm:$0x1]  ;;  %v1524_v51 = vld [vmem:[%s1680_s4 + $0x20] sm:$0xe] }
  0x33   : > { %v663_v13 = vunpack.c.l.b16 %v650_v0  ;;  %v980_v34 = vshll.u32 %v1493_v28, 16  ;;  %v746_v36 = vsel %vm1685_vm3, %v1418_v17, %v745_v18  ;;  %v750_v37 = vsel %vm1685_vm3, %v1419_v19, %v749_v20  ;;  %v1525_v55 = vld [vmem:[%s1680_s4 + $0x24] sm:$0x1]  ;;  %v1526_v56 = vld [vmem:[%s1680_s4 + $0x28] sm:$0xe] }
  0x34   : > { %810 = vmatpush.bf16.msra.mxu1 %v1586_v11  ;;  %v950_v4 = vrot.slane %v949_v61, 4  ;;  %v941_v11 = vsel %vm1759_vm6, %v936_v1, %v940_v58  ;;  %1143 = vmatpush.bf16.msra.mxu0 %v1600_v21  ;;  %v959_v38 = vrot.slane %v957_v29, 4  ;;  %v968_v42 = vrot.slane %v966_v31, 5  ;;  %v1527_v60 = vld [vmem:[%s1680_s4 + $0x2c] sm:$0x1] }
  0x35   : > { %v993_v15 = vunpack.c.l.b16 %v941_v11  ;;  %v665_v26 = vpack.c.b16 %v663_v13, %v662_v12  ;;  %v973_v43 = vrot.slane %v971_v32, 4  ;;  %v976_v44 = vrot.slane %v974_v33, 5  ;;  %v1466_v1 = vld [vmem:[%s1680_s4 + $0x20] sm:$0xf]  ;;  %v1415_v18 = vld [vmem:[%s1680_s4 + $0x1c] sm:$0x1] }
  0x36   : > { %v955_v14 = vsel %vm1759_vm6, %v950_v4, %v954_v62  ;;  %v982_v45 = vrot.slane %v980_v34, 5  ;;  %v1528_v48 = vrot.slane %v1520_v35, 9  ;;  %v1078_v49 = vrot.slane %v1521_v40, 5  ;;  %v1416_v19 = vld [vmem:[%s1680_s4 + $0x20] sm:$0xe] }
  0x37   : > { %v994_v16 = vunpack.c.l.b16 %v955_v14  ;;  %v1529_v50 = vrot.slane %v1522_v41, 9  ;;  %v768_v52 = vunpack.c.l.b16 %v746_v36  ;;  %v977_v53 = vor.u32 %v976_v44, %v973_v43  ;;  %v1417_v20 = vld [vmem:[%s1680_s4 + $0x24] sm:$0x1] }
  0x38   : > { %811 = vmatpush.bf16.msra.mxu1 %v1585_v30  ;;  %v960_v30 = vshll.u32 %v1490_v24, 16  ;;  %1144 = vmatpush.bf16.msra.mxu0 %v1599_v23  ;;  %v1082_v54 = vrot.slane %v1523_v46, 5  ;;  %v1530_v57 = vrot.slane %v1524_v51, 9  ;;  %v769_v58 = vunpack.c.l.b16 %v750_v37 }
  0x39   : > { %v997_v22 = vpack.c.b16 %v994_v16, %v993_v15  ;;  %v1086_v61 = vrot.slane %v1525_v55, 5  ;;  %v1531_v62 = vrot.slane %v1526_v56, 9  ;;  %v978_v63 = vrot.slane %v977_v53, 4  ;;  %v1414_v16 = vld [vmem:[%s1680_s4 + $0x18] sm:$0xe] }
  0x3a   : > { %v962_v39 = vrot.slane %v960_v30, 5  ;;  %v1090_v0 = vrot.slane %v1527_v60, 5  ;;  %v1079_v4 = vsel %vm1685_vm3, %v1528_v48, %v1078_v49  ;;  %v1083_v9 = vsel %vm1685_vm3, %v1529_v50, %v1082_v54 }
  0x3b   : > { %1307 = vmatmul.msk.bf16.gmra.mxu1 %vm218_vm2, %v329_v2  ;;  %v1590_v2 = vld [vmem:[%s1680_s4 + $0x24] sm:$0xf0]  ;;  %v1087_v6 = vsel %vm1685_vm3, %v1530_v57, %v1086_v61  ;;  %v983_v7 = vsel %vm1759_vm6, %v978_v63, %v982_v45  ;;  %v772_v12 = vpack.c.b16 %v769_v58, %v768_v52  ;;  %v1101_v21 = vunpack.c.l.b16 %v1079_v4 }
  0x3c   : > { %v963_v47 = vor.u32 %v962_v39, %v959_v38  ;;  %v1103_v11 = vunpack.c.l.b16 %v1087_v6  ;;  %v996_v14 = vunpack.c.l.b16 %v983_v7  ;;  %v1467_v17 = vor.u32 %v1590_v2, %v1466_v1 }
  0x3d   : > { %1518 = vmatmul.msk.bf16.vlgmr.msrb.gmra.mxu3 %vm218_vm2, %v997_v22  ;;  %v1102_v22 = vunpack.c.l.b16 %v1083_v9  ;;  %v1420_v24 = vrot.slane %v1414_v16, 9  ;;  %v753_v25 = vrot.slane %v1415_v18, 5  ;;  %v757_v27 = vrot.slane %v1417_v20, 5 }
  0x3e   : > { %1484 = vmatmul.msk.bf16.vlgmr.msrb.gmra.mxu2 %vm218_vm2, %v1463_v10  ;;  %1409 = vmatmul.msk.bf16.gmra.mxu0 %vm218_vm2, %v665_v26  ;;  %v964_v59 = vrot.slane %v963_v47, 4  ;;  %v1091_v10 = vsel %vm1685_vm3, %v1531_v62, %v1090_v0  ;;  %v1421_v26 = vrot.slane %v1416_v19, 9 }
  0x3f   : > { %v1104_v15 = vunpack.c.l.b16 %v1091_v10  ;;  %v1105_v28 = vpack.c.b16 %v1102_v22, %v1101_v21  ;;  %v754_v29 = vsel %vm1685_vm3, %v1420_v24, %v753_v25 }
  0x40   : > { %v969_v3 = vsel %vm1759_vm6, %v964_v59, %v968_v42  ;;  %v758_v30 = vsel %vm1685_vm3, %v1421_v26, %v757_v27  ;;  %v770_v31 = vunpack.c.l.b16 %v754_v29 }
  0x41   : > { %v995_v13 = vunpack.c.l.b16 %v969_v3  ;;  %v1106_v5 = vpack.c.b16 %v1104_v15, %v1103_v11  ;;  %v771_v32 = vunpack.c.l.b16 %v758_v30 }
  0x43   : > { %v998_v23 = vpack.c.b16 %v996_v14, %v995_v13  ;;  %v773_v33 = vpack.c.b16 %v771_v32, %v770_v31 }
  0x4b   : > { %1446 = vmatmul.msk.bf16.vlgmr.msra.gmra.mxu1 %vm218_vm2, %v772_v12 }
  0x4d   : > { %1519 = vmatmul.msk.bf16.gmra.mxu3 %vm218_vm2, %v998_v23 }
  0x4e   : > { %1485 = vmatmul.msk.bf16.gmra.mxu2 %vm218_vm2, %v1467_v17  ;;  %1556 = vmatmul.msk.bf16.vlgmr.msra.gmra.mxu0 %vm218_vm2, %v1105_v28 }
  0x5b   : > { %1447 = vmatmul.msk.bf16.gmra.mxu1 %vm218_vm2, %v773_v33 }
  0x5e   : > { %1557 = vmatmul.msk.bf16.gmra.mxu0 %vm218_vm2, %v1106_v5 }
  0x98   : > { %v239_v34 = vpop.f32.mrf.mxu1  ;;  %v234_v35 = vpop.f32.mrf.mxu0 }
  0x99   : > { %246 = vst.msk [vmem:[#allocation2 + $0x10] sm:$0xff] %vm218_vm2, %v239_v34 }
  0x9a   : > { %244 = vst.msk [vmem:[#allocation2] sm:$0xff] %vm218_vm2, %v234_v35 }
  0xa0   : > { %v241_v36 = vpop.f32.mrf.mxu1  ;;  %v236_v37 = vpop.f32.mrf.mxu0  ;;  %v381_v49 = vld [vmem:[#allocation2 + $0x10] sm:$0xff] }
  0xa1   : > { %247 = vst.msk [vmem:[#allocation2 + $0x18] sm:$0xff] %vm218_vm2, %v241_v36  ;;  %v379_v8 = vld [vmem:[#allocation2] sm:$0xff]  ;;  %v480_v40 = vpop.f32.mrf.mxu2  ;;  %v565_v46 = vpop.f32.mrf.mxu3 }
  0xa2   : > { %245 = vst.msk [vmem:[#allocation2 + $0x8] sm:$0xff] %vm218_vm2, %v236_v37 }
  0xa8   : > { %v369_v38 = vpop.f32.mrf.mxu1  ;;  %v382_v59 = vld [vmem:[#allocation2 + $0x18] sm:$0xff] }
  0xa9   : > { %v383_v39 = vadd.f32 %v379_v8, %v369_v38  ;;  %v380_v41 = vld [vmem:[#allocation2 + $0x8] sm:$0xff]  ;;  %v482_v47 = vpop.f32.mrf.mxu2  ;;  %v567_v55 = vpop.f32.mrf.mxu3 }
  0xab   : > { %387 = vst.msk [vmem:[#allocation2] sm:$0xff] %vm218_vm2, %v383_v39  ;;  %v705_v56 = vpop.f32.mrf.mxu0 }
  0xb0   : > { %v371_v42 = vpop.f32.mrf.mxu1 }
  0xb1   : > { %v384_v43 = vadd.f32 %v380_v41, %v371_v42  ;;  %v485_v57 = vpop.f32.mrf.mxu2  ;;  %v570_v3 = vpop.f32.mrf.mxu3 }
  0xb2   : > { %v490_v44 = vld [vmem:[#allocation2] sm:$0xff] }
  0xb3   : > { %v494_v45 = vadd.f32 %v490_v44, %v480_v40  ;;  %388 = vst.msk [vmem:[#allocation2 + $0x8] sm:$0xff] %vm218_vm2, %v384_v43  ;;  %v707_v4 = vpop.f32.mrf.mxu0 }
  0xb5   : > { %498 = vst.msk [vmem:[#allocation2] sm:$0xff] %vm218_vm2, %v494_v45 }
  0xb8   : > { %v374_v48 = vpop.f32.mrf.mxu1 }
  0xb9   : > { %v385_v50 = vadd.f32 %v381_v49, %v374_v48  ;;  %v487_v6 = vpop.f32.mrf.mxu2  ;;  %v572_v17 = vpop.f32.mrf.mxu3 }
  0xba   : > { %v491_v51 = vld [vmem:[#allocation2 + $0x8] sm:$0xff] }
  0xbb   : > { %v495_v52 = vadd.f32 %v491_v51, %v482_v47  ;;  %389 = vst.msk [vmem:[#allocation2 + $0x10] sm:$0xff] %vm218_vm2, %v385_v50  ;;  %v710_v18 = vpop.f32.mrf.mxu0 }
  0xbc   : > { %v575_v53 = vld [vmem:[#allocation2] sm:$0xff] }
  0xbd   : > { %499 = vst.msk [vmem:[#allocation2 + $0x8] sm:$0xff] %vm218_vm2, %v495_v52  ;;  %v579_v54 = vadd.f32 %v575_v53, %v565_v46 }
  0xbf   : > { %583 = vst.msk [vmem:[#allocation2] sm:$0xff] %vm218_vm2, %v579_v54 }
  0xc0   : > { %v376_v58 = vpop.f32.mrf.mxu1 }
  0xc1   : > { %v386_v60 = vadd.f32 %v382_v59, %v376_v58  ;;  %v898_v21 = vpop.f32.mrf.mxu2  ;;  %v1038_v29 = vpop.f32.mrf.mxu3 }
  0xc2   : > { %v492_v61 = vld [vmem:[#allocation2 + $0x10] sm:$0xff] }
  0xc3   : > { %v496_v62 = vadd.f32 %v492_v61, %v485_v57  ;;  %390 = vst.msk [vmem:[#allocation2 + $0x18] sm:$0xff] %vm218_vm2, %v386_v60  ;;  %v712_v28 = vpop.f32.mrf.mxu0  ;;  %v1616_v57 = vld [vmem:[%s1972_s2] ss:$0 sm:$0xff] }
  0xc4   : > { %v576_v63 = vld [vmem:[#allocation2 + $0x8] sm:$0xff] }
  0xc5   : > { %500 = vst.msk [vmem:[#allocation2 + $0x10] sm:$0xff] %vm218_vm2, %v496_v62  ;;  %v580_v0 = vadd.f32 %v576_v63, %v567_v55 }
  0xc6   : > { %v715_v1 = vld [vmem:[#allocation2] sm:$0xff] }
  0xc7   : > { %584 = vst.msk [vmem:[#allocation2 + $0x8] sm:$0xff] %vm218_vm2, %v580_v0  ;;  %v719_v2 = vadd.f32 %v715_v1, %v705_v56 }
  0xc8   : > { %v813_v9 = vpop.f32.mrf.mxu1 }
  0xc9   : > { %723 = vst.msk [vmem:[#allocation2] sm:$0xff] %vm218_vm2, %v719_v2  ;;  %v900_v32 = vpop.f32.mrf.mxu2  ;;  %v1040_v39 = vpop.f32.mrf.mxu3 }
  0xca   : > { %v493_v7 = vld [vmem:[#allocation2 + $0x18] sm:$0xff] }
  0xcb   : > { %v497_v10 = vadd.f32 %v493_v7, %v487_v6  ;;  %v1146_v44 = vpop.f32.mrf.mxu0 }
  0xcc   : > { %v577_v11 = vld [vmem:[#allocation2 + $0x10] sm:$0xff] }
  0xcd   : > { %501 = vst.msk [vmem:[#allocation2 + $0x18] sm:$0xff] %vm218_vm2, %v497_v10  ;;  %v581_v12 = vadd.f32 %v577_v11, %v570_v3 }
  0xce   : > { %v716_v13 = vld [vmem:[#allocation2 + $0x8] sm:$0xff] }
  0xcf   : > { %585 = vst.msk [vmem:[#allocation2 + $0x10] sm:$0xff] %vm218_vm2, %v581_v12  ;;  %v720_v14 = vadd.f32 %v716_v13, %v707_v4 }
  0xd0   : > { %v823_v15 = vld [vmem:[#allocation2] sm:$0xff]  ;;  %v815_v20 = vpop.f32.mrf.mxu1 }
  0xd1   : > { %724 = vst.msk [vmem:[#allocation2 + $0x8] sm:$0xff] %vm218_vm2, %v720_v14  ;;  %v827_v16 = vadd.f32 %v823_v15, %v813_v9  ;;  %v903_v42 = vpop.f32.mrf.mxu2  ;;  %v1043_v53 = vpop.f32.mrf.mxu3 }
  0xd3   : > { %831 = vst.msk [vmem:[#allocation2] sm:$0xff] %vm218_vm2, %v827_v16  ;;  %v1148_v55 = vpop.f32.mrf.mxu0 }
  0xd4   : > { %v578_v19 = vld [vmem:[#allocation2 + $0x18] sm:$0xff] }
  0xd5   : > { %v582_v22 = vadd.f32 %v578_v19, %v572_v17 }
  0xd6   : > { %v717_v5 = vld [vmem:[#allocation2 + $0x10] sm:$0xff] }
  0xd7   : > { %586 = vst.msk [vmem:[#allocation2 + $0x18] sm:$0xff] %vm218_vm2, %v582_v22  ;;  %v721_v23 = vadd.f32 %v717_v5, %v710_v18 }
  0xd8   : > { %v824_v24 = vld [vmem:[#allocation2 + $0x8] sm:$0xff]  ;;  %v818_v31 = vpop.f32.mrf.mxu1 }
  0xd9   : > { %725 = vst.msk [vmem:[#allocation2 + $0x10] sm:$0xff] %vm218_vm2, %v721_v23  ;;  %v828_v25 = vadd.f32 %v824_v24, %v815_v20  ;;  %v905_v51 = vpop.f32.mrf.mxu2  ;;  %v1045_v0 = vpop.f32.mrf.mxu3 }
  0xda   : > { %v908_v26 = vld [vmem:[#allocation2] sm:$0xff] }
  0xdb   : > { %832 = vst.msk [vmem:[#allocation2 + $0x8] sm:$0xff] %vm218_vm2, %v828_v25  ;;  %v912_v27 = vadd.f32 %v908_v26, %v898_v21  ;;  %v1151_v4 = vpop.f32.mrf.mxu0 }
  0xdd   : > { %916 = vst.msk [vmem:[#allocation2] sm:$0xff] %vm218_vm2, %v912_v27 }
  0xde   : > { %v718_v30 = vld [vmem:[#allocation2 + $0x18] sm:$0xff] }
  0xdf   : > { %v722_v33 = vadd.f32 %v718_v30, %v712_v28 }
  0xe0   : > { %v825_v34 = vld [vmem:[#allocation2 + $0x10] sm:$0xff]  ;;  %v820_v40 = vpop.f32.mrf.mxu1 }
  0xe1   : > { %726 = vst.msk [vmem:[#allocation2 + $0x18] sm:$0xff] %vm218_vm2, %v722_v33  ;;  %v829_v35 = vadd.f32 %v825_v34, %v818_v31 }
  0xe2   : > { %v909_v36 = vld [vmem:[#allocation2 + $0x8] sm:$0xff] }
  0xe3   : > { %833 = vst.msk [vmem:[#allocation2 + $0x10] sm:$0xff] %vm218_vm2, %v829_v35  ;;  %v913_v37 = vadd.f32 %v909_v36, %v900_v32  ;;  %v1153_v13 = vpop.f32.mrf.mxu0 }
  0xe4   : > { %v1048_v8 = vld [vmem:[#allocation2] sm:$0xff] }
  0xe5   : > { %917 = vst.msk [vmem:[#allocation2 + $0x8] sm:$0xff] %vm218_vm2, %v913_v37  ;;  %v1052_v38 = vadd.f32 %v1048_v8, %v1038_v29 }
  0xe7   : > { %1056 = vst.msk [vmem:[#allocation2] sm:$0xff] %vm218_vm2, %v1052_v38 }
  0xe8   : > { %v826_v41 = vld [vmem:[#allocation2 + $0x18] sm:$0xff] }
  0xe9   : > { %v830_v43 = vadd.f32 %v826_v41, %v820_v40 }
  0xea   : > { %v910_v45 = vld [vmem:[#allocation2 + $0x10] sm:$0xff] }
  0xeb   : > { %834 = vst.msk [vmem:[#allocation2 + $0x18] sm:$0xff] %vm218_vm2, %v830_v43  ;;  %v914_v46 = vadd.f32 %v910_v45, %v903_v42 }
  0xec   : > { %v1049_v47 = vld [vmem:[#allocation2 + $0x8] sm:$0xff] }
  0xed   : > { %918 = vst.msk [vmem:[#allocation2 + $0x10] sm:$0xff] %vm218_vm2, %v914_v46  ;;  %v1053_v48 = vadd.f32 %v1049_v47, %v1040_v39 }
  0xee   : > { %v1156_v49 = vld [vmem:[#allocation2] sm:$0xff] }
  0xef   : > { %1057 = vst.msk [vmem:[#allocation2 + $0x8] sm:$0xff] %vm218_vm2, %v1053_v48  ;;  %v1160_v50 = vadd.f32 %v1156_v49, %v1146_v44 }
  0xf1   : > { %1164 = vst.msk [vmem:[#allocation2] sm:$0xff] %vm218_vm2, %v1160_v50 }
  0xf2   : > { %v911_v52 = vld [vmem:[#allocation2 + $0x18] sm:$0xff] }
  0xf3   : > { %v915_v54 = vadd.f32 %v911_v52, %v905_v51 }
  0xf4   : > { %v1050_v56 = vld [vmem:[#allocation2 + $0x10] sm:$0xff] }
  0xf5   : > { %919 = vst.msk [vmem:[#allocation2 + $0x18] sm:$0xff] %vm218_vm2, %v915_v54  ;;  %v1054_v58 = vadd.f32 %v1050_v56, %v1043_v53 }
  0xf6   : > { %v1157_v59 = vld [vmem:[#allocation2 + $0x8] sm:$0xff] }
  0xf7   : > { %1058 = vst.msk [vmem:[#allocation2 + $0x10] sm:$0xff] %vm218_vm2, %v1054_v58  ;;  %v1161_v60 = vadd.f32 %v1157_v59, %v1148_v55 }
  0xf8   : > { %v1168_v61 = vld [vmem:[#allocation2] sm:$0xff] }
  0xf9   : > { %v1176_v62 = vadd.f32 %v1616_v57, %v1168_v61  ;;  %1165 = vst.msk [vmem:[#allocation2 + $0x8] sm:$0xff] %vm218_vm2, %v1161_v60 }
  0xfb   : > { %v1180_v63 = vmax.f32 %v1176_v62, 0.0 }
  0xfc   : > { %v1051_v1 = vld [vmem:[#allocation2 + $0x18] sm:$0xff] }
  0xfd   : > { %v1184_v2 = vpack.c.bf16 %v1180_v63, %v1180_v63  ;;  %v1055_v3 = vadd.f32 %v1051_v1, %v1045_v0 }
  0xfe   : > { %v1158_v6 = vld [vmem:[#allocation2 + $0x10] sm:$0xff] }
  0xff   : > { %1189 = vst.msk [vmem:[%s170_s21] sm:$0xf] %vm1188_vm7, %v1184_v2  ;;  %v1162_v7 = vadd.f32 %v1158_v6, %v1151_v4 }
 0x100   : > { %v1169_v9 = vld [vmem:[#allocation2 + $0x8] sm:$0xff]  ;;  %1059 = vst.msk [vmem:[#allocation2 + $0x18] sm:$0xff] %vm218_vm2, %v1055_v3 }
 0x101   : > { %v1177_v10 = vadd.f32 %v1616_v57, %v1169_v9  ;;  %1166 = vst.msk [vmem:[#allocation2 + $0x10] sm:$0xff] %vm218_vm2, %v1162_v7 }
 0x103   : > { %v1181_v11 = vmax.f32 %v1177_v10, 0.0 }
 0x105   : > { %v1185_v12 = vpack.c.bf16 %v1181_v11, %v1181_v11 }
 0x107   : > { %1190 = vst.msk [vmem:[%s170_s21 + $0x4] sm:$0xf] %vm1188_vm7, %v1185_v12  ;;  %v1159_v14 = vld [vmem:[#allocation2 + $0x18] sm:$0xff] }
 0x108   : > { %v1170_v15 = vld [vmem:[#allocation2 + $0x10] sm:$0xff]  ;;  %v1163_v16 = vadd.f32 %v1159_v14, %v1153_v13 }
 0x109   : > { %v1178_v17 = vadd.f32 %v1616_v57, %v1170_v15 }
 0x10a   : > { %1167 = vst.msk [vmem:[#allocation2 + $0x18] sm:$0xff] %vm218_vm2, %v1163_v16 }
 0x10b   : > { %v1182_v18 = vmax.f32 %v1178_v17, 0.0 }
 0x10d   : > { %v1186_v19 = vpack.c.bf16 %v1182_v18, %v1182_v18 }
 0x10f   : > { %1191 = vst.msk [vmem:[%s170_s21 + $0x8] sm:$0xf] %vm1188_vm7, %v1186_v19 }
 0x111   : > { %v1171_v20 = vld [vmem:[#allocation2 + $0x18] sm:$0xff] }
 0x112   : > { %v1179_v21 = vadd.f32 %v1616_v57, %v1171_v20 }
 0x114   : > { %v1183_v22 = vmax.f32 %v1179_v21, 0.0 }
 0x116   : > { %v1187_v5 = vpack.c.bf16 %v1183_v22, %v1183_v22 }
 0x118   : > { %1192 = vst.msk [vmem:[%s170_s21 + $0xc] sm:$0xf] %vm1188_vm7, %v1187_v5 }
 0x119 PF: > { %s13_s12 = sadd.s32 1, %s1623_s12  }
 0x11a   : > { %p10_p4 = scmp.ge.s32.totalorder %s13_s12, 4  }
 0x11c   :  { %12 = sbr.rel (!%p10_p4) target bundleno = 1 (0x1), region = 72 }

// kernel: ppo_policy_forward.7
= control target key start
LH: loop header
LB: loop body
LE: loop exit
PB: predicated region body
PF: predicated region fallthrough
CT: control target
= control target key end

     0   :  { %20 = vsyncpa [#allocation5], 0  ;;  %s4233_s29 = smov 0   ;;  %s4235_s30 = smov 0   ;;  %s5132_s0 = inlined_call_operand.vmem [shape: bf16[16,2048], index: 0, kind: input, shape index: {}]   ;;  %s5133_s1 = inlined_call_operand.vmem [shape: s8[2048,512], index: 1, kind: input, shape index: {}]   ;;  %s5134_s2 = inlined_call_operand.vmem [shape: f32[1,512], index: 2, kind: input, shape index: {}]   ;;  %s5135_s3 = inlined_call_operand.vmem [shape: f32[1,512], index: 3, kind: input, shape index: {}]   ;;  %s5136_s4 = inlined_call_operand.vmem [shape: f32[16,3], index: 4, kind: input, shape index: {}]   ;;  %s5137_s5 = inlined_call_operand.vmem [shape: bf16[512,256], index: 5, kind: input, shape index: {}]   ;;  %s5138_s6 = inlined_call_operand.vmem [shape: f32[3,256], index: 6, kind: input, shape index: {}]   ;;  %s5139_s7 = inlined_call_operand.vmem [shape: f32[1,256], index: 7, kind: input, shape index: {}]   ;;  %s5140_s8 = inlined_call_operand.vmem [shape: bf16[256,128], index: 8, kind: input, shape index: {}]   ;;  %s5141_s9 = inlined_call_operand.vmem [shape: f32[1,128], index: 9, kind: input, shape index: {}]   ;;  %s5142_s10 = inlined_call_operand.vmem [shape: bf16[128,2], index: 10, kind: input, shape index: {}]   ;;  %s5143_s11 = inlined_call_operand.vmem [shape: f32[1,2], index: 11, kind: input, shape index: {}]   ;;  %s5144_s12 = inlined_call_operand.vmem [shape: f32[1,2], index: 12, kind: input, shape index: {}]   ;;  %s5145_s13 = inlined_call_operand.vmem [shape: f32[16,2], index: 13, kind: output, shape index: {0}]   ;;  %s5146_s14 = inlined_call_operand.hbm [shape: f32[1,2], index: 14, kind: output, shape index: {1}]  }
   0x1   :  { %s4237_s15 = smov 0   ;;  %s4239_s16 = smov 0  }
   0x2   :  { %s4241_s17 = smov 0  }
   0x3 LB: > { %s35_s19 = sadd.s32 1, %s4150_s16  ;;  %p54_p1 = scmp.ne.s32.totalorder %s4142_s30, %s4138_s29  ;;  %s4154_s17 = sphi %s4241_s17, %s26_s17   ;;  %s4150_s16 = sphi %s4239_s16, %s5151_s16   ;;  %s4146_s15 = sphi %s4237_s15, %s5150_s15   ;;  %s4142_s30 = sphi %s4235_s30, %s5149_s30   ;;  %s4138_s29 = sphi %s4233_s29, %s5148_s29  }
   0x4   : > { %p36_p0 = scmp.ge.s32.totalorder %s35_s19, 2  ;;  %p55_p2 = scmp.eq.s32.totalorder %s4154_s17, 0 }
   0x5   : > { %s47_s21 = sadd.s32 1, %s4142_s30  ;;  %p3527_p5 = scmp.ge.s32.totalorder %s4154_s17, 2 }
   0x6   : > { %s5153_s19 = smov (%p36_p0, %s35_s19), 0  ;;  %p56_p3 = por %p55_p2, %p54_p1 }
   0x7   : > { %s43_s20 = ssub.s32 %s4150_s16, %s5153_s19  ;;  %428 = sbr.rel (%p3527_p5) target bundleno = 24 (0x18), region = 60 }
   0x8   : > { %p45_p4 = scmp.eq.s32.totalorder %s43_s20, 0 }
   0xa   : > { %s4269_s22 = scalar_select %p45_p4, %s4142_s30, %s47_s21  }
   0xc   : > { %431 = sbr.rel (!%p56_p3) target bundleno = 24 (0x18), region = 64  ;;  %s433_s23 = sand.u32 (%p56_p3), 1, %s4142_s30  }
   0xd   : > { %s3934_s24 = sshll.u32 (%p56_p3), %s4150_s16, 5  ;;  %s3528_s25 = sshll.u32 (%p56_p3), %s433_s23, 6 }
   0xe   : > { %s441_s28 = scalar_lea.vmem (%p56_p3), %s5132_s0, %s3934_s24  ;;  %s435_s18 = scalar_lea.vmem (%p56_p3), [#allocation3], %s3528_s25 }
   0xf   : > { %v454_v0 = vld [vmem:[%s441_s28] sm:$0xff] (%p56_p3)  ;;  %v456_v1 = vld [vmem:[%s441_s28 + $0x8] sm:$0xff] (%p56_p3)  ;;  %v458_v2 = vld [vmem:[%s441_s28 + $0x10] sm:$0xff] (%p56_p3) }
  0x10   : > { %455 = vst [vmem:[%s435_s18] sm:$0xff] (%p56_p3), %v454_v0  ;;  %v460_v3 = vld [vmem:[%s441_s28 + $0x18] sm:$0xff] (%p56_p3)  ;;  %v462_v4 = vld [vmem:[%s441_s28 + $0x40] sm:$0xff] (%p56_p3)  ;;  %v464_v5 = vld [vmem:[%s441_s28 + $0x48] sm:$0xff] (%p56_p3) }
  0x11   : > { %457 = vst [vmem:[%s435_s18 + $0x8] sm:$0xff] %v456_v1  ;;  %v466_v6 = vld [vmem:[%s441_s28 + $0x50] sm:$0xff]  ;;  %v468_v7 = vld [vmem:[%s441_s28 + $0x58] sm:$0xff] }
  0x12   : > { %459 = vst [vmem:[%s435_s18 + $0x10] sm:$0xff] %v458_v2 }
  0x13   : > { %461 = vst [vmem:[%s435_s18 + $0x18] sm:$0xff] %v460_v3 }
  0x14   : > { %463 = vst [vmem:[%s435_s18 + $0x20] sm:$0xff] %v462_v4 }
  0x15   : > { %465 = vst [vmem:[%s435_s18 + $0x28] sm:$0xff] %v464_v5 }
  0x16   : > { %467 = vst [vmem:[%s435_s18 + $0x30] sm:$0xff] %v466_v6 }
  0x17   : > { %469 = vst [vmem:[%s435_s18 + $0x38] sm:$0xff] %v468_v7 }
  0x18 PF: > { %p3531_p6 = scmp.ge.s32.totalorder %s4154_s17, 1  ;;  %p484_p7 = scmp.lt.s32.totalorder %s4154_s17, 3 }
  0x1a   : > { %p485_p8 = pnand %p3531_p6, %p484_p7 }
  0x1b   : > { %s491_s20 = sand.u32 (!%p485_p8), 1, %s4138_s29   ;;  %s3533_s21 = sshll.u32 (!%p485_p8), %s4146_s15, 5 }
  0x1c   : > { %488 = sbr.rel (%p485_p8) target bundleno = 1036 (0x40c), region = 91  ;;  %s3532_s23 = sshll.u32 (!%p485_p8), %s491_s20, 6 }
  0x1d   : > { %p550_p9 = scmp.lt.s32.totalorder (!%p485_p8), %s3533_s21, 63  ;;  %s4286_s27 = scalar_lea.vmem (!%p485_p8), [#allocation3], %s3532_s23 }
  0x1e   : > { %p3536_p10 = scmp.ne.s32.totalorder (!%p485_p8), %s4146_s15, 0 }
  0x21   : > { %s5155_s21 = smov (!%p550_p9, %s3533_s21), 63  ;;  %571 = sbr.rel (%p3536_p10) target bundleno = 47 (0x2f), region = 99 }
  0x22   : > { %s3935_s24 = sshll.u32 %s5155_s21, 5 }
  0x23   : > { %s4284_s18 = scalar_lea.vmem %s5133_s1, %s3935_s24 }
  0x26   : > { %v4156_v8 = vmov 0.0  }
  0x27   : > { %572 = vst [vmem:[#allocation2 + $0x30] sm:$0xff] %v4156_v8 }
  0x28   : > { %573 = vst [vmem:[#allocation2] sm:$0xff] %v4156_v8 }
  0x29   : > { %574 = vst [vmem:[#allocation2 + $0x18] sm:$0xff] %v4156_v8 }
  0x2a   : > { %575 = vst [vmem:[#allocation2 + $0x10] sm:$0xff] %v4156_v8 }
  0x2b   : > { %576 = vst [vmem:[#allocation2 + $0x8] sm:$0xff] %v4156_v8 }
  0x2c   : > { %577 = vst [vmem:[#allocation2 + $0x20] sm:$0xff] %v4156_v8 }
  0x2d   : > { %578 = vst [vmem:[#allocation2 + $0x28] sm:$0xff] %v4156_v8 }
  0x2e   : > { %579 = vst [vmem:[#allocation2 + $0x38] sm:$0xff] %v4156_v8 }
  0x2f PF: > { %v608_v9 = vld [vmem:[%s4284_s18 + $0x60] sm:$0xff]  ;;  %p3569_p11 = scmp.ne.s32.totalorder %s4146_s15, 1 }
  0x30   : > { %v624_v10 = vld [vmem:[%s4284_s18 + $0xe0] sm:$0xff]  ;;  %v780_v12 = vunpack.c.2.s8 %v608_v9  ;;  %v784_v13 = vunpack.c.3.s8 %v608_v9  ;;  %v772_v31 = vunpack.c.0.s8 %v608_v9  ;;  %v776_v32 = vunpack.c.1.s8 %v608_v9 }
  0x31   : > { %v640_v11 = vld [vmem:[%s4284_s18 + $0x160] sm:$0xff]  ;;  %v844_v14 = vunpack.c.2.s8 %v624_v10  ;;  %v848_v15 = vunpack.c.3.s8 %v624_v10  ;;  %v836_v35 = vunpack.c.0.s8 %v624_v10  ;;  %v840_v36 = vunpack.c.1.s8 %v624_v10 }
  0x32   : > { %v656_v16 = vld [vmem:[%s4284_s18 + $0x1e0] sm:$0xff]  ;;  %v908_v17 = vunpack.c.2.s8 %v640_v11  ;;  %v912_v18 = vunpack.c.3.s8 %v640_v11  ;;  %v1292_v21 = vcvt.s32.f32 %v780_v12  ;;  %v1296_v22 = vcvt.s32.f32 %v784_v13 }
  0x33   : > { %v972_v19 = vunpack.c.2.s8 %v656_v16  ;;  %v976_v20 = vunpack.c.3.s8 %v656_v16  ;;  %v1356_v23 = vcvt.s32.f32 %v844_v14  ;;  %v1360_v24 = vcvt.s32.f32 %v848_v15  ;;  %v604_v37 = vld [vmem:[%s4284_s18 + $0x40] sm:$0xff] }
  0x34   : > { %v1420_v25 = vcvt.s32.f32 %v908_v17  ;;  %v1424_v26 = vcvt.s32.f32 %v912_v18  ;;  %v1776_v29 = vpack.c.bf16 %v1296_v22, %v1292_v21  ;;  %v1284_v38 = vcvt.s32.f32 %v772_v31  ;;  %v620_v46 = vld [vmem:[%s4284_s18 + $0xc0] sm:$0xff] }
  0x35   : > { %v1484_v27 = vcvt.s32.f32 %v972_v19  ;;  %v1488_v28 = vcvt.s32.f32 %v976_v20  ;;  %v1808_v30 = vpack.c.bf16 %v1360_v24, %v1356_v23  ;;  %v1288_v39 = vcvt.s32.f32 %v776_v32  ;;  %v636_v51 = vld [vmem:[%s4284_s18 + $0x140] sm:$0xff] }
  0x36   : > { %v1840_v33 = vpack.c.bf16 %v1424_v26, %v1420_v25  ;;  %2044 = vmatpush.bf16.msra.mxu0 %v1776_v29  ;;  %v900_v40 = vunpack.c.0.s8 %v640_v11  ;;  %v904_v41 = vunpack.c.1.s8 %v640_v11  ;;  %v1348_v42 = vcvt.s32.f32 %v836_v35  ;;  %v652_v56 = vld [vmem:[%s4284_s18 + $0x1c0] sm:$0xff] }
  0x37   : > { %v1872_v34 = vpack.c.bf16 %v1488_v28, %v1484_v27  ;;  %2058 = vmatpush.bf16.msra.mxu1 %v1808_v30  ;;  %v1352_v43 = vcvt.s32.f32 %v840_v36  ;;  %v964_v44 = vunpack.c.0.s8 %v656_v16  ;;  %v968_v45 = vunpack.c.1.s8 %v656_v16  ;;  %v600_v17 = vld [vmem:[%s4284_s18 + $0x20] sm:$0xff] }
  0x38   : > { %2072 = vmatpush.bf16.msra.mxu2 %v1840_v33  ;;  %v1772_v47 = vpack.c.bf16 %v1288_v39, %v1284_v38  ;;  %v1412_v48 = vcvt.s32.f32 %v900_v40  ;;  %v1416_v49 = vcvt.s32.f32 %v904_v41  ;;  %v764_v50 = vunpack.c.2.s8 %v604_v37  ;;  %v616_v26 = vld [vmem:[%s4284_s18 + $0xa0] sm:$0xff] }
  0x39   : > { %2086 = vmatpush.bf16.msra.mxu3 %v1872_v34  ;;  %v1804_v52 = vpack.c.bf16 %v1352_v43, %v1348_v42  ;;  %v1476_v53 = vcvt.s32.f32 %v964_v44  ;;  %v1480_v54 = vcvt.s32.f32 %v968_v45  ;;  %v768_v55 = vunpack.c.3.s8 %v604_v37  ;;  %v632_v31 = vld [vmem:[%s4284_s18 + $0x120] sm:$0xff] }
  0x3a   : > { %2045 = vmatpush.bf16.msra.mxu0 %v1772_v47  ;;  %v1836_v57 = vpack.c.bf16 %v1416_v49, %v1412_v48  ;;  %v1276_v58 = vcvt.s32.f32 %v764_v50  ;;  %v828_v59 = vunpack.c.2.s8 %v620_v46  ;;  %v832_v60 = vunpack.c.3.s8 %v620_v46  ;;  %v648_v36 = vld [vmem:[%s4284_s18 + $0x1a0] sm:$0xff] }
  0x3b   : > { %2059 = vmatpush.bf16.msra.mxu1 %v1804_v52  ;;  %v1868_v61 = vpack.c.bf16 %v1480_v54, %v1476_v53  ;;  %v1280_v62 = vcvt.s32.f32 %v768_v55  ;;  %v892_v63 = vunpack.c.2.s8 %v636_v51  ;;  %v896_v0 = vunpack.c.3.s8 %v636_v51 }
  0x3c   : > { %2073 = vmatpush.bf16.msra.mxu2 %v1836_v57  ;;  %v1340_v1 = vcvt.s32.f32 %v828_v59  ;;  %v1344_v2 = vcvt.s32.f32 %v832_v60  ;;  %v956_v3 = vunpack.c.2.s8 %v652_v56  ;;  %v960_v4 = vunpack.c.3.s8 %v652_v56 }
  0x3d   : > { %2087 = vmatpush.bf16.msra.mxu3 %v1868_v61  ;;  %v1768_v5 = vpack.c.bf16 %v1280_v62, %v1276_v58  ;;  %v1404_v6 = vcvt.s32.f32 %v892_v63  ;;  %v1408_v7 = vcvt.s32.f32 %v896_v0  ;;  %v756_v8 = vunpack.c.0.s8 %v604_v37  ;;  %v596_v61 = vld [vmem:[%s4284_s18] sm:$0xff] }
  0x3e   : > { %v1800_v9 = vpack.c.bf16 %v1344_v2, %v1340_v1  ;;  %v1468_v10 = vcvt.s32.f32 %v956_v3  ;;  %v1472_v11 = vcvt.s32.f32 %v960_v4  ;;  %v760_v12 = vunpack.c.1.s8 %v604_v37 }
  0x3f   : > { %2046 = vmatpush.bf16.msra.mxu0 %v1768_v5  ;;  %v1832_v13 = vpack.c.bf16 %v1408_v7, %v1404_v6  ;;  %v1268_v14 = vcvt.s32.f32 %v756_v8  ;;  %v820_v15 = vunpack.c.0.s8 %v620_v46  ;;  %v824_v16 = vunpack.c.1.s8 %v620_v46  ;;  %v612_v6 = vld [vmem:[%s4284_s18 + $0x80] sm:$0xff] }
  0x40   : > { %2060 = vmatpush.bf16.msra.mxu1 %v1800_v9  ;;  %v1864_v18 = vpack.c.bf16 %v1472_v11, %v1468_v10  ;;  %v1272_v19 = vcvt.s32.f32 %v760_v12  ;;  %v884_v20 = vunpack.c.0.s8 %v636_v51  ;;  %v888_v21 = vunpack.c.1.s8 %v636_v51  ;;  %v628_v11 = vld [vmem:[%s4284_s18 + $0x100] sm:$0xff] }
  0x41   : > { %2074 = vmatpush.bf16.msra.mxu2 %v1832_v13  ;;  %v1332_v22 = vcvt.s32.f32 %v820_v15  ;;  %v1336_v23 = vcvt.s32.f32 %v824_v16  ;;  %v948_v24 = vunpack.c.0.s8 %v652_v56  ;;  %v952_v25 = vunpack.c.1.s8 %v652_v56  ;;  %v644_v16 = vld [vmem:[%s4284_s18 + $0x180] sm:$0xff] }
  0x42   : > { %2088 = vmatpush.bf16.msra.mxu3 %v1864_v18  ;;  %v1764_v27 = vpack.c.bf16 %v1272_v19, %v1268_v14  ;;  %v1396_v28 = vcvt.s32.f32 %v884_v20  ;;  %v1400_v29 = vcvt.s32.f32 %v888_v21  ;;  %v748_v30 = vunpack.c.2.s8 %v600_v17 }
  0x43   : > { %v1796_v32 = vpack.c.bf16 %v1336_v23, %v1332_v22  ;;  %v1460_v33 = vcvt.s32.f32 %v948_v24  ;;  %v1464_v34 = vcvt.s32.f32 %v952_v25  ;;  %v752_v35 = vunpack.c.3.s8 %v600_v17 }
  0x44   : > { %2047 = vmatpush.bf16.msra.mxu0 %v1764_v27  ;;  %v1828_v37 = vpack.c.bf16 %v1400_v29, %v1396_v28  ;;  %v1260_v38 = vcvt.s32.f32 %v748_v30  ;;  %v812_v39 = vunpack.c.2.s8 %v616_v26  ;;  %v816_v40 = vunpack.c.3.s8 %v616_v26 }
  0x45   : > { %2061 = vmatpush.bf16.msra.mxu1 %v1796_v32  ;;  %v1860_v41 = vpack.c.bf16 %v1464_v34, %v1460_v33  ;;  %v1264_v42 = vcvt.s32.f32 %v752_v35  ;;  %v876_v43 = vunpack.c.2.s8 %v632_v31  ;;  %v880_v44 = vunpack.c.3.s8 %v632_v31 }
  0x46   : > { %2075 = vmatpush.bf16.msra.mxu2 %v1828_v37  ;;  %v1324_v45 = vcvt.s32.f32 %v812_v39  ;;  %v1328_v46 = vcvt.s32.f32 %v816_v40  ;;  %v940_v47 = vunpack.c.2.s8 %v648_v36  ;;  %v944_v48 = vunpack.c.3.s8 %v648_v36 }
  0x47   : > { %2089 = vmatpush.bf16.msra.mxu3 %v1860_v41  ;;  %v1760_v49 = vpack.c.bf16 %v1264_v42, %v1260_v38  ;;  %v1388_v50 = vcvt.s32.f32 %v876_v43  ;;  %v1392_v51 = vcvt.s32.f32 %v880_v44  ;;  %v740_v52 = vunpack.c.0.s8 %v600_v17  ;;  %v672_v41 = vld [vmem:[%s4284_s18 + $0x260] sm:$0xff] }
  0x48   : > { %v1792_v53 = vpack.c.bf16 %v1328_v46, %v1324_v45  ;;  %v1452_v54 = vcvt.s32.f32 %v940_v47  ;;  %v1456_v55 = vcvt.s32.f32 %v944_v48  ;;  %v744_v56 = vunpack.c.1.s8 %v600_v17 }
  0x49   : > { %2048 = vmatpush.bf16.msra.mxu0 %v1760_v49  ;;  %v1824_v57 = vpack.c.bf16 %v1392_v51, %v1388_v50  ;;  %v1252_v58 = vcvt.s32.f32 %v740_v52  ;;  %v804_v59 = vunpack.c.0.s8 %v616_v26  ;;  %v808_v60 = vunpack.c.1.s8 %v616_v26  ;;  %v688_v50 = vld [vmem:[%s4284_s18 + $0x2e0] sm:$0xff] }
  0x4a   : > { %2062 = vmatpush.bf16.msra.mxu1 %v1792_v53  ;;  %v1856_v62 = vpack.c.bf16 %v1456_v55, %v1452_v54  ;;  %v1256_v63 = vcvt.s32.f32 %v744_v56  ;;  %v868_v0 = vunpack.c.0.s8 %v632_v31  ;;  %v872_v1 = vunpack.c.1.s8 %v632_v31  ;;  %v704_v55 = vld [vmem:[%s4284_s18 + $0x360] sm:$0xff] }
  0x4b   : > { %2076 = vmatpush.bf16.msra.mxu2 %v1824_v57  ;;  %v1316_v2 = vcvt.s32.f32 %v804_v59  ;;  %v1320_v3 = vcvt.s32.f32 %v808_v60  ;;  %v932_v4 = vunpack.c.0.s8 %v648_v36  ;;  %v936_v5 = vunpack.c.1.s8 %v648_v36  ;;  %v720_v60 = vld [vmem:[%s4284_s18 + $0x3e0] sm:$0xff] }
  0x4c   : > { %2090 = vmatpush.bf16.msra.mxu3 %v1856_v62  ;;  %v1756_v7 = vpack.c.bf16 %v1256_v63, %v1252_v58  ;;  %v1380_v8 = vcvt.s32.f32 %v868_v0  ;;  %v1384_v9 = vcvt.s32.f32 %v872_v1  ;;  %v732_v10 = vunpack.c.2.s8 %v596_v61 }
  0x4d   : > { %v1788_v12 = vpack.c.bf16 %v1320_v3, %v1316_v2  ;;  %v1444_v13 = vcvt.s32.f32 %v932_v4  ;;  %v1448_v14 = vcvt.s32.f32 %v936_v5  ;;  %v736_v15 = vunpack.c.3.s8 %v596_v61 }
  0x4e   : > { %2049 = vmatpush.bf16.msra.mxu0 %v1756_v7  ;;  %v1820_v17 = vpack.c.bf16 %v1384_v9, %v1380_v8  ;;  %v1244_v18 = vcvt.s32.f32 %v732_v10  ;;  %v796_v19 = vunpack.c.2.s8 %v612_v6  ;;  %v800_v20 = vunpack.c.3.s8 %v612_v6 }
  0x4f   : > { %2063 = vmatpush.bf16.msra.mxu1 %v1788_v12  ;;  %v1852_v21 = vpack.c.bf16 %v1448_v14, %v1444_v13  ;;  %v1248_v22 = vcvt.s32.f32 %v736_v15  ;;  %v860_v23 = vunpack.c.2.s8 %v628_v11  ;;  %v864_v24 = vunpack.c.3.s8 %v628_v11 }
  0x50   : > { %2077 = vmatpush.bf16.msra.mxu2 %v1820_v17  ;;  %v1308_v25 = vcvt.s32.f32 %v796_v19  ;;  %v1312_v26 = vcvt.s32.f32 %v800_v20  ;;  %v924_v27 = vunpack.c.2.s8 %v644_v16  ;;  %v928_v28 = vunpack.c.3.s8 %v644_v16 }
  0x51   : > { %2091 = vmatpush.bf16.msra.mxu3 %v1852_v21  ;;  %v1752_v29 = vpack.c.bf16 %v1248_v22, %v1244_v18  ;;  %v1372_v30 = vcvt.s32.f32 %v860_v23  ;;  %v1376_v31 = vcvt.s32.f32 %v864_v24  ;;  %v724_v32 = vunpack.c.0.s8 %v596_v61  ;;  %v668_v21 = vld [vmem:[%s4284_s18 + $0x240] sm:$0xff] }
  0x52   : > { %v1784_v33 = vpack.c.bf16 %v1312_v26, %v1308_v25  ;;  %v1436_v34 = vcvt.s32.f32 %v924_v27  ;;  %v1440_v35 = vcvt.s32.f32 %v928_v28  ;;  %v728_v36 = vunpack.c.1.s8 %v596_v61 }
  0x53   : > { %2050 = vmatpush.bf16.msra.mxu0 %v1752_v29  ;;  %v1816_v37 = vpack.c.bf16 %v1376_v31, %v1372_v30  ;;  %v1236_v38 = vcvt.s32.f32 %v724_v32  ;;  %v788_v39 = vunpack.c.0.s8 %v612_v6  ;;  %v792_v40 = vunpack.c.1.s8 %v612_v6  ;;  %v684_v30 = vld [vmem:[%s4284_s18 + $0x2c0] sm:$0xff] }
  0x54   : > { %2064 = vmatpush.bf16.msra.mxu1 %v1784_v33  ;;  %v1848_v42 = vpack.c.bf16 %v1440_v35, %v1436_v34  ;;  %v1240_v43 = vcvt.s32.f32 %v728_v36  ;;  %v852_v44 = vunpack.c.0.s8 %v628_v11  ;;  %v856_v45 = vunpack.c.1.s8 %v628_v11  ;;  %v700_v35 = vld [vmem:[%s4284_s18 + $0x340] sm:$0xff] }
  0x55   : > { %2078 = vmatpush.bf16.msra.mxu2 %v1816_v37  ;;  %v1300_v46 = vcvt.s32.f32 %v788_v39  ;;  %v1304_v47 = vcvt.s32.f32 %v792_v40  ;;  %v916_v48 = vunpack.c.0.s8 %v644_v16  ;;  %v920_v49 = vunpack.c.1.s8 %v644_v16  ;;  %v716_v40 = vld [vmem:[%s4284_s18 + $0x3c0] sm:$0xff] }
  0x56   : > { %2092 = vmatpush.bf16.msra.mxu3 %v1848_v42  ;;  %v1748_v51 = vpack.c.bf16 %v1240_v43, %v1236_v38  ;;  %v1364_v52 = vcvt.s32.f32 %v852_v44  ;;  %v1368_v53 = vcvt.s32.f32 %v856_v45  ;;  %v1036_v54 = vunpack.c.2.s8 %v672_v41 }
  0x57   : > { %v1780_v56 = vpack.c.bf16 %v1304_v47, %v1300_v46  ;;  %v1428_v57 = vcvt.s32.f32 %v916_v48  ;;  %v1432_v58 = vcvt.s32.f32 %v920_v49  ;;  %v1040_v59 = vunpack.c.3.s8 %v672_v41 }
  0x58   : > { %2051 = vmatpush.bf16.msra.mxu0 %v1748_v51  ;;  %v1812_v61 = vpack.c.bf16 %v1368_v53, %v1364_v52  ;;  %v1548_v62 = vcvt.s32.f32 %v1036_v54  ;;  %v1100_v63 = vunpack.c.2.s8 %v688_v50  ;;  %v1104_v0 = vunpack.c.3.s8 %v688_v50 }
  0x59   : > { %2065 = vmatpush.bf16.msra.mxu1 %v1780_v56  ;;  %v1844_v1 = vpack.c.bf16 %v1432_v58, %v1428_v57  ;;  %v1552_v2 = vcvt.s32.f32 %v1040_v59  ;;  %v1164_v3 = vunpack.c.2.s8 %v704_v55  ;;  %v1168_v4 = vunpack.c.3.s8 %v704_v55 }
  0x5a   : > { %2079 = vmatpush.bf16.msra.mxu2 %v1812_v61  ;;  %v1612_v5 = vcvt.s32.f32 %v1100_v63  ;;  %v1616_v6 = vcvt.s32.f32 %v1104_v0  ;;  %v1228_v7 = vunpack.c.2.s8 %v720_v60  ;;  %v1232_v8 = vunpack.c.3.s8 %v720_v60 }
  0x5b   : > { %2093 = vmatpush.bf16.msra.mxu3 %v1844_v1  ;;  %v1904_v9 = vpack.c.bf16 %v1552_v2, %v1548_v62  ;;  %v1676_v10 = vcvt.s32.f32 %v1164_v3  ;;  %v1680_v11 = vcvt.s32.f32 %v1168_v4  ;;  %v1028_v12 = vunpack.c.0.s8 %v672_v41  ;;  %v3539_v1 = vld [vmem:[%s4286_s27] sm:$0xf] }
  0x5c   : > { %v1936_v13 = vpack.c.bf16 %v1616_v6, %v1612_v5  ;;  %v1740_v14 = vcvt.s32.f32 %v1228_v7  ;;  %v1744_v15 = vcvt.s32.f32 %v1232_v8  ;;  %v1032_v16 = vunpack.c.1.s8 %v672_v41  ;;  %v3940_v2 = vld [vmem:[%s4286_s27 + $0x1c] sm:$0xf0]  ;;  %v3547_v7 = vld [vmem:[%s4286_s27 + $0x8] sm:$0xf] }
  0x5d   : > { %2100 = vmatpush.bf16.msrb.mxu0 %v1904_v9  ;;  %v1968_v17 = vpack.c.bf16 %v1680_v11, %v1676_v10  ;;  %v1540_v18 = vcvt.s32.f32 %v1028_v12  ;;  %v1092_v19 = vunpack.c.0.s8 %v688_v50  ;;  %v1096_v20 = vunpack.c.1.s8 %v688_v50  ;;  %v3941_v8 = vld [vmem:[%s4286_s27 + $0x24] sm:$0xf0] }
  0x5e   : > { %2114 = vmatpush.bf16.msrb.mxu1 %v1936_v13  ;;  %v2000_v22 = vpack.c.bf16 %v1744_v15, %v1740_v14  ;;  %v1544_v23 = vcvt.s32.f32 %v1032_v16  ;;  %v1156_v24 = vunpack.c.0.s8 %v704_v55  ;;  %v1160_v25 = vunpack.c.1.s8 %v704_v55  ;;  %v664_v13 = vld [vmem:[%s4284_s18 + $0x220] sm:$0xff] }
  0x5f   : > { %2128 = vmatpush.bf16.msrb.mxu2 %v1968_v17  ;;  %v1604_v26 = vcvt.s32.f32 %v1092_v19  ;;  %v1608_v27 = vcvt.s32.f32 %v1096_v20  ;;  %v1220_v28 = vunpack.c.0.s8 %v720_v60  ;;  %v1224_v29 = vunpack.c.1.s8 %v720_v60  ;;  %v4319_v14 = vld [vmem:[%s4284_s18 + $0x2a0] sm:$0xff] }
  0x60   : > { %2142 = vmatpush.bf16.msrb.mxu3 %v2000_v22  ;;  %v1900_v31 = vpack.c.bf16 %v1544_v23, %v1540_v18  ;;  %v1668_v32 = vcvt.s32.f32 %v1156_v24  ;;  %v1672_v33 = vcvt.s32.f32 %v1160_v25  ;;  %v1020_v34 = vunpack.c.2.s8 %v668_v21  ;;  %v696_v19 = vld [vmem:[%s4284_s18 + $0x320] sm:$0xff] }
  0x61   : > { %v1932_v36 = vpack.c.bf16 %v1608_v27, %v1604_v26  ;;  %v1732_v37 = vcvt.s32.f32 %v1220_v28  ;;  %v1736_v38 = vcvt.s32.f32 %v1224_v29  ;;  %v1024_v39 = vunpack.c.3.s8 %v668_v21  ;;  %v4327_v24 = vld [vmem:[%s4284_s18 + $0x3a0] sm:$0xff]  ;;  %v3936_v29 = vld [vmem:[%s4286_s27 + $0x4] sm:$0xf] }
  0x62   : > { %2101 = vmatpush.bf16.msrb.mxu0 %v1900_v31  ;;  %v1964_v41 = vpack.c.bf16 %v1672_v33, %v1668_v32  ;;  %v1532_v42 = vcvt.s32.f32 %v1020_v34  ;;  %v1084_v43 = vunpack.c.2.s8 %v684_v30  ;;  %v1088_v44 = vunpack.c.3.s8 %v684_v30  ;;  %v3541_v34 = vld [vmem:[%s4286_s27 + $0x20] sm:$0xf0] }
  0x63   : > { %2115 = vmatpush.bf16.msrb.mxu1 %v1932_v36  ;;  %v1996_v45 = vpack.c.bf16 %v1736_v38, %v1732_v37  ;;  %v1536_v46 = vcvt.s32.f32 %v1024_v39  ;;  %v1148_v47 = vunpack.c.2.s8 %v700_v35  ;;  %v1152_v48 = vunpack.c.3.s8 %v700_v35  ;;  %v3549_v36 = vld [vmem:[%s4286_s27 + $0x28] sm:$0xf0] }
  0x64   : > { %2129 = vmatpush.bf16.msrb.mxu2 %v1964_v41  ;;  %v1596_v49 = vcvt.s32.f32 %v1084_v43  ;;  %v1600_v50 = vcvt.s32.f32 %v1088_v44  ;;  %v1212_v51 = vunpack.c.2.s8 %v716_v40  ;;  %v1216_v52 = vunpack.c.3.s8 %v716_v40 }
  0x65   : > { %2143 = vmatpush.bf16.msrb.mxu3 %v1996_v45  ;;  %v1896_v53 = vpack.c.bf16 %v1536_v46, %v1532_v42  ;;  %v1660_v54 = vcvt.s32.f32 %v1148_v47  ;;  %v1664_v55 = vcvt.s32.f32 %v1152_v48  ;;  %v1012_v56 = vunpack.c.0.s8 %v668_v21 }
  0x66   : > { %v1928_v57 = vpack.c.bf16 %v1600_v50, %v1596_v49  ;;  %v1724_v58 = vcvt.s32.f32 %v1212_v51  ;;  %v1728_v59 = vcvt.s32.f32 %v1216_v52  ;;  %v1016_v60 = vunpack.c.1.s8 %v668_v21 }
  0x67   : > { %2102 = vmatpush.bf16.msrb.mxu0 %v1896_v53  ;;  %v1960_v61 = vpack.c.bf16 %v1664_v55, %v1660_v54  ;;  %v1524_v62 = vcvt.s32.f32 %v1012_v56  ;;  %v1076_v63 = vunpack.c.0.s8 %v684_v30  ;;  %v1080_v0 = vunpack.c.1.s8 %v684_v30 }
  0x68   : > { %2116 = vmatpush.bf16.msrb.mxu1 %v1928_v57  ;;  %v1992_v3 = vpack.c.bf16 %v1728_v59, %v1724_v58  ;;  %v1528_v4 = vcvt.s32.f32 %v1016_v60  ;;  %v1140_v5 = vunpack.c.0.s8 %v700_v35  ;;  %v1144_v6 = vunpack.c.1.s8 %v700_v35  ;;  %v3937_v35 = vld [vmem:[%s4286_s27 + $0xc] sm:$0xf]  ;;  %v660_v57 = vld [vmem:[%s4284_s18 + $0x200] sm:$0xff] }
  0x69   : > { %2130 = vmatpush.bf16.msrb.mxu2 %v1960_v61  ;;  %v1588_v9 = vcvt.s32.f32 %v1076_v63  ;;  %v1592_v10 = vcvt.s32.f32 %v1080_v0  ;;  %v1204_v11 = vunpack.c.0.s8 %v716_v40  ;;  %v1208_v12 = vunpack.c.1.s8 %v716_v40 }
  0x6a   : > { %2144 = vmatpush.bf16.msrb.mxu3 %v1992_v3  ;;  %v1892_v15 = vpack.c.bf16 %v1528_v4, %v1524_v62  ;;  %v1652_v16 = vcvt.s32.f32 %v1140_v5  ;;  %v1656_v17 = vcvt.s32.f32 %v1144_v6  ;;  %v4321_v18 = vor.u32 %v3940_v2, %v3539_v1  ;;  %v676_v62 = vld [vmem:[%s4284_s18 + $0x280] sm:$0xff] }
  0x6b   : > { %v1924_v20 = vpack.c.bf16 %v1592_v10, %v1588_v9  ;;  %v1716_v21 = vcvt.s32.f32 %v1204_v11  ;;  %v1720_v22 = vcvt.s32.f32 %v1208_v12  ;;  %v4324_v23 = vor.u32 %v3941_v8, %v3547_v7  ;;  %v692_v7 = vld [vmem:[%s4284_s18 + $0x300] sm:$0xff] }
  0x6c   : > { %2103 = vmatpush.bf16.msrb.mxu0 %v1892_v15  ;;  %v1956_v25 = vpack.c.bf16 %v1656_v17, %v1652_v16  ;;  %v1004_v26 = vunpack.c.2.s8 %v664_v13  ;;  %v1008_v27 = vunpack.c.3.s8 %v664_v13  ;;  %v1068_v28 = vunpack.c.2.s8 %v4319_v14  ;;  %v708_v12 = vld [vmem:[%s4284_s18 + $0x380] sm:$0xff] }
  0x6d   : > { %2117 = vmatpush.bf16.msrb.mxu1 %v1924_v20  ;;  %v1988_v30 = vpack.c.bf16 %v1720_v22, %v1716_v21  ;;  %2052 = vmatmul.bf16.vlgmr.msra.gmra.mxu0 %v4321_v18  ;;  %v1072_v31 = vunpack.c.3.s8 %v4319_v14  ;;  %v1132_v32 = vunpack.c.2.s8 %v696_v19  ;;  %v1136_v33 = vunpack.c.3.s8 %v696_v19 }
  0x6e   : > { %2131 = vmatpush.bf16.msrb.mxu2 %v1956_v25  ;;  %v1516_v37 = vcvt.s32.f32 %v1004_v26  ;;  %v1520_v38 = vcvt.s32.f32 %v1008_v27  ;;  %v1580_v39 = vcvt.s32.f32 %v1068_v28  ;;  %v1196_v40 = vunpack.c.2.s8 %v4327_v24 }
  0x6f   : > { %2145 = vmatpush.bf16.msrb.mxu3 %v1988_v30  ;;  %2080 = vmatmul.bf16.vlgmr.msra.gmra.mxu2 %v4324_v23  ;;  %v1584_v41 = vcvt.s32.f32 %v1072_v31  ;;  %v1644_v42 = vcvt.s32.f32 %v1132_v32  ;;  %v1648_v43 = vcvt.s32.f32 %v1136_v33  ;;  %v1200_v44 = vunpack.c.3.s8 %v4327_v24 }
  0x70   : > { %v1888_v45 = vpack.c.bf16 %v1520_v38, %v1516_v37  ;;  %v1708_v46 = vcvt.s32.f32 %v1196_v40  ;;  %v4339_v47 = vor.u32 %v3936_v29, %v3541_v34  ;;  %v4341_v48 = vor.u32 %v3937_v35, %v3549_v36 }
  0x71   : > { %v1920_v49 = vpack.c.bf16 %v1584_v41, %v1580_v39  ;;  %v1952_v50 = vpack.c.bf16 %v1648_v43, %v1644_v42  ;;  %v1712_v51 = vcvt.s32.f32 %v1200_v44  ;;  %v996_v52 = vunpack.c.0.s8 %v664_v13  ;;  %v4354_v39 = vld [vmem:[%s4284_s18 + $0x68] sm:$0xff] }
  0x72   : > { %2104 = vmatpush.bf16.msrb.mxu0 %v1888_v45  ;;  %2066 = vmatmul.bf16.vlgmr.msra.gmra.mxu1 %v4339_v47  ;;  %v1000_v53 = vunpack.c.1.s8 %v664_v13  ;;  %v1060_v54 = vunpack.c.0.s8 %v4319_v14  ;;  %v1064_v55 = vunpack.c.1.s8 %v4319_v14  ;;  %v1124_v56 = vunpack.c.0.s8 %v696_v19 }
  0x73   : > { %2118 = vmatpush.bf16.msrb.mxu1 %v1920_v49  ;;  %2132 = vmatpush.bf16.msrb.mxu2 %v1952_v50  ;;  %v1984_v58 = vpack.c.bf16 %v1712_v51, %v1708_v46  ;;  %v1508_v59 = vcvt.s32.f32 %v996_v52  ;;  %v1128_v60 = vunpack.c.1.s8 %v696_v19  ;;  %v1188_v61 = vunpack.c.0.s8 %v4327_v24  ;;  %v4357_v50 = vld [vmem:[%s4284_s18 + $0xe8] sm:$0xff] }
  0x74   : > { %2094 = vmatmul.bf16.vlgmr.msra.gmra.mxu3 %v4341_v48  ;;  %v1512_v63 = vcvt.s32.f32 %v1000_v53  ;;  %v1572_v0 = vcvt.s32.f32 %v1060_v54  ;;  %v1576_v1 = vcvt.s32.f32 %v1064_v55  ;;  %v1636_v2 = vcvt.s32.f32 %v1124_v56  ;;  %v4361_v55 = vld [vmem:[%s4284_s18 + $0x168] sm:$0xff] }
  0x75   : > { %2146 = vmatpush.bf16.msrb.mxu3 %v1984_v58  ;;  %v1640_v3 = vcvt.s32.f32 %v1128_v60  ;;  %v1192_v4 = vunpack.c.1.s8 %v4327_v24  ;;  %v1700_v5 = vcvt.s32.f32 %v1188_v61  ;;  %v988_v6 = vunpack.c.2.s8 %v660_v57  ;;  %v4365_v60 = vld [vmem:[%s4284_s18 + $0x1e8] sm:$0xff] }
  0x76   : > { %v1884_v8 = vpack.c.bf16 %v1512_v63, %v1508_v59  ;;  %v1916_v9 = vpack.c.bf16 %v1576_v1, %v1572_v0  ;;  %v992_v10 = vunpack.c.3.s8 %v660_v57  ;;  %v1052_v11 = vunpack.c.2.s8 %v676_v62  ;;  %v3555_v1 = vld [vmem:[%s4286_s27 + $0x10] sm:$0xf] }
  0x77   : > { %v1948_v13 = vpack.c.bf16 %v1640_v3, %v1636_v2  ;;  %v1704_v14 = vcvt.s32.f32 %v1192_v4  ;;  %v1500_v15 = vcvt.s32.f32 %v988_v6  ;;  %v1056_v16 = vunpack.c.3.s8 %v676_v62  ;;  %v3942_v2 = vld [vmem:[%s4286_s27 + $0x2c] sm:$0xf0] }
  0x78   : > { %2105 = vmatpush.bf16.msrb.mxu0 %v1884_v8  ;;  %2119 = vmatpush.bf16.msrb.mxu1 %v1916_v9  ;;  %v1504_v17 = vcvt.s32.f32 %v992_v10  ;;  %v1564_v19 = vcvt.s32.f32 %v1052_v11  ;;  %v1116_v20 = vunpack.c.2.s8 %v692_v7  ;;  %v1120_v21 = vunpack.c.3.s8 %v692_v7  ;;  %v3943_v8 = vld [vmem:[%s4286_s27 + $0x34] sm:$0xf0]  ;;  %v3938_v9 = vld [vmem:[%s4286_s27 + $0x14] sm:$0xf] }
  0x79   : > { %2133 = vmatpush.bf16.msrb.mxu2 %v1948_v13  ;;  %v1980_v22 = vpack.c.bf16 %v1704_v14, %v1700_v5  ;;  %v1568_v24 = vcvt.s32.f32 %v1056_v16  ;;  %v1180_v25 = vunpack.c.2.s8 %v708_v12  ;;  %v1184_v26 = vunpack.c.3.s8 %v708_v12  ;;  %v3557_v14 = vld [vmem:[%s4286_s27 + $0x30] sm:$0xf0]  ;;  %v3565_v16 = vld [vmem:[%s4286_s27 + $0x38] sm:$0xf0] }
  0x7a   : > { %v1880_v27 = vpack.c.bf16 %v1504_v17, %v1500_v15  ;;  %v1628_v28 = vcvt.s32.f32 %v1116_v20  ;;  %v1632_v29 = vcvt.s32.f32 %v1120_v21  ;;  %v980_v30 = vunpack.c.0.s8 %v660_v57  ;;  %v3939_v15 = vld [vmem:[%s4286_s27 + $0x1c] sm:$0xf] }
  0x7b   : > { %2147 = vmatpush.bf16.msrb.mxu3 %v1980_v22  ;;  %v1912_v31 = vpack.c.bf16 %v1568_v24, %v1564_v19  ;;  %v1692_v32 = vcvt.s32.f32 %v1180_v25  ;;  %v1696_v33 = vcvt.s32.f32 %v1184_v26  ;;  %v984_v34 = vunpack.c.1.s8 %v660_v57 }
  0x7c   : > { %2106 = vmatpush.bf16.msrb.mxu0 %v1880_v27  ;;  %v1944_v35 = vpack.c.bf16 %v1632_v29, %v1628_v28  ;;  %v1492_v36 = vcvt.s32.f32 %v980_v30  ;;  %v1044_v37 = vunpack.c.0.s8 %v676_v62  ;;  %v1048_v38 = vunpack.c.1.s8 %v676_v62 }
  0x7d   : > { %2120 = vmatpush.bf16.msrb.mxu1 %v1912_v31  ;;  %v1976_v40 = vpack.c.bf16 %v1696_v33, %v1692_v32  ;;  %v1496_v41 = vcvt.s32.f32 %v984_v34  ;;  %v1108_v42 = vunpack.c.0.s8 %v692_v7  ;;  %v1112_v43 = vunpack.c.1.s8 %v692_v7  ;;  %v3563_v7 = vld [vmem:[%s4286_s27 + $0x18] sm:$0xf] }
  0x7e   : > { %2134 = vmatpush.bf16.msrb.mxu2 %v1944_v35  ;;  %v1556_v44 = vcvt.s32.f32 %v1044_v37  ;;  %v1560_v45 = vcvt.s32.f32 %v1048_v38  ;;  %v1172_v46 = vunpack.c.0.s8 %v708_v12  ;;  %v1176_v49 = vunpack.c.1.s8 %v708_v12  ;;  %v605_v35 = vld [vmem:[%s4284_s18 + $0x48] sm:$0xff] }
  0x7f   : > { %2148 = vmatpush.bf16.msrb.mxu3 %v1976_v40  ;;  %v1876_v51 = vpack.c.bf16 %v1496_v41, %v1492_v36  ;;  %v1620_v52 = vcvt.s32.f32 %v1108_v42  ;;  %v1624_v53 = vcvt.s32.f32 %v1112_v43  ;;  %v781_v54 = vunpack.c.2.s8 %v4354_v39 }
  0x80   : > { %v1908_v56 = vpack.c.bf16 %v1560_v45, %v1556_v44  ;;  %v1684_v57 = vcvt.s32.f32 %v1172_v46  ;;  %v1688_v58 = vcvt.s32.f32 %v1176_v49  ;;  %v785_v59 = vunpack.c.3.s8 %v4354_v39  ;;  %v621_v44 = vld [vmem:[%s4284_s18 + $0xc8] sm:$0xff] }
  0x81   : > { %2107 = vmatpush.bf16.msrb.mxu0 %v1876_v51  ;;  %v1940_v61 = vpack.c.bf16 %v1624_v53, %v1620_v52  ;;  %v1293_v62 = vcvt.s32.f32 %v781_v54  ;;  %v845_v63 = vunpack.c.2.s8 %v4357_v50  ;;  %v849_v0 = vunpack.c.3.s8 %v4357_v50  ;;  %v637_v51 = vld [vmem:[%s4284_s18 + $0x148] sm:$0xff] }
  0x82   : > { %2121 = vmatpush.bf16.msrb.mxu1 %v1908_v56  ;;  %v1972_v3 = vpack.c.bf16 %v1688_v58, %v1684_v57  ;;  %v1297_v4 = vcvt.s32.f32 %v785_v59  ;;  %v909_v5 = vunpack.c.2.s8 %v4361_v55  ;;  %v913_v6 = vunpack.c.3.s8 %v4361_v55  ;;  %v653_v56 = vld [vmem:[%s4284_s18 + $0x1c8] sm:$0xff] }
  0x83   : > { %2135 = vmatpush.bf16.msrb.mxu2 %v1940_v61  ;;  %v1357_v10 = vcvt.s32.f32 %v845_v63  ;;  %v1361_v11 = vcvt.s32.f32 %v849_v0  ;;  %v973_v12 = vunpack.c.2.s8 %v4365_v60  ;;  %v977_v13 = vunpack.c.3.s8 %v4365_v60 }
  0x84   : > { %2149 = vmatpush.bf16.msrb.mxu3 %v1972_v3  ;;  %v1777_v17 = vpack.c.bf16 %v1297_v4, %v1293_v62  ;;  %v1421_v19 = vcvt.s32.f32 %v909_v5  ;;  %v1425_v20 = vcvt.s32.f32 %v913_v6  ;;  %v4381_v21 = vor.u32 %v3942_v2, %v3555_v1 }
  0x85   : > { %v1809_v22 = vpack.c.bf16 %v1361_v11, %v1357_v10  ;;  %v1485_v24 = vcvt.s32.f32 %v973_v12  ;;  %v1489_v25 = vcvt.s32.f32 %v977_v13  ;;  %v4383_v26 = vor.u32 %v3943_v8, %v3563_v7 }
  0x86   : > { %2156 = vmatpush.bf16.msra.mxu0 %v1777_v17  ;;  %v1841_v27 = vpack.c.bf16 %v1425_v20, %v1421_v19  ;;  %v4385_v28 = vor.u32 %v3938_v9, %v3557_v14  ;;  %v4387_v29 = vor.u32 %v3939_v15, %v3565_v16  ;;  %v773_v30 = vunpack.c.0.s8 %v4354_v39  ;;  %v601_v17 = vld [vmem:[%s4284_s18 + $0x28] sm:$0xff] }
  0x87   : > { %2170 = vmatpush.bf16.msra.mxu1 %v1809_v22  ;;  %v1873_v31 = vpack.c.bf16 %v1489_v25, %v1485_v24  ;;  %2108 = vmatmul.bf16.vlgmr.msrb.gmra.mxu0 %v4381_v21  ;;  %v777_v32 = vunpack.c.1.s8 %v4354_v39  ;;  %v837_v33 = vunpack.c.0.s8 %v4357_v50  ;;  %v841_v34 = vunpack.c.1.s8 %v4357_v50 }
  0x88   : > { %2184 = vmatpush.bf16.msra.mxu2 %v1841_v27  ;;  %2122 = vmatmul.bf16.vlgmr.msrb.gmra.mxu1 %v4385_v28  ;;  %v1285_v36 = vcvt.s32.f32 %v773_v30  ;;  %v901_v37 = vunpack.c.0.s8 %v4361_v55  ;;  %v905_v38 = vunpack.c.1.s8 %v4361_v55  ;;  %v965_v40 = vunpack.c.0.s8 %v4365_v60 }
  0x89   : > { %2198 = vmatpush.bf16.msra.mxu3 %v1873_v31  ;;  %2136 = vmatmul.bf16.vlgmr.msrb.gmra.mxu2 %v4383_v26  ;;  %v1289_v39 = vcvt.s32.f32 %v777_v32  ;;  %v1349_v41 = vcvt.s32.f32 %v837_v33  ;;  %v1353_v42 = vcvt.s32.f32 %v841_v34  ;;  %v969_v43 = vunpack.c.1.s8 %v4365_v60  ;;  %v617_v32 = vld [vmem:[%s4284_s18 + $0xa8] sm:$0xff] }
  0x8a   : > { %2150 = vmatmul.bf16.vlgmr.msrb.gmra.mxu3 %v4387_v29  ;;  %v1413_v45 = vcvt.s32.f32 %v901_v37  ;;  %v1417_v46 = vcvt.s32.f32 %v905_v38  ;;  %v1477_v49 = vcvt.s32.f32 %v965_v40  ;;  %v765_v50 = vunpack.c.2.s8 %v605_v35  ;;  %v633_v37 = vld [vmem:[%s4284_s18 + $0x128] sm:$0xff] }
  0x8b   : > { %v1773_v52 = vpack.c.bf16 %v1289_v39, %v1285_v36  ;;  %v1805_v53 = vpack.c.bf16 %v1353_v42, %v1349_v41  ;;  %v1481_v54 = vcvt.s32.f32 %v969_v43  ;;  %v769_v55 = vunpack.c.3.s8 %v605_v35  ;;  %v649_v42 = vld [vmem:[%s4284_s18 + $0x1a8] sm:$0xff] }
  0x8c   : > { %v1837_v57 = vpack.c.bf16 %v1417_v46, %v1413_v45  ;;  %v1277_v58 = vcvt.s32.f32 %v765_v50  ;;  %v829_v59 = vunpack.c.2.s8 %v621_v44  ;;  %v833_v61 = vunpack.c.3.s8 %v621_v44 }
  0x8d   : > { %2157 = vmatpush.bf16.msra.mxu0 %v1773_v52  ;;  %2171 = vmatpush.bf16.msra.mxu1 %v1805_v53  ;;  %v1869_v60 = vpack.c.bf16 %v1481_v54, %v1477_v49  ;;  %v1281_v62 = vcvt.s32.f32 %v769_v55  ;;  %v893_v63 = vunpack.c.2.s8 %v637_v51  ;;  %v897_v0 = vunpack.c.3.s8 %v637_v51 }
  0x8e   : > { %2185 = vmatpush.bf16.msra.mxu2 %v1837_v57  ;;  %v1341_v1 = vcvt.s32.f32 %v829_v59  ;;  %v1345_v2 = vcvt.s32.f32 %v833_v61  ;;  %v957_v3 = vunpack.c.2.s8 %v653_v56  ;;  %v961_v4 = vunpack.c.3.s8 %v653_v56 }
  0x8f   : > { %2199 = vmatpush.bf16.msra.mxu3 %v1869_v60  ;;  %v1769_v5 = vpack.c.bf16 %v1281_v62, %v1277_v58  ;;  %v1405_v6 = vcvt.s32.f32 %v893_v63  ;;  %v1409_v7 = vcvt.s32.f32 %v897_v0  ;;  %v757_v8 = vunpack.c.0.s8 %v605_v35 }
  0x90   : > { %v1801_v9 = vpack.c.bf16 %v1345_v2, %v1341_v1  ;;  %v1469_v10 = vcvt.s32.f32 %v957_v3  ;;  %v1473_v11 = vcvt.s32.f32 %v961_v4  ;;  %v761_v12 = vunpack.c.1.s8 %v605_v35 }
  0x91   : > { %2158 = vmatpush.bf16.msra.mxu0 %v1769_v5  ;;  %v1833_v13 = vpack.c.bf16 %v1409_v7, %v1405_v6  ;;  %v1269_v14 = vcvt.s32.f32 %v757_v8  ;;  %v821_v15 = vunpack.c.0.s8 %v621_v44  ;;  %v825_v16 = vunpack.c.1.s8 %v621_v44  ;;  %v597_v5 = vld [vmem:[%s4284_s18 + $0x8] sm:$0xff] }
  0x92   : > { %2172 = vmatpush.bf16.msra.mxu1 %v1801_v9  ;;  %v1865_v19 = vpack.c.bf16 %v1473_v11, %v1469_v10  ;;  %v1273_v20 = vcvt.s32.f32 %v761_v12  ;;  %v885_v22 = vunpack.c.0.s8 %v637_v51  ;;  %v889_v24 = vunpack.c.1.s8 %v637_v51 }
  0x93   : > { %2186 = vmatpush.bf16.msra.mxu2 %v1833_v13  ;;  %v1333_v25 = vcvt.s32.f32 %v821_v15  ;;  %v1337_v27 = vcvt.s32.f32 %v825_v16  ;;  %v949_v30 = vunpack.c.0.s8 %v653_v56  ;;  %v953_v31 = vunpack.c.1.s8 %v653_v56 }
  0x94   : > { %2200 = vmatpush.bf16.msra.mxu3 %v1865_v19  ;;  %v1765_v33 = vpack.c.bf16 %v1273_v20, %v1269_v14  ;;  %v1397_v34 = vcvt.s32.f32 %v885_v22  ;;  %v1401_v35 = vcvt.s32.f32 %v889_v24  ;;  %v749_v36 = vunpack.c.2.s8 %v601_v17  ;;  %v613_v14 = vld [vmem:[%s4284_s18 + $0x88] sm:$0xff] }
  0x95   : > { %v1797_v38 = vpack.c.bf16 %v1337_v27, %v1333_v25  ;;  %v1461_v40 = vcvt.s32.f32 %v949_v30  ;;  %v1465_v39 = vcvt.s32.f32 %v953_v31  ;;  %v753_v41 = vunpack.c.3.s8 %v601_v17  ;;  %v629_v20 = vld [vmem:[%s4284_s18 + $0x108] sm:$0xff] }
  0x96   : > { %2159 = vmatpush.bf16.msra.mxu0 %v1765_v33  ;;  %v1829_v43 = vpack.c.bf16 %v1401_v35, %v1397_v34  ;;  %v1261_v44 = vcvt.s32.f32 %v749_v36  ;;  %v813_v45 = vunpack.c.2.s8 %v617_v32  ;;  %v817_v46 = vunpack.c.3.s8 %v617_v32  ;;  %v645_v30 = vld [vmem:[%s4284_s18 + $0x188] sm:$0xff] }
  0x97   : > { %2173 = vmatpush.bf16.msra.mxu1 %v1797_v38  ;;  %v1861_v49 = vpack.c.bf16 %v1465_v39, %v1461_v40  ;;  %v1265_v50 = vcvt.s32.f32 %v753_v41  ;;  %v877_v51 = vunpack.c.2.s8 %v633_v37  ;;  %v881_v52 = vunpack.c.3.s8 %v633_v37 }
  0x98   : > { %2187 = vmatpush.bf16.msra.mxu2 %v1829_v43  ;;  %v1325_v53 = vcvt.s32.f32 %v813_v45  ;;  %v1329_v54 = vcvt.s32.f32 %v817_v46  ;;  %v941_v55 = vunpack.c.2.s8 %v649_v42  ;;  %v945_v56 = vunpack.c.3.s8 %v649_v42 }
  0x99   : > { %2201 = vmatpush.bf16.msra.mxu3 %v1861_v49  ;;  %v1761_v57 = vpack.c.bf16 %v1265_v50, %v1261_v44  ;;  %v1389_v58 = vcvt.s32.f32 %v877_v51  ;;  %v1393_v59 = vcvt.s32.f32 %v881_v52  ;;  %v741_v61 = vunpack.c.0.s8 %v601_v17 }
  0x9a   : > { %v1793_v60 = vpack.c.bf16 %v1329_v54, %v1325_v53  ;;  %v1453_v62 = vcvt.s32.f32 %v941_v55  ;;  %v1457_v63 = vcvt.s32.f32 %v945_v56  ;;  %v745_v0 = vunpack.c.1.s8 %v601_v17 }
  0x9b   : > { %2160 = vmatpush.bf16.msra.mxu0 %v1761_v57  ;;  %v1825_v1 = vpack.c.bf16 %v1393_v59, %v1389_v58  ;;  %v1253_v2 = vcvt.s32.f32 %v741_v61  ;;  %v805_v3 = vunpack.c.0.s8 %v617_v32  ;;  %v809_v4 = vunpack.c.1.s8 %v617_v32  ;;  %v673_v57 = vld [vmem:[%s4284_s18 + $0x268] sm:$0xff] }
  0x9c   : > { %2174 = vmatpush.bf16.msra.mxu1 %v1793_v60  ;;  %v1857_v6 = vpack.c.bf16 %v1457_v63, %v1453_v62  ;;  %v1257_v7 = vcvt.s32.f32 %v745_v0  ;;  %v869_v8 = vunpack.c.0.s8 %v633_v37  ;;  %v873_v9 = vunpack.c.1.s8 %v633_v37 }
  0x9d   : > { %2188 = vmatpush.bf16.msra.mxu2 %v1825_v1  ;;  %v1317_v10 = vcvt.s32.f32 %v805_v3  ;;  %v1321_v11 = vcvt.s32.f32 %v809_v4  ;;  %v933_v12 = vunpack.c.0.s8 %v649_v42  ;;  %v937_v13 = vunpack.c.1.s8 %v649_v42 }
  0x9e   : > { %2202 = vmatpush.bf16.msra.mxu3 %v1857_v6  ;;  %v1757_v15 = vpack.c.bf16 %v1257_v7, %v1253_v2  ;;  %v1381_v16 = vcvt.s32.f32 %v869_v8  ;;  %v1385_v17 = vcvt.s32.f32 %v873_v9  ;;  %v733_v19 = vunpack.c.2.s8 %v597_v5  ;;  %v689_v2 = vld [vmem:[%s4284_s18 + $0x2e8] sm:$0xff] }
  0x9f   : > { %v1789_v22 = vpack.c.bf16 %v1321_v11, %v1317_v10  ;;  %v1445_v24 = vcvt.s32.f32 %v933_v12  ;;  %v1449_v25 = vcvt.s32.f32 %v937_v13  ;;  %v737_v27 = vunpack.c.3.s8 %v597_v5  ;;  %v705_v7 = vld [vmem:[%s4284_s18 + $0x368] sm:$0xff] }
  0xa0   : > { %2161 = vmatpush.bf16.msra.mxu0 %v1757_v15  ;;  %v1821_v31 = vpack.c.bf16 %v1385_v17, %v1381_v16  ;;  %v1245_v32 = vcvt.s32.f32 %v733_v19  ;;  %v797_v33 = vunpack.c.2.s8 %v613_v14  ;;  %v801_v34 = vunpack.c.3.s8 %v613_v14  ;;  %v721_v12 = vld [vmem:[%s4284_s18 + $0x3e8] sm:$0xff] }
  0xa1   : > { %2175 = vmatpush.bf16.msra.mxu1 %v1789_v22  ;;  %v1853_v35 = vpack.c.bf16 %v1449_v25, %v1445_v24  ;;  %v1249_v36 = vcvt.s32.f32 %v737_v27  ;;  %v861_v37 = vunpack.c.2.s8 %v629_v20  ;;  %v865_v38 = vunpack.c.3.s8 %v629_v20 }
  0xa2   : > { %2189 = vmatpush.bf16.msra.mxu2 %v1821_v31  ;;  %v1309_v40 = vcvt.s32.f32 %v797_v33  ;;  %v1313_v39 = vcvt.s32.f32 %v801_v34  ;;  %v925_v41 = vunpack.c.2.s8 %v645_v30  ;;  %v929_v42 = vunpack.c.3.s8 %v645_v30 }
  0xa3   : > { %2203 = vmatpush.bf16.msra.mxu3 %v1853_v35  ;;  %v1753_v43 = vpack.c.bf16 %v1249_v36, %v1245_v32  ;;  %v1373_v44 = vcvt.s32.f32 %v861_v37  ;;  %v1377_v45 = vcvt.s32.f32 %v865_v38  ;;  %v725_v46 = vunpack.c.0.s8 %v597_v5 }
  0xa4   : > { %v1785_v49 = vpack.c.bf16 %v1313_v39, %v1309_v40  ;;  %v1437_v50 = vcvt.s32.f32 %v925_v41  ;;  %v1441_v51 = vcvt.s32.f32 %v929_v42  ;;  %v729_v52 = vunpack.c.1.s8 %v597_v5 }
  0xa5   : > { %2162 = vmatpush.bf16.msra.mxu0 %v1753_v43  ;;  %v1817_v53 = vpack.c.bf16 %v1377_v45, %v1373_v44  ;;  %v1237_v54 = vcvt.s32.f32 %v725_v46  ;;  %v789_v55 = vunpack.c.0.s8 %v613_v14  ;;  %v793_v56 = vunpack.c.1.s8 %v613_v14  ;;  %v669_v43 = vld [vmem:[%s4284_s18 + $0x248] sm:$0xff] }
  0xa6   : > { %2176 = vmatpush.bf16.msra.mxu1 %v1785_v49  ;;  %v1849_v58 = vpack.c.bf16 %v1441_v51, %v1437_v50  ;;  %v1241_v59 = vcvt.s32.f32 %v729_v52  ;;  %v853_v61 = vunpack.c.0.s8 %v629_v20  ;;  %v857_v60 = vunpack.c.1.s8 %v629_v20 }
  0xa7   : > { %2190 = vmatpush.bf16.msra.mxu2 %v1817_v53  ;;  %v1301_v62 = vcvt.s32.f32 %v789_v55  ;;  %v1305_v63 = vcvt.s32.f32 %v793_v56  ;;  %v917_v0 = vunpack.c.0.s8 %v645_v30  ;;  %v921_v1 = vunpack.c.1.s8 %v645_v30 }
  0xa8   : > { %2204 = vmatpush.bf16.msra.mxu3 %v1849_v58  ;;  %v1749_v3 = vpack.c.bf16 %v1241_v59, %v1237_v54  ;;  %v1365_v4 = vcvt.s32.f32 %v853_v61  ;;  %v1369_v5 = vcvt.s32.f32 %v857_v60  ;;  %v1037_v6 = vunpack.c.2.s8 %v673_v57  ;;  %v685_v54 = vld [vmem:[%s4284_s18 + $0x2c8] sm:$0xff] }
  0xa9   : > { %v1781_v8 = vpack.c.bf16 %v1305_v63, %v1301_v62  ;;  %v1429_v9 = vcvt.s32.f32 %v917_v0  ;;  %v1433_v10 = vcvt.s32.f32 %v921_v1  ;;  %v1041_v11 = vunpack.c.3.s8 %v673_v57  ;;  %v701_v59 = vld [vmem:[%s4284_s18 + $0x348] sm:$0xff] }
  0xaa   : > { %2163 = vmatpush.bf16.msra.mxu0 %v1749_v3  ;;  %v1813_v13 = vpack.c.bf16 %v1369_v5, %v1365_v4  ;;  %v1549_v14 = vcvt.s32.f32 %v1037_v6  ;;  %v1101_v15 = vunpack.c.2.s8 %v689_v2  ;;  %v1105_v16 = vunpack.c.3.s8 %v689_v2  ;;  %v717_v0 = vld [vmem:[%s4284_s18 + $0x3c8] sm:$0xff] }
  0xab   : > { %2177 = vmatpush.bf16.msra.mxu1 %v1781_v8  ;;  %v1845_v17 = vpack.c.bf16 %v1433_v10, %v1429_v9  ;;  %v1553_v19 = vcvt.s32.f32 %v1041_v11  ;;  %v1165_v20 = vunpack.c.2.s8 %v705_v7  ;;  %v1169_v22 = vunpack.c.3.s8 %v705_v7 }
  0xac   : > { %2191 = vmatpush.bf16.msra.mxu2 %v1813_v13  ;;  %v1613_v24 = vcvt.s32.f32 %v1101_v15  ;;  %v1617_v25 = vcvt.s32.f32 %v1105_v16  ;;  %v1229_v27 = vunpack.c.2.s8 %v721_v12  ;;  %v1233_v30 = vunpack.c.3.s8 %v721_v12 }
  0xad   : > { %2205 = vmatpush.bf16.msra.mxu3 %v1845_v17  ;;  %v1905_v31 = vpack.c.bf16 %v1553_v19, %v1549_v14  ;;  %v1677_v32 = vcvt.s32.f32 %v1165_v20  ;;  %v1681_v33 = vcvt.s32.f32 %v1169_v22  ;;  %v1029_v34 = vunpack.c.0.s8 %v673_v57  ;;  %2164 = vmatmul.bf16.vlgmr.msra.gmra.mxu0 %v4321_v18 }
  0xae   : > { %v1937_v35 = vpack.c.bf16 %v1617_v25, %v1613_v24  ;;  %v1741_v36 = vcvt.s32.f32 %v1229_v27  ;;  %v1745_v37 = vcvt.s32.f32 %v1233_v30  ;;  %v1033_v38 = vunpack.c.1.s8 %v673_v57  ;;  %2178 = vmatmul.bf16.vlgmr.msra.gmra.mxu1 %v4339_v47 }
  0xaf   : > { %2212 = vmatpush.bf16.msrb.mxu0 %v1905_v31  ;;  %v1969_v40 = vpack.c.bf16 %v1681_v33, %v1677_v32  ;;  %v1541_v39 = vcvt.s32.f32 %v1029_v34  ;;  %v1093_v41 = vunpack.c.0.s8 %v689_v2  ;;  %v1097_v42 = vunpack.c.1.s8 %v689_v2  ;;  %2192 = vmatmul.bf16.vlgmr.msra.gmra.mxu2 %v4324_v23  ;;  %v665_v31 = vld [vmem:[%s4284_s18 + $0x228] sm:$0xff] }
  0xb0   : > { %2226 = vmatpush.bf16.msrb.mxu1 %v1937_v35  ;;  %v2001_v44 = vpack.c.bf16 %v1745_v37, %v1741_v36  ;;  %v1545_v45 = vcvt.s32.f32 %v1033_v38  ;;  %v1157_v46 = vunpack.c.0.s8 %v705_v7  ;;  %v1161_v49 = vunpack.c.1.s8 %v705_v7  ;;  %2206 = vmatmul.bf16.vlgmr.msra.gmra.mxu3 %v4341_v48 }
  0xb1   : > { %2240 = vmatpush.bf16.msrb.mxu2 %v1969_v40  ;;  %v1605_v50 = vcvt.s32.f32 %v1093_v41  ;;  %v1609_v51 = vcvt.s32.f32 %v1097_v42  ;;  %v1221_v52 = vunpack.c.0.s8 %v721_v12  ;;  %v1225_v53 = vunpack.c.1.s8 %v721_v12 }
  0xb2   : > { %2254 = vmatpush.bf16.msrb.mxu3 %v2001_v44  ;;  %v1901_v55 = vpack.c.bf16 %v1545_v45, %v1541_v39  ;;  %v1669_v56 = vcvt.s32.f32 %v1157_v46  ;;  %v1673_v57 = vcvt.s32.f32 %v1161_v49  ;;  %v1021_v58 = vunpack.c.2.s8 %v669_v43  ;;  %v681_v39 = vld [vmem:[%s4284_s18 + $0x2a8] sm:$0xff] }
  0xb3   : > { %v1933_v61 = vpack.c.bf16 %v1609_v51, %v1605_v50  ;;  %v1733_v60 = vcvt.s32.f32 %v1221_v52  ;;  %v1737_v62 = vcvt.s32.f32 %v1225_v53  ;;  %v1025_v63 = vunpack.c.3.s8 %v669_v43  ;;  %v697_v45 = vld [vmem:[%s4284_s18 + $0x328] sm:$0xff] }
  0xb4   : > { %2213 = vmatpush.bf16.msrb.mxu0 %v1901_v55  ;;  %v1965_v1 = vpack.c.bf16 %v1673_v57, %v1669_v56  ;;  %v1533_v2 = vcvt.s32.f32 %v1021_v58  ;;  %v1085_v3 = vunpack.c.2.s8 %v685_v54  ;;  %v1089_v4 = vunpack.c.3.s8 %v685_v54  ;;  %v713_v52 = vld [vmem:[%s4284_s18 + $0x3a8] sm:$0xff] }
  0xb5   : > { %2227 = vmatpush.bf16.msrb.mxu1 %v1933_v61  ;;  %v1997_v5 = vpack.c.bf16 %v1737_v62, %v1733_v60  ;;  %v1537_v6 = vcvt.s32.f32 %v1025_v63  ;;  %v1149_v7 = vunpack.c.2.s8 %v701_v59  ;;  %v1153_v8 = vunpack.c.3.s8 %v701_v59 }
  0xb6   : > { %2241 = vmatpush.bf16.msrb.mxu2 %v1965_v1  ;;  %v1597_v9 = vcvt.s32.f32 %v1085_v3  ;;  %v1601_v10 = vcvt.s32.f32 %v1089_v4  ;;  %v1213_v11 = vunpack.c.2.s8 %v717_v0  ;;  %v1217_v12 = vunpack.c.3.s8 %v717_v0 }
  0xb7   : > { %2255 = vmatpush.bf16.msrb.mxu3 %v1997_v5  ;;  %v1897_v13 = vpack.c.bf16 %v1537_v6, %v1533_v2  ;;  %v1661_v14 = vcvt.s32.f32 %v1149_v7  ;;  %v1665_v15 = vcvt.s32.f32 %v1153_v8  ;;  %v1013_v16 = vunpack.c.0.s8 %v669_v43 }
  0xb8   : > { %v1929_v17 = vpack.c.bf16 %v1601_v10, %v1597_v9  ;;  %v1725_v19 = vcvt.s32.f32 %v1213_v11  ;;  %v1729_v20 = vcvt.s32.f32 %v1217_v12  ;;  %v1017_v22 = vunpack.c.1.s8 %v669_v43 }
  0xb9   : > { %2214 = vmatpush.bf16.msrb.mxu0 %v1897_v13  ;;  %v1961_v24 = vpack.c.bf16 %v1665_v15, %v1661_v14  ;;  %v1525_v25 = vcvt.s32.f32 %v1013_v16  ;;  %v1077_v27 = vunpack.c.0.s8 %v685_v54  ;;  %v1081_v30 = vunpack.c.1.s8 %v685_v54  ;;  %v661_v13 = vld [vmem:[%s4284_s18 + $0x208] sm:$0xff] }
  0xba   : > { %2228 = vmatpush.bf16.msrb.mxu1 %v1929_v17  ;;  %v1993_v32 = vpack.c.bf16 %v1729_v20, %v1725_v19  ;;  %v1529_v33 = vcvt.s32.f32 %v1017_v22  ;;  %v1141_v34 = vunpack.c.0.s8 %v701_v59  ;;  %v1145_v35 = vunpack.c.1.s8 %v701_v59 }
  0xbb   : > { %2242 = vmatpush.bf16.msrb.mxu2 %v1961_v24  ;;  %v1589_v36 = vcvt.s32.f32 %v1077_v27  ;;  %v1593_v37 = vcvt.s32.f32 %v1081_v30  ;;  %v1205_v38 = vunpack.c.0.s8 %v717_v0  ;;  %v1209_v40 = vunpack.c.1.s8 %v717_v0 }
  0xbc   : > { %2256 = vmatpush.bf16.msrb.mxu3 %v1993_v32  ;;  %v1893_v41 = vpack.c.bf16 %v1529_v33, %v1525_v25  ;;  %v1653_v42 = vcvt.s32.f32 %v1141_v34  ;;  %v1657_v43 = vcvt.s32.f32 %v1145_v35  ;;  %v1005_v44 = vunpack.c.2.s8 %v665_v31  ;;  %v677_v25 = vld [vmem:[%s4284_s18 + $0x288] sm:$0xff] }
  0xbd   : > { %v1925_v46 = vpack.c.bf16 %v1593_v37, %v1589_v36  ;;  %v1717_v49 = vcvt.s32.f32 %v1205_v38  ;;  %v1721_v50 = vcvt.s32.f32 %v1209_v40  ;;  %v1009_v51 = vunpack.c.3.s8 %v665_v31  ;;  %v693_v33 = vld [vmem:[%s4284_s18 + $0x308] sm:$0xff] }
  0xbe   : > { %2215 = vmatpush.bf16.msrb.mxu0 %v1893_v41  ;;  %v1957_v53 = vpack.c.bf16 %v1657_v43, %v1653_v42  ;;  %v1517_v54 = vcvt.s32.f32 %v1005_v44  ;;  %v1069_v55 = vunpack.c.2.s8 %v681_v39  ;;  %v1073_v56 = vunpack.c.3.s8 %v681_v39  ;;  %v709_v38 = vld [vmem:[%s4284_s18 + $0x388] sm:$0xff] }
  0xbf   : > { %2229 = vmatpush.bf16.msrb.mxu1 %v1925_v46  ;;  %v1989_v57 = vpack.c.bf16 %v1721_v50, %v1717_v49  ;;  %v1521_v58 = vcvt.s32.f32 %v1009_v51  ;;  %v1133_v59 = vunpack.c.2.s8 %v697_v45  ;;  %v1137_v61 = vunpack.c.3.s8 %v697_v45 }
  0xc0   : > { %2243 = vmatpush.bf16.msrb.mxu2 %v1957_v53  ;;  %v1581_v60 = vcvt.s32.f32 %v1069_v55  ;;  %v1585_v62 = vcvt.s32.f32 %v1073_v56  ;;  %v1197_v63 = vunpack.c.2.s8 %v713_v52  ;;  %v1201_v0 = vunpack.c.3.s8 %v713_v52 }
  0xc1   : > { %2257 = vmatpush.bf16.msrb.mxu3 %v1989_v57  ;;  %v1889_v1 = vpack.c.bf16 %v1521_v58, %v1517_v54  ;;  %v1645_v2 = vcvt.s32.f32 %v1133_v59  ;;  %v1649_v3 = vcvt.s32.f32 %v1137_v61  ;;  %v997_v4 = vunpack.c.0.s8 %v665_v31 }
  0xc2   : > { %v1921_v5 = vpack.c.bf16 %v1585_v62, %v1581_v60  ;;  %v1709_v6 = vcvt.s32.f32 %v1197_v63  ;;  %v1713_v7 = vcvt.s32.f32 %v1201_v0  ;;  %v1001_v8 = vunpack.c.1.s8 %v665_v31 }
  0xc3   : > { %2216 = vmatpush.bf16.msrb.mxu0 %v1889_v1  ;;  %v1953_v9 = vpack.c.bf16 %v1649_v3, %v1645_v2  ;;  %v1509_v10 = vcvt.s32.f32 %v997_v4  ;;  %v1061_v11 = vunpack.c.0.s8 %v681_v39  ;;  %v1065_v12 = vunpack.c.1.s8 %v681_v39  ;;  %v610_v1 = vld [vmem:[%s4284_s18 + $0x70] sm:$0xff] }
  0xc4   : > { %2230 = vmatpush.bf16.msrb.mxu1 %v1921_v5  ;;  %v1985_v14 = vpack.c.bf16 %v1713_v7, %v1709_v6  ;;  %v1513_v15 = vcvt.s32.f32 %v1001_v8  ;;  %v1125_v16 = vunpack.c.0.s8 %v697_v45  ;;  %v1129_v17 = vunpack.c.1.s8 %v697_v45 }
  0xc5   : > { %2244 = vmatpush.bf16.msrb.mxu2 %v1953_v9  ;;  %v1573_v19 = vcvt.s32.f32 %v1061_v11  ;;  %v1577_v20 = vcvt.s32.f32 %v1065_v12  ;;  %v1189_v22 = vunpack.c.0.s8 %v713_v52  ;;  %v1193_v24 = vunpack.c.1.s8 %v713_v52 }
  0xc6   : > { %2258 = vmatpush.bf16.msrb.mxu3 %v1985_v14  ;;  %v1885_v27 = vpack.c.bf16 %v1513_v15, %v1509_v10  ;;  %v1637_v30 = vcvt.s32.f32 %v1125_v16  ;;  %v1641_v31 = vcvt.s32.f32 %v1129_v17  ;;  %v989_v32 = vunpack.c.2.s8 %v661_v13  ;;  %v626_v10 = vld [vmem:[%s4284_s18 + $0xf0] sm:$0xff] }
  0xc7   : > { %v1917_v34 = vpack.c.bf16 %v1577_v20, %v1573_v19  ;;  %v1701_v35 = vcvt.s32.f32 %v1189_v22  ;;  %v1705_v36 = vcvt.s32.f32 %v1193_v24  ;;  %v993_v37 = vunpack.c.3.s8 %v661_v13  ;;  %v642_v15 = vld [vmem:[%s4284_s18 + $0x170] sm:$0xff] }
  0xc8   : > { %2217 = vmatpush.bf16.msrb.mxu0 %v1885_v27  ;;  %v1949_v40 = vpack.c.bf16 %v1641_v31, %v1637_v30  ;;  %v1501_v39 = vcvt.s32.f32 %v989_v32  ;;  %v1053_v41 = vunpack.c.2.s8 %v677_v25  ;;  %v1057_v42 = vunpack.c.3.s8 %v677_v25  ;;  %v658_v22 = vld [vmem:[%s4284_s18 + $0x1f0] sm:$0xff] }
  0xc9   : > { %2231 = vmatpush.bf16.msrb.mxu1 %v1917_v34  ;;  %v1981_v43 = vpack.c.bf16 %v1705_v36, %v1701_v35  ;;  %v1505_v44 = vcvt.s32.f32 %v993_v37  ;;  %v1117_v45 = vunpack.c.2.s8 %v693_v33  ;;  %v1121_v46 = vunpack.c.3.s8 %v693_v33 }
  0xca   : > { %2245 = vmatpush.bf16.msrb.mxu2 %v1949_v40  ;;  %v1565_v49 = vcvt.s32.f32 %v1053_v41  ;;  %v1569_v50 = vcvt.s32.f32 %v1057_v42  ;;  %v1181_v51 = vunpack.c.2.s8 %v709_v38  ;;  %v1185_v52 = vunpack.c.3.s8 %v709_v38 }
  0xcb   : > { %2259 = vmatpush.bf16.msrb.mxu3 %v1981_v43  ;;  %v1881_v53 = vpack.c.bf16 %v1505_v44, %v1501_v39  ;;  %v1629_v54 = vcvt.s32.f32 %v1117_v45  ;;  %v1633_v55 = vcvt.s32.f32 %v1121_v46  ;;  %v981_v56 = vunpack.c.0.s8 %v661_v13 }
  0xcc   : > { %v1913_v57 = vpack.c.bf16 %v1569_v50, %v1565_v49  ;;  %v1693_v58 = vcvt.s32.f32 %v1181_v51  ;;  %v1697_v59 = vcvt.s32.f32 %v1185_v52  ;;  %v985_v61 = vunpack.c.1.s8 %v661_v13 }
  0xcd   : > { %2218 = vmatpush.bf16.msrb.mxu0 %v1881_v53  ;;  %v1945_v60 = vpack.c.bf16 %v1633_v55, %v1629_v54  ;;  %v1493_v62 = vcvt.s32.f32 %v981_v56  ;;  %v1045_v63 = vunpack.c.0.s8 %v677_v25  ;;  %v1049_v0 = vunpack.c.1.s8 %v677_v25  ;;  %v606_v53 = vld [vmem:[%s4284_s18 + $0x50] sm:$0xff] }
  0xce   : > { %2232 = vmatpush.bf16.msrb.mxu1 %v1913_v57  ;;  %v1977_v2 = vpack.c.bf16 %v1697_v59, %v1693_v58  ;;  %v1497_v3 = vcvt.s32.f32 %v985_v61  ;;  %v1109_v4 = vunpack.c.0.s8 %v693_v33  ;;  %v1113_v5 = vunpack.c.1.s8 %v693_v33 }
  0xcf   : > { %2246 = vmatpush.bf16.msrb.mxu2 %v1945_v60  ;;  %v1557_v6 = vcvt.s32.f32 %v1045_v63  ;;  %v1561_v7 = vcvt.s32.f32 %v1049_v0  ;;  %v1173_v8 = vunpack.c.0.s8 %v709_v38  ;;  %v1177_v9 = vunpack.c.1.s8 %v709_v38 }
  0xd0   : > { %2260 = vmatpush.bf16.msrb.mxu3 %v1977_v2  ;;  %v1877_v11 = vpack.c.bf16 %v1497_v3, %v1493_v62  ;;  %v1621_v12 = vcvt.s32.f32 %v1109_v4  ;;  %v1625_v13 = vcvt.s32.f32 %v1113_v5  ;;  %v782_v14 = vunpack.c.2.s8 %v610_v1  ;;  %v622_v62 = vld [vmem:[%s4284_s18 + $0xd0] sm:$0xff] }
  0xd1   : > { %v1909_v16 = vpack.c.bf16 %v1561_v7, %v1557_v6  ;;  %v1685_v17 = vcvt.s32.f32 %v1173_v8  ;;  %v1689_v19 = vcvt.s32.f32 %v1177_v9  ;;  %v786_v20 = vunpack.c.3.s8 %v610_v1  ;;  %v638_v3 = vld [vmem:[%s4284_s18 + $0x150] sm:$0xff] }
  0xd2   : > { %2219 = vmatpush.bf16.msrb.mxu0 %v1877_v11  ;;  %v1941_v24 = vpack.c.bf16 %v1625_v13, %v1621_v12  ;;  %v1294_v25 = vcvt.s32.f32 %v782_v14  ;;  %v846_v27 = vunpack.c.2.s8 %v626_v10  ;;  %v850_v30 = vunpack.c.3.s8 %v626_v10  ;;  %v654_v8 = vld [vmem:[%s4284_s18 + $0x1d0] sm:$0xff] }
  0xd3   : > { %2233 = vmatpush.bf16.msrb.mxu1 %v1909_v16  ;;  %v1973_v31 = vpack.c.bf16 %v1689_v19, %v1685_v17  ;;  %v1298_v32 = vcvt.s32.f32 %v786_v20  ;;  %v910_v33 = vunpack.c.2.s8 %v642_v15  ;;  %v914_v34 = vunpack.c.3.s8 %v642_v15 }
  0xd4   : > { %2247 = vmatpush.bf16.msrb.mxu2 %v1941_v24  ;;  %v1358_v35 = vcvt.s32.f32 %v846_v27  ;;  %v1362_v36 = vcvt.s32.f32 %v850_v30  ;;  %v974_v37 = vunpack.c.2.s8 %v658_v22  ;;  %v978_v38 = vunpack.c.3.s8 %v658_v22 }
  0xd5   : > { %2261 = vmatpush.bf16.msrb.mxu3 %v1973_v31  ;;  %v1778_v40 = vpack.c.bf16 %v1298_v32, %v1294_v25  ;;  %v1422_v39 = vcvt.s32.f32 %v910_v33  ;;  %v1426_v41 = vcvt.s32.f32 %v914_v34  ;;  %2220 = vmatmul.bf16.vlgmr.msrb.gmra.mxu0 %v4381_v21  ;;  %v774_v42 = vunpack.c.0.s8 %v610_v1 }
  0xd6   : > { %v1810_v43 = vpack.c.bf16 %v1362_v36, %v1358_v35  ;;  %v1486_v44 = vcvt.s32.f32 %v974_v37  ;;  %v1490_v45 = vcvt.s32.f32 %v978_v38  ;;  %2234 = vmatmul.bf16.vlgmr.msrb.gmra.mxu1 %v4385_v28  ;;  %v778_v46 = vunpack.c.1.s8 %v610_v1 }
  0xd7   : > { %2268 = vmatpush.bf16.msra.mxu0 %v1778_v40  ;;  %v1842_v49 = vpack.c.bf16 %v1426_v41, %v1422_v39  ;;  %2248 = vmatmul.bf16.vlgmr.msrb.gmra.mxu2 %v4383_v26  ;;  %v1286_v50 = vcvt.s32.f32 %v774_v42  ;;  %v838_v51 = vunpack.c.0.s8 %v626_v10  ;;  %v842_v52 = vunpack.c.1.s8 %v626_v10  ;;  %v602_v40 = vld [vmem:[%s4284_s18 + $0x30] sm:$0xff] }
  0xd8   : > { %2282 = vmatpush.bf16.msra.mxu1 %v1810_v43  ;;  %v1874_v54 = vpack.c.bf16 %v1490_v45, %v1486_v44  ;;  %2262 = vmatmul.bf16.vlgmr.msrb.gmra.mxu3 %v4387_v29  ;;  %v1290_v55 = vcvt.s32.f32 %v778_v46  ;;  %v902_v56 = vunpack.c.0.s8 %v642_v15  ;;  %v906_v57 = vunpack.c.1.s8 %v642_v15 }
  0xd9   : > { %2296 = vmatpush.bf16.msra.mxu2 %v1842_v49  ;;  %v1350_v58 = vcvt.s32.f32 %v838_v51  ;;  %v1354_v59 = vcvt.s32.f32 %v842_v52  ;;  %v966_v61 = vunpack.c.0.s8 %v658_v22  ;;  %v970_v60 = vunpack.c.1.s8 %v658_v22 }
  0xda   : > { %2310 = vmatpush.bf16.msra.mxu3 %v1874_v54  ;;  %v1774_v63 = vpack.c.bf16 %v1290_v55, %v1286_v50  ;;  %v1414_v0 = vcvt.s32.f32 %v902_v56  ;;  %v1418_v1 = vcvt.s32.f32 %v906_v57  ;;  %v766_v2 = vunpack.c.2.s8 %v606_v53  ;;  %v618_v50 = vld [vmem:[%s4284_s18 + $0xb0] sm:$0xff] }
  0xdb   : > { %v1806_v4 = vpack.c.bf16 %v1354_v59, %v1350_v58  ;;  %v1478_v5 = vcvt.s32.f32 %v966_v61  ;;  %v1482_v6 = vcvt.s32.f32 %v970_v60  ;;  %v770_v7 = vunpack.c.3.s8 %v606_v53  ;;  %v634_v55 = vld [vmem:[%s4284_s18 + $0x130] sm:$0xff] }
  0xdc   : > { %2269 = vmatpush.bf16.msra.mxu0 %v1774_v63  ;;  %v1838_v9 = vpack.c.bf16 %v1418_v1, %v1414_v0  ;;  %v1278_v10 = vcvt.s32.f32 %v766_v2  ;;  %v830_v11 = vunpack.c.2.s8 %v622_v62  ;;  %v834_v12 = vunpack.c.3.s8 %v622_v62  ;;  %v650_v61 = vld [vmem:[%s4284_s18 + $0x1b0] sm:$0xff] }
  0xdd   : > { %2283 = vmatpush.bf16.msra.mxu1 %v1806_v4  ;;  %v1870_v13 = vpack.c.bf16 %v1482_v6, %v1478_v5  ;;  %v1282_v14 = vcvt.s32.f32 %v770_v7  ;;  %v894_v15 = vunpack.c.2.s8 %v638_v3  ;;  %v898_v16 = vunpack.c.3.s8 %v638_v3 }
  0xde   : > { %2297 = vmatpush.bf16.msra.mxu2 %v1838_v9  ;;  %v1342_v17 = vcvt.s32.f32 %v830_v11  ;;  %v1346_v19 = vcvt.s32.f32 %v834_v12  ;;  %v958_v20 = vunpack.c.2.s8 %v654_v8  ;;  %v962_v22 = vunpack.c.3.s8 %v654_v8 }
  0xdf   : > { %2311 = vmatpush.bf16.msra.mxu3 %v1870_v13  ;;  %v1770_v24 = vpack.c.bf16 %v1282_v14, %v1278_v10  ;;  %v1406_v25 = vcvt.s32.f32 %v894_v15  ;;  %v1410_v27 = vcvt.s32.f32 %v898_v16  ;;  %v758_v30 = vunpack.c.0.s8 %v606_v53 }
  0xe0   : > { %v1802_v31 = vpack.c.bf16 %v1346_v19, %v1342_v17  ;;  %v1470_v32 = vcvt.s32.f32 %v958_v20  ;;  %v1474_v33 = vcvt.s32.f32 %v962_v22  ;;  %v762_v34 = vunpack.c.1.s8 %v606_v53 }
  0xe1   : > { %2270 = vmatpush.bf16.msra.mxu0 %v1770_v24  ;;  %v1834_v35 = vpack.c.bf16 %v1410_v27, %v1406_v25  ;;  %v1270_v36 = vcvt.s32.f32 %v758_v30  ;;  %v822_v37 = vunpack.c.0.s8 %v622_v62  ;;  %v826_v38 = vunpack.c.1.s8 %v622_v62  ;;  %v598_v24 = vld [vmem:[%s4284_s18 + $0x10] sm:$0xff] }
  0xe2   : > { %2284 = vmatpush.bf16.msra.mxu1 %v1802_v31  ;;  %v1866_v39 = vpack.c.bf16 %v1474_v33, %v1470_v32  ;;  %v1274_v41 = vcvt.s32.f32 %v762_v34  ;;  %v886_v42 = vunpack.c.0.s8 %v638_v3  ;;  %v890_v43 = vunpack.c.1.s8 %v638_v3 }
  0xe3   : > { %2298 = vmatpush.bf16.msra.mxu2 %v1834_v35  ;;  %v1334_v44 = vcvt.s32.f32 %v822_v37  ;;  %v1338_v45 = vcvt.s32.f32 %v826_v38  ;;  %v950_v46 = vunpack.c.0.s8 %v654_v8  ;;  %v954_v49 = vunpack.c.1.s8 %v654_v8 }
  0xe4   : > { %2312 = vmatpush.bf16.msra.mxu3 %v1866_v39  ;;  %v1766_v51 = vpack.c.bf16 %v1274_v41, %v1270_v36  ;;  %v1398_v52 = vcvt.s32.f32 %v886_v42  ;;  %v1402_v53 = vcvt.s32.f32 %v890_v43  ;;  %v750_v54 = vunpack.c.2.s8 %v602_v40  ;;  %v614_v36 = vld [vmem:[%s4284_s18 + $0x90] sm:$0xff] }
  0xe5   : > { %v1798_v56 = vpack.c.bf16 %v1338_v45, %v1334_v44  ;;  %v1462_v57 = vcvt.s32.f32 %v950_v46  ;;  %v1466_v58 = vcvt.s32.f32 %v954_v49  ;;  %v754_v59 = vunpack.c.3.s8 %v602_v40  ;;  %v630_v41 = vld [vmem:[%s4284_s18 + $0x110] sm:$0xff] }
  0xe6   : > { %2271 = vmatpush.bf16.msra.mxu0 %v1766_v51  ;;  %v1830_v60 = vpack.c.bf16 %v1402_v53, %v1398_v52  ;;  %v1262_v62 = vcvt.s32.f32 %v750_v54  ;;  %v814_v63 = vunpack.c.2.s8 %v618_v50  ;;  %v818_v0 = vunpack.c.3.s8 %v618_v50  ;;  %v646_v46 = vld [vmem:[%s4284_s18 + $0x190] sm:$0xff] }
  0xe7   : > { %2285 = vmatpush.bf16.msra.mxu1 %v1798_v56  ;;  %v1862_v1 = vpack.c.bf16 %v1466_v58, %v1462_v57  ;;  %v1266_v2 = vcvt.s32.f32 %v754_v59  ;;  %v878_v3 = vunpack.c.2.s8 %v634_v55  ;;  %v882_v4 = vunpack.c.3.s8 %v634_v55 }
  0xe8   : > { %2299 = vmatpush.bf16.msra.mxu2 %v1830_v60  ;;  %v1326_v5 = vcvt.s32.f32 %v814_v63  ;;  %v1330_v6 = vcvt.s32.f32 %v818_v0  ;;  %v942_v7 = vunpack.c.2.s8 %v650_v61  ;;  %v946_v8 = vunpack.c.3.s8 %v650_v61 }
  0xe9   : > { %2313 = vmatpush.bf16.msra.mxu3 %v1862_v1  ;;  %v1762_v9 = vpack.c.bf16 %v1266_v2, %v1262_v62  ;;  %v1390_v10 = vcvt.s32.f32 %v878_v3  ;;  %v1394_v11 = vcvt.s32.f32 %v882_v4  ;;  %v742_v12 = vunpack.c.0.s8 %v602_v40 }
  0xea   : > { %v1794_v13 = vpack.c.bf16 %v1330_v6, %v1326_v5  ;;  %v1454_v14 = vcvt.s32.f32 %v942_v7  ;;  %v1458_v15 = vcvt.s32.f32 %v946_v8  ;;  %v746_v16 = vunpack.c.1.s8 %v602_v40 }
  0xeb   : > { %2272 = vmatpush.bf16.msra.mxu0 %v1762_v9  ;;  %v1826_v17 = vpack.c.bf16 %v1394_v11, %v1390_v10  ;;  %v1254_v19 = vcvt.s32.f32 %v742_v12  ;;  %v806_v20 = vunpack.c.0.s8 %v618_v50  ;;  %v810_v22 = vunpack.c.1.s8 %v618_v50  ;;  %v674_v9 = vld [vmem:[%s4284_s18 + $0x270] sm:$0xff] }
  0xec   : > { %2286 = vmatpush.bf16.msra.mxu1 %v1794_v13  ;;  %v1858_v25 = vpack.c.bf16 %v1458_v15, %v1454_v14  ;;  %v1258_v27 = vcvt.s32.f32 %v746_v16  ;;  %v870_v30 = vunpack.c.0.s8 %v634_v55  ;;  %v874_v31 = vunpack.c.1.s8 %v634_v55 }
  0xed   : > { %2300 = vmatpush.bf16.msra.mxu2 %v1826_v17  ;;  %v1318_v32 = vcvt.s32.f32 %v806_v20  ;;  %v1322_v33 = vcvt.s32.f32 %v810_v22  ;;  %v934_v34 = vunpack.c.0.s8 %v650_v61  ;;  %v938_v35 = vunpack.c.1.s8 %v650_v61 }
  0xee   : > { %2314 = vmatpush.bf16.msra.mxu3 %v1858_v25  ;;  %v1758_v37 = vpack.c.bf16 %v1258_v27, %v1254_v19  ;;  %v1382_v38 = vcvt.s32.f32 %v870_v30  ;;  %v1386_v40 = vcvt.s32.f32 %v874_v31  ;;  %v734_v39 = vunpack.c.2.s8 %v598_v24  ;;  %v690_v19 = vld [vmem:[%s4284_s18 + $0x2f0] sm:$0xff] }
  0xef   : > { %v1790_v42 = vpack.c.bf16 %v1322_v33, %v1318_v32  ;;  %v1446_v43 = vcvt.s32.f32 %v934_v34  ;;  %v1450_v44 = vcvt.s32.f32 %v938_v35  ;;  %v738_v45 = vunpack.c.3.s8 %v598_v24  ;;  %v706_v27 = vld [vmem:[%s4284_s18 + $0x370] sm:$0xff] }
  0xf0   : > { %2273 = vmatpush.bf16.msra.mxu0 %v1758_v37  ;;  %v1822_v49 = vpack.c.bf16 %v1386_v40, %v1382_v38  ;;  %v1246_v50 = vcvt.s32.f32 %v734_v39  ;;  %v798_v51 = vunpack.c.2.s8 %v614_v36  ;;  %v802_v52 = vunpack.c.3.s8 %v614_v36  ;;  %v722_v34 = vld [vmem:[%s4284_s18 + $0x3f0] sm:$0xff] }
  0xf1   : > { %2287 = vmatpush.bf16.msra.mxu1 %v1790_v42  ;;  %v1854_v53 = vpack.c.bf16 %v1450_v44, %v1446_v43  ;;  %v1250_v54 = vcvt.s32.f32 %v738_v45  ;;  %v862_v55 = vunpack.c.2.s8 %v630_v41  ;;  %v866_v56 = vunpack.c.3.s8 %v630_v41 }
  0xf2   : > { %2301 = vmatpush.bf16.msra.mxu2 %v1822_v49  ;;  %v1310_v57 = vcvt.s32.f32 %v798_v51  ;;  %v1314_v58 = vcvt.s32.f32 %v802_v52  ;;  %v926_v59 = vunpack.c.2.s8 %v646_v46  ;;  %v930_v61 = vunpack.c.3.s8 %v646_v46 }
  0xf3   : > { %2315 = vmatpush.bf16.msra.mxu3 %v1854_v53  ;;  %v1754_v60 = vpack.c.bf16 %v1250_v54, %v1246_v50  ;;  %v1374_v62 = vcvt.s32.f32 %v862_v55  ;;  %v1378_v63 = vcvt.s32.f32 %v866_v56  ;;  %v726_v0 = vunpack.c.0.s8 %v598_v24 }
  0xf4   : > { %v1786_v1 = vpack.c.bf16 %v1314_v58, %v1310_v57  ;;  %v1438_v2 = vcvt.s32.f32 %v926_v59  ;;  %v1442_v3 = vcvt.s32.f32 %v930_v61  ;;  %v730_v4 = vunpack.c.1.s8 %v598_v24 }
  0xf5   : > { %2274 = vmatpush.bf16.msra.mxu0 %v1754_v60  ;;  %v1818_v5 = vpack.c.bf16 %v1378_v63, %v1374_v62  ;;  %v1238_v6 = vcvt.s32.f32 %v726_v0  ;;  %v790_v7 = vunpack.c.0.s8 %v614_v36  ;;  %v794_v8 = vunpack.c.1.s8 %v614_v36  ;;  %v670_v60 = vld [vmem:[%s4284_s18 + $0x250] sm:$0xff] }
  0xf6   : > { %2288 = vmatpush.bf16.msra.mxu1 %v1786_v1  ;;  %v1850_v10 = vpack.c.bf16 %v1442_v3, %v1438_v2  ;;  %v1242_v11 = vcvt.s32.f32 %v730_v4  ;;  %v854_v12 = vunpack.c.0.s8 %v630_v41  ;;  %v858_v13 = vunpack.c.1.s8 %v630_v41 }
  0xf7   : > { %2302 = vmatpush.bf16.msra.mxu2 %v1818_v5  ;;  %v1302_v14 = vcvt.s32.f32 %v790_v7  ;;  %v1306_v15 = vcvt.s32.f32 %v794_v8  ;;  %v918_v16 = vunpack.c.0.s8 %v646_v46  ;;  %v922_v17 = vunpack.c.1.s8 %v646_v46 }
  0xf8   : > { %2316 = vmatpush.bf16.msra.mxu3 %v1850_v10  ;;  %v1750_v20 = vpack.c.bf16 %v1242_v11, %v1238_v6  ;;  %v1366_v22 = vcvt.s32.f32 %v854_v12  ;;  %v1370_v24 = vcvt.s32.f32 %v858_v13  ;;  %v1038_v25 = vunpack.c.2.s8 %v674_v9  ;;  %v686_v6 = vld [vmem:[%s4284_s18 + $0x2d0] sm:$0xff] }
  0xf9   : > { %v1782_v30 = vpack.c.bf16 %v1306_v15, %v1302_v14  ;;  %v1430_v31 = vcvt.s32.f32 %v918_v16  ;;  %v1434_v32 = vcvt.s32.f32 %v922_v17  ;;  %v1042_v33 = vunpack.c.3.s8 %v674_v9  ;;  %v702_v11 = vld [vmem:[%s4284_s18 + $0x350] sm:$0xff] }
  0xfa   : > { %2275 = vmatpush.bf16.msra.mxu0 %v1750_v20  ;;  %v1814_v35 = vpack.c.bf16 %v1370_v24, %v1366_v22  ;;  %v1550_v36 = vcvt.s32.f32 %v1038_v25  ;;  %v1102_v37 = vunpack.c.2.s8 %v690_v19  ;;  %v1106_v38 = vunpack.c.3.s8 %v690_v19  ;;  %v718_v16 = vld [vmem:[%s4284_s18 + $0x3d0] sm:$0xff] }
  0xfb   : > { %2289 = vmatpush.bf16.msra.mxu1 %v1782_v30  ;;  %v1846_v40 = vpack.c.bf16 %v1434_v32, %v1430_v31  ;;  %v1554_v39 = vcvt.s32.f32 %v1042_v33  ;;  %v1166_v41 = vunpack.c.2.s8 %v706_v27  ;;  %v1170_v42 = vunpack.c.3.s8 %v706_v27 }
  0xfc   : > { %2303 = vmatpush.bf16.msra.mxu2 %v1814_v35  ;;  %v1614_v43 = vcvt.s32.f32 %v1102_v37  ;;  %v1618_v44 = vcvt.s32.f32 %v1106_v38  ;;  %v1230_v45 = vunpack.c.2.s8 %v722_v34  ;;  %v1234_v46 = vunpack.c.3.s8 %v722_v34 }
  0xfd   : > { %2317 = vmatpush.bf16.msra.mxu3 %v1846_v40  ;;  %v1906_v49 = vpack.c.bf16 %v1554_v39, %v1550_v36  ;;  %v1678_v50 = vcvt.s32.f32 %v1166_v41  ;;  %v1682_v51 = vcvt.s32.f32 %v1170_v42  ;;  %v1030_v52 = vunpack.c.0.s8 %v674_v9  ;;  %2276 = vmatmul.bf16.vlgmr.msra.gmra.mxu0 %v4321_v18 }
  0xfe   : > { %v1938_v53 = vpack.c.bf16 %v1618_v44, %v1614_v43  ;;  %v1742_v54 = vcvt.s32.f32 %v1230_v45  ;;  %v1746_v55 = vcvt.s32.f32 %v1234_v46  ;;  %v1034_v56 = vunpack.c.1.s8 %v674_v9  ;;  %2290 = vmatmul.bf16.vlgmr.msra.gmra.mxu1 %v4339_v47 }
  0xff   : > { %2324 = vmatpush.bf16.msrb.mxu0 %v1906_v49  ;;  %v1970_v57 = vpack.c.bf16 %v1682_v51, %v1678_v50  ;;  %v1542_v58 = vcvt.s32.f32 %v1030_v52  ;;  %v1094_v59 = vunpack.c.0.s8 %v690_v19  ;;  %v1098_v61 = vunpack.c.1.s8 %v690_v19  ;;  %2304 = vmatmul.bf16.vlgmr.msra.gmra.mxu2 %v4324_v23  ;;  %v666_v49 = vld [vmem:[%s4284_s18 + $0x230] sm:$0xff] }
 0x100   : > { %2338 = vmatpush.bf16.msrb.mxu1 %v1938_v53  ;;  %v2002_v62 = vpack.c.bf16 %v1746_v55, %v1742_v54  ;;  %v1546_v63 = vcvt.s32.f32 %v1034_v56  ;;  %v1158_v0 = vunpack.c.0.s8 %v706_v27  ;;  %v1162_v1 = vunpack.c.1.s8 %v706_v27  ;;  %2318 = vmatmul.bf16.vlgmr.msra.gmra.mxu3 %v4341_v48 }
 0x101   : > { %2352 = vmatpush.bf16.msrb.mxu2 %v1970_v57  ;;  %v1606_v2 = vcvt.s32.f32 %v1094_v59  ;;  %v1610_v3 = vcvt.s32.f32 %v1098_v61  ;;  %v1222_v4 = vunpack.c.0.s8 %v722_v34  ;;  %v1226_v5 = vunpack.c.1.s8 %v722_v34 }
 0x102   : > { %2366 = vmatpush.bf16.msrb.mxu3 %v2002_v62  ;;  %v1902_v7 = vpack.c.bf16 %v1546_v63, %v1542_v58  ;;  %v1670_v8 = vcvt.s32.f32 %v1158_v0  ;;  %v1674_v9 = vcvt.s32.f32 %v1162_v1  ;;  %v1022_v10 = vunpack.c.2.s8 %v670_v60  ;;  %v682_v58 = vld [vmem:[%s4284_s18 + $0x2b0] sm:$0xff] }
 0x103   : > { %v1934_v12 = vpack.c.bf16 %v1610_v3, %v1606_v2  ;;  %v1734_v13 = vcvt.s32.f32 %v1222_v4  ;;  %v1738_v14 = vcvt.s32.f32 %v1226_v5  ;;  %v1026_v15 = vunpack.c.3.s8 %v670_v60  ;;  %v698_v63 = vld [vmem:[%s4284_s18 + $0x330] sm:$0xff] }
 0x104   : > { %2325 = vmatpush.bf16.msrb.mxu0 %v1902_v7  ;;  %v1966_v17 = vpack.c.bf16 %v1674_v9, %v1670_v8  ;;  %v1534_v19 = vcvt.s32.f32 %v1022_v10  ;;  %v1086_v20 = vunpack.c.2.s8 %v686_v6  ;;  %v1090_v22 = vunpack.c.3.s8 %v686_v6  ;;  %v714_v4 = vld [vmem:[%s4284_s18 + $0x3b0] sm:$0xff] }
 0x105   : > { %2339 = vmatpush.bf16.msrb.mxu1 %v1934_v12  ;;  %v1998_v24 = vpack.c.bf16 %v1738_v14, %v1734_v13  ;;  %v1538_v25 = vcvt.s32.f32 %v1026_v15  ;;  %v1150_v27 = vunpack.c.2.s8 %v702_v11  ;;  %v1154_v30 = vunpack.c.3.s8 %v702_v11 }
 0x106   : > { %2353 = vmatpush.bf16.msrb.mxu2 %v1966_v17  ;;  %v1598_v31 = vcvt.s32.f32 %v1086_v20  ;;  %v1602_v32 = vcvt.s32.f32 %v1090_v22  ;;  %v1214_v33 = vunpack.c.2.s8 %v718_v16  ;;  %v1218_v34 = vunpack.c.3.s8 %v718_v16 }
 0x107   : > { %2367 = vmatpush.bf16.msrb.mxu3 %v1998_v24  ;;  %v1898_v35 = vpack.c.bf16 %v1538_v25, %v1534_v19  ;;  %v1662_v36 = vcvt.s32.f32 %v1150_v27  ;;  %v1666_v37 = vcvt.s32.f32 %v1154_v30  ;;  %v1014_v38 = vunpack.c.0.s8 %v670_v60 }
 0x108   : > { %v1930_v40 = vpack.c.bf16 %v1602_v32, %v1598_v31  ;;  %v1726_v39 = vcvt.s32.f32 %v1214_v33  ;;  %v1730_v41 = vcvt.s32.f32 %v1218_v34  ;;  %v1018_v42 = vunpack.c.1.s8 %v670_v60 }
 0x109   : > { %2326 = vmatpush.bf16.msrb.mxu0 %v1898_v35  ;;  %v1962_v43 = vpack.c.bf16 %v1666_v37, %v1662_v36  ;;  %v1526_v44 = vcvt.s32.f32 %v1014_v38  ;;  %v1078_v45 = vunpack.c.0.s8 %v686_v6  ;;  %v1082_v46 = vunpack.c.1.s8 %v686_v6  ;;  %v662_v35 = vld [vmem:[%s4284_s18 + $0x210] sm:$0xff] }
 0x10a   : > { %2340 = vmatpush.bf16.msrb.mxu1 %v1930_v40  ;;  %v1994_v50 = vpack.c.bf16 %v1730_v41, %v1726_v39  ;;  %v1530_v51 = vcvt.s32.f32 %v1018_v42  ;;  %v1142_v52 = vunpack.c.0.s8 %v702_v11  ;;  %v1146_v53 = vunpack.c.1.s8 %v702_v11 }
 0x10b   : > { %2354 = vmatpush.bf16.msrb.mxu2 %v1962_v43  ;;  %v1590_v54 = vcvt.s32.f32 %v1078_v45  ;;  %v1594_v55 = vcvt.s32.f32 %v1082_v46  ;;  %v1206_v56 = vunpack.c.0.s8 %v718_v16  ;;  %v1210_v57 = vunpack.c.1.s8 %v718_v16 }
 0x10c   : > { %2368 = vmatpush.bf16.msrb.mxu3 %v1994_v50  ;;  %v1894_v59 = vpack.c.bf16 %v1530_v51, %v1526_v44  ;;  %v1654_v61 = vcvt.s32.f32 %v1142_v52  ;;  %v1658_v60 = vcvt.s32.f32 %v1146_v53  ;;  %v1006_v62 = vunpack.c.2.s8 %v666_v49  ;;  %v678_v44 = vld [vmem:[%s4284_s18 + $0x290] sm:$0xff] }
 0x10d   : > { %v1926_v0 = vpack.c.bf16 %v1594_v55, %v1590_v54  ;;  %v1718_v1 = vcvt.s32.f32 %v1206_v56  ;;  %v1722_v2 = vcvt.s32.f32 %v1210_v57  ;;  %v1010_v3 = vunpack.c.3.s8 %v666_v49  ;;  %v694_v51 = vld [vmem:[%s4284_s18 + $0x310] sm:$0xff] }
 0x10e   : > { %2327 = vmatpush.bf16.msrb.mxu0 %v1894_v59  ;;  %v1958_v5 = vpack.c.bf16 %v1658_v60, %v1654_v61  ;;  %v1518_v6 = vcvt.s32.f32 %v1006_v62  ;;  %v1070_v7 = vunpack.c.2.s8 %v682_v58  ;;  %v1074_v8 = vunpack.c.3.s8 %v682_v58  ;;  %v710_v56 = vld [vmem:[%s4284_s18 + $0x390] sm:$0xff] }
 0x10f   : > { %2341 = vmatpush.bf16.msrb.mxu1 %v1926_v0  ;;  %v1990_v9 = vpack.c.bf16 %v1722_v2, %v1718_v1  ;;  %v1522_v10 = vcvt.s32.f32 %v1010_v3  ;;  %v1134_v11 = vunpack.c.2.s8 %v698_v63  ;;  %v1138_v12 = vunpack.c.3.s8 %v698_v63  ;;  %v2053_v1 = vpop.f32.mrf.mxu0 }
 0x110   : > { %2355 = vmatpush.bf16.msrb.mxu2 %v1958_v5  ;;  %v1582_v13 = vcvt.s32.f32 %v1070_v7  ;;  %v1586_v14 = vcvt.s32.f32 %v1074_v8  ;;  %v1198_v15 = vunpack.c.2.s8 %v714_v4  ;;  %v1202_v16 = vunpack.c.3.s8 %v714_v4 }
 0x111   : > { %2369 = vmatpush.bf16.msrb.mxu3 %v1990_v9  ;;  %v1890_v17 = vpack.c.bf16 %v1522_v10, %v1518_v6  ;;  %v1646_v19 = vcvt.s32.f32 %v1134_v11  ;;  %v1650_v20 = vcvt.s32.f32 %v1138_v12  ;;  %v998_v22 = vunpack.c.0.s8 %v666_v49  ;;  %v2067_v6 = vpop.f32.mrf.mxu1 }
 0x112   : > { %v1922_v24 = vpack.c.bf16 %v1586_v14, %v1582_v13  ;;  %v1710_v25 = vcvt.s32.f32 %v1198_v15  ;;  %v1714_v27 = vcvt.s32.f32 %v1202_v16  ;;  %v1002_v30 = vunpack.c.1.s8 %v666_v49 }
 0x113   : > { %2328 = vmatpush.bf16.msrb.mxu0 %v1890_v17  ;;  %v1954_v31 = vpack.c.bf16 %v1650_v20, %v1646_v19  ;;  %v1510_v32 = vcvt.s32.f32 %v998_v22  ;;  %v1062_v33 = vunpack.c.0.s8 %v682_v58  ;;  %v1066_v34 = vunpack.c.1.s8 %v682_v58  ;;  %v4474_v20 = vld [vmem:[%s4284_s18 + $0x78] sm:$0xff] }
 0x114   : > { %2342 = vmatpush.bf16.msrb.mxu1 %v1922_v24  ;;  %v1986_v36 = vpack.c.bf16 %v1714_v27, %v1710_v25  ;;  %v1514_v37 = vcvt.s32.f32 %v1002_v30  ;;  %v1126_v38 = vunpack.c.0.s8 %v698_v63  ;;  %v1130_v40 = vunpack.c.1.s8 %v698_v63 }
 0x115   : > { %2356 = vmatpush.bf16.msrb.mxu2 %v1954_v31  ;;  %v1574_v39 = vcvt.s32.f32 %v1062_v33  ;;  %v1578_v41 = vcvt.s32.f32 %v1066_v34  ;;  %v1190_v42 = vunpack.c.0.s8 %v714_v4  ;;  %v1194_v43 = vunpack.c.1.s8 %v714_v4  ;;  %v627_v34 = vld [vmem:[%s4284_s18 + $0xf8] sm:$0xff] }
 0x116   : > { %2370 = vmatpush.bf16.msrb.mxu3 %v1986_v36  ;;  %v1886_v45 = vpack.c.bf16 %v1514_v37, %v1510_v32  ;;  %v1638_v46 = vcvt.s32.f32 %v1126_v38  ;;  %v1642_v49 = vcvt.s32.f32 %v1130_v40  ;;  %v990_v50 = vunpack.c.2.s8 %v662_v35  ;;  %v643_v40 = vld [vmem:[%s4284_s18 + $0x178] sm:$0xff] }
 0x117   : > { %v1918_v52 = vpack.c.bf16 %v1578_v41, %v1574_v39  ;;  %v1702_v53 = vcvt.s32.f32 %v1190_v42  ;;  %v1706_v54 = vcvt.s32.f32 %v1194_v43  ;;  %v994_v55 = vunpack.c.3.s8 %v662_v35 }
 0x118   : > { %2329 = vmatpush.bf16.msrb.mxu0 %v1886_v45  ;;  %v1950_v57 = vpack.c.bf16 %v1642_v49, %v1638_v46  ;;  %v1502_v58 = vcvt.s32.f32 %v990_v50  ;;  %v1054_v59 = vunpack.c.2.s8 %v678_v44  ;;  %v1058_v61 = vunpack.c.3.s8 %v678_v44 }
 0x119   : > { %2343 = vmatpush.bf16.msrb.mxu1 %v1918_v52  ;;  %v1982_v60 = vpack.c.bf16 %v1706_v54, %v1702_v53  ;;  %v1506_v62 = vcvt.s32.f32 %v994_v55  ;;  %v1118_v63 = vunpack.c.2.s8 %v694_v51  ;;  %v1122_v0 = vunpack.c.3.s8 %v694_v51 }
 0x11a   : > { %2357 = vmatpush.bf16.msrb.mxu2 %v1950_v57  ;;  %v1566_v2 = vcvt.s32.f32 %v1054_v59  ;;  %v1570_v3 = vcvt.s32.f32 %v1058_v61  ;;  %v1182_v4 = vunpack.c.2.s8 %v710_v56  ;;  %v1186_v5 = vunpack.c.3.s8 %v710_v56 }
 0x11b   : > { %2371 = vmatpush.bf16.msrb.mxu3 %v1982_v60  ;;  %v1882_v7 = vpack.c.bf16 %v1506_v62, %v1502_v58  ;;  %v1630_v8 = vcvt.s32.f32 %v1118_v63  ;;  %v1634_v9 = vcvt.s32.f32 %v1122_v0  ;;  %v2068_v10 = vadd.f32 %v2067_v6, %v2053_v1  ;;  %v2081_v63 = vpop.f32.mrf.mxu2  ;;  %v2055_v0 = vpop.f32.mrf.mxu0 }
 0x11c   : > { %v1914_v11 = vpack.c.bf16 %v1570_v3, %v1566_v2  ;;  %v1694_v12 = vcvt.s32.f32 %v1182_v4  ;;  %v1698_v13 = vcvt.s32.f32 %v1186_v5  ;;  %v982_v14 = vunpack.c.0.s8 %v662_v35 }
 0x11d   : > { %2330 = vmatpush.bf16.msrb.mxu0 %v1882_v7  ;;  %v1946_v15 = vpack.c.bf16 %v1634_v9, %v1630_v8  ;;  %v986_v16 = vunpack.c.1.s8 %v662_v35  ;;  %v1046_v17 = vunpack.c.0.s8 %v678_v44  ;;  %v1050_v19 = vunpack.c.1.s8 %v678_v44  ;;  %v659_v44 = vld [vmem:[%s4284_s18 + $0x1f8] sm:$0xff]  ;;  %v2095_v7 = vpop.f32.mrf.mxu3 }
 0x11e   : > { %2344 = vmatpush.bf16.msrb.mxu1 %v1914_v11  ;;  %v1978_v22 = vpack.c.bf16 %v1698_v13, %v1694_v12  ;;  %v1494_v24 = vcvt.s32.f32 %v982_v14  ;;  %v1110_v25 = vunpack.c.0.s8 %v694_v51  ;;  %v1114_v27 = vunpack.c.1.s8 %v694_v51  ;;  %v4487_v14 = vld [vmem:[%s4284_s18 + $0x58] sm:$0xff] }
 0x11f   : > { %2358 = vmatpush.bf16.msrb.mxu2 %v1946_v15  ;;  %v1498_v30 = vcvt.s32.f32 %v986_v16  ;;  %v1558_v31 = vcvt.s32.f32 %v1046_v17  ;;  %v1562_v32 = vcvt.s32.f32 %v1050_v19  ;;  %v1174_v33 = vunpack.c.0.s8 %v710_v56 }
 0x120   : > { %2372 = vmatpush.bf16.msrb.mxu3 %v1978_v22  ;;  %v1622_v36 = vcvt.s32.f32 %v1110_v25  ;;  %v1626_v35 = vcvt.s32.f32 %v1114_v27  ;;  %v1178_v37 = vunpack.c.1.s8 %v710_v56  ;;  %v783_v38 = vunpack.c.2.s8 %v4474_v20  ;;  %v2069_v22 = vpop.f32.mrf.mxu1 }
 0x121   : > { %v1878_v39 = vpack.c.bf16 %v1498_v30, %v1494_v24  ;;  %v1910_v41 = vpack.c.bf16 %v1562_v32, %v1558_v31  ;;  %v1686_v42 = vcvt.s32.f32 %v1174_v33  ;;  %v787_v43 = vunpack.c.3.s8 %v4474_v20  ;;  %v623_v30 = vld [vmem:[%s4284_s18 + $0xd8] sm:$0xff] }
 0x122   : > { %v1942_v45 = vpack.c.bf16 %v1626_v35, %v1622_v36  ;;  %v1690_v46 = vcvt.s32.f32 %v1178_v37  ;;  %v1295_v49 = vcvt.s32.f32 %v783_v38  ;;  %v847_v50 = vunpack.c.2.s8 %v627_v34  ;;  %v639_v36 = vld [vmem:[%s4284_s18 + $0x158] sm:$0xff] }
 0x123   : > { %2331 = vmatpush.bf16.msrb.mxu0 %v1878_v39  ;;  %2345 = vmatpush.bf16.msrb.mxu1 %v1910_v41  ;;  %v1299_v51 = vcvt.s32.f32 %v787_v43  ;;  %v851_v52 = vunpack.c.3.s8 %v627_v34  ;;  %v911_v53 = vunpack.c.2.s8 %v643_v40  ;;  %v915_v54 = vunpack.c.3.s8 %v643_v40  ;;  %v655_v39 = vld [vmem:[%s4284_s18 + $0x1d8] sm:$0xff] }
 0x124   : > { %2359 = vmatpush.bf16.msrb.mxu2 %v1942_v45  ;;  %v1974_v55 = vpack.c.bf16 %v1690_v46, %v1686_v42  ;;  %v1359_v56 = vcvt.s32.f32 %v847_v50  ;;  %v975_v57 = vunpack.c.2.s8 %v659_v44  ;;  %v979_v58 = vunpack.c.3.s8 %v659_v44 }
 0x125   : > { %v1779_v59 = vpack.c.bf16 %v1299_v51, %v1295_v49  ;;  %v1363_v61 = vcvt.s32.f32 %v851_v52  ;;  %v1423_v60 = vcvt.s32.f32 %v911_v53  ;;  %v1427_v62 = vcvt.s32.f32 %v915_v54 }
 0x126   : > { %2373 = vmatpush.bf16.msrb.mxu3 %v1974_v55  ;;  %v1487_v1 = vcvt.s32.f32 %v975_v57  ;;  %v1491_v2 = vcvt.s32.f32 %v979_v58  ;;  %v2082_v3 = vadd.f32 %v2081_v63, %v2068_v10  ;;  %2332 = vmatmul.bf16.vlgmr.msrb.gmra.mxu0 %v4381_v21  ;;  %v775_v4 = vunpack.c.0.s8 %v4474_v20  ;;  %v2083_v55 = vpop.f32.mrf.mxu2 }
 0x127   : > { %2380 = vmatpush.bf16.msra.mxu0 %v1779_v59  ;;  %v1811_v5 = vpack.c.bf16 %v1363_v61, %v1359_v56  ;;  %v1843_v6 = vpack.c.bf16 %v1427_v62, %v1423_v60  ;;  %2360 = vmatmul.bf16.vlgmr.msrb.gmra.mxu2 %v4383_v26  ;;  %v779_v8 = vunpack.c.1.s8 %v4474_v20  ;;  %v839_v9 = vunpack.c.0.s8 %v627_v34  ;;  %v2109_v56 = vpop.f32.mrf.mxu0 }
 0x128   : > { %v1875_v11 = vpack.c.bf16 %v1491_v2, %v1487_v1  ;;  %v2096_v12 = vadd.f32 %v2095_v7, %v2082_v3  ;;  %2346 = vmatmul.bf16.vlgmr.msrb.gmra.mxu1 %v4385_v28  ;;  %v1287_v13 = vcvt.s32.f32 %v775_v4  ;;  %v843_v10 = vunpack.c.1.s8 %v627_v34 }
 0x129   : > { %2394 = vmatpush.bf16.msra.mxu1 %v1811_v5  ;;  %2408 = vmatpush.bf16.msra.mxu2 %v1843_v6  ;;  %v1291_v15 = vcvt.s32.f32 %v779_v8  ;;  %v1351_v16 = vcvt.s32.f32 %v839_v9  ;;  %v903_v17 = vunpack.c.0.s8 %v643_v40  ;;  %v907_v19 = vunpack.c.1.s8 %v643_v40 }
 0x12a   : > { %2422 = vmatpush.bf16.msra.mxu3 %v1875_v11  ;;  %v1355_v20 = vcvt.s32.f32 %v843_v10  ;;  %v967_v24 = vunpack.c.0.s8 %v659_v44  ;;  %v971_v25 = vunpack.c.1.s8 %v659_v44  ;;  %v2070_v27 = vadd.f32 %v2069_v22, %v2055_v0  ;;  %v2097_v0 = vpop.f32.mrf.mxu3 }
 0x12b   : > { %2374 = vmatmul.bf16.vlgmr.msrb.gmra.mxu3 %v4387_v29  ;;  %v1775_v31 = vpack.c.bf16 %v1291_v15, %v1287_v13  ;;  %v1415_v32 = vcvt.s32.f32 %v903_v17  ;;  %v1419_v33 = vcvt.s32.f32 %v907_v19  ;;  %v767_v34 = vunpack.c.2.s8 %v4487_v14  ;;  %v2123_v15 = vpop.f32.mrf.mxu1 }
 0x12c   : > { %v1807_v35 = vpack.c.bf16 %v1355_v20, %v1351_v16  ;;  %v1479_v37 = vcvt.s32.f32 %v967_v24  ;;  %v1483_v38 = vcvt.s32.f32 %v971_v25  ;;  %v771_v40 = vunpack.c.3.s8 %v4487_v14  ;;  %v603_v16 = vld [vmem:[%s4284_s18 + $0x38] sm:$0xff] }
 0x12d   : > { %2381 = vmatpush.bf16.msra.mxu0 %v1775_v31  ;;  %v1839_v41 = vpack.c.bf16 %v1419_v33, %v1415_v32  ;;  %v1279_v42 = vcvt.s32.f32 %v767_v34  ;;  %v831_v43 = vunpack.c.2.s8 %v623_v30  ;;  %v835_v44 = vunpack.c.3.s8 %v623_v30  ;;  %v619_v20 = vld [vmem:[%s4284_s18 + $0xb8] sm:$0xff] }
 0x12e   : > { %2395 = vmatpush.bf16.msra.mxu1 %v1807_v35  ;;  %v1871_v45 = vpack.c.bf16 %v1483_v38, %v1479_v37  ;;  %v1283_v46 = vcvt.s32.f32 %v771_v40  ;;  %v895_v49 = vunpack.c.2.s8 %v639_v36  ;;  %v899_v50 = vunpack.c.3.s8 %v639_v36  ;;  %v4500_v24 = vld [vmem:[%s4284_s18 + $0x138] sm:$0xff] }
 0x12f   : > { %2409 = vmatpush.bf16.msra.mxu2 %v1839_v41  ;;  %v1343_v51 = vcvt.s32.f32 %v831_v43  ;;  %v1347_v52 = vcvt.s32.f32 %v835_v44  ;;  %v959_v53 = vunpack.c.2.s8 %v655_v39  ;;  %v963_v54 = vunpack.c.3.s8 %v655_v39  ;;  %v4503_v35 = vld [vmem:[%s4284_s18 + $0x1b8] sm:$0xff] }
 0x130   : > { %2423 = vmatpush.bf16.msra.mxu3 %v1871_v45  ;;  %v1771_v57 = vpack.c.bf16 %v1283_v46, %v1279_v42  ;;  %v1407_v58 = vcvt.s32.f32 %v895_v49  ;;  %v1411_v59 = vcvt.s32.f32 %v899_v50  ;;  %v2084_v61 = vadd.f32 %v2083_v55, %v2070_v27  ;;  %v2111_v45 = vpop.f32.mrf.mxu0 }
 0x131   : > { %v1803_v60 = vpack.c.bf16 %v1347_v52, %v1343_v51  ;;  %v1471_v62 = vcvt.s32.f32 %v959_v53  ;;  %v1475_v63 = vcvt.s32.f32 %v963_v54  ;;  %v2110_v1 = vadd.f32 %v2109_v56, %v2096_v12  ;;  %v2137_v52 = vpop.f32.mrf.mxu2 }
 0x132   : > { %2382 = vmatpush.bf16.msra.mxu0 %v1771_v57  ;;  %v1835_v2 = vpack.c.bf16 %v1411_v59, %v1407_v58  ;;  %v2098_v3 = vadd.f32 %v2097_v0, %v2084_v61  ;;  %v759_v4 = vunpack.c.0.s8 %v4487_v14  ;;  %v763_v5 = vunpack.c.1.s8 %v4487_v14  ;;  %v580_v61 = vld [vmem:[#allocation2 + $0x30] sm:$0xff] }
 0x133   : > { %2396 = vmatpush.bf16.msra.mxu1 %v1803_v60  ;;  %v1867_v6 = vpack.c.bf16 %v1475_v63, %v1471_v62  ;;  %v823_v7 = vunpack.c.0.s8 %v623_v30  ;;  %v827_v8 = vunpack.c.1.s8 %v623_v30  ;;  %v887_v9 = vunpack.c.0.s8 %v639_v36  ;;  %v2151_v60 = vpop.f32.mrf.mxu3 }
 0x134   : > { %2410 = vmatpush.bf16.msra.mxu2 %v1835_v2  ;;  %v1271_v11 = vcvt.s32.f32 %v759_v4  ;;  %v1275_v13 = vcvt.s32.f32 %v763_v5  ;;  %v891_v10 = vunpack.c.1.s8 %v639_v36  ;;  %v951_v12 = vunpack.c.0.s8 %v655_v39 }
 0x135   : > { %2424 = vmatpush.bf16.msra.mxu3 %v1867_v6  ;;  %v1335_v17 = vcvt.s32.f32 %v823_v7  ;;  %v1339_v19 = vcvt.s32.f32 %v827_v8  ;;  %v1399_v22 = vcvt.s32.f32 %v887_v9  ;;  %v955_v14 = vunpack.c.1.s8 %v655_v39  ;;  %v2125_v8 = vpop.f32.mrf.mxu1 }
 0x136   : > { %v1767_v25 = vpack.c.bf16 %v1275_v13, %v1271_v11  ;;  %v1403_v27 = vcvt.s32.f32 %v891_v10  ;;  %v1463_v30 = vcvt.s32.f32 %v951_v12  ;;  %v2124_v31 = vadd.f32 %v2123_v15, %v2110_v1  ;;  %v599_v10 = vld [vmem:[%s4284_s18 + $0x18] sm:$0xff] }
 0x137   : > { %v1799_v32 = vpack.c.bf16 %v1339_v19, %v1335_v17  ;;  %v1467_v33 = vcvt.s32.f32 %v955_v14  ;;  %v751_v34 = vunpack.c.2.s8 %v603_v16  ;;  %v755_v36 = vunpack.c.3.s8 %v603_v16  ;;  %v615_v19 = vld [vmem:[%s4284_s18 + $0x98] sm:$0xff] }
 0x138   : > { %2383 = vmatpush.bf16.msra.mxu0 %v1767_v25  ;;  %v1831_v37 = vpack.c.bf16 %v1403_v27, %v1399_v22  ;;  %v815_v38 = vunpack.c.2.s8 %v619_v20  ;;  %v819_v40 = vunpack.c.3.s8 %v619_v20  ;;  %v879_v41 = vunpack.c.2.s8 %v4500_v24  ;;  %v631_v27 = vld [vmem:[%s4284_s18 + $0x118] sm:$0xff] }
 0x139   : > { %2397 = vmatpush.bf16.msra.mxu1 %v1799_v32  ;;  %v1863_v39 = vpack.c.bf16 %v1467_v33, %v1463_v30  ;;  %v1263_v42 = vcvt.s32.f32 %v751_v34  ;;  %v1267_v43 = vcvt.s32.f32 %v755_v36  ;;  %v883_v44 = vunpack.c.3.s8 %v4500_v24  ;;  %v4517_v33 = vld [vmem:[%s4284_s18 + $0x198] sm:$0xff] }
 0x13a   : > { %2411 = vmatpush.bf16.msra.mxu2 %v1831_v37  ;;  %v1327_v46 = vcvt.s32.f32 %v815_v38  ;;  %v1331_v49 = vcvt.s32.f32 %v819_v40  ;;  %v1391_v50 = vcvt.s32.f32 %v879_v41  ;;  %v943_v51 = vunpack.c.2.s8 %v4503_v35 }
 0x13b   : > { %2425 = vmatpush.bf16.msra.mxu3 %v1863_v39  ;;  %v1763_v53 = vpack.c.bf16 %v1267_v43, %v1263_v42  ;;  %v1395_v54 = vcvt.s32.f32 %v883_v44  ;;  %v947_v55 = vunpack.c.3.s8 %v4503_v35  ;;  %v2138_v56 = vadd.f32 %v2137_v52, %v2124_v31  ;;  %v2139_v43 = vpop.f32.mrf.mxu2 }
 0x13c   : > { %v1795_v57 = vpack.c.bf16 %v1331_v49, %v1327_v46  ;;  %v1455_v58 = vcvt.s32.f32 %v943_v51  ;;  %v2112_v59 = vadd.f32 %v2111_v45, %v2098_v3  ;;  %v743_v62 = vunpack.c.0.s8 %v603_v16 }
 0x13d   : > { %2384 = vmatpush.bf16.msra.mxu0 %v1763_v53  ;;  %v1827_v63 = vpack.c.bf16 %v1395_v54, %v1391_v50  ;;  %v1459_v0 = vcvt.s32.f32 %v947_v55  ;;  %v2152_v1 = vadd.f32 %v2151_v60, %v2138_v56  ;;  %v747_v2 = vunpack.c.1.s8 %v603_v16  ;;  %v2153_v53 = vpop.f32.mrf.mxu3 }
 0x13e   : > { %2398 = vmatpush.bf16.msra.mxu1 %v1795_v57  ;;  %v1255_v4 = vcvt.s32.f32 %v743_v62  ;;  %v807_v5 = vunpack.c.0.s8 %v619_v20  ;;  %v811_v6 = vunpack.c.1.s8 %v619_v20  ;;  %v871_v7 = vunpack.c.0.s8 %v4500_v24 }
 0x13f   : > { %2412 = vmatpush.bf16.msra.mxu2 %v1827_v63  ;;  %v1859_v9 = vpack.c.bf16 %v1459_v0, %v1455_v58  ;;  %v2492_v3 = vadd.f32 %v2152_v1, %v580_v61  ;;  %v1259_v11 = vcvt.s32.f32 %v747_v2  ;;  %v875_v13 = vunpack.c.1.s8 %v4500_v24  ;;  %v584_v61 = vld [vmem:[#allocation2 + $0x8] sm:$0xff] }
 0x140   : > { %v1319_v12 = vcvt.s32.f32 %v807_v5  ;;  %v1323_v15 = vcvt.s32.f32 %v811_v6  ;;  %v1383_v16 = vcvt.s32.f32 %v871_v7  ;;  %v935_v17 = vunpack.c.0.s8 %v4503_v35 }
 0x141   : > { %2426 = vmatpush.bf16.msra.mxu3 %v1859_v9  ;;  %2500 = vst [vmem:[#allocation2 + $0x30] sm:$0xff] %v2492_v3  ;;  %v1759_v22 = vpack.c.bf16 %v1259_v11, %v1255_v4  ;;  %v1387_v14 = vcvt.s32.f32 %v875_v13  ;;  %v939_v20 = vunpack.c.1.s8 %v4503_v35  ;;  %v2126_v25 = vadd.f32 %v2125_v8, %v2112_v59  ;;  %v675_v4 = vld [vmem:[%s4284_s18 + $0x278] sm:$0xff] }
 0x142   : > { %v1791_v30 = vpack.c.bf16 %v1323_v15, %v1319_v12  ;;  %v1447_v31 = vcvt.s32.f32 %v935_v17  ;;  %v735_v32 = vunpack.c.2.s8 %v599_v10  ;;  %v739_v24 = vunpack.c.3.s8 %v599_v10  ;;  %v691_v9 = vld [vmem:[%s4284_s18 + $0x2f8] sm:$0xff] }
 0x143   : > { %2385 = vmatpush.bf16.msra.mxu0 %v1759_v22  ;;  %v1823_v34 = vpack.c.bf16 %v1387_v14, %v1383_v16  ;;  %v1451_v36 = vcvt.s32.f32 %v939_v20  ;;  %v799_v37 = vunpack.c.2.s8 %v615_v19  ;;  %v803_v38 = vunpack.c.3.s8 %v615_v19 }
 0x144   : > { %2399 = vmatpush.bf16.msra.mxu1 %v1791_v30  ;;  %v1247_v40 = vcvt.s32.f32 %v735_v32  ;;  %v1251_v41 = vcvt.s32.f32 %v739_v24  ;;  %v863_v39 = vunpack.c.2.s8 %v631_v27  ;;  %v867_v42 = vunpack.c.3.s8 %v631_v27 }
 0x145   : > { %2413 = vmatpush.bf16.msra.mxu2 %v1823_v34  ;;  %v1855_v35 = vpack.c.bf16 %v1451_v36, %v1447_v31  ;;  %v1311_v44 = vcvt.s32.f32 %v799_v37  ;;  %v1315_v45 = vcvt.s32.f32 %v803_v38  ;;  %v927_v46 = vunpack.c.2.s8 %v4517_v33 }
 0x146   : > { %v1755_v49 = vpack.c.bf16 %v1251_v41, %v1247_v40  ;;  %v1375_v50 = vcvt.s32.f32 %v863_v39  ;;  %v1379_v51 = vcvt.s32.f32 %v867_v42  ;;  %v931_v52 = vunpack.c.3.s8 %v4517_v33 }
 0x147   : > { %2427 = vmatpush.bf16.msra.mxu3 %v1855_v35  ;;  %v1787_v54 = vpack.c.bf16 %v1315_v45, %v1311_v44  ;;  %v1439_v55 = vcvt.s32.f32 %v927_v46  ;;  %v2140_v56 = vadd.f32 %v2139_v43, %v2126_v25  ;;  %v727_v57 = vunpack.c.0.s8 %v599_v10 }
 0x148   : > { %2386 = vmatpush.bf16.msra.mxu0 %v1755_v49  ;;  %v1819_v58 = vpack.c.bf16 %v1379_v51, %v1375_v50  ;;  %v1443_v59 = vcvt.s32.f32 %v931_v52  ;;  %v731_v60 = vunpack.c.1.s8 %v599_v10  ;;  %v791_v62 = vunpack.c.0.s8 %v615_v19 }
 0x149   : > { %2400 = vmatpush.bf16.msra.mxu1 %v1787_v54  ;;  %v2154_v63 = vadd.f32 %v2153_v53, %v2140_v56  ;;  %v1239_v0 = vcvt.s32.f32 %v727_v57  ;;  %v795_v1 = vunpack.c.1.s8 %v615_v19  ;;  %v855_v2 = vunpack.c.0.s8 %v631_v27  ;;  %v707_v19 = vld [vmem:[%s4284_s18 + $0x378] sm:$0xff] }
 0x14a   : > { %2414 = vmatpush.bf16.msra.mxu2 %v1819_v58  ;;  %v1851_v5 = vpack.c.bf16 %v1443_v59, %v1439_v55  ;;  %v1243_v6 = vcvt.s32.f32 %v731_v60  ;;  %v1303_v7 = vcvt.s32.f32 %v791_v62  ;;  %v859_v8 = vunpack.c.1.s8 %v631_v27  ;;  %v723_v27 = vld [vmem:[%s4284_s18 + $0x3f8] sm:$0xff] }
 0x14b   : > { %v2496_v3 = vadd.f32 %v2154_v63, %v584_v61  ;;  %v1307_v11 = vcvt.s32.f32 %v795_v1  ;;  %v1367_v13 = vcvt.s32.f32 %v855_v2  ;;  %v919_v10 = vunpack.c.0.s8 %v4517_v33  ;;  %v671_v55 = vld [vmem:[%s4284_s18 + $0x258] sm:$0xff] }
 0x14c   : > { %2428 = vmatpush.bf16.msra.mxu3 %v1851_v5  ;;  %v1751_v12 = vpack.c.bf16 %v1243_v6, %v1239_v0  ;;  %v1371_v15 = vcvt.s32.f32 %v859_v8  ;;  %v923_v16 = vunpack.c.1.s8 %v4517_v33  ;;  %v1039_v17 = vunpack.c.2.s8 %v675_v4  ;;  %v687_v62 = vld [vmem:[%s4284_s18 + $0x2d8] sm:$0xff] }
 0x14d   : > { %2504 = vst [vmem:[#allocation2 + $0x8] sm:$0xff] %v2496_v3  ;;  %v1783_v22 = vpack.c.bf16 %v1307_v11, %v1303_v7  ;;  %v1431_v14 = vcvt.s32.f32 %v919_v10  ;;  %v1043_v20 = vunpack.c.3.s8 %v675_v4  ;;  %v1103_v25 = vunpack.c.2.s8 %v691_v9  ;;  %v703_v2 = vld [vmem:[%s4284_s18 + $0x358] sm:$0xff] }
 0x14e   : > { %2387 = vmatpush.bf16.msra.mxu0 %v1751_v12  ;;  %v1815_v30 = vpack.c.bf16 %v1371_v15, %v1367_v13  ;;  %v1435_v31 = vcvt.s32.f32 %v923_v16  ;;  %v1551_v32 = vcvt.s32.f32 %v1039_v17  ;;  %v1107_v24 = vunpack.c.3.s8 %v691_v9  ;;  %v719_v8 = vld [vmem:[%s4284_s18 + $0x3d8] sm:$0xff] }
 0x14f   : > { %2401 = vmatpush.bf16.msra.mxu1 %v1783_v22  ;;  %v1555_v34 = vcvt.s32.f32 %v1043_v20  ;;  %v1615_v36 = vcvt.s32.f32 %v1103_v25  ;;  %v1167_v37 = vunpack.c.2.s8 %v707_v19  ;;  %v1171_v38 = vunpack.c.3.s8 %v707_v19 }
 0x150   : > { %2415 = vmatpush.bf16.msra.mxu2 %v1815_v30  ;;  %v1847_v33 = vpack.c.bf16 %v1435_v31, %v1431_v14  ;;  %v1619_v40 = vcvt.s32.f32 %v1107_v24  ;;  %v1231_v41 = vunpack.c.2.s8 %v723_v27  ;;  %v1235_v39 = vunpack.c.3.s8 %v723_v27  ;;  %v4535_v14 = vpop.f32.mrf.mxu0 }
 0x151   : > { %v1907_v42 = vpack.c.bf16 %v1555_v34, %v1551_v32  ;;  %v1679_v43 = vcvt.s32.f32 %v1167_v37  ;;  %v1683_v35 = vcvt.s32.f32 %v1171_v38  ;;  %v1031_v44 = vunpack.c.0.s8 %v675_v4  ;;  %2388 = vmatmul.bf16.vlgmr.msra.gmra.mxu0 %v4321_v18 }
 0x152   : > { %2429 = vmatpush.bf16.msra.mxu3 %v1847_v33  ;;  %v1939_v45 = vpack.c.bf16 %v1619_v40, %v1615_v36  ;;  %v1743_v46 = vcvt.s32.f32 %v1231_v41  ;;  %v1747_v49 = vcvt.s32.f32 %v1235_v39  ;;  %v1035_v50 = vunpack.c.1.s8 %v675_v4  ;;  %2402 = vmatmul.bf16.vlgmr.msra.gmra.mxu1 %v4339_v47  ;;  %v4537_v36 = vpop.f32.mrf.mxu1  ;;  %v667_v41 = vld [vmem:[%s4284_s18 + $0x238] sm:$0xff] }
 0x153   : > { %2436 = vmatpush.bf16.msrb.mxu0 %v1907_v42  ;;  %v1971_v51 = vpack.c.bf16 %v1683_v35, %v1679_v43  ;;  %v1543_v52 = vcvt.s32.f32 %v1031_v44  ;;  %v1095_v53 = vunpack.c.0.s8 %v691_v9  ;;  %v1099_v54 = vunpack.c.1.s8 %v691_v9  ;;  %2416 = vmatmul.bf16.vlgmr.msra.gmra.mxu2 %v4324_v23  ;;  %v4540_v44 = vpop.f32.mrf.mxu2 }
 0x154   : > { %2450 = vmatpush.bf16.msrb.mxu1 %v1939_v45  ;;  %v2003_v56 = vpack.c.bf16 %v1747_v49, %v1743_v46  ;;  %v1547_v18 = vcvt.s32.f32 %v1035_v50  ;;  %v1159_v57 = vunpack.c.0.s8 %v707_v19  ;;  %v1163_v58 = vunpack.c.1.s8 %v707_v19 }
 0x155   : > { %2464 = vmatpush.bf16.msrb.mxu2 %v1971_v51  ;;  %v1607_v59 = vcvt.s32.f32 %v1095_v53  ;;  %v1611_v61 = vcvt.s32.f32 %v1099_v54  ;;  %v1223_v47 = vunpack.c.0.s8 %v723_v27  ;;  %v1227_v60 = vunpack.c.1.s8 %v723_v27  ;;  %2430 = vmatmul.bf16.vlgmr.msra.gmra.mxu3 %v4341_v48  ;;  %v683_v51 = vld [vmem:[%s4284_s18 + $0x2b8] sm:$0xff] }
 0x156   : > { %2478 = vmatpush.bf16.msrb.mxu3 %v2003_v56  ;;  %v1903_v63 = vpack.c.bf16 %v1547_v18, %v1543_v52  ;;  %v1671_v0 = vcvt.s32.f32 %v1159_v57  ;;  %v1675_v23 = vcvt.s32.f32 %v1163_v58  ;;  %v1023_v1 = vunpack.c.2.s8 %v671_v55  ;;  %v699_v56 = vld [vmem:[%s4284_s18 + $0x338] sm:$0xff]  ;;  %v4544_v18 = vpop.f32.mrf.mxu3 }
 0x157   : > { %v1935_v4 = vpack.c.bf16 %v1611_v61, %v1607_v59  ;;  %v1735_v5 = vcvt.s32.f32 %v1223_v47  ;;  %v1739_v6 = vcvt.s32.f32 %v1227_v60  ;;  %v1027_v7 = vunpack.c.3.s8 %v671_v55  ;;  %v715_v47 = vld [vmem:[%s4284_s18 + $0x3b8] sm:$0xff] }
 0x158   : > { %2437 = vmatpush.bf16.msrb.mxu0 %v1903_v63  ;;  %v1967_v9 = vpack.c.bf16 %v1675_v23, %v1671_v0  ;;  %v1535_v3 = vcvt.s32.f32 %v1023_v1  ;;  %v1087_v11 = vunpack.c.2.s8 %v687_v62  ;;  %v1091_v13 = vunpack.c.3.s8 %v687_v62 }
 0x159   : > { %2451 = vmatpush.bf16.msrb.mxu1 %v1935_v4  ;;  %v1999_v10 = vpack.c.bf16 %v1739_v6, %v1735_v5  ;;  %v1539_v48 = vcvt.s32.f32 %v1027_v7  ;;  %v1151_v12 = vunpack.c.2.s8 %v703_v2  ;;  %v1155_v15 = vunpack.c.3.s8 %v703_v2 }
 0x15a   : > { %2465 = vmatpush.bf16.msrb.mxu2 %v1967_v9  ;;  %v1599_v16 = vcvt.s32.f32 %v1087_v11  ;;  %v1603_v17 = vcvt.s32.f32 %v1091_v13  ;;  %v1215_v19 = vunpack.c.2.s8 %v719_v8  ;;  %v1219_v22 = vunpack.c.3.s8 %v719_v8  ;;  %v4547_v9 = vpop.f32.mrf.mxu0 }
 0x15b   : > { %2479 = vmatpush.bf16.msrb.mxu3 %v1999_v10  ;;  %v1899_v20 = vpack.c.bf16 %v1539_v48, %v1535_v3  ;;  %v1663_v25 = vcvt.s32.f32 %v1151_v12  ;;  %v1667_v27 = vcvt.s32.f32 %v1155_v15  ;;  %v1015_v30 = vunpack.c.0.s8 %v671_v55 }
 0x15c   : > { %v1931_v31 = vpack.c.bf16 %v1603_v17, %v1599_v16  ;;  %v1727_v32 = vcvt.s32.f32 %v1215_v19  ;;  %v1731_v24 = vcvt.s32.f32 %v1219_v22  ;;  %v1019_v34 = vunpack.c.1.s8 %v671_v55  ;;  %v4549_v17 = vpop.f32.mrf.mxu1 }
 0x15d   : > { %2438 = vmatpush.bf16.msrb.mxu0 %v1899_v20  ;;  %v1963_v37 = vpack.c.bf16 %v1667_v27, %v1663_v25  ;;  %v1527_v38 = vcvt.s32.f32 %v1015_v30  ;;  %v1079_v33 = vunpack.c.0.s8 %v687_v62  ;;  %v1083_v40 = vunpack.c.1.s8 %v687_v62  ;;  %v4552_v27 = vld [vmem:[%s4284_s18 + $0x218] sm:$0xff] }
 0x15e   : > { %2452 = vmatpush.bf16.msrb.mxu1 %v1931_v31  ;;  %v1995_v39 = vpack.c.bf16 %v1731_v24, %v1727_v32  ;;  %v1531_v42 = vcvt.s32.f32 %v1019_v34  ;;  %v1143_v43 = vunpack.c.0.s8 %v703_v2  ;;  %v1147_v35 = vunpack.c.1.s8 %v703_v2  ;;  %v4554_v34 = vpop.f32.mrf.mxu2 }
 0x15f   : > { %2466 = vmatpush.bf16.msrb.mxu2 %v1963_v37  ;;  %v1591_v45 = vcvt.s32.f32 %v1079_v33  ;;  %v1595_v46 = vcvt.s32.f32 %v1083_v40  ;;  %v1207_v49 = vunpack.c.0.s8 %v719_v8  ;;  %v1211_v50 = vunpack.c.1.s8 %v719_v8 }
 0x160   : > { %2480 = vmatpush.bf16.msrb.mxu3 %v1995_v39  ;;  %v1895_v52 = vpack.c.bf16 %v1531_v42, %v1527_v38  ;;  %v1655_v53 = vcvt.s32.f32 %v1143_v43  ;;  %v1659_v54 = vcvt.s32.f32 %v1147_v35  ;;  %v1007_v55 = vunpack.c.2.s8 %v667_v41 }
 0x161   : > { %v1927_v57 = vpack.c.bf16 %v1595_v46, %v1591_v45  ;;  %v1719_v58 = vcvt.s32.f32 %v1207_v49  ;;  %v1723_v59 = vcvt.s32.f32 %v1211_v50  ;;  %v1011_v61 = vunpack.c.3.s8 %v667_v41  ;;  %v695_v45 = vld [vmem:[%s4284_s18 + $0x318] sm:$0xff]  ;;  %v4559_v46 = vpop.f32.mrf.mxu3 }
 0x162   : > { %2439 = vmatpush.bf16.msrb.mxu0 %v1895_v52  ;;  %v1959_v60 = vpack.c.bf16 %v1659_v54, %v1655_v53  ;;  %v1519_v62 = vcvt.s32.f32 %v1007_v55  ;;  %v1071_v63 = vunpack.c.2.s8 %v683_v51  ;;  %v1075_v0 = vunpack.c.3.s8 %v683_v51  ;;  %v711_v53 = vld [vmem:[%s4284_s18 + $0x398] sm:$0xff] }
 0x163   : > { %2453 = vmatpush.bf16.msrb.mxu1 %v1927_v57  ;;  %v1991_v23 = vpack.c.bf16 %v1723_v59, %v1719_v58  ;;  %v1523_v1 = vcvt.s32.f32 %v1011_v61  ;;  %v1135_v2 = vunpack.c.2.s8 %v699_v56  ;;  %v1139_v4 = vunpack.c.3.s8 %v699_v56 }
 0x164   : > { %2467 = vmatpush.bf16.msrb.mxu2 %v1959_v60  ;;  %v1583_v5 = vcvt.s32.f32 %v1071_v63  ;;  %v1587_v6 = vcvt.s32.f32 %v1075_v0  ;;  %v1199_v7 = vunpack.c.2.s8 %v715_v47  ;;  %v1203_v8 = vunpack.c.3.s8 %v715_v47 }
 0x165   : > { %2481 = vmatpush.bf16.msrb.mxu3 %v1991_v23  ;;  %v1891_v3 = vpack.c.bf16 %v1523_v1, %v1519_v62  ;;  %v1647_v11 = vcvt.s32.f32 %v1135_v2  ;;  %v1651_v13 = vcvt.s32.f32 %v1139_v4  ;;  %v999_v10 = vunpack.c.0.s8 %v667_v41  ;;  %v2221_v23 = vpop.f32.mrf.mxu0 }
 0x166   : > { %v1923_v48 = vpack.c.bf16 %v1587_v6, %v1583_v5  ;;  %v1711_v12 = vcvt.s32.f32 %v1199_v7  ;;  %v1715_v15 = vcvt.s32.f32 %v1203_v8  ;;  %v1003_v16 = vunpack.c.1.s8 %v667_v41  ;;  %v679_v41 = vld [vmem:[%s4284_s18 + $0x298] sm:$0xff] }
 0x167   : > { %2440 = vmatpush.bf16.msrb.mxu0 %v1891_v3  ;;  %v1955_v19 = vpack.c.bf16 %v1651_v13, %v1647_v11  ;;  %v1511_v22 = vcvt.s32.f32 %v999_v10  ;;  %v1063_v20 = vunpack.c.0.s8 %v683_v51  ;;  %v1067_v25 = vunpack.c.1.s8 %v683_v51  ;;  %v2235_v11 = vpop.f32.mrf.mxu1 }
 0x168   : > { %2454 = vmatpush.bf16.msrb.mxu1 %v1923_v48  ;;  %v1987_v30 = vpack.c.bf16 %v1715_v15, %v1711_v12  ;;  %v1515_v31 = vcvt.s32.f32 %v1003_v16  ;;  %v1127_v32 = vunpack.c.0.s8 %v699_v56  ;;  %v1131_v24 = vunpack.c.1.s8 %v699_v56 }
 0x169   : > { %2468 = vmatpush.bf16.msrb.mxu2 %v1955_v19  ;;  %v1575_v37 = vcvt.s32.f32 %v1063_v20  ;;  %v1579_v38 = vcvt.s32.f32 %v1067_v25  ;;  %v1191_v33 = vunpack.c.0.s8 %v715_v47  ;;  %v1195_v40 = vunpack.c.1.s8 %v715_v47  ;;  %v2249_v20 = vpop.f32.mrf.mxu2 }
 0x16a   : > { %2482 = vmatpush.bf16.msrb.mxu3 %v1987_v30  ;;  %v1887_v39 = vpack.c.bf16 %v1515_v31, %v1511_v22  ;;  %v1639_v42 = vcvt.s32.f32 %v1127_v32  ;;  %v1643_v43 = vcvt.s32.f32 %v1131_v24  ;;  %v991_v35 = vunpack.c.2.s8 %v4552_v27 }
 0x16b   : > { %v1919_v49 = vpack.c.bf16 %v1579_v38, %v1575_v37  ;;  %v1703_v50 = vcvt.s32.f32 %v1191_v33  ;;  %v1707_v51 = vcvt.s32.f32 %v1195_v40  ;;  %v995_v52 = vunpack.c.3.s8 %v4552_v27 }
 0x16c   : > { %2441 = vmatpush.bf16.msrb.mxu0 %v1887_v39  ;;  %v1951_v54 = vpack.c.bf16 %v1643_v43, %v1639_v42  ;;  %v1503_v55 = vcvt.s32.f32 %v991_v35  ;;  %v1055_v56 = vunpack.c.2.s8 %v679_v41  ;;  %v1059_v57 = vunpack.c.3.s8 %v679_v41 }
 0x16d   : > { %2455 = vmatpush.bf16.msrb.mxu1 %v1919_v49  ;;  %v1983_v58 = vpack.c.bf16 %v1707_v51, %v1703_v50  ;;  %v1507_v59 = vcvt.s32.f32 %v995_v52  ;;  %v1119_v61 = vunpack.c.2.s8 %v695_v45  ;;  %v1123_v47 = vunpack.c.3.s8 %v695_v45  ;;  %v2223_v50 = vpop.f32.mrf.mxu0 }
 0x16e   : > { %2469 = vmatpush.bf16.msrb.mxu2 %v1951_v54  ;;  %v1567_v60 = vcvt.s32.f32 %v1055_v56  ;;  %v1571_v62 = vcvt.s32.f32 %v1059_v57  ;;  %v1183_v63 = vunpack.c.2.s8 %v711_v53  ;;  %v1187_v0 = vunpack.c.3.s8 %v711_v53  ;;  %v585_v57 = vld [vmem:[#allocation2 + $0x20] sm:$0xff] }
 0x16f   : > { %2483 = vmatpush.bf16.msrb.mxu3 %v1983_v58  ;;  %v1883_v1 = vpack.c.bf16 %v1507_v59, %v1503_v55  ;;  %v1631_v2 = vcvt.s32.f32 %v1119_v61  ;;  %v1635_v4 = vcvt.s32.f32 %v1123_v47  ;;  %v2180_v5 = vadd.f32 %v4537_v36, %v4535_v14  ;;  %v2237_v52 = vpop.f32.mrf.mxu1 }
 0x170   : > { %v1915_v6 = vpack.c.bf16 %v1571_v62, %v1567_v60  ;;  %v1695_v7 = vcvt.s32.f32 %v1183_v63  ;;  %v1699_v8 = vcvt.s32.f32 %v1187_v0  ;;  %v983_v3 = vunpack.c.0.s8 %v4552_v27 }
 0x171   : > { %2442 = vmatpush.bf16.msrb.mxu0 %v1883_v1  ;;  %v1947_v13 = vpack.c.bf16 %v1635_v4, %v1631_v2  ;;  %v987_v10 = vunpack.c.1.s8 %v4552_v27  ;;  %v1047_v48 = vunpack.c.0.s8 %v679_v41  ;;  %v1051_v12 = vunpack.c.1.s8 %v679_v41  ;;  %v2263_v27 = vpop.f32.mrf.mxu3 }
 0x172   : > { %2456 = vmatpush.bf16.msrb.mxu1 %v1915_v6  ;;  %v1979_v15 = vpack.c.bf16 %v1699_v8, %v1695_v7  ;;  %v1495_v16 = vcvt.s32.f32 %v983_v3  ;;  %v1111_v19 = vunpack.c.0.s8 %v695_v45  ;;  %v1115_v22 = vunpack.c.1.s8 %v695_v45 }
 0x173   : > { %2470 = vmatpush.bf16.msrb.mxu2 %v1947_v13  ;;  %v1499_v14 = vcvt.s32.f32 %v987_v10  ;;  %v1559_v36 = vcvt.s32.f32 %v1047_v48  ;;  %v1563_v25 = vcvt.s32.f32 %v1051_v12  ;;  %v1175_v30 = vunpack.c.0.s8 %v711_v53  ;;  %v582_v48 = vld [vmem:[#allocation2 + $0x18] sm:$0xff] }
 0x174   : > { %2484 = vmatpush.bf16.msrb.mxu3 %v1979_v15  ;;  %v1623_v31 = vcvt.s32.f32 %v1111_v19  ;;  %v1627_v32 = vcvt.s32.f32 %v1115_v22  ;;  %v1179_v24 = vunpack.c.1.s8 %v711_v53  ;;  %v2194_v37 = vadd.f32 %v4540_v44, %v2180_v5 }
 0x175   : > { %v1879_v38 = vpack.c.bf16 %v1499_v14, %v1495_v16  ;;  %v1911_v33 = vpack.c.bf16 %v1563_v25, %v1559_v36  ;;  %v1687_v40 = vcvt.s32.f32 %v1175_v30  ;;  %v2182_v41 = vadd.f32 %v4549_v17, %v4547_v9  ;;  %v2251_v17 = vpop.f32.mrf.mxu2  ;;  %v586_v36 = vld [vmem:[#allocation2 + $0x28] sm:$0xff] }
 0x176   : > { %v1943_v39 = vpack.c.bf16 %v1627_v32, %v1623_v31  ;;  %v1691_v42 = vcvt.s32.f32 %v1179_v24  ;;  %v2208_v43 = vadd.f32 %v4544_v18, %v2194_v37 }
 0x177   : > { %2443 = vmatpush.bf16.msrb.mxu0 %v1879_v38  ;;  %2457 = vmatpush.bf16.msrb.mxu1 %v1911_v33  ;;  %v2196_v35 = vadd.f32 %v4554_v34, %v2182_v41  ;;  %v581_v34 = vld [vmem:[#allocation2] sm:$0xff] }
 0x178   : > { %2471 = vmatpush.bf16.msrb.mxu2 %v1943_v39  ;;  %v1975_v45 = vpack.c.bf16 %v1691_v42, %v1687_v40  ;;  %v2222_v49 = vadd.f32 %v2221_v23, %v2208_v43 }
 0x179   : > { %v2210_v44 = vadd.f32 %v4559_v46, %v2196_v35  ;;  %v2265_v55 = vpop.f32.mrf.mxu3 }
 0x17a   : > { %2485 = vmatpush.bf16.msrb.mxu3 %v1975_v45  ;;  %2444 = vmatmul.bf16.vlgmr.msrb.gmra.mxu0 %v4381_v21  ;;  %v2236_v51 = vadd.f32 %v2235_v11, %v2222_v49  ;;  %v2277_v59 = vpop.f32.mrf.mxu0 }
 0x17b   : > { %2458 = vmatmul.bf16.vlgmr.msrb.gmra.mxu1 %v4385_v28  ;;  %2472 = vmatmul.bf16.vlgmr.msrb.gmra.mxu2 %v4383_v26  ;;  %v2224_v18 = vadd.f32 %v2223_v50, %v2210_v44  ;;  %v2291_v28 = vpop.f32.mrf.mxu1 }
 0x17c   : > { %v2250_v9 = vadd.f32 %v2249_v20, %v2236_v51  ;;  %v2292_v26 = vadd.f32 %v2291_v28, %v2277_v59  ;;  %v587_v59 = vld [vmem:[#allocation2 + $0x38] sm:$0xff] }
 0x17d   : > { %2486 = vmatmul.bf16.vlgmr.msrb.gmra.mxu3 %v4387_v29  ;;  %v2238_v53 = vadd.f32 %v2237_v52, %v2224_v18 }
 0x17e   : > { %v2264_v54 = vadd.f32 %v2263_v27, %v2250_v9 }
 0x17f   : > { %v2252_v56 = vadd.f32 %v2251_v17, %v2238_v53 }
 0x180   : > { %v2493_v46 = vadd.f32 %v2264_v54, %v581_v34  ;;  %v583_v34 = vld [vmem:[#allocation2 + $0x10] sm:$0xff] }
 0x181   : > { %v2266_v58 = vadd.f32 %v2265_v55, %v2252_v56 }
 0x182   : > { %2501 = vst [vmem:[#allocation2] sm:$0xff] %v2493_v46  ;;  %v2305_v61 = vpop.f32.mrf.mxu2  ;;  %v2279_v47 = vpop.f32.mrf.mxu0 }
 0x183   : > { %v2497_v21 = vadd.f32 %v2266_v58, %v585_v57  ;;  %v2319_v60 = vpop.f32.mrf.mxu3  ;;  %v2293_v62 = vpop.f32.mrf.mxu1  ;;  %v2306_v63 = vadd.f32 %v2305_v61, %v2292_v26 }
 0x184   : > { %v2294_v23 = vadd.f32 %v2293_v62, %v2279_v47 }
 0x185   : > { %2505 = vst [vmem:[#allocation2 + $0x20] sm:$0xff] %v2497_v21  ;;  %v2320_v29 = vadd.f32 %v2319_v60, %v2306_v63 }
 0x18a   : > { %v2307_v0 = vpop.f32.mrf.mxu2 }
 0x18b   : > { %v2321_v2 = vpop.f32.mrf.mxu3  ;;  %v2308_v6 = vadd.f32 %v2307_v0, %v2294_v23 }
 0x18d   : > { %v2322_v3 = vadd.f32 %v2321_v2, %v2308_v6 }
 0x1a3   : > { %v2333_v1 = vpop.f32.mrf.mxu0 }
 0x1a4   : > { %v2334_v4 = vadd.f32 %v2333_v1, %v2320_v29 }
 0x1a5   : > { %v2347_v5 = vpop.f32.mrf.mxu1 }
 0x1a6   : > { %v2348_v7 = vadd.f32 %v2347_v5, %v2334_v4 }
 0x1aa   : > { %v2361_v8 = vpop.f32.mrf.mxu2 }
 0x1ab   : > { %v2362_v11 = vadd.f32 %v2361_v8, %v2348_v7  ;;  %v2335_v13 = vpop.f32.mrf.mxu0 }
 0x1ac   : > { %v2336_v10 = vadd.f32 %v2335_v13, %v2322_v3 }
 0x1ad   : > { %v2349_v15 = vpop.f32.mrf.mxu1 }
 0x1ae   : > { %v2375_v12 = vpop.f32.mrf.mxu3  ;;  %v2350_v22 = vadd.f32 %v2349_v15, %v2336_v10 }
 0x1af   : > { %v2376_v16 = vadd.f32 %v2375_v12, %v2362_v11 }
 0x1b1   : > { %v2494_v19 = vadd.f32 %v2376_v16, %v582_v48 }
 0x1b2   : > { %v2363_v20 = vpop.f32.mrf.mxu2 }
 0x1b3   : > { %2502 = vst [vmem:[#allocation2 + $0x18] sm:$0xff] %v2494_v19  ;;  %v2364_v14 = vadd.f32 %v2363_v20, %v2350_v22 }
 0x1b6   : > { %v2377_v25 = vpop.f32.mrf.mxu3 }
 0x1b7   : > { %v2378_v30 = vadd.f32 %v2377_v25, %v2364_v14 }
 0x1b9   : > { %v2498_v31 = vadd.f32 %v2378_v30, %v586_v36 }
 0x1bb   : > { %2506 = vst [vmem:[#allocation2 + $0x28] sm:$0xff] %v2498_v31 }
 0x1ce   : > { %v2389_v32 = vpop.f32.mrf.mxu0 }
 0x1cf   : > { %v2403_v24 = vpop.f32.mrf.mxu1 }
 0x1d0   : > { %v2404_v38 = vadd.f32 %v2403_v24, %v2389_v32 }
 0x1d6   : > { %v2417_v37 = vpop.f32.mrf.mxu2  ;;  %v2391_v33 = vpop.f32.mrf.mxu0 }
 0x1d7   : > { %v2405_v40 = vpop.f32.mrf.mxu1  ;;  %v2418_v41 = vadd.f32 %v2417_v37, %v2404_v38 }
 0x1d8   : > { %v2431_v27 = vpop.f32.mrf.mxu3  ;;  %v2406_v43 = vadd.f32 %v2405_v40, %v2391_v33 }
 0x1d9   : > { %v2432_v42 = vadd.f32 %v2431_v27, %v2418_v41 }
 0x1de   : > { %v2419_v39 = vpop.f32.mrf.mxu2 }
 0x1df   : > { %v2420_v44 = vadd.f32 %v2419_v39, %v2406_v43 }
 0x1e0   : > { %v2433_v45 = vpop.f32.mrf.mxu3 }
 0x1e1   : > { %v2434_v18 = vadd.f32 %v2433_v45, %v2420_v44 }
 0x1f7   : > { %v2445_v35 = vpop.f32.mrf.mxu0 }
 0x1f8   : > { %v2446_v49 = vadd.f32 %v2445_v35, %v2432_v42  ;;  %v2459_v50 = vpop.f32.mrf.mxu1 }
 0x1fa   : > { %v2460_v51 = vadd.f32 %v2459_v50, %v2446_v49 }
 0x1fe   : > { %v2473_v52 = vpop.f32.mrf.mxu2 }
 0x1ff   : > { %v2474_v9 = vadd.f32 %v2473_v52, %v2460_v51  ;;  %v2447_v17 = vpop.f32.mrf.mxu0 }
 0x200   : > { %v2487_v53 = vpop.f32.mrf.mxu3  ;;  %v2448_v55 = vadd.f32 %v2447_v17, %v2434_v18  ;;  %v2461_v46 = vpop.f32.mrf.mxu1 }
 0x201   : > { %v2488_v54 = vadd.f32 %v2487_v53, %v2474_v9 }
 0x202   : > { %v2462_v57 = vadd.f32 %v2461_v46, %v2448_v55 }
 0x203   : > { %v2495_v56 = vadd.f32 %v2488_v54, %v583_v34 }
 0x205   : > { %2503 = vst [vmem:[#allocation2 + $0x10] sm:$0xff] %v2495_v56 }
 0x206   : > { %v2475_v58 = vpop.f32.mrf.mxu2 }
 0x207   : > { %v2476_v21 = vadd.f32 %v2475_v58, %v2462_v57 }
 0x208   : > { %v2489_v28 = vpop.f32.mrf.mxu3 }
 0x209   : > { %v2490_v61 = vadd.f32 %v2489_v28, %v2476_v21  ;;  %2511 = sbr.rel (%p3569_p11) target bundleno = 1030 (0x406), region = 103 }
 0x20b   : > { %v2499_v26 = vadd.f32 %v2490_v61, %v587_v59 }
 0x20d   : > { %2507 = vst [vmem:[#allocation2 + $0x38] sm:$0xff] %v2499_v26 }
 0x20e   : > { %v3634_v47 = vld [vmem:[%s5137_s5 + $0x70] sm:$0xf]  ;;  %v3959_v60 = vld [vmem:[%s5137_s5 + $0x74] sm:$0xf0]  ;;  %v3626_v4 = vld [vmem:[%s5137_s5 + $0x60] sm:$0xf] }
 0x20f   : > { %v3698_v62 = vld [vmem:[%s5137_s5 + $0xf0] sm:$0xf]  ;;  %v3635_v63 = vor.u32 %v3959_v60, %v3634_v47  ;;  %v3975_v29 = vld [vmem:[%s5137_s5 + $0xf4] sm:$0xf0]  ;;  %v3957_v5 = vld [vmem:[%s5137_s5 + $0x64] sm:$0xf0] }
 0x210   : > { %v3762_v0 = vld [vmem:[%s5137_s5 + $0x170] sm:$0xf]  ;;  %v3991_v23 = vld [vmem:[%s5137_s5 + $0x174] sm:$0xf0]  ;;  %v3699_v1 = vor.u32 %v3975_v29, %v3698_v62  ;;  %v3690_v6 = vld [vmem:[%s5137_s5 + $0xe0] sm:$0xf]  ;;  %v3627_v7 = vor.u32 %v3957_v5, %v3626_v4 }
 0x211   : > { %v3763_v2 = vor.u32 %v3991_v23, %v3762_v0  ;;  %3017 = vmatpush.bf16.msra.mxu2 %v3635_v63  ;;  %v3973_v8 = vld [vmem:[%s5137_s5 + $0xe4] sm:$0xf0]  ;;  %v2634_v3 = vld [vmem:[%s5138_s6] sm:$0x77]  ;;  %v3618_v12 = vld [vmem:[%s5137_s5 + $0x50] sm:$0xf] }
 0x212   : > { %3031 = vmatpush.bf16.msra.mxu3 %v3699_v1  ;;  %v3691_v11 = vor.u32 %v3973_v8, %v3690_v6  ;;  %2636 = vst [vmem:[#allocation1] ss:$2 sm:$0xff] %v2634_v3  ;;  %v3754_v13 = vld [vmem:[%s5137_s5 + $0x160] sm:$0xf]  ;;  %v3989_v10 = vld [vmem:[%s5137_s5 + $0x164] sm:$0xf0] }
 0x213   : > { %3045 = vmatpush.bf16.msra.mxu0 %v3763_v2  ;;  %v3755_v48 = vor.u32 %v3989_v10, %v3754_v13  ;;  %v3955_v15 = vld [vmem:[%s5137_s5 + $0x54] sm:$0xf0]  ;;  %vm2646_vm0 = vcmask 1042432   ;;  %v3682_v16 = vld [vmem:[%s5137_s5 + $0xd0] sm:$0xf]  ;;  %v4650_v24 = vld [vmem:[%s5136_s4] sm:$0xff] }
 0x214   : > { %v3971_v19 = vld [vmem:[%s5137_s5 + $0xd4] sm:$0xf0]  ;;  %v3619_v22 = vor.u32 %v3955_v15, %v3618_v12  ;;  %v3826_v20 = vld [vmem:[%s5137_s5 + $0x1f0] sm:$0xf]  ;;  %v3610_v31 = vld [vmem:[%s5137_s5 + $0x40] sm:$0xf] }
 0x215   : > { %3018 = vmatpush.bf16.msra.mxu2 %v3627_v7  ;;  %v3746_v14 = vld [vmem:[%s5137_s5 + $0x150] sm:$0xf]  ;;  %v3987_v36 = vld [vmem:[%s5137_s5 + $0x154] sm:$0xf0]  ;;  %v3683_v25 = vor.u32 %v3971_v19, %v3682_v16  ;;  %v3953_v32 = vld [vmem:[%s5137_s5 + $0x44] sm:$0xf0] }
 0x216   : > { %3032 = vmatpush.bf16.msra.mxu3 %v3691_v11  ;;  %v4007_v30 = vld [vmem:[%s5137_s5 + $0x1f4] sm:$0xf0]  ;;  %vm2639_vm1 = vcmask 23552   ;;  %v3747_v37 = vor.u32 %v3987_v36, %v3746_v14  ;;  %v3674_v27 = vld [vmem:[%s5137_s5 + $0xc0] sm:$0xf]  ;;  %v3611_v35 = vor.u32 %v3953_v32, %v3610_v31  ;;  %v4713_v28 = vld [vmem:[%s5136_s4 + $0x8] sm:$0xff] }
 0x217   : > { %3046 = vmatpush.bf16.msra.mxu0 %v3755_v48  ;;  %v3969_v38 = vld [vmem:[%s5137_s5 + $0xc4] sm:$0xf0]  ;;  %v3818_v33 = vld [vmem:[%s5137_s5 + $0x1e0] sm:$0xf]  ;;  %v3827_v43 = vor.u32 %v4007_v30, %v3826_v20  ;;  %v3602_v50 = vld [vmem:[%s5137_s5 + $0x30] sm:$0xf] }
 0x218   : > { %v3738_v40 = vld [vmem:[%s5137_s5 + $0x140] sm:$0xf]  ;;  %v3985_v41 = vld [vmem:[%s5137_s5 + $0x144] sm:$0xf0]  ;;  %v3675_v45 = vor.u32 %v3969_v38, %v3674_v27  ;;  %v3951_v44 = vld [vmem:[%s5137_s5 + $0x34] sm:$0xf0] }
 0x219   : > { %v2637_v39 = vld.sshfl [vmem:[#allocation1] sm:$0xff pattern:$0x75316420]  ;;  %v2638_v42 = vld.sshfl [vmem:[#allocation1 + $0x8] sm:$0xff pattern:$0x75316420]  ;;  %3019 = vmatpush.bf16.msra.mxu2 %v3619_v22  ;;  %v3739_v51 = vor.u32 %v3985_v41, %v3738_v40  ;;  %v3603_v53 = vor.u32 %v3951_v44, %v3602_v50 }
 0x21a   : > { %3570 = vmatpush.msk.msra.mxu1 %vm2646_vm0, %v2637_v39  ;;  %3033 = vmatpush.bf16.msra.mxu3 %v3683_v25  ;;  %v4005_v49 = vld [vmem:[%s5137_s5 + $0x1e4] sm:$0xf0]  ;;  %v3666_v52 = vld [vmem:[%s5137_s5 + $0xb0] sm:$0xf]  ;;  %v3967_v18 = vld [vmem:[%s5137_s5 + $0xb4] sm:$0xf0] }
 0x21b   : > { %3047 = vmatpush.bf16.msra.mxu0 %v3747_v37  ;;  %3571 = vmatmul.msk.f32.vlgmr.msra.gmra.mxu1 %vm2639_vm1, %v4650_v24  ;;  %v3730_v9 = vld [vmem:[%s5137_s5 + $0x130] sm:$0xf]  ;;  %v3983_v17 = vld [vmem:[%s5137_s5 + $0x134] sm:$0xf0]  ;;  %v3819_v34 = vor.u32 %v4005_v49, %v3818_v33  ;;  %v3667_v55 = vor.u32 %v3967_v18, %v3666_v52  ;;  %v3594_v46 = vld [vmem:[%s5137_s5 + $0x20] sm:$0xf] }
 0x21c   : > { %3573 = vmatpush.msk.msrb.mxu1 %vm2646_vm0, %v2638_v42  ;;  %v3810_v54 = vld [vmem:[%s5137_s5 + $0x1d0] sm:$0xf]  ;;  %v4003_v56 = vld [vmem:[%s5137_s5 + $0x1d4] sm:$0xf0]  ;;  %v3949_v57 = vld [vmem:[%s5137_s5 + $0x24] sm:$0xf0]  ;;  %v3731_v58 = vor.u32 %v3983_v17, %v3730_v9 }
 0x21d   : > { %3020 = vmatpush.bf16.msra.mxu2 %v3611_v35  ;;  %v3658_v21 = vld [vmem:[%s5137_s5 + $0xa0] sm:$0xf]  ;;  %v3965_v59 = vld [vmem:[%s5137_s5 + $0xa4] sm:$0xf0]  ;;  %v3811_v47 = vor.u32 %v4003_v56, %v3810_v54  ;;  %v3595_v60 = vor.u32 %v3949_v57, %v3594_v46  ;;  %v3586_v29 = vld [vmem:[%s5137_s5 + $0x10] sm:$0xf] }
 0x21e   : > { %3059 = vmatpush.bf16.msra.mxu1 %v3827_v43  ;;  %3034 = vmatpush.bf16.msra.mxu3 %v3675_v45  ;;  %v3722_v61 = vld [vmem:[%s5137_s5 + $0x120] sm:$0xf]  ;;  %v3981_v26 = vld [vmem:[%s5137_s5 + $0x124] sm:$0xf0]  ;;  %v3659_v0 = vor.u32 %v3965_v59, %v3658_v21  ;;  %v3947_v23 = vld [vmem:[%s5137_s5 + $0x14] sm:$0xf0] }
 0x21f   : > { %3048 = vmatpush.bf16.msra.mxu0 %v3739_v51  ;;  %v3802_v62 = vld [vmem:[%s5137_s5 + $0x1c0] sm:$0xf]  ;;  %v4001_v63 = vld [vmem:[%s5137_s5 + $0x1c4] sm:$0xf0]  ;;  %v3650_v1 = vld [vmem:[%s5137_s5 + $0x90] sm:$0xf]  ;;  %v3723_v4 = vor.u32 %v3981_v26, %v3722_v61  ;;  %v3587_v10 = vor.u32 %v3947_v23, %v3586_v29 }
 0x220   : > { %v3963_v2 = vld [vmem:[%s5137_s5 + $0x94] sm:$0xf0]  ;;  %v3794_v5 = vld [vmem:[%s5137_s5 + $0x1b0] sm:$0xf]  ;;  %v3578_v3 = vld [vmem:[%s5137_s5] sm:$0xf]  ;;  %v3803_v13 = vor.u32 %v4001_v63, %v3802_v62 }
 0x221   : > { %3021 = vmatpush.bf16.msra.mxu2 %v3603_v53  ;;  %v3999_v6 = vld [vmem:[%s5137_s5 + $0x1b4] sm:$0xf0]  ;;  %v3714_v7 = vld [vmem:[%s5137_s5 + $0x110] sm:$0xf]  ;;  %v3945_v11 = vld [vmem:[%s5137_s5 + $0x4] sm:$0xf0]  ;;  %v3651_v22 = vor.u32 %v3963_v2, %v3650_v1 }
 0x222   : > { %3060 = vmatpush.bf16.msra.mxu1 %v3819_v34  ;;  %3035 = vmatpush.bf16.msra.mxu3 %v3667_v55  ;;  %v3979_v8 = vld [vmem:[%s5137_s5 + $0x114] sm:$0xf0]  ;;  %v3642_v48 = vld [vmem:[%s5137_s5 + $0x80] sm:$0xf]  ;;  %v3961_v12 = vld [vmem:[%s5137_s5 + $0x84] sm:$0xf0]  ;;  %v3795_v27 = vor.u32 %v3999_v6, %v3794_v5  ;;  %v3579_v39 = vor.u32 %v3945_v11, %v3578_v3 }
 0x223   : > { %3049 = vmatpush.bf16.msra.mxu0 %v3731_v58  ;;  %3572 = vmatmul.msk.f32.gmra.mxu1 %vm2639_vm1, %v4713_v28  ;;  %v3958_v15 = vld [vmem:[%s5137_s5 + $0x74] sm:$0xf]  ;;  %v3636_v16 = vld [vmem:[%s5137_s5 + $0x78] sm:$0xf0]  ;;  %v4774_v14 = vld [vmem:[%s5134_s2] sm:$0xf]  ;;  %v3715_v25 = vor.u32 %v3979_v8, %v3714_v7  ;;  %v3643_v44 = vor.u32 %v3961_v12, %v3642_v48 }
 0x224   : > { %v2512_v19 = vld [vmem:[#allocation2 + $0x30] sm:$0xff]  ;;  %v2516_v20 = vld [vmem:[#allocation2 + $0x8] sm:$0xff]  ;;  %v4779_v36 = vld [vmem:[%s5135_s3] sm:$0xf]  ;;  %v2522_v32 = vperm.slane %v4774_v14, 0  ;;  %v2523_v41 = vperm.slane %v4774_v14, 1  ;;  %v3639_v18 = vor.u32 %v3958_v15, %v3636_v16 }
 0x225   : > { %3022 = vmatpush.bf16.msra.mxu2 %v3595_v60  ;;  %v3974_v30 = vld [vmem:[%s5137_s5 + $0xf4] sm:$0xf]  ;;  %v3700_v31 = vld [vmem:[%s5137_s5 + $0xf8] sm:$0xf0]  ;;  %v2540_v37 = vperm.slane %v4779_v36, 0  ;;  %v2513_v40 = vld [vmem:[#allocation2] sm:$0xff] }
 0x226   : > { %3061 = vmatpush.bf16.msra.mxu1 %v3811_v47  ;;  %3036 = vmatpush.bf16.msra.mxu3 %v3659_v0  ;;  %v3706_v38 = vld [vmem:[%s5137_s5 + $0x100] sm:$0xf]  ;;  %v3977_v33 = vld [vmem:[%s5137_s5 + $0x104] sm:$0xf0]  ;;  %v2530_v42 = vmul.f32 %v2522_v32, %v2512_v19  ;;  %v2534_v43 = vmul.f32 %v2522_v32, %v2516_v20  ;;  %v3990_v35 = vld [vmem:[%s5137_s5 + $0x174] sm:$0xf]  ;;  %v2531_v9 = vmul.f32 %v2523_v41, %v2513_v40 }
 0x227   : > { %3050 = vmatpush.bf16.msra.mxu0 %v3723_v4  ;;  %v3764_v45 = vld [vmem:[%s5137_s5 + $0x178] sm:$0xf0]  ;;  %v2517_v49 = vld [vmem:[#allocation2 + $0x20] sm:$0xff]  ;;  %v2541_v50 = vperm.slane %v4779_v36, 1  ;;  %v3786_v51 = vld [vmem:[%s5137_s5 + $0x1a0] sm:$0xf]  ;;  %v3703_v34 = vor.u32 %v3974_v30, %v3700_v31  ;;  %v3707_v53 = vor.u32 %v3977_v33, %v3706_v38 }
 0x228   : > { %v3997_v52 = vld [vmem:[%s5137_s5 + $0x1a4] sm:$0xf0]  ;;  %v2535_v17 = vmul.f32 %v2523_v41, %v2517_v49  ;;  %v2548_v54 = vadd.f32 %v2540_v37, %v2530_v42  ;;  %v2552_v55 = vadd.f32 %v2540_v37, %v2534_v43  ;;  %v3956_v56 = vld [vmem:[%s5137_s5 + $0x64] sm:$0xf]  ;;  %v3628_v46 = vld [vmem:[%s5137_s5 + $0x68] sm:$0xf0]  ;;  %v3767_v57 = vor.u32 %v3990_v35, %v3764_v45 }
 0x229   : > { %3023 = vmatpush.bf16.msra.mxu2 %v3587_v10  ;;  %v4820_v58 = vld [vmem:[%s5137_s5 + $0x190] sm:$0xf]  ;;  %v2549_v21 = vadd.f32 %v2541_v50, %v2531_v9  ;;  %v3972_v61 = vld [vmem:[%s5137_s5 + $0xe4] sm:$0xf]  ;;  %v3692_v26 = vld [vmem:[%s5137_s5 + $0xe8] sm:$0xf0]  ;;  %v3787_v47 = vor.u32 %v3997_v52, %v3786_v51  ;;  %v3631_v1 = vor.u32 %v3956_v56, %v3628_v46 }
 0x22a   : > { %3062 = vmatpush.bf16.msra.mxu1 %v3803_v13  ;;  %3037 = vmatpush.bf16.msra.mxu3 %v3651_v22  ;;  %v2553_v59 = vadd.f32 %v2541_v50, %v2535_v17  ;;  %v2560_v60 = vmax.f32 %v2552_v55, 0.0  ;;  %v3988_v62 = vld [vmem:[%s5137_s5 + $0x164] sm:$0xf]  ;;  %v3756_v63 = vld [vmem:[%s5137_s5 + $0x168] sm:$0xf0]  ;;  %v3695_v5 = vor.u32 %v3972_v61, %v3692_v26  ;;  %v2518_v8 = vld [vmem:[#allocation2 + $0x28] sm:$0xff] }
 0x22b   : > { %3051 = vmatpush.bf16.msra.mxu0 %v3715_v25  ;;  %3574 = vmatmul.msk.f32.vlgmr.msrb.gmra.mxu1 %vm2639_vm1, %v4650_v24  ;;  %v2556_v24 = vmax.f32 %v2548_v54, 0.0  ;;  %v3995_v29 = vld [vmem:[%s5137_s5 + $0x194] sm:$0xf0]  ;;  %v2557_v0 = vmax.f32 %v2549_v21, 0.0  ;;  %v3954_v2 = vld [vmem:[%s5137_s5 + $0x54] sm:$0xf]  ;;  %v3759_v10 = vor.u32 %v3988_v62, %v3756_v63 }
 0x22c   : > { %v2561_v23 = vmax.f32 %v2553_v59, 0.0  ;;  %v3620_v6 = vld [vmem:[%s5137_s5 + $0x58] sm:$0xf0]  ;;  %v2514_v7 = vld [vmem:[#allocation2 + $0x18] sm:$0xff]  ;;  %v2524_v3 = vperm.slane %v4774_v14, 2  ;;  %v2542_v11 = vperm.slane %v4779_v36, 2  ;;  %v3779_v16 = vor.u32 %v3995_v29, %v4820_v58 }
 0x22d   : > { %3024 = vmatpush.bf16.msra.mxu2 %v3579_v39  ;;  %v4840_v4 = vpack.c.bf16 %v2560_v60, %v2556_v24  ;;  %v3770_v48 = vld [vmem:[%s5137_s5 + $0x180] sm:$0xf]  ;;  %v3970_v12 = vld [vmem:[%s5137_s5 + $0xd4] sm:$0xf]  ;;  %v3684_v15 = vld [vmem:[%s5137_s5 + $0xd8] sm:$0xf0]  ;;  %v3623_v31 = vor.u32 %v3954_v2, %v3620_v6 }
 0x22e   : > { %3063 = vmatpush.bf16.msra.mxu1 %v3795_v27  ;;  %3038 = vmatpush.bf16.msra.mxu3 %v3643_v44  ;;  %v4847_v13 = vpack.c.bf16 %v2561_v23, %v2557_v0  ;;  %v3993_v19 = vld [vmem:[%s5137_s5 + $0x184] sm:$0xf0]  ;;  %v3986_v22 = vld [vmem:[%s5137_s5 + $0x154] sm:$0xf]  ;;  %v3748_v20 = vld [vmem:[%s5137_s5 + $0x158] sm:$0xf0]  ;;  %v2532_v25 = vmul.f32 %v2524_v3, %v2514_v7  ;;  %v2536_v30 = vmul.f32 %v2524_v3, %v2518_v8 }
 0x22f   : > { %3052 = vmatpush.bf16.msra.mxu0 %v3707_v53  ;;  %v4006_v32 = vld [vmem:[%s5137_s5 + $0x1f4] sm:$0xf]  ;;  %v2515_v37 = vld [vmem:[#allocation2 + $0x10] sm:$0xff]  ;;  %v2519_v27 = vld [vmem:[#allocation2 + $0x38] sm:$0xff]  ;;  %v2525_v38 = vperm.slane %v4774_v14, 3  ;;  %v2543_v33 = vperm.slane %v4779_v36, 3  ;;  %v3687_v40 = vor.u32 %v3970_v12, %v3684_v15  ;;  %v3751_v14 = vor.u32 %v3986_v22, %v3748_v20 }
 0x230   : > { %3025 = vmatmul.bf16.vlgmr.msra.gmra.mxu2 %v4840_v4  ;;  %v3828_v41 = vld [vmem:[%s5137_s5 + $0x1f8] sm:$0xf0]  ;;  %v2550_v39 = vadd.f32 %v2542_v11, %v2532_v25  ;;  %v2554_v42 = vadd.f32 %v2542_v11, %v2536_v30  ;;  %v3952_v43 = vld [vmem:[%s5137_s5 + $0x44] sm:$0xf]  ;;  %v3612_v35 = vld [vmem:[%s5137_s5 + $0x48] sm:$0xf0]  ;;  %v3771_v44 = vor.u32 %v3993_v19, %v3770_v48 }
 0x231   : > { %3073 = vmatpush.bf16.msrb.mxu2 %v3639_v18  ;;  %3039 = vmatmul.bf16.vlgmr.msra.gmra.mxu3 %v4847_v13  ;;  %v3968_v36 = vld [vmem:[%s5137_s5 + $0xc4] sm:$0xf]  ;;  %v3676_v45 = vld [vmem:[%s5137_s5 + $0xc8] sm:$0xf0]  ;;  %v2533_v49 = vmul.f32 %v2525_v38, %v2515_v37  ;;  %v2537_v50 = vmul.f32 %v2525_v38, %v2519_v27  ;;  %v3831_v9 = vor.u32 %v4006_v32, %v3828_v41  ;;  %v3604_v58 = vld [vmem:[%s5137_s5 + $0x38] sm:$0xf0] }
 0x232   : > { %3087 = vmatpush.bf16.msrb.mxu3 %v3703_v34  ;;  %3064 = vmatpush.bf16.msra.mxu1 %v3787_v47  ;;  %v2558_v51 = vmax.f32 %v2550_v39, 0.0  ;;  %v2562_v52 = vmax.f32 %v2554_v42, 0.0  ;;  %v3740_v18 = vld [vmem:[%s5137_s5 + $0x148] sm:$0xf0]  ;;  %v3615_v17 = vor.u32 %v3952_v43, %v3612_v35  ;;  %v4004_v34 = vld [vmem:[%s5137_s5 + $0x1e4] sm:$0xf]  ;;  %v3679_v56 = vor.u32 %v3968_v36, %v3676_v45 }
 0x233   : > { %3101 = vmatpush.bf16.msrb.mxu0 %v3767_v57  ;;  %3575 = vmatmul.msk.f32.gmra.mxu1 %vm2639_vm1, %v4713_v28  ;;  %v3984_v28 = vld [vmem:[%s5137_s5 + $0x144] sm:$0xf]  ;;  %v2551_v53 = vadd.f32 %v2543_v33, %v2533_v49  ;;  %v2555_v54 = vadd.f32 %v2543_v33, %v2537_v50  ;;  %v3820_v46 = vld [vmem:[%s5137_s5 + $0x1e8] sm:$0xf0]  ;;  %v3950_v57 = vld [vmem:[%s5137_s5 + $0x34] sm:$0xf] }
 0x234   : > { %v4901_v55 = vpack.c.bf16 %v2562_v52, %v2558_v51  ;;  %v3743_v61 = vor.u32 %v3984_v28, %v3740_v18  ;;  %v3966_v26 = vld [vmem:[%s5137_s5 + $0xb4] sm:$0xf]  ;;  %v3668_v47 = vld [vmem:[%s5137_s5 + $0xb8] sm:$0xf0]  ;;  %v3823_v62 = vor.u32 %v4004_v34, %v3820_v46  ;;  %v3607_v29 = vor.u32 %v3950_v57, %v3604_v58  ;;  %v3948_v2 = vld [vmem:[%s5137_s5 + $0x24] sm:$0xf] }
 0x235   : > { %3074 = vmatpush.bf16.msrb.mxu2 %v3631_v1  ;;  %v2559_v21 = vmax.f32 %v2551_v53, 0.0  ;;  %v2563_v59 = vmax.f32 %v2555_v54, 0.0  ;;  %v3982_v24 = vld [vmem:[%s5137_s5 + $0x134] sm:$0xf]  ;;  %v3732_v60 = vld [vmem:[%s5137_s5 + $0x138] sm:$0xf0]  ;;  %v3671_v23 = vor.u32 %v3966_v26, %v3668_v47 }
 0x236   : > { %3088 = vmatpush.bf16.msrb.mxu3 %v3695_v5  ;;  %3065 = vmatpush.bf16.msra.mxu1 %v3779_v16  ;;  %v4002_v0 = vld [vmem:[%s5137_s5 + $0x1d4] sm:$0xf]  ;;  %v3812_v1 = vld [vmem:[%s5137_s5 + $0x1d8] sm:$0xf0]  ;;  %v3596_v5 = vld [vmem:[%s5137_s5 + $0x28] sm:$0xf0]  ;;  %v3735_v6 = vor.u32 %v3982_v24, %v3732_v60 }
 0x237   : > { %3102 = vmatpush.bf16.msrb.mxu0 %v3759_v10  ;;  %v4925_v63 = vpack.c.bf16 %v2563_v59, %v2559_v21  ;;  %v3964_v7 = vld [vmem:[%s5137_s5 + $0xa4] sm:$0xf]  ;;  %v3660_v8 = vld [vmem:[%s5137_s5 + $0xa8] sm:$0xf0]  ;;  %v3815_v10 = vor.u32 %v4002_v0, %v3812_v1  ;;  %v3599_v48 = vor.u32 %v3948_v2, %v3596_v5  ;;  %v3946_v19 = vld [vmem:[%s5137_s5 + $0x14] sm:$0xf] }
 0x238   : > { %3053 = vmatmul.bf16.vlgmr.msra.gmra.mxu0 %v4901_v55  ;;  %v3980_v3 = vld [vmem:[%s5137_s5 + $0x124] sm:$0xf]  ;;  %v3724_v11 = vld [vmem:[%s5137_s5 + $0x128] sm:$0xf0]  ;;  %v3663_v16 = vor.u32 %v3964_v7, %v3660_v8  ;;  %v3588_v22 = vld [vmem:[%s5137_s5 + $0x18] sm:$0xf0] }
 0x239   : > { %3075 = vmatpush.bf16.msrb.mxu2 %v3623_v31  ;;  %v4000_v12 = vld [vmem:[%s5137_s5 + $0x1c4] sm:$0xf]  ;;  %v3804_v15 = vld [vmem:[%s5137_s5 + $0x1c8] sm:$0xf0]  ;;  %v3962_v20 = vld [vmem:[%s5137_s5 + $0x94] sm:$0xf]  ;;  %v3727_v25 = vor.u32 %v3980_v3, %v3724_v11  ;;  %v3591_v27 = vor.u32 %v3946_v19, %v3588_v22 }
 0x23a   : > { %3089 = vmatpush.bf16.msrb.mxu3 %v3687_v40  ;;  %3066 = vmatpush.bf16.msra.mxu1 %v3771_v44  ;;  %v3652_v30 = vld [vmem:[%s5137_s5 + $0x98] sm:$0xf0]  ;;  %v3978_v31 = vld [vmem:[%s5137_s5 + $0x114] sm:$0xf]  ;;  %v3807_v37 = vor.u32 %v4000_v12, %v3804_v15  ;;  %v3944_v41 = vld [vmem:[%s5137_s5 + $0x4] sm:$0xf] }
 0x23b   : > { %3103 = vmatpush.bf16.msrb.mxu0 %v3751_v14  ;;  %v3716_v32 = vld [vmem:[%s5137_s5 + $0x118] sm:$0xf0]  ;;  %v3998_v38 = vld [vmem:[%s5137_s5 + $0x1b4] sm:$0xf]  ;;  %v3655_v33 = vor.u32 %v3962_v20, %v3652_v30  ;;  %v3580_v39 = vld [vmem:[%s5137_s5 + $0x8] sm:$0xf0] }
 0x23c   : > { %v3796_v40 = vld [vmem:[%s5137_s5 + $0x1b8] sm:$0xf0]  ;;  %v3719_v42 = vor.u32 %v3978_v31, %v3716_v32  ;;  %v3960_v43 = vld [vmem:[%s5137_s5 + $0x84] sm:$0xf]  ;;  %v3644_v35 = vld [vmem:[%s5137_s5 + $0x88] sm:$0xf0]  ;;  %v3583_v49 = vor.u32 %v3944_v41, %v3580_v39 }
 0x23d   : > { %3076 = vmatpush.bf16.msrb.mxu2 %v3615_v17  ;;  %3067 = vmatmul.bf16.vlgmr.msra.gmra.mxu1 %v4925_v63  ;;  %v3976_v14 = vld [vmem:[%s5137_s5 + $0x104] sm:$0xf]  ;;  %v3708_v36 = vld [vmem:[%s5137_s5 + $0x108] sm:$0xf0]  ;;  %v3799_v45 = vor.u32 %v3998_v38, %v3796_v40  ;;  %v3647_v50 = vor.u32 %v3960_v43, %v3644_v35  ;;  %v3994_v18 = vld [vmem:[%s5137_s5 + $0x194] sm:$0xf] }
 0x23e   : > { %3115 = vmatpush.bf16.msrb.mxu1 %v3831_v9  ;;  %3090 = vmatpush.bf16.msrb.mxu3 %v3679_v56  ;;  %v3996_v44 = vld [vmem:[%s5137_s5 + $0x1a4] sm:$0xf]  ;;  %v3788_v51 = vld [vmem:[%s5137_s5 + $0x1a8] sm:$0xf0]  ;;  %v3711_v52 = vor.u32 %v3976_v14, %v3708_v36  ;;  %v3780_v9 = vld [vmem:[%s5137_s5 + $0x198] sm:$0xf0] }
 0x23f   : > { %3104 = vmatpush.bf16.msrb.mxu0 %v3743_v61  ;;  %v3791_v28 = vor.u32 %v3996_v44, %v3788_v51  ;;  %v3783_v17 = vor.u32 %v3994_v18, %v3780_v9  ;;  %v3992_v34 = vld [vmem:[%s5137_s5 + $0x184] sm:$0xf]  ;;  %v3772_v53 = vld [vmem:[%s5137_s5 + $0x188] sm:$0xf0]  ;;  %v4011_v57 = vld [vmem:[%s5140_s8 + $0x18] sm:$0xff]  ;;  %vm3398_vm2 = vcmask 8192  }
 0x240   : > { %v3775_v54 = vor.u32 %v3992_v34, %v3772_v53  ;;  %v4012_v46 = vld [vmem:[%s5140_s8 + $0x20] sm:$0xff]  ;;  %v4010_v21 = vld [vmem:[%s5140_s8 + $0x10] sm:$0xff]  ;;  %v4009_v59 = vld [vmem:[%s5140_s8 + $0x8] sm:$0xff]  ;;  %vm3390_vm3 = vcmask 15360  }
 0x241   : > { %3077 = vmatpush.bf16.msrb.mxu2 %v3607_v29  ;;  %v4008_v26 = vld [vmem:[%s5140_s8] sm:$0xff]  ;;  %v4023_v47 = vld [vmem:[%s5140_s8 + $0x78] sm:$0xff]  ;;  %v4022_v24 = vld [vmem:[%s5140_s8 + $0x70] sm:$0xff] }
 0x242   : > { %3116 = vmatpush.bf16.msrb.mxu1 %v3823_v62  ;;  %3091 = vmatpush.bf16.msrb.mxu3 %v3671_v23  ;;  %v4021_v62 = vld [vmem:[%s5140_s8 + $0x68] sm:$0xff]  ;;  %v4020_v1 = vld [vmem:[%s5140_s8 + $0x60] sm:$0xff]  ;;  %v4018_v12 = vld [vmem:[%s5140_s8 + $0x50] sm:$0xff] }
 0x243   : > { %3105 = vmatpush.bf16.msrb.mxu0 %v3735_v6  ;;  %v4019_v6 = vld [vmem:[%s5140_s8 + $0x58] sm:$0xff]  ;;  %v3129_v8 = vld [vmem:[%s5139_s7] sm:$0x3] }
 0x244   : > { %v3132_v44 = vperm.slane %v3129_v8, 1 }
 0x245   : > { %3078 = vmatpush.bf16.msrb.mxu2 %v3599_v48 }
 0x246   : > { %3117 = vmatpush.bf16.msrb.mxu1 %v3815_v10  ;;  %3092 = vmatpush.bf16.msrb.mxu3 %v3663_v16  ;;  %v3131_v16 = vperm.slane %v3129_v8, 0 }
 0x247   : > { %3106 = vmatpush.bf16.msrb.mxu0 %v3727_v25  ;;  %v4017_v25 = vld [vmem:[%s5140_s8 + $0x48] sm:$0xff] }
 0x249   : > { %3079 = vmatpush.bf16.msrb.mxu2 %v3591_v27 }
 0x24a   : > { %3118 = vmatpush.bf16.msrb.mxu1 %v3807_v37  ;;  %3093 = vmatpush.bf16.msrb.mxu3 %v3655_v33  ;;  %v4016_v37 = vld [vmem:[%s5140_s8 + $0x40] sm:$0xff] }
 0x24b   : > { %3107 = vmatpush.bf16.msrb.mxu0 %v3719_v42 }
 0x24d   : > { %3080 = vmatpush.bf16.msrb.mxu2 %v3583_v49 }
 0x24e   : > { %3119 = vmatpush.bf16.msrb.mxu1 %v3799_v45  ;;  %3094 = vmatpush.bf16.msrb.mxu3 %v3647_v50 }
 0x24f   : > { %3108 = vmatpush.bf16.msrb.mxu0 %v3711_v52 }
 0x250   : > { %3081 = vmatmul.bf16.vlgmr.msrb.gmra.mxu2 %v4840_v4  ;;  %v4015_v4 = vld [vmem:[%s5140_s8 + $0x38] sm:$0xff] }
 0x251   : > { %3095 = vmatmul.bf16.vlgmr.msrb.gmra.mxu3 %v4847_v13  ;;  %3277 = vmatpush.bf16.msra.mxu2 %v4015_v4  ;;  %v4014_v13 = vld [vmem:[%s5140_s8 + $0x30] sm:$0xff] }
 0x252   : > { %3120 = vmatpush.bf16.msrb.mxu1 %v3791_v28  ;;  %3109 = vmatmul.bf16.vlgmr.msrb.gmra.mxu0 %v4901_v55  ;;  %v4013_v55 = vld [vmem:[%s5140_s8 + $0x28] sm:$0xff] }
 0x253   : > { %3291 = vmatpush.bf16.msra.mxu3 %v4023_v47  ;;  %v4080_v47 = vld [vmem:[%s5141_s9] ss:$0 sm:$0xff] }
 0x255   : > { %3278 = vmatpush.bf16.msra.mxu2 %v4014_v13  ;;  %v4031_v13 = vld [vmem:[%s5142_s10 + $0x38] sm:$0xff] }
 0x256   : > { %3121 = vmatpush.bf16.msrb.mxu1 %v3783_v17  ;;  %3376 = vmatpush.bf16.msra.mxu0 %v4031_v13 }
 0x257   : > { %3292 = vmatpush.bf16.msra.mxu3 %v4022_v24 }
 0x259   : > { %3279 = vmatpush.bf16.msra.mxu2 %v4013_v55  ;;  %v4030_v55 = vld [vmem:[%s5142_s10 + $0x30] sm:$0xff] }
 0x25a   : > { %3122 = vmatpush.bf16.msrb.mxu1 %v3775_v54  ;;  %3377 = vmatpush.bf16.msra.mxu0 %v4030_v55 }
 0x25b   : > { %3293 = vmatpush.bf16.msra.mxu3 %v4021_v62 }
 0x25d   : > { %3123 = vmatmul.bf16.vlgmr.msrb.gmra.mxu1 %v4925_v63  ;;  %3280 = vmatpush.bf16.msra.mxu2 %v4012_v46  ;;  %v4028_v46 = vld [vmem:[%s5142_s10 + $0x20] sm:$0xff] }
 0x25f   : > { %3294 = vmatpush.bf16.msra.mxu3 %v4020_v1 }
 0x261   : > { %3281 = vmatpush.bf16.msra.mxu2 %v4011_v57  ;;  %v4027_v57 = vld [vmem:[%s5142_s10 + $0x18] sm:$0xff] }
 0x263   : > { %3295 = vmatpush.bf16.msra.mxu3 %v4019_v6 }
 0x265   : > { %3282 = vmatpush.bf16.msra.mxu2 %v4010_v21  ;;  %v4025_v21 = vld [vmem:[%s5142_s10 + $0x8] sm:$0xff] }
 0x267   : > { %3296 = vmatpush.bf16.msra.mxu3 %v4018_v12 }
 0x269   : > { %3283 = vmatpush.bf16.msra.mxu2 %v4009_v59  ;;  %v4024_v59 = vld [vmem:[%s5142_s10] sm:$0xff] }
 0x26b   : > { %3297 = vmatpush.bf16.msra.mxu3 %v4017_v25 }
 0x26d   : > { %3284 = vmatpush.bf16.msra.mxu2 %v4008_v26 }
 0x26f   : > { %3298 = vmatpush.bf16.msra.mxu3 %v4016_v37 }
 0x298   : > { %v2668_v56 = vpop.f32.mrf.mxu1 }
 0x2a0   : > { %v2671_v58 = vpop.f32.mrf.mxu1 }
 0x2a8   : > { %v2691_v61 = vpop.f32.mrf.mxu1 }
 0x2b0   : > { %v2694_v60 = vpop.f32.mrf.mxu1 }
 0x2b3   : > { %v3026_v63 = vpop.f32.mrf.mxu2 }
 0x2b4   : > { %v3027_v29 = vadd.f32 %v3026_v63, %v2668_v56  ;;  %v3040_v0 = vpop.f32.mrf.mxu3  ;;  %v4029_v56 = vld [vmem:[%s5142_s10 + $0x28] sm:$0xff] }
 0x2b5   : > { %v3054_v23 = vpop.f32.mrf.mxu0  ;;  %3378 = vmatpush.bf16.msra.mxu0 %v4029_v56 }
 0x2b6   : > { %v3041_v2 = vadd.f32 %v3040_v0, %v3027_v29 }
 0x2b8   : > { %v3055_v7 = vadd.f32 %v3054_v23, %v3041_v2 }
 0x2b9   : > { %3379 = vmatpush.bf16.msra.mxu0 %v4028_v46 }
 0x2ba   : > { %v3068_v5 = vpop.f32.mrf.mxu1 }
 0x2bb   : > { %v3028_v3 = vpop.f32.mrf.mxu2  ;;  %v3069_v15 = vadd.f32 %v3068_v5, %v3055_v7  ;;  %v3393_v5 = vld [vmem:[%s5144_s12] sm:$0x1] }
 0x2bc   : > { %v3029_v11 = vadd.f32 %v3028_v3, %v2671_v58  ;;  %v3042_v10 = vpop.f32.mrf.mxu3  ;;  %v4026_v58 = vld [vmem:[%s5142_s10 + $0x10] sm:$0xff]  ;;  %v3394_v6 = vmax.f32 %v3393_v5, -20.0 }
 0x2bd   : > { %v3056_v48 = vpop.f32.mrf.mxu0  ;;  %v3135_v30 = vadd.f32 %v3131_v16, %v3069_v15  ;;  %3380 = vmatpush.bf16.msra.mxu0 %v4027_v57 }
 0x2be   : > { %v3043_v19 = vadd.f32 %v3042_v10, %v3029_v11  ;;  %v3395_v7 = vmin.f32 %v3394_v6, 2.0  ;;  %v4081_v11 = vld [vmem:[%s5143_s11] ss:$0 sm:$0xff] }
 0x2bf   : > { %v3139_v27 = vmax.f32 %v3135_v30, 0.0 }
 0x2c0   : > { %v3057_v22 = vadd.f32 %v3056_v48, %v3043_v19  ;;  %v3396_v8 = vmul.f32 1.442695, %v3395_v7 }
 0x2c1   : > { %3381 = vmatpush.bf16.msra.mxu0 %v4026_v58 }
 0x2c2   : > { %v3070_v20 = vpop.f32.mrf.mxu1  ;;  %4082 = vpow2.f32 %v3396_v8 }
 0x2c3   : > { %v3071_v31 = vadd.f32 %v3070_v20, %v3057_v22 }
 0x2c5   : > { %v3137_v32 = vadd.f32 %v3131_v16, %v3071_v31  ;;  %3382 = vmatpush.bf16.msra.mxu0 %v4025_v21 }
 0x2c7   : > { %v3141_v38 = vmax.f32 %v3137_v32, 0.0 }
 0x2c8   : > { %v4083_v3 = vpop.eup %4082 }
 0x2c9   : > { %v3143_v33 = vpack.c.bf16 %v3141_v38, %v3139_v27  ;;  %3383 = vmatpush.bf16.msra.mxu0 %v4024_v59  ;;  %3399 = vst.msk [vmem:[#allocation4] sm:$0x1] %vm3398_vm2, %v4083_v3 }
 0x2cb   : > { %3285 = vmatmul.bf16.vlgmr.msra.gmra.mxu2 %v3143_v33 }
 0x2cf   : > { %v3110_v42 = vpop.f32.mrf.mxu0 }
 0x2d3   : > { %v3082_v40 = vpop.f32.mrf.mxu2 }
 0x2d4   : > { %v3083_v41 = vadd.f32 %v3082_v40, %v2691_v61  ;;  %v3096_v39 = vpop.f32.mrf.mxu3 }
 0x2d6   : > { %v3097_v43 = vadd.f32 %v3096_v39, %v3083_v41 }
 0x2d7   : > { %v3112_v52 = vpop.f32.mrf.mxu0 }
 0x2d8   : > { %v3111_v14 = vadd.f32 %v3110_v42, %v3097_v43 }
 0x2da   : > { %v3124_v35 = vpop.f32.mrf.mxu1 }
 0x2db   : > { %v3084_v36 = vpop.f32.mrf.mxu2  ;;  %v3125_v50 = vadd.f32 %v3124_v35, %v3111_v14 }
 0x2dc   : > { %v3085_v45 = vadd.f32 %v3084_v36, %v2694_v60  ;;  %v3098_v49 = vpop.f32.mrf.mxu3 }
 0x2dd   : > { %v3136_v9 = vadd.f32 %v3132_v44, %v3125_v50 }
 0x2de   : > { %v3099_v51 = vadd.f32 %v3098_v49, %v3085_v45 }
 0x2df   : > { %v3140_v53 = vmax.f32 %v3136_v9, 0.0 }
 0x2e0   : > { %v3113_v28 = vadd.f32 %v3112_v52, %v3099_v51 }
 0x2e2   : > { %v3126_v18 = vpop.f32.mrf.mxu1 }
 0x2e3   : > { %v3127_v17 = vadd.f32 %v3126_v18, %v3113_v28 }
 0x2e5   : > { %v3138_v34 = vadd.f32 %v3132_v44, %v3127_v17 }
 0x2e7   : > { %v3142_v54 = vmax.f32 %v3138_v34, 0.0 }
 0x2e9   : > { %v3144_v4 = vpack.c.bf16 %v3142_v54, %v3140_v53 }
 0x2eb   : > { %3299 = vmatmul.bf16.vlgmr.msra.gmra.mxu3 %v3144_v4 }
 0x34e   : > { %v3286_v61 = vpop.f32.mrf.mxu2 }
 0x34f   : > { %v3287_v60 = vadd.f32 %v4080_v47, %v3286_v61 }
 0x356   : > { %v3288_v24 = vpop.f32.mrf.mxu2 }
 0x357   : > { %v3289_v62 = vadd.f32 %v4080_v47, %v3288_v24 }
 0x36e   : > { %v3300_v26 = vpop.f32.mrf.mxu3 }
 0x36f   : > { %v3301_v63 = vadd.f32 %v3300_v26, %v3287_v60 }
 0x371   : > { %v3305_v23 = vmax.f32 %v3301_v63, 0.0 }
 0x376   : > { %v3302_v29 = vpop.f32.mrf.mxu3 }
 0x377   : > { %v3303_v0 = vadd.f32 %v3302_v29, %v3289_v62 }
 0x379   : > { %v3306_v1 = vmax.f32 %v3303_v0, 0.0 }
 0x37b   : > { %v3307_v2 = vpack.c.bf16 %v3306_v1, %v3305_v23 }
 0x37d   : > { %3384 = vmatmul.bf16.vlgmr.msra.gmra.mxu0 %v3307_v2 }
 0x3fa   : > { %v3385_v10 = vpop.f32.mrf.mxu0 }
 0x3fb   : > { %v3386_v48 = vadd.f32 %v4081_v11, %v3385_v10 }
 0x3fd   : > { %3391 = vst.msk [vmem:[%s5145_s13] sm:$0xff] %vm3390_vm3, %v3386_v48 }
 0x402   : > { %v3387_v12 = vpop.f32.mrf.mxu0 }
 0x403   : > { %v3388_v15 = vadd.f32 %v4081_v11, %v3387_v12 }
 0x405   : > { %3392 = vst.msk [vmem:[%s5145_s13 + $0x8] sm:$0xff] %vm3390_vm3, %v3388_v15 }
 0x406 PF: > { %s5147_s26 = sadd.s32 4294967295, %s4154_s17   ;;  %s3417_s27 = sshll.u32 %s5146_s14, 4  ;;  %s3418_s27 = int_to_ptr.hbm [resolvable:$true] %s3417_s27 }
 0x407   : > { %p4036_p12 = scmp.eq.s32.totalorder %s5147_s26, 1  ;;  %s4157_s29 = smov [#allocation4]  }
 0x408   : > { %s3415_s28 = sshll.u32 %s4157_s29, 4  ;;  %s3416_s28 = int_to_ptr.vmem [resolvable:$true] %s3415_s28 }
 0x409   : > { %4033 = dma.vmem_to_hbm [thread:$0]  (%p4036_p12), %s3416_s28, 16, %s3418_s27, [#allocation5]  }
 0x40a   : > { %4133 = dma.done.wait (%p4036_p12), [#allocation5], 16  }
 0x40b   : > { %4135 = vsyncadd (%p4036_p12), [#allocation5], 4294967280 }
 0x40c PF: > { %s26_s17 = sadd.s32 1, %s4154_s17   ;;  %s5148_s29 = smov %s4142_s30 }
 0x40d   : > { %p23_p13 = scmp.ge.s32.totalorder %s26_s17, 4   ;;  %s5149_s30 = smov %s4269_s22 }
 0x40e   : > { %s5150_s15 = smov %s4150_s16  ;;  %s5151_s16 = smov %s5153_s19 }
 0x40f   :  { %25 = sbr.rel (!%p23_p13) target bundleno = 3 (0x3), region = 153 }
 0x414   :  { %3439 = vsyncpa [#allocation5], 1 }
 0x415   :  { %3441 = vsyncpa [#allocation5 + $0x1], 1 }

</bundles_post_ra>
